<compile_context>
chip_gen: v6e
topology: v6e:2x2x1
jax: 0.10.0
libtpu: 0.0.40
codegen_flags: <defaults>
</compile_context>

<pallas_src>
import functools
import numpy as np

import jax
import jax.numpy as jnp
from jax.experimental import pallas as pl
from jax.experimental.pallas import tpu as pltpu

EPS = 1e-5      # GroupNorm eps (PyTorch default)
LANE = 128      # TPU lane width; channel dims are padded to multiples of this

_STAGE_PARAM_NAMES = ("g1", "b1", "ls1", "g2", "b2", "ls2",
                      "fc1_w", "fc1_b", "fc2_w", "fc2_b")


def _round_up(x, m):
    return (x + m - 1) // m * m


def _gelu(x):
    # TODO(synk): PyTorch nn.GELU uses exact erf; tanh-approx GELU is used
    # since erf is not guaranteed to lower in Mosaic.
    return jax.nn.gelu(x, approximate=True)


# ---------------------------------------------------------------------------
# GEMM + bias (used for all conv-as-im2col projections)
# ---------------------------------------------------------------------------

def _matmul_bias_kernel(x_ref, w_ref, b_ref, o_ref):
    acc = jnp.dot(x_ref[...], w_ref[...], preferred_element_type=jnp.float32)
    o_ref[...] = (acc + b_ref[...]).astype(o_ref.dtype)


def matmul_bias(x, w, b, tm_max=256):
    """(M, K) @ (K, Nout) + b.  x, w bf16 (K a multiple of 128); acc/out f32.

    Row tile is adaptive: never pads a tiny M up to 256, and tries to expose
    >= 2 parallel grid steps so a v7x megacore can split the work.
    """
    M, K = x.shape
    K2, Nout = w.shape
    assert K == K2 and K % LANE == 0 and Nout % LANE == 0
    if M <= 8:
        tm = _round_up(M, 8)
    else:
        tm = min(tm_max, _round_up((M + 1) // 2, 8))
    Mp = _round_up(M, tm)
    if Mp != M:
        x = jnp.pad(x, ((0, Mp - M), (0, 0)))
    out = pl.pallas_call(
        _matmul_bias_kernel,
        grid=(Mp // tm,),
        in_specs=[pl.BlockSpec((tm, K), lambda i: (i, 0)),
                  pl.BlockSpec((K, Nout), lambda i: (0, 0)),
                  pl.BlockSpec((1, Nout), lambda i: (0, 0))],
        out_specs=pl.BlockSpec((tm, Nout), lambda i: (i, 0)),
        out_shape=jax.ShapeDtypeStruct((Mp, Nout), jnp.float32),
        compiler_params=pltpu.CompilerParams(
            dimension_semantics=("parallel",)),
    )(x, w, b.reshape(1, Nout))
    return out[:M]


def conv2d_pallas(x_nhwc, w_flat, bias, k, stride, pad):
    """x: (B,H,W,Cin) f32; w_flat: (Kp, CoutP) bf16 with Kp = roundup(k*k*Cin, 128)."""
    # TODO(synk): fold patch extraction into the Pallas GEMM (strided pl.ds
    # loads per M-tile) to avoid materializing im2col in HBM at large sizes.
    B, H, W, Cin = x_nhwc.shape
    Kp, CoutP = w_flat.shape
    xp = jnp.pad(x_nhwc, ((0, 0), (pad, pad), (pad, pad), (0, 0)))
    Ho = (H + 2 * pad - k) // stride + 1
    Wo = (W + 2 * pad - k) // stride + 1
    cols = []
    for i in range(k):
        for j in range(k):
            cols.append(xp[:, i:i + stride * Ho:stride,
                           j:j + stride * Wo:stride, :])        # (B, Ho, Wo, Cin)
    col = jnp.stack(cols, axis=3).reshape(B * Ho * Wo, k * k * Cin)
    Ktrue = k * k * Cin
    if Kp != Ktrue:                                             # 128-align K
        col = jnp.pad(col, ((0, 0), (0, Kp - Ktrue)))
    out = matmul_bias(col.astype(jnp.bfloat16), w_flat, bias)   # Pallas GEMM
    return out.reshape(B, Ho, Wo, CoutP)


# ---------------------------------------------------------------------------
# Fused stage kernel: all PoolFormerBlocks of a stage in one pallas_call
# ---------------------------------------------------------------------------

def _stage_kernel(x_ref, invc_ref, lm_ref, rm_ref,
                  g1_ref, b1_ref, ls1_ref, g2_ref, b2_ref, ls2_ref,
                  w1_ref, fb1_ref, w2_ref, fb2_ref, o_ref,
                  *, img_w, norm_count):
    """One PoolFormerBlock per grid step.  Grid = (batch, block); the residual
    lives in the (revisited) output block across the whole block axis."""
    @pl.when(pl.program_id(1) == 0)
    def _():
        o_ref[...] = x_ref[...]                 # seed residual at first block

    x = o_ref[0]                                # (N, CP) f32, resident in VMEM
    N, CP = x.shape
    W = img_w
    inv_cnt = 1.0 / norm_count

    # --- norm1: GroupNorm(1 group), fused sum/sumsq over the true N*C count
    #     (padded channels are exactly zero end-to-end) ----------------------
    mu = jnp.sum(x) * inv_cnt
    var = jnp.maximum(jnp.sum(x * x) * inv_cnt - mu * mu, 0.0)
    y = (x - mu) * jax.lax.rsqrt(var + EPS) * g1_ref[0] + b1_ref[0]

    # --- token mixer: AvgPool3x3(count_include_pad=False) - identity,
    #     separable 9-tap shifted-add on the flat (N=H*W, CP) tile -----------
    # TODO(synk): replace the concatenate shifts with pltpu.roll (XLU) once
    # sub-8-row sublane rotates are guaranteed to lower.
    zW = jnp.zeros((W, CP), jnp.float32)
    vert = y + jnp.concatenate([zW, y[:N - W]], axis=0) \
             + jnp.concatenate([y[W:], zW], axis=0)                   # 3-tap vertical
    z1 = jnp.zeros((1, CP), jnp.float32)
    mix = vert + lm_ref[...] * jnp.concatenate([z1, vert[:N - 1]], axis=0) \
               + rm_ref[...] * jnp.concatenate([vert[1:], z1], axis=0)
    mix = mix * invc_ref[...] - y
    x = x + ls1_ref[0] * mix                                          # layer-scale residual

    # --- norm2 ---------------------------------------------------------------
    mu = jnp.sum(x) * inv_cnt
    var = jnp.maximum(jnp.sum(x * x) * inv_cnt - mu * mu, 0.0)
    y2 = (x - mu) * jax.lax.rsqrt(var + EPS) * g2_ref[0] + b2_ref[0]

    # --- MLP (1x1 convs == per-token matmuls): bf16 MXU, f32 accumulate ------
    h = jnp.dot(y2.astype(jnp.bfloat16), w1_ref[0],
                preferred_element_type=jnp.float32) + fb1_ref[0]
    h = _gelu(h)
    m = jnp.dot(h.astype(jnp.bfloat16), w2_ref[0],
                preferred_element_type=jnp.float32) + fb2_ref[0]
    x = x + ls2_ref[0] * m                                            # layer-scale residual

    o_ref[0] = x


def poolformer_stage(x, aux, sp, img_w, norm_count):
    """x: (B, N, CP) f32, CP multiple of 128.  sp: per-stage params stacked
    along a leading num_blocks axis."""
    B, N, CP = x.shape
    nb = sp["g1"].shape[0]
    invc, lm, rm = aux

    def const_spec(a):
        nd = a.ndim
        return pl.BlockSpec(a.shape, lambda b, k, _nd=nd: (0,) * _nd)

    def blk_spec(a):
        nd = a.ndim
        return pl.BlockSpec((1,) + a.shape[1:],
                            lambda b, k, _nd=nd: (k,) + (0,) * (_nd - 1))

    stage_args = tuple(sp[n] for n in _STAGE_PARAM_NAMES)
    in_specs = ([pl.BlockSpec((1, N, CP), lambda b, k: (b, 0, 0))]
                + [const_spec(a) for a in (invc, lm, rm)]
                + [blk_spec(a) for a in stage_args])
    kern = functools.partial(_stage_kernel, img_w=img_w,
                             norm_count=float(norm_count))
    return pl.pallas_call(
        kern,
        grid=(B, nb),
        in_specs=in_specs,
        out_specs=pl.BlockSpec((1, N, CP), lambda b, k: (b, 0, 0)),
        out_shape=jax.ShapeDtypeStruct((B, N, CP), jnp.float32),
        compiler_params=pltpu.CompilerParams(
            dimension_semantics=("parallel", "arbitrary")),
    )(x, invc, lm, rm, *stage_args)


# ---------------------------------------------------------------------------
# Head: final GroupNorm + global average pool + Linear, whole batch at once
# ---------------------------------------------------------------------------

def _head_kernel(x_ref, g_ref, b_ref, w_ref, hb_ref, o_ref,
                 *, norm_count, n_tokens):
    B = x_ref.shape[0]
    inv_cnt = 1.0 / norm_count
    rows = []
    for bi in range(B):                      # static unroll, B is small
        xb = x_ref[bi]                       # (N, CP)
        mu = jnp.sum(xb) * inv_cnt
        var = jnp.maximum(jnp.sum(xb * xb) * inv_cnt - mu * mu, 0.0)
        yb = (xb - mu) * jax.lax.rsqrt(var + EPS) * g_ref[...] + b_ref[...]
        rows.append(jnp.sum(yb, axis=0, keepdims=True) * (1.0 / n_tokens))
    pooled = jnp.concatenate(rows, axis=0)   # (B, CP)
    logits = jnp.dot(pooled.astype(jnp.bfloat16), w_ref[...],
                     preferred_element_type=jnp.float32) + hb_ref[...]
    o_ref[...] = logits


def head_call(x, g, b, w, hb, norm_count):
    B, N, CP = x.shape
    NCp = w.shape[1]
    kern = functools.partial(_head_kernel, norm_count=float(norm_count),
                             n_tokens=float(N))
    return pl.pallas_call(
        kern,
        grid=(1,),
        in_specs=[pl.BlockSpec((B, N, CP), lambda i: (0, 0, 0)),
                  pl.BlockSpec((1, CP), lambda i: (0, 0)),
                  pl.BlockSpec((1, CP), lambda i: (0, 0)),
                  pl.BlockSpec((CP, NCp), lambda i: (0, 0)),
                  pl.BlockSpec((1, NCp), lambda i: (0, 0))],
        out_specs=pl.BlockSpec((B, NCp), lambda i: (0, 0)),
        out_shape=jax.ShapeDtypeStruct((B, NCp), jnp.float32),
    )(x, g, b, w, hb)


# ---------------------------------------------------------------------------
# Pooling auxiliaries (per-position 1/valid-count and left/right edge masks)
# ---------------------------------------------------------------------------

@functools.lru_cache(maxsize=None)
def _pool_aux(H, W):
    N = H * W
    inv = np.zeros((N, 1), np.float32)
    lm = np.zeros((N, 1), np.float32)
    rm = np.zeros((N, 1), np.float32)
    for i in range(H):
        rc = min(i + 1, H - 1) - max(i - 1, 0) + 1
        for j in range(W):
            cc = min(j + 1, W - 1) - max(j - 1, 0) + 1
            n = i * W + j
            inv[n, 0] = 1.0 / (rc * cc)
            lm[n, 0] = 1.0 if j > 0 else 0.0
            rm[n, 0] = 1.0 if j < W - 1 else 0.0
    return jnp.asarray(inv), jnp.asarray(lm), jnp.asarray(rm)


# ---------------------------------------------------------------------------
# Parameter init (deterministic, synthetic; channel-padded to 128 lanes,
# conv K pre-padded to 128-multiples; padded lanes are exactly zero)
# ---------------------------------------------------------------------------

def init_params(key, layers, embed_dims, mlp_ratios, downsamples, num_classes,
                in_patch_size=7, down_patch_size=3,
                layer_scale_init_value=1e-5):
    keys = iter(jax.random.split(key, 256))

    def nrm(shape):
        return 0.02 * jax.random.normal(next(keys), shape, jnp.float32)

    def pad2(a, r, c):
        return jnp.pad(a, ((0, r - a.shape[0]), (0, c - a.shape[1])))

    def conv_weight(k, cin, cout, coutp):
        w = nrm((k, k, cin, cout)).reshape(k * k * cin, cout)
        kp = _round_up(k * k * cin, LANE)
        return pad2(w, kp, coutp).astype(jnp.bfloat16)

    cps = [_round_up(c, LANE) for c in embed_dims]

    params = {
        "patch_embed": {"k": in_patch_size,
                        "w": conv_weight(in_patch_size, 3, embed_dims[0], cps[0]),
                        "b": jnp.zeros((cps[0],), jnp.float32)},
        "network": [],
    }
    for i, nb in enumerate(layers):
        C, CP = embed_dims[i], cps[i]
        Ch = int(C * mlp_ratios[i])
        ChP = _round_up(Ch, LANE)
        gamma = jnp.zeros((1, CP), jnp.float32).at[0, :C].set(1.0)
        ls = jnp.zeros((1, CP), jnp.float32).at[0, :C].set(layer_scale_init_value)
        zero = jnp.zeros((1, CP), jnp.float32)
        sp = {
            "g1": jnp.tile(gamma[None], (nb, 1, 1)),
            "b1": jnp.tile(zero[None], (nb, 1, 1)),
            "ls1": jnp.tile(ls[None], (nb, 1, 1)),
            "g2": jnp.tile(gamma[None], (nb, 1, 1)),
            "b2": jnp.tile(zero[None], (nb, 1, 1)),
            "ls2": jnp.tile(ls[None], (nb, 1, 1)),
            "fc1_w": jnp.stack([pad2(nrm((C, Ch)), CP, ChP)
                                for _ in range(nb)]).astype(jnp.bfloat16),
            "fc1_b": jnp.zeros((nb, 1, ChP), jnp.float32),
            "fc2_w": jnp.stack([pad2(nrm((Ch, C)), ChP, CP)
                                for _ in range(nb)]).astype(jnp.bfloat16),
            "fc2_b": jnp.zeros((nb, 1, CP), jnp.float32),
        }
        params["network"].append({"type": "stage", "c_true": C, "params": sp})
        if i >= len(layers) - 1:
            break
        if downsamples[i] or embed_dims[i] != embed_dims[i + 1]:
            Cn, CPn = embed_dims[i + 1], cps[i + 1]
            params["network"].append({
                "type": "down", "k": down_patch_size, "cin_true": C,
                "w": conv_weight(down_patch_size, C, Cn, CPn),
                "b": jnp.zeros((CPn,), jnp.float32)})

    C_last, CP_last = embed_dims[-1], cps[-1]
    NCp = _round_up(num_classes, LANE)
    params["c_last"] = C_last
    params["num_classes"] = num_classes
    params["norm_g"] = jnp.zeros((1, CP_last), jnp.float32).at[0, :C_last].set(1.0)
    params["norm_b"] = jnp.zeros((1, CP_last), jnp.float32)
    params["head_w"] = pad2(nrm((C_last, num_classes)), CP_last, NCp).astype(jnp.bfloat16)
    params["head_b"] = jnp.zeros((1, NCp), jnp.float32)
    return params


# ---------------------------------------------------------------------------
# Forward
# ---------------------------------------------------------------------------

def poolformer_forward(x_nchw, params, in_stride=4, in_pad=2,
                       down_stride=2, down_pad=1):
    x = jnp.transpose(x_nchw, (0, 2, 3, 1)).astype(jnp.float32)      # NCHW -> NHWC
    pe = params["patch_embed"]
    x = conv2d_pallas(x, pe["w"], pe["b"], k=pe["k"], stride=in_stride, pad=in_pad)

    for entry in params["network"]:
        if entry["type"] == "down":
            x = conv2d_pallas(x[..., :entry["cin_true"]], entry["w"], entry["b"],
                              k=entry["k"], stride=down_stride, pad=down_pad)
        else:  # fused stage of PoolFormer blocks
            B, H, W, CP = x.shape
            aux = _pool_aux(H, W)
            xt = x.reshape(B, H * W, CP)
            xt = poolformer_stage(xt, aux, entry["params"], img_w=W,
                                  norm_count=H * W * entry["c_true"])
            x = xt.reshape(B, H, W, CP)

    B, H, W, CP = x.shape
    logits = head_call(x.reshape(B, H * W, CP), params["norm_g"], params["norm_b"],
                       params["head_w"], params["head_b"],
                       norm_count=H * W * params["c_last"])
    return logits[:, :params["num_classes"]]                          # (B, num_classes)


# ---------------------------------------------------------------------------

if __name__ == "__main__":
    # Small PoolFormer config: 4 stages, 1 block each.
    layers = [1, 1, 1, 1]
    embed_dims = [16, 32, 48, 64]
    mlp_ratios = [2, 2, 2, 2]
    downsamples = [True, True, True, True]
    num_classes = 10

    key = jax.random.PRNGKey(0)
    k_x, k_p = jax.random.split(key)
    x = jax.random.normal(k_x, (2, 3, 64, 64), jnp.float32)   # NCHW input
    params = init_params(k_p, layers, embed_dims, mlp_ratios, downsamples, num_classes)

    fwd = jax.jit(functools.partial(poolformer_forward, params=params))
    logits = jax.block_until_ready(fwd(x))

    assert logits.shape == (2, num_classes), logits.shape
    assert bool(jnp.all(jnp.isfinite(logits)))
    print("KERNEL_OK")
</pallas_src>

<mosaic_0001>
module attributes {stable_mosaic.version = 11 : i64} {
  func.func @_matmul_bias_kernel(%arg0: i32, %arg1: memref<256x256xbf16, #tpu.memory_space<vmem>>, %arg2: memref<256x128xbf16, #tpu.memory_space<vmem>>, %arg3: memref<1x128xf32, #tpu.memory_space<vmem>>, %arg4: memref<256x128xf32, #tpu.memory_space<vmem>>) attributes {dimension_semantics = [#tpu.dimension_semantics<parallel>], iteration_bounds = array<i64: 2>, scalar_prefetch = 0 : i64, scratch_operands = 0 : i64, tpu.core_type = #tpu.core_type<tc>, window_params = [{transform_indices = @transform_0, window_bounds = array<i64: 256, 256>}, {pipeline_mode = #tpu.pipeline_mode<synchronous>, transform_indices = @transform_1, window_bounds = array<i64: 256, 128>}, {pipeline_mode = #tpu.pipeline_mode<synchronous>, transform_indices = @transform_2, window_bounds = array<i64: 1, 128>}, {transform_indices = @transform_3, window_bounds = array<i64: 256, 128>}]} {
    %c0 = arith.constant 0 : index
    %c0_0 = arith.constant 0 : index
    %0 = vector.load %arg1[%c0, %c0_0] : memref<256x256xbf16, #tpu.memory_space<vmem>>, vector<256x256xbf16>
    %c0_1 = arith.constant 0 : index
    %c0_2 = arith.constant 0 : index
    %1 = vector.load %arg2[%c0_1, %c0_2] : memref<256x128xbf16, #tpu.memory_space<vmem>>, vector<256x128xbf16>
    %cst = arith.constant dense<0.000000e+00> : vector<256x128xf32>
    %2 = tpu.matmul %0, %1, %cst {dimension_numbers = #tpu.dot_dimension_numbers<[1], [0], [0], [1], [0, 0, 1, 1], [], []>} : vector<256x256xbf16>, vector<256x128xbf16>, vector<256x128xf32> -> vector<256x128xf32>
    %c0_3 = arith.constant 0 : index
    %c0_4 = arith.constant 0 : index
    %3 = vector.load %arg3[%c0_3, %c0_4] : memref<1x128xf32, #tpu.memory_space<vmem>>, vector<1x128xf32>
    %4 = vector.broadcast %3 : vector<1x128xf32> to vector<256x128xf32>
    %5 = arith.addf %2, %4 : vector<256x128xf32>
    %c0_5 = arith.constant 0 : index
    %c0_6 = arith.constant 0 : index
    %6 = vector.load %arg4[%c0_5, %c0_6] : memref<256x128xf32, #tpu.memory_space<vmem>>, vector<256x128xf32>
    tpu.vector_store %arg4[%c0_5, %c0_6], %5 {strides = array<i32>} : memref<256x128xf32, #tpu.memory_space<vmem>>, vector<256x128xf32>,
    return
  }
  func.func @transform_0(%arg0: i32) -> (i32, i32) {
    %c0_i32 = arith.constant 0 : i32
    %c0_i32_0 = arith.constant 0 : i32
    return %arg0, %c0_i32 : i32, i32
  }
  func.func @transform_1(%arg0: i32) -> (i32, i32) {
    %c0_i32 = arith.constant 0 : i32
    %c0_i32_0 = arith.constant 0 : i32
    %c0_i32_1 = arith.constant 0 : i32
    return %c0_i32, %c0_i32_0 : i32, i32
  }
  func.func @transform_2(%arg0: i32) -> (i32, i32) {
    %c0_i32 = arith.constant 0 : i32
    %c0_i32_0 = arith.constant 0 : i32
    %c0_i32_1 = arith.constant 0 : i32
    return %c0_i32, %c0_i32_0 : i32, i32
  }
  func.func @transform_3(%arg0: i32) -> (i32, i32) {
    %c0_i32 = arith.constant 0 : i32
    %c0_i32_0 = arith.constant 0 : i32
    return %arg0, %c0_i32 : i32, i32
  }
}

module attributes {stable_mosaic.version = 11 : i64} {
  func.func @_stage_kernel(%arg0: i32, %arg1: i32, %arg2: memref<1x256x128xf32, #tpu.memory_space<vmem>>, %arg3: memref<256x1xf32, #tpu.memory_space<vmem>>, %arg4: memref<256x1xf32, #tpu.memory_space<vmem>>, %arg5: memref<256x1xf32, #tpu.memory_space<vmem>>, %arg6: memref<1x1x128xf32, #tpu.memory_space<vmem>>, %arg7: memref<1x1x128xf32, #tpu.memory_space<vmem>>, %arg8: memref<1x1x128xf32, #tpu.memory_space<vmem>>, %arg9: memref<1x1x128xf32, #tpu.memory_space<vmem>>, %arg10: memref<1x1x128xf32, #tpu.memory_space<vmem>>, %arg11: memref<1x1x128xf32, #tpu.memory_space<vmem>>, %arg12: memref<1x128x128xbf16, #tpu.memory_space<vmem>>, %arg13: memref<1x1x128xf32, #tpu.memory_space<vmem>>, %arg14: memref<1x128x128xbf16, #tpu.memory_space<vmem>>, %arg15: memref<1x1x128xf32, #tpu.memory_space<vmem>>, %arg16: memref<1x256x128xf32, #tpu.memory_space<vmem>>) attributes {dimension_semantics = [#tpu.dimension_semantics<parallel>, #tpu.dimension_semantics<arbitrary>], iteration_bounds = array<i64: 2, 1>, scalar_prefetch = 0 : i64, scratch_operands = 0 : i64, tpu.core_type = #tpu.core_type<tc>, window_params = [{transform_indices = @transform_0, window_bounds = array<i64: 1, 256, 128>}, {pipeline_mode = #tpu.pipeline_mode<synchronous>, transform_indices = @transform_1, window_bounds = array<i64: 256, 1>}, {pipeline_mode = #tpu.pipeline_mode<synchronous>, transform_indices = @transform_2, window_bounds = array<i64: 256, 1>}, {pipeline_mode = #tpu.pipeline_mode<synchronous>, transform_indices = @transform_3, window_bounds = array<i64: 256, 1>}, {transform_indices = @transform_4, window_bounds = array<i64: 1, 1, 128>}, {transform_indices = @transform_5, window_bounds = array<i64: 1, 1, 128>}, {transform_indices = @transform_6, window_bounds = array<i64: 1, 1, 128>}, {transform_indices = @transform_7, window_bounds = array<i64: 1, 1, 128>}, {transform_indices = @transform_8, window_bounds = array<i64: 1, 1, 128>}, {transform_indices = @transform_9, window_bounds = array<i64: 1, 1, 128>}, {transform_indices = @transform_10, window_bounds = array<i64: 1, 128, 128>}, {transform_indices = @transform_11, window_bounds = array<i64: 1, 1, 128>}, {transform_indices = @transform_12, window_bounds = array<i64: 1, 128, 128>}, {transform_indices = @transform_13, window_bounds = array<i64: 1, 1, 128>}, {transform_indices = @transform_14, window_bounds = array<i64: 1, 256, 128>}]} {
    %c0_i32 = arith.constant 0 : i32
    %0 = arith.cmpi eq, %arg1, %c0_i32 : i32
    %1 = arith.extui %0 : i1 to i32
    %c0_i32_0 = arith.constant 0 : i32
    %2 = arith.cmpi ne, %1, %c0_i32_0 : i32
    scf.if %2 {
      %c0_61 = arith.constant 0 : index
      %c0_62 = arith.constant 0 : index
      %c0_63 = arith.constant 0 : index
      %127 = vector.load %arg2[%c0_61, %c0_62, %c0_63] : memref<1x256x128xf32, #tpu.memory_space<vmem>>, vector<1x256x128xf32>
      %c0_64 = arith.constant 0 : index
      %c0_65 = arith.constant 0 : index
      %c0_66 = arith.constant 0 : index
      %128 = vector.load %arg16[%c0_64, %c0_65, %c0_66] : memref<1x256x128xf32, #tpu.memory_space<vmem>>, vector<1x256x128xf32>
      tpu.vector_store %arg16[%c0_64, %c0_65, %c0_66], %127 {strides = array<i32>} : memref<1x256x128xf32, #tpu.memory_space<vmem>>, vector<1x256x128xf32>,
    } else {
    }
    %c0 = arith.constant 0 : index
    %c0_1 = arith.constant 0 : index
    %c0_2 = arith.constant 0 : index
    %3 = vector.load %arg16[%c0, %c0_1, %c0_2] : memref<1x256x128xf32, #tpu.memory_space<vmem>>, vector<1x256x128xf32>
    %4 = vector.shape_cast %3 : vector<1x256x128xf32> to vector<256x128xf32>
    %5 = vector.shape_cast %4 : vector<256x128xf32> to vector<1x256x128xf32>
    %cst = arith.constant dense<0.000000e+00> : vector<1xf32>
    %6 = vector.multi_reduction <add>, %5, %cst [1, 2] : vector<1x256x128xf32> to vector<1xf32>
    %7 = vector.shape_cast %6 : vector<1xf32> to vector<1x1x1xf32>
    %8 = vector.extract %7[0, 0, 0] : f32 from vector<1x1x1xf32>
    %cst_3 = arith.constant 2.44140625E-4 : f32
    %9 = arith.mulf %8, %cst_3 : f32
    %10 = arith.mulf %4, %4 : vector<256x128xf32>
    %11 = vector.shape_cast %10 : vector<256x128xf32> to vector<1x256x128xf32>
    %cst_4 = arith.constant dense<0.000000e+00> : vector<1xf32>
    %12 = vector.multi_reduction <add>, %11, %cst_4 [1, 2] : vector<1x256x128xf32> to vector<1xf32>
    %13 = vector.shape_cast %12 : vector<1xf32> to vector<1x1x1xf32>
    %14 = vector.extract %13[0, 0, 0] : f32 from vector<1x1x1xf32>
    %cst_5 = arith.constant 2.44140625E-4 : f32
    %15 = arith.mulf %14, %cst_5 : f32
    %16 = arith.mulf %9, %9 : f32
    %17 = arith.subf %15, %16 : f32
    %cst_6 = arith.constant 0.000000e+00 : f32
    %18 = arith.maximumf %17, %cst_6 : f32
    %19 = vector.broadcast %9 : f32 to vector<256x128xf32>
    %20 = arith.subf %4, %19 : vector<256x128xf32>
    %cst_7 = arith.constant 9.99999974E-6 : f32
    %21 = arith.addf %18, %cst_7 : f32
    %22 = math.rsqrt %21 : f32
    %23 = vector.broadcast %22 : f32 to vector<256x128xf32>
    %24 = arith.mulf %20, %23 : vector<256x128xf32>
    %c0_8 = arith.constant 0 : index
    %c0_9 = arith.constant 0 : index
    %c0_10 = arith.constant 0 : index
    %25 = vector.load %arg6[%c0_8, %c0_9, %c0_10] : memref<1x1x128xf32, #tpu.memory_space<vmem>>, vector<1x1x128xf32>
    %26 = vector.shape_cast %25 : vector<1x1x128xf32> to vector<1x128xf32>
    %27 = vector.broadcast %26 : vector<1x128xf32> to vector<256x128xf32>
    %28 = arith.mulf %24, %27 : vector<256x128xf32>
    %c0_11 = arith.constant 0 : index
    %c0_12 = arith.constant 0 : index
    %c0_13 = arith.constant 0 : index
    %29 = vector.load %arg7[%c0_11, %c0_12, %c0_13] : memref<1x1x128xf32, #tpu.memory_space<vmem>>, vector<1x1x128xf32>
    %30 = vector.shape_cast %29 : vector<1x1x128xf32> to vector<1x128xf32>
    %31 = vector.broadcast %30 : vector<1x128xf32> to vector<256x128xf32>
    %32 = arith.addf %28, %31 : vector<256x128xf32>
    %cst_14 = arith.constant 0.000000e+00 : f32
    %33 = vector.broadcast %cst_14 : f32 to vector<16x128xf32>
    %34 = vector.extract_strided_slice %32 {offsets = [0, 0], sizes = [240, 128], strides = [1, 1]} : vector<256x128xf32> to vector<240x128xf32>
    %35 = tpu.concatenate %33, %34 in 0 : vector<16x128xf32>, vector<240x128xf32> -> vector<256x128xf32>
    %36 = arith.addf %32, %35 : vector<256x128xf32>
    %37 = vector.extract_strided_slice %32 {offsets = [16, 0], sizes = [240, 128], strides = [1, 1]} : vector<256x128xf32> to vector<240x128xf32>
    %38 = tpu.concatenate %37, %33 in 0 : vector<240x128xf32>, vector<16x128xf32> -> vector<256x128xf32>
    %39 = arith.addf %36, %38 : vector<256x128xf32>
    %cst_15 = arith.constant 0.000000e+00 : f32
    %40 = vector.broadcast %cst_15 : f32 to vector<1x128xf32>
    %c0_16 = arith.constant 0 : index
    %c0_17 = arith.constant 0 : index
    %41 = vector.load %arg4[%c0_16, %c0_17] : memref<256x1xf32, #tpu.memory_space<vmem>>, vector<256x1xf32>
    %42 = vector.extract_strided_slice %39 {offsets = [0, 0], sizes = [255, 128], strides = [1, 1]} : vector<256x128xf32> to vector<255x128xf32>
    %43 = tpu.concatenate %40, %42 in 0 : vector<1x128xf32>, vector<255x128xf32> -> vector<256x128xf32>
    %44 = vector.broadcast %41 : vector<256x1xf32> to vector<256x128xf32>
    %45 = arith.mulf %44, %43 : vector<256x128xf32>
    %46 = arith.addf %39, %45 : vector<256x128xf32>
    %c0_18 = arith.constant 0 : index
    %c0_19 = arith.constant 0 : index
    %47 = vector.load %arg5[%c0_18, %c0_19] : memref<256x1xf32, #tpu.memory_space<vmem>>, vector<256x1xf32>
    %48 = vector.extract_strided_slice %39 {offsets = [1, 0], sizes = [255, 128], strides = [1, 1]} : vector<256x128xf32> to vector<255x128xf32>
    %49 = tpu.concatenate %48, %40 in 0 : vector<255x128xf32>, vector<1x128xf32> -> vector<256x128xf32>
    %50 = vector.broadcast %47 : vector<256x1xf32> to vector<256x128xf32>
    %51 = arith.mulf %50, %49 : vector<256x128xf32>
    %52 = arith.addf %46, %51 : vector<256x128xf32>
    %c0_20 = arith.constant 0 : index
    %c0_21 = arith.constant 0 : index
    %53 = vector.load %arg3[%c0_20, %c0_21] : memref<256x1xf32, #tpu.memory_space<vmem>>, vector<256x1xf32>
    %54 = vector.broadcast %53 : vector<256x1xf32> to vector<256x128xf32>
    %55 = arith.mulf %52, %54 : vector<256x128xf32>
    %56 = arith.subf %55, %32 : vector<256x128xf32>
    %c0_22 = arith.constant 0 : index
    %c0_23 = arith.constant 0 : index
    %c0_24 = arith.constant 0 : index
    %57 = vector.load %arg8[%c0_22, %c0_23, %c0_24] : memref<1x1x128xf32, #tpu.memory_space<vmem>>, vector<1x1x128xf32>
    %58 = vector.shape_cast %57 : vector<1x1x128xf32> to vector<1x128xf32>
    %59 = vector.broadcast %58 : vector<1x128xf32> to vector<256x128xf32>
    %60 = arith.mulf %59, %56 : vector<256x128xf32>
    %61 = arith.addf %4, %60 : vector<256x128xf32>
    %62 = vector.shape_cast %61 : vector<256x128xf32> to vector<1x256x128xf32>
    %cst_25 = arith.constant dense<0.000000e+00> : vector<1xf32>
    %63 = vector.multi_reduction <add>, %62, %cst_25 [1, 2] : vector<1x256x128xf32> to vector<1xf32>
    %64 = vector.shape_cast %63 : vector<1xf32> to vector<1x1x1xf32>
    %65 = vector.extract %64[0, 0, 0] : f32 from vector<1x1x1xf32>
    %cst_26 = arith.constant 2.44140625E-4 : f32
    %66 = arith.mulf %65, %cst_26 : f32
    %67 = arith.mulf %61, %61 : vector<256x128xf32>
    %68 = vector.shape_cast %67 : vector<256x128xf32> to vector<1x256x128xf32>
    %cst_27 = arith.constant dense<0.000000e+00> : vector<1xf32>
    %69 = vector.multi_reduction <add>, %68, %cst_27 [1, 2] : vector<1x256x128xf32> to vector<1xf32>
    %70 = vector.shape_cast %69 : vector<1xf32> to vector<1x1x1xf32>
    %71 = vector.extract %70[0, 0, 0] : f32 from vector<1x1x1xf32>
    %cst_28 = arith.constant 2.44140625E-4 : f32
    %72 = arith.mulf %71, %cst_28 : f32
    %73 = arith.mulf %66, %66 : f32
    %74 = arith.subf %72, %73 : f32
    %cst_29 = arith.constant 0.000000e+00 : f32
    %75 = arith.maximumf %74, %cst_29 : f32
    %76 = vector.broadcast %66 : f32 to vector<256x128xf32>
    %77 = arith.subf %61, %76 : vector<256x128xf32>
    %cst_30 = arith.constant 9.99999974E-6 : f32
    %78 = arith.addf %75, %cst_30 : f32
    %79 = math.rsqrt %78 : f32
    %80 = vector.broadcast %79 : f32 to vector<256x128xf32>
    %81 = arith.mulf %77, %80 : vector<256x128xf32>
    %c0_31 = arith.constant 0 : index
    %c0_32 = arith.constant 0 : index
    %c0_33 = arith.constant 0 : index
    %82 = vector.load %arg9[%c0_31, %c0_32, %c0_33] : memref<1x1x128xf32, #tpu.memory_space<vmem>>, vector<1x1x128xf32>
    %83 = vector.shape_cast %82 : vector<1x1x128xf32> to vector<1x128xf32>
    %84 = vector.broadcast %83 : vector<1x128xf32> to vector<256x128xf32>
    %85 = arith.mulf %81, %84 : vector<256x128xf32>
    %c0_34 = arith.constant 0 : index
    %c0_35 = arith.constant 0 : index
    %c0_36 = arith.constant 0 : index
    %86 = vector.load %arg10[%c0_34, %c0_35, %c0_36] : memref<1x1x128xf32, #tpu.memory_space<vmem>>, vector<1x1x128xf32>
    %87 = vector.shape_cast %86 : vector<1x1x128xf32> to vector<1x128xf32>
    %88 = vector.broadcast %87 : vector<1x128xf32> to vector<256x128xf32>
    %89 = arith.addf %85, %88 : vector<256x128xf32>
    %90 = arith.truncf %89 : vector<256x128xf32> to vector<256x128xbf16>
    %c0_37 = arith.constant 0 : index
    %c0_38 = arith.constant 0 : index
    %c0_39 = arith.constant 0 : index
    %91 = vector.load %arg12[%c0_37, %c0_38, %c0_39] : memref<1x128x128xbf16, #tpu.memory_space<vmem>>, vector<1x128x128xbf16>
    %92 = vector.shape_cast %91 : vector<1x128x128xbf16> to vector<128x128xbf16>
    %cst_40 = arith.constant dense<0.000000e+00> : vector<256x128xf32>
    %93 = tpu.matmul %90, %92, %cst_40 {dimension_numbers = #tpu.dot_dimension_numbers<[1], [0], [0], [1], [0, 0, 1, 1], [], []>} : vector<256x128xbf16>, vector<128x128xbf16>, vector<256x128xf32> -> vector<256x128xf32>
    %c0_41 = arith.constant 0 : index
    %c0_42 = arith.constant 0 : index
    %c0_43 = arith.constant 0 : index
    %94 = vector.load %arg13[%c0_41, %c0_42, %c0_43] : memref<1x1x128xf32, #tpu.memory_space<vmem>>, vector<1x1x128xf32>
    %95 = vector.shape_cast %94 : vector<1x1x128xf32> to vector<1x128xf32>
    %96 = vector.broadcast %95 : vector<1x128xf32> to vector<256x128xf32>
    %97 = arith.addf %93, %96 : vector<256x128xf32>
    %98 = arith.mulf %97, %97 : vector<256x128xf32>
    %99 = arith.mulf %97, %98 : vector<256x128xf32>
    %cst_44 = arith.constant 4.471500e-02 : f32
    %100 = vector.broadcast %cst_44 : f32 to vector<256x128xf32>
    %101 = arith.mulf %100, %99 : vector<256x128xf32>
    %102 = arith.addf %97, %101 : vector<256x128xf32>
    %cst_45 = arith.constant 0.797884583 : f32
    %103 = vector.broadcast %cst_45 : f32 to vector<256x128xf32>
    %104 = arith.mulf %103, %102 : vector<256x128xf32>
    %105 = math.tanh %104 : vector<256x128xf32>
    %cst_46 = arith.constant 1.000000e+00 : f32
    %106 = vector.broadcast %cst_46 : f32 to vector<256x128xf32>
    %107 = arith.addf %106, %105 : vector<256x128xf32>
    %cst_47 = arith.constant 5.000000e-01 : f32
    %108 = vector.broadcast %cst_47 : f32 to vector<256x128xf32>
    %109 = arith.mulf %108, %107 : vector<256x128xf32>
    %110 = arith.mulf %97, %109 : vector<256x128xf32>
    %111 = arith.truncf %110 : vector<256x128xf32> to vector<256x128xbf16>
    %c0_48 = arith.constant 0 : index
    %c0_49 = arith.constant 0 : index
    %c0_50 = arith.constant 0 : index
    %112 = vector.load %arg14[%c0_48, %c0_49, %c0_50] : memref<1x128x128xbf16, #tpu.memory_space<vmem>>, vector<1x128x128xbf16>
    %113 = vector.shape_cast %112 : vector<1x128x128xbf16> to vector<128x128xbf16>
    %cst_51 = arith.constant dense<0.000000e+00> : vector<256x128xf32>
    %114 = tpu.matmul %111, %113, %cst_51 {dimension_numbers = #tpu.dot_dimension_numbers<[1], [0], [0], [1], [0, 0, 1, 1], [], []>} : vector<256x128xbf16>, vector<128x128xbf16>, vector<256x128xf32> -> vector<256x128xf32>
    %c0_52 = arith.constant 0 : index
    %c0_53 = arith.constant 0 : index
    %c0_54 = arith.constant 0 : index
    %115 = vector.load %arg15[%c0_52, %c0_53, %c0_54] : memref<1x1x128xf32, #tpu.memory_space<vmem>>, vector<1x1x128xf32>
    %116 = vector.shape_cast %115 : vector<1x1x128xf32> to vector<1x128xf32>
    %117 = vector.broadcast %116 : vector<1x128xf32> to vector<256x128xf32>
    %118 = arith.addf %114, %117 : vector<256x128xf32>
    %c0_55 = arith.constant 0 : index
    %c0_56 = arith.constant 0 : index
    %c0_57 = arith.constant 0 : index
    %119 = vector.load %arg11[%c0_55, %c0_56, %c0_57] : memref<1x1x128xf32, #tpu.memory_space<vmem>>, vector<1x1x128xf32>
    %120 = vector.shape_cast %119 : vector<1x1x128xf32> to vector<1x128xf32>
    %121 = vector.broadcast %120 : vector<1x128xf32> to vector<256x128xf32>
    %122 = arith.mulf %121, %118 : vector<256x128xf32>
    %123 = arith.addf %61, %122 : vector<256x128xf32>
    %c0_58 = arith.constant 0 : index
    %c0_59 = arith.constant 0 : index
    %c0_60 = arith.constant 0 : index
    %124 = vector.load %arg16[%c0_58, %c0_59, %c0_60] : memref<1x256x128xf32, #tpu.memory_space<vmem>>, vector<1x256x128xf32>
    %125 = vector.shape_cast %124 : vector<1x256x128xf32> to vector<256x128xf32>
    %126 = vector.shape_cast %123 : vector<256x128xf32> to vector<1x256x128xf32>
    tpu.vector_store %arg16[%c0_58, %c0_59, %c0_60], %126 {strides = array<i32>} : memref<1x256x128xf32, #tpu.memory_space<vmem>>, vector<1x256x128xf32>,
    return
  }
  func.func @transform_0(%arg0: i32, %arg1: i32) -> (i32, i32, i32) {
    %c0_i32 = arith.constant 0 : i32
    %c0_i32_0 = arith.constant 0 : i32
    %c0_i32_1 = arith.constant 0 : i32
    return %arg0, %c0_i32, %c0_i32_0 : i32, i32, i32
  }
  func.func @transform_1(%arg0: i32, %arg1: i32) -> (i32, i32) {
    %c0_i32 = arith.constant 0 : i32
    %c0_i32_0 = arith.constant 0 : i32
    %c0_i32_1 = arith.constant 0 : i32
    return %c0_i32, %c0_i32_0 : i32, i32
  }
  func.func @transform_2(%arg0: i32, %arg1: i32) -> (i32, i32) {
    %c0_i32 = arith.constant 0 : i32
    %c0_i32_0 = arith.constant 0 : i32
    %c0_i32_1 = arith.constant 0 : i32
    return %c0_i32, %c0_i32_0 : i32, i32
  }
  func.func @transform_3(%arg0: i32, %arg1: i32) -> (i32, i32) {
    %c0_i32 = arith.constant 0 : i32
    %c0_i32_0 = arith.constant 0 : i32
    %c0_i32_1 = arith.constant 0 : i32
    return %c0_i32, %c0_i32_0 : i32, i32
  }
  func.func @transform_4(%arg0: i32, %arg1: i32) -> (i32, i32, i32) {
    %c0_i32 = arith.constant 0 : i32
    %c0_i32_0 = arith.constant 0 : i32
    %c0_i32_1 = arith.constant 0 : i32
    return %arg1, %c0_i32, %c0_i32_0 : i32, i32, i32
  }
  func.func @transform_5(%arg0: i32, %arg1: i32) -> (i32, i32, i32) {
    %c0_i32 = arith.constant 0 : i32
    %c0_i32_0 = arith.constant 0 : i32
    %c0_i32_1 = arith.constant 0 : i32
    return %arg1, %c0_i32, %c0_i32_0 : i32, i32, i32
  }
  func.func @transform_6(%arg0: i32, %arg1: i32) -> (i32, i32, i32) {
    %c0_i32 = arith.constant 0 : i32
    %c0_i32_0 = arith.constant 0 : i32
    %c0_i32_1 = arith.constant 0 : i32
    return %arg1, %c0_i32, %c0_i32_0 : i32, i32, i32
  }
  func.func @transform_7(%arg0: i32, %arg1: i32) -> (i32, i32, i32) {
    %c0_i32 = arith.constant 0 : i32
    %c0_i32_0 = arith.constant 0 : i32
    %c0_i32_1 = arith.constant 0 : i32
    return %arg1, %c0_i32, %c0_i32_0 : i32, i32, i32
  }
  func.func @transform_8(%arg0: i32, %arg1: i32) -> (i32, i32, i32) {
    %c0_i32 = arith.constant 0 : i32
    %c0_i32_0 = arith.constant 0 : i32
    %c0_i32_1 = arith.constant 0 : i32
    return %arg1, %c0_i32, %c0_i32_0 : i32, i32, i32
  }
  func.func @transform_9(%arg0: i32, %arg1: i32) -> (i32, i32, i32) {
    %c0_i32 = arith.constant 0 : i32
    %c0_i32_0 = arith.constant 0 : i32
    %c0_i32_1 = arith.constant 0 : i32
    return %arg1, %c0_i32, %c0_i32_0 : i32, i32, i32
  }
  func.func @transform_10(%arg0: i32, %arg1: i32) -> (i32, i32, i32) {
    %c0_i32 = arith.constant 0 : i32
    %c0_i32_0 = arith.constant 0 : i32
    %c0_i32_1 = arith.constant 0 : i32
    return %arg1, %c0_i32, %c0_i32_0 : i32, i32, i32
  }
  func.func @transform_11(%arg0: i32, %arg1: i32) -> (i32, i32, i32) {
    %c0_i32 = arith.constant 0 : i32
    %c0_i32_0 = arith.constant 0 : i32
    %c0_i32_1 = arith.constant 0 : i32
    return %arg1, %c0_i32, %c0_i32_0 : i32, i32, i32
  }
  func.func @transform_12(%arg0: i32, %arg1: i32) -> (i32, i32, i32) {
    %c0_i32 = arith.constant 0 : i32
    %c0_i32_0 = arith.constant 0 : i32
    %c0_i32_1 = arith.constant 0 : i32
    return %arg1, %c0_i32, %c0_i32_0 : i32, i32, i32
  }
  func.func @transform_13(%arg0: i32, %arg1: i32) -> (i32, i32, i32) {
    %c0_i32 = arith.constant 0 : i32
    %c0_i32_0 = arith.constant 0 : i32
    %c0_i32_1 = arith.constant 0 : i32
    return %arg1, %c0_i32, %c0_i32_0 : i32, i32, i32
  }
  func.func @transform_14(%arg0: i32, %arg1: i32) -> (i32, i32, i32) {
    %c0_i32 = arith.constant 0 : i32
    %c0_i32_0 = arith.constant 0 : i32
    %c0_i32_1 = arith.constant 0 : i32
    return %arg0, %c0_i32, %c0_i32_0 : i32, i32, i32
  }
}

module attributes {stable_mosaic.version = 11 : i64} {
  func.func @_matmul_bias_kernel(%arg0: i32, %arg1: memref<64x256xbf16, #tpu.memory_space<vmem>>, %arg2: memref<256x128xbf16, #tpu.memory_space<vmem>>, %arg3: memref<1x128xf32, #tpu.memory_space<vmem>>, %arg4: memref<64x128xf32, #tpu.memory_space<vmem>>) attributes {dimension_semantics = [#tpu.dimension_semantics<parallel>], iteration_bounds = array<i64: 2>, scalar_prefetch = 0 : i64, scratch_operands = 0 : i64, tpu.core_type = #tpu.core_type<tc>, window_params = [{transform_indices = @transform_0, window_bounds = array<i64: 64, 256>}, {pipeline_mode = #tpu.pipeline_mode<synchronous>, transform_indices = @transform_1, window_bounds = array<i64: 256, 128>}, {pipeline_mode = #tpu.pipeline_mode<synchronous>, transform_indices = @transform_2, window_bounds = array<i64: 1, 128>}, {transform_indices = @transform_3, window_bounds = array<i64: 64, 128>}]} {
    %c0 = arith.constant 0 : index
    %c0_0 = arith.constant 0 : index
    %0 = vector.load %arg1[%c0, %c0_0] : memref<64x256xbf16, #tpu.memory_space<vmem>>, vector<64x256xbf16>
    %c0_1 = arith.constant 0 : index
    %c0_2 = arith.constant 0 : index
    %1 = vector.load %arg2[%c0_1, %c0_2] : memref<256x128xbf16, #tpu.memory_space<vmem>>, vector<256x128xbf16>
    %cst = arith.constant dense<0.000000e+00> : vector<64x128xf32>
    %2 = tpu.matmul %0, %1, %cst {dimension_numbers = #tpu.dot_dimension_numbers<[1], [0], [0], [1], [0, 0, 1, 1], [], []>} : vector<64x256xbf16>, vector<256x128xbf16>, vector<64x128xf32> -> vector<64x128xf32>
    %c0_3 = arith.constant 0 : index
    %c0_4 = arith.constant 0 : index
    %3 = vector.load %arg3[%c0_3, %c0_4] : memref<1x128xf32, #tpu.memory_space<vmem>>, vector<1x128xf32>
    %4 = vector.broadcast %3 : vector<1x128xf32> to vector<64x128xf32>
    %5 = arith.addf %2, %4 : vector<64x128xf32>
    %c0_5 = arith.constant 0 : index
    %c0_6 = arith.constant 0 : index
    %6 = vector.load %arg4[%c0_5, %c0_6] : memref<64x128xf32, #tpu.memory_space<vmem>>, vector<64x128xf32>
    tpu.vector_store %arg4[%c0_5, %c0_6], %5 {strides = array<i32>} : memref<64x128xf32, #tpu.memory_space<vmem>>, vector<64x128xf32>,
    return
  }
  func.func @transform_0(%arg0: i32) -> (i32, i32) {
    %c0_i32 = arith.constant 0 : i32
    %c0_i32_0 = arith.constant 0 : i32
    return %arg0, %c0_i32 : i32, i32
  }
  func.func @transform_1(%arg0: i32) -> (i32, i32) {
    %c0_i32 = arith.constant 0 : i32
    %c0_i32_0 = arith.constant 0 : i32
    %c0_i32_1 = arith.constant 0 : i32
    return %c0_i32, %c0_i32_0 : i32, i32
  }
  func.func @transform_2(%arg0: i32) -> (i32, i32) {
    %c0_i32 = arith.constant 0 : i32
    %c0_i32_0 = arith.constant 0 : i32
    %c0_i32_1 = arith.constant 0 : i32
    return %c0_i32, %c0_i32_0 : i32, i32
  }
  func.func @transform_3(%arg0: i32) -> (i32, i32) {
    %c0_i32 = arith.constant 0 : i32
    %c0_i32_0 = arith.constant 0 : i32
    return %arg0, %c0_i32 : i32, i32
  }
}

module attributes {stable_mosaic.version = 11 : i64} {
  func.func @_stage_kernel(%arg0: i32, %arg1: i32, %arg2: memref<1x64x128xf32, #tpu.memory_space<vmem>>, %arg3: memref<64x1xf32, #tpu.memory_space<vmem>>, %arg4: memref<64x1xf32, #tpu.memory_space<vmem>>, %arg5: memref<64x1xf32, #tpu.memory_space<vmem>>, %arg6: memref<1x1x128xf32, #tpu.memory_space<vmem>>, %arg7: memref<1x1x128xf32, #tpu.memory_space<vmem>>, %arg8: memref<1x1x128xf32, #tpu.memory_space<vmem>>, %arg9: memref<1x1x128xf32, #tpu.memory_space<vmem>>, %arg10: memref<1x1x128xf32, #tpu.memory_space<vmem>>, %arg11: memref<1x1x128xf32, #tpu.memory_space<vmem>>, %arg12: memref<1x128x128xbf16, #tpu.memory_space<vmem>>, %arg13: memref<1x1x128xf32, #tpu.memory_space<vmem>>, %arg14: memref<1x128x128xbf16, #tpu.memory_space<vmem>>, %arg15: memref<1x1x128xf32, #tpu.memory_space<vmem>>, %arg16: memref<1x64x128xf32, #tpu.memory_space<vmem>>) attributes {dimension_semantics = [#tpu.dimension_semantics<parallel>, #tpu.dimension_semantics<arbitrary>], iteration_bounds = array<i64: 2, 1>, scalar_prefetch = 0 : i64, scratch_operands = 0 : i64, tpu.core_type = #tpu.core_type<tc>, window_params = [{transform_indices = @transform_0, window_bounds = array<i64: 1, 64, 128>}, {pipeline_mode = #tpu.pipeline_mode<synchronous>, transform_indices = @transform_1, window_bounds = array<i64: 64, 1>}, {pipeline_mode = #tpu.pipeline_mode<synchronous>, transform_indices = @transform_2, window_bounds = array<i64: 64, 1>}, {pipeline_mode = #tpu.pipeline_mode<synchronous>, transform_indices = @transform_3, window_bounds = array<i64: 64, 1>}, {transform_indices = @transform_4, window_bounds = array<i64: 1, 1, 128>}, {transform_indices = @transform_5, window_bounds = array<i64: 1, 1, 128>}, {transform_indices = @transform_6, window_bounds = array<i64: 1, 1, 128>}, {transform_indices = @transform_7, window_bounds = array<i64: 1, 1, 128>}, {transform_indices = @transform_8, window_bounds = array<i64: 1, 1, 128>}, {transform_indices = @transform_9, window_bounds = array<i64: 1, 1, 128>}, {transform_indices = @transform_10, window_bounds = array<i64: 1, 128, 128>}, {transform_indices = @transform_11, window_bounds = array<i64: 1, 1, 128>}, {transform_indices = @transform_12, window_bounds = array<i64: 1, 128, 128>}, {transform_indices = @transform_13, window_bounds = array<i64: 1, 1, 128>}, {transform_indices = @transform_14, window_bounds = array<i64: 1, 64, 128>}]} {
    %c0_i32 = arith.constant 0 : i32
    %0 = arith.cmpi eq, %arg1, %c0_i32 : i32
    %1 = arith.extui %0 : i1 to i32
    %c0_i32_0 = arith.constant 0 : i32
    %2 = arith.cmpi ne, %1, %c0_i32_0 : i32
    scf.if %2 {
      %c0_61 = arith.constant 0 : index
      %c0_62 = arith.constant 0 : index
      %c0_63 = arith.constant 0 : index
      %127 = vector.load %arg2[%c0_61, %c0_62, %c0_63] : memref<1x64x128xf32, #tpu.memory_space<vmem>>, vector<1x64x128xf32>
      %c0_64 = arith.constant 0 : index
      %c0_65 = arith.constant 0 : index
      %c0_66 = arith.constant 0 : index
      %128 = vector.load %arg16[%c0_64, %c0_65, %c0_66] : memref<1x64x128xf32, #tpu.memory_space<vmem>>, vector<1x64x128xf32>
      tpu.vector_store %arg16[%c0_64, %c0_65, %c0_66], %127 {strides = array<i32>} : memref<1x64x128xf32, #tpu.memory_space<vmem>>, vector<1x64x128xf32>,
    } else {
    }
    %c0 = arith.constant 0 : index
    %c0_1 = arith.constant 0 : index
    %c0_2 = arith.constant 0 : index
    %3 = vector.load %arg16[%c0, %c0_1, %c0_2] : memref<1x64x128xf32, #tpu.memory_space<vmem>>, vector<1x64x128xf32>
    %4 = vector.shape_cast %3 : vector<1x64x128xf32> to vector<64x128xf32>
    %5 = vector.shape_cast %4 : vector<64x128xf32> to vector<1x64x128xf32>
    %cst = arith.constant dense<0.000000e+00> : vector<1xf32>
    %6 = vector.multi_reduction <add>, %5, %cst [1, 2] : vector<1x64x128xf32> to vector<1xf32>
    %7 = vector.shape_cast %6 : vector<1xf32> to vector<1x1x1xf32>
    %8 = vector.extract %7[0, 0, 0] : f32 from vector<1x1x1xf32>
    %cst_3 = arith.constant 4.8828125E-4 : f32
    %9 = arith.mulf %8, %cst_3 : f32
    %10 = arith.mulf %4, %4 : vector<64x128xf32>
    %11 = vector.shape_cast %10 : vector<64x128xf32> to vector<1x64x128xf32>
    %cst_4 = arith.constant dense<0.000000e+00> : vector<1xf32>
    %12 = vector.multi_reduction <add>, %11, %cst_4 [1, 2] : vector<1x64x128xf32> to vector<1xf32>
    %13 = vector.shape_cast %12 : vector<1xf32> to vector<1x1x1xf32>
    %14 = vector.extract %13[0, 0, 0] : f32 from vector<1x1x1xf32>
    %cst_5 = arith.constant 4.8828125E-4 : f32
    %15 = arith.mulf %14, %cst_5 : f32
    %16 = arith.mulf %9, %9 : f32
    %17 = arith.subf %15, %16 : f32
    %cst_6 = arith.constant 0.000000e+00 : f32
    %18 = arith.maximumf %17, %cst_6 : f32
    %19 = vector.broadcast %9 : f32 to vector<64x128xf32>
    %20 = arith.subf %4, %19 : vector<64x128xf32>
    %cst_7 = arith.constant 9.99999974E-6 : f32
    %21 = arith.addf %18, %cst_7 : f32
    %22 = math.rsqrt %21 : f32
    %23 = vector.broadcast %22 : f32 to vector<64x128xf32>
    %24 = arith.mulf %20, %23 : vector<64x128xf32>
    %c0_8 = arith.constant 0 : index
    %c0_9 = arith.constant 0 : index
    %c0_10 = arith.constant 0 : index
    %25 = vector.load %arg6[%c0_8, %c0_9, %c0_10] : memref<1x1x128xf32, #tpu.memory_space<vmem>>, vector<1x1x128xf32>
    %26 = vector.shape_cast %25 : vector<1x1x128xf32> to vector<1x128xf32>
    %27 = vector.broadcast %26 : vector<1x128xf32> to vector<64x128xf32>
    %28 = arith.mulf %24, %27 : vector<64x128xf32>
    %c0_11 = arith.constant 0 : index
    %c0_12 = arith.constant 0 : index
    %c0_13 = arith.constant 0 : index
    %29 = vector.load %arg7[%c0_11, %c0_12, %c0_13] : memref<1x1x128xf32, #tpu.memory_space<vmem>>, vector<1x1x128xf32>
    %30 = vector.shape_cast %29 : vector<1x1x128xf32> to vector<1x128xf32>
    %31 = vector.broadcast %30 : vector<1x128xf32> to vector<64x128xf32>
    %32 = arith.addf %28, %31 : vector<64x128xf32>
    %cst_14 = arith.constant 0.000000e+00 : f32
    %33 = vector.broadcast %cst_14 : f32 to vector<8x128xf32>
    %34 = vector.extract_strided_slice %32 {offsets = [0, 0], sizes = [56, 128], strides = [1, 1]} : vector<64x128xf32> to vector<56x128xf32>
    %35 = tpu.concatenate %33, %34 in 0 : vector<8x128xf32>, vector<56x128xf32> -> vector<64x128xf32>
    %36 = arith.addf %32, %35 : vector<64x128xf32>
    %37 = vector.extract_strided_slice %32 {offsets = [8, 0], sizes = [56, 128], strides = [1, 1]} : vector<64x128xf32> to vector<56x128xf32>
    %38 = tpu.concatenate %37, %33 in 0 : vector<56x128xf32>, vector<8x128xf32> -> vector<64x128xf32>
    %39 = arith.addf %36, %38 : vector<64x128xf32>
    %cst_15 = arith.constant 0.000000e+00 : f32
    %40 = vector.broadcast %cst_15 : f32 to vector<1x128xf32>
    %c0_16 = arith.constant 0 : index
    %c0_17 = arith.constant 0 : index
    %41 = vector.load %arg4[%c0_16, %c0_17] : memref<64x1xf32, #tpu.memory_space<vmem>>, vector<64x1xf32>
    %42 = vector.extract_strided_slice %39 {offsets = [0, 0], sizes = [63, 128], strides = [1, 1]} : vector<64x128xf32> to vector<63x128xf32>
    %43 = tpu.concatenate %40, %42 in 0 : vector<1x128xf32>, vector<63x128xf32> -> vector<64x128xf32>
    %44 = vector.broadcast %41 : vector<64x1xf32> to vector<64x128xf32>
    %45 = arith.mulf %44, %43 : vector<64x128xf32>
    %46 = arith.addf %39, %45 : vector<64x128xf32>
    %c0_18 = arith.constant 0 : index
    %c0_19 = arith.constant 0 : index
    %47 = vector.load %arg5[%c0_18, %c0_19] : memref<64x1xf32, #tpu.memory_space<vmem>>, vector<64x1xf32>
    %48 = vector.extract_strided_slice %39 {offsets = [1, 0], sizes = [63, 128], strides = [1, 1]} : vector<64x128xf32> to vector<63x128xf32>
    %49 = tpu.concatenate %48, %40 in 0 : vector<63x128xf32>, vector<1x128xf32> -> vector<64x128xf32>
    %50 = vector.broadcast %47 : vector<64x1xf32> to vector<64x128xf32>
    %51 = arith.mulf %50, %49 : vector<64x128xf32>
    %52 = arith.addf %46, %51 : vector<64x128xf32>
    %c0_20 = arith.constant 0 : index
    %c0_21 = arith.constant 0 : index
    %53 = vector.load %arg3[%c0_20, %c0_21] : memref<64x1xf32, #tpu.memory_space<vmem>>, vector<64x1xf32>
    %54 = vector.broadcast %53 : vector<64x1xf32> to vector<64x128xf32>
    %55 = arith.mulf %52, %54 : vector<64x128xf32>
    %56 = arith.subf %55, %32 : vector<64x128xf32>
    %c0_22 = arith.constant 0 : index
    %c0_23 = arith.constant 0 : index
    %c0_24 = arith.constant 0 : index
    %57 = vector.load %arg8[%c0_22, %c0_23, %c0_24] : memref<1x1x128xf32, #tpu.memory_space<vmem>>, vector<1x1x128xf32>
    %58 = vector.shape_cast %57 : vector<1x1x128xf32> to vector<1x128xf32>
    %59 = vector.broadcast %58 : vector<1x128xf32> to vector<64x128xf32>
    %60 = arith.mulf %59, %56 : vector<64x128xf32>
    %61 = arith.addf %4, %60 : vector<64x128xf32>
    %62 = vector.shape_cast %61 : vector<64x128xf32> to vector<1x64x128xf32>
    %cst_25 = arith.constant dense<0.000000e+00> : vector<1xf32>
    %63 = vector.multi_reduction <add>, %62, %cst_25 [1, 2] : vector<1x64x128xf32> to vector<1xf32>
    %64 = vector.shape_cast %63 : vector<1xf32> to vector<1x1x1xf32>
    %65 = vector.extract %64[0, 0, 0] : f32 from vector<1x1x1xf32>
    %cst_26 = arith.constant 4.8828125E-4 : f32
    %66 = arith.mulf %65, %cst_26 : f32
    %67 = arith.mulf %61, %61 : vector<64x128xf32>
    %68 = vector.shape_cast %67 : vector<64x128xf32> to vector<1x64x128xf32>
    %cst_27 = arith.constant dense<0.000000e+00> : vector<1xf32>
    %69 = vector.multi_reduction <add>, %68, %cst_27 [1, 2] : vector<1x64x128xf32> to vector<1xf32>
    %70 = vector.shape_cast %69 : vector<1xf32> to vector<1x1x1xf32>
    %71 = vector.extract %70[0, 0, 0] : f32 from vector<1x1x1xf32>
    %cst_28 = arith.constant 4.8828125E-4 : f32
    %72 = arith.mulf %71, %cst_28 : f32
    %73 = arith.mulf %66, %66 : f32
    %74 = arith.subf %72, %73 : f32
    %cst_29 = arith.constant 0.000000e+00 : f32
    %75 = arith.maximumf %74, %cst_29 : f32
    %76 = vector.broadcast %66 : f32 to vector<64x128xf32>
    %77 = arith.subf %61, %76 : vector<64x128xf32>
    %cst_30 = arith.constant 9.99999974E-6 : f32
    %78 = arith.addf %75, %cst_30 : f32
    %79 = math.rsqrt %78 : f32
    %80 = vector.broadcast %79 : f32 to vector<64x128xf32>
    %81 = arith.mulf %77, %80 : vector<64x128xf32>
    %c0_31 = arith.constant 0 : index
    %c0_32 = arith.constant 0 : index
    %c0_33 = arith.constant 0 : index
    %82 = vector.load %arg9[%c0_31, %c0_32, %c0_33] : memref<1x1x128xf32, #tpu.memory_space<vmem>>, vector<1x1x128xf32>
    %83 = vector.shape_cast %82 : vector<1x1x128xf32> to vector<1x128xf32>
    %84 = vector.broadcast %83 : vector<1x128xf32> to vector<64x128xf32>
    %85 = arith.mulf %81, %84 : vector<64x128xf32>
    %c0_34 = arith.constant 0 : index
    %c0_35 = arith.constant 0 : index
    %c0_36 = arith.constant 0 : index
    %86 = vector.load %arg10[%c0_34, %c0_35, %c0_36] : memref<1x1x128xf32, #tpu.memory_space<vmem>>, vector<1x1x128xf32>
    %87 = vector.shape_cast %86 : vector<1x1x128xf32> to vector<1x128xf32>
    %88 = vector.broadcast %87 : vector<1x128xf32> to vector<64x128xf32>
    %89 = arith.addf %85, %88 : vector<64x128xf32>
    %90 = arith.truncf %89 : vector<64x128xf32> to vector<64x128xbf16>
    %c0_37 = arith.constant 0 : index
    %c0_38 = arith.constant 0 : index
    %c0_39 = arith.constant 0 : index
    %91 = vector.load %arg12[%c0_37, %c0_38, %c0_39] : memref<1x128x128xbf16, #tpu.memory_space<vmem>>, vector<1x128x128xbf16>
    %92 = vector.shape_cast %91 : vector<1x128x128xbf16> to vector<128x128xbf16>
    %cst_40 = arith.constant dense<0.000000e+00> : vector<64x128xf32>
    %93 = tpu.matmul %90, %92, %cst_40 {dimension_numbers = #tpu.dot_dimension_numbers<[1], [0], [0], [1], [0, 0, 1, 1], [], []>} : vector<64x128xbf16>, vector<128x128xbf16>, vector<64x128xf32> -> vector<64x128xf32>
    %c0_41 = arith.constant 0 : index
    %c0_42 = arith.constant 0 : index
    %c0_43 = arith.constant 0 : index
    %94 = vector.load %arg13[%c0_41, %c0_42, %c0_43] : memref<1x1x128xf32, #tpu.memory_space<vmem>>, vector<1x1x128xf32>
    %95 = vector.shape_cast %94 : vector<1x1x128xf32> to vector<1x128xf32>
    %96 = vector.broadcast %95 : vector<1x128xf32> to vector<64x128xf32>
    %97 = arith.addf %93, %96 : vector<64x128xf32>
    %98 = arith.mulf %97, %97 : vector<64x128xf32>
    %99 = arith.mulf %97, %98 : vector<64x128xf32>
    %cst_44 = arith.constant 4.471500e-02 : f32
    %100 = vector.broadcast %cst_44 : f32 to vector<64x128xf32>
    %101 = arith.mulf %100, %99 : vector<64x128xf32>
    %102 = arith.addf %97, %101 : vector<64x128xf32>
    %cst_45 = arith.constant 0.797884583 : f32
    %103 = vector.broadcast %cst_45 : f32 to vector<64x128xf32>
    %104 = arith.mulf %103, %102 : vector<64x128xf32>
    %105 = math.tanh %104 : vector<64x128xf32>
    %cst_46 = arith.constant 1.000000e+00 : f32
    %106 = vector.broadcast %cst_46 : f32 to vector<64x128xf32>
    %107 = arith.addf %106, %105 : vector<64x128xf32>
    %cst_47 = arith.constant 5.000000e-01 : f32
    %108 = vector.broadcast %cst_47 : f32 to vector<64x128xf32>
    %109 = arith.mulf %108, %107 : vector<64x128xf32>
    %110 = arith.mulf %97, %109 : vector<64x128xf32>
    %111 = arith.truncf %110 : vector<64x128xf32> to vector<64x128xbf16>
    %c0_48 = arith.constant 0 : index
    %c0_49 = arith.constant 0 : index
    %c0_50 = arith.constant 0 : index
    %112 = vector.load %arg14[%c0_48, %c0_49, %c0_50] : memref<1x128x128xbf16, #tpu.memory_space<vmem>>, vector<1x128x128xbf16>
    %113 = vector.shape_cast %112 : vector<1x128x128xbf16> to vector<128x128xbf16>
    %cst_51 = arith.constant dense<0.000000e+00> : vector<64x128xf32>
    %114 = tpu.matmul %111, %113, %cst_51 {dimension_numbers = #tpu.dot_dimension_numbers<[1], [0], [0], [1], [0, 0, 1, 1], [], []>} : vector<64x128xbf16>, vector<128x128xbf16>, vector<64x128xf32> -> vector<64x128xf32>
    %c0_52 = arith.constant 0 : index
    %c0_53 = arith.constant 0 : index
    %c0_54 = arith.constant 0 : index
    %115 = vector.load %arg15[%c0_52, %c0_53, %c0_54] : memref<1x1x128xf32, #tpu.memory_space<vmem>>, vector<1x1x128xf32>
    %116 = vector.shape_cast %115 : vector<1x1x128xf32> to vector<1x128xf32>
    %117 = vector.broadcast %116 : vector<1x128xf32> to vector<64x128xf32>
    %118 = arith.addf %114, %117 : vector<64x128xf32>
    %c0_55 = arith.constant 0 : index
    %c0_56 = arith.constant 0 : index
    %c0_57 = arith.constant 0 : index
    %119 = vector.load %arg11[%c0_55, %c0_56, %c0_57] : memref<1x1x128xf32, #tpu.memory_space<vmem>>, vector<1x1x128xf32>
    %120 = vector.shape_cast %119 : vector<1x1x128xf32> to vector<1x128xf32>
    %121 = vector.broadcast %120 : vector<1x128xf32> to vector<64x128xf32>
    %122 = arith.mulf %121, %118 : vector<64x128xf32>
    %123 = arith.addf %61, %122 : vector<64x128xf32>
    %c0_58 = arith.constant 0 : index
    %c0_59 = arith.constant 0 : index
    %c0_60 = arith.constant 0 : index
    %124 = vector.load %arg16[%c0_58, %c0_59, %c0_60] : memref<1x64x128xf32, #tpu.memory_space<vmem>>, vector<1x64x128xf32>
    %125 = vector.shape_cast %124 : vector<1x64x128xf32> to vector<64x128xf32>
    %126 = vector.shape_cast %123 : vector<64x128xf32> to vector<1x64x128xf32>
    tpu.vector_store %arg16[%c0_58, %c0_59, %c0_60], %126 {strides = array<i32>} : memref<1x64x128xf32, #tpu.memory_space<vmem>>, vector<1x64x128xf32>,
    return
  }
  func.func @transform_0(%arg0: i32, %arg1: i32) -> (i32, i32, i32) {
    %c0_i32 = arith.constant 0 : i32
    %c0_i32_0 = arith.constant 0 : i32
    %c0_i32_1 = arith.constant 0 : i32
    return %arg0, %c0_i32, %c0_i32_0 : i32, i32, i32
  }
  func.func @transform_1(%arg0: i32, %arg1: i32) -> (i32, i32) {
    %c0_i32 = arith.constant 0 : i32
    %c0_i32_0 = arith.constant 0 : i32
    %c0_i32_1 = arith.constant 0 : i32
    return %c0_i32, %c0_i32_0 : i32, i32
  }
  func.func @transform_2(%arg0: i32, %arg1: i32) -> (i32, i32) {
    %c0_i32 = arith.constant 0 : i32
    %c0_i32_0 = arith.constant 0 : i32
    %c0_i32_1 = arith.constant 0 : i32
    return %c0_i32, %c0_i32_0 : i32, i32
  }
  func.func @transform_3(%arg0: i32, %arg1: i32) -> (i32, i32) {
    %c0_i32 = arith.constant 0 : i32
    %c0_i32_0 = arith.constant 0 : i32
    %c0_i32_1 = arith.constant 0 : i32
    return %c0_i32, %c0_i32_0 : i32, i32
  }
  func.func @transform_4(%arg0: i32, %arg1: i32) -> (i32, i32, i32) {
    %c0_i32 = arith.constant 0 : i32
    %c0_i32_0 = arith.constant 0 : i32
    %c0_i32_1 = arith.constant 0 : i32
    return %arg1, %c0_i32, %c0_i32_0 : i32, i32, i32
  }
  func.func @transform_5(%arg0: i32, %arg1: i32) -> (i32, i32, i32) {
    %c0_i32 = arith.constant 0 : i32
    %c0_i32_0 = arith.constant 0 : i32
    %c0_i32_1 = arith.constant 0 : i32
    return %arg1, %c0_i32, %c0_i32_0 : i32, i32, i32
  }
  func.func @transform_6(%arg0: i32, %arg1: i32) -> (i32, i32, i32) {
    %c0_i32 = arith.constant 0 : i32
    %c0_i32_0 = arith.constant 0 : i32
    %c0_i32_1 = arith.constant 0 : i32
    return %arg1, %c0_i32, %c0_i32_0 : i32, i32, i32
  }
  func.func @transform_7(%arg0: i32, %arg1: i32) -> (i32, i32, i32) {
    %c0_i32 = arith.constant 0 : i32
    %c0_i32_0 = arith.constant 0 : i32
    %c0_i32_1 = arith.constant 0 : i32
    return %arg1, %c0_i32, %c0_i32_0 : i32, i32, i32
  }
  func.func @transform_8(%arg0: i32, %arg1: i32) -> (i32, i32, i32) {
    %c0_i32 = arith.constant 0 : i32
    %c0_i32_0 = arith.constant 0 : i32
    %c0_i32_1 = arith.constant 0 : i32
    return %arg1, %c0_i32, %c0_i32_0 : i32, i32, i32
  }
  func.func @transform_9(%arg0: i32, %arg1: i32) -> (i32, i32, i32) {
    %c0_i32 = arith.constant 0 : i32
    %c0_i32_0 = arith.constant 0 : i32
    %c0_i32_1 = arith.constant 0 : i32
    return %arg1, %c0_i32, %c0_i32_0 : i32, i32, i32
  }
  func.func @transform_10(%arg0: i32, %arg1: i32) -> (i32, i32, i32) {
    %c0_i32 = arith.constant 0 : i32
    %c0_i32_0 = arith.constant 0 : i32
    %c0_i32_1 = arith.constant 0 : i32
    return %arg1, %c0_i32, %c0_i32_0 : i32, i32, i32
  }
  func.func @transform_11(%arg0: i32, %arg1: i32) -> (i32, i32, i32) {
    %c0_i32 = arith.constant 0 : i32
    %c0_i32_0 = arith.constant 0 : i32
    %c0_i32_1 = arith.constant 0 : i32
    return %arg1, %c0_i32, %c0_i32_0 : i32, i32, i32
  }
  func.func @transform_12(%arg0: i32, %arg1: i32) -> (i32, i32, i32) {
    %c0_i32 = arith.constant 0 : i32
    %c0_i32_0 = arith.constant 0 : i32
    %c0_i32_1 = arith.constant 0 : i32
    return %arg1, %c0_i32, %c0_i32_0 : i32, i32, i32
  }
  func.func @transform_13(%arg0: i32, %arg1: i32) -> (i32, i32, i32) {
    %c0_i32 = arith.constant 0 : i32
    %c0_i32_0 = arith.constant 0 : i32
    %c0_i32_1 = arith.constant 0 : i32
    return %arg1, %c0_i32, %c0_i32_0 : i32, i32, i32
  }
  func.func @transform_14(%arg0: i32, %arg1: i32) -> (i32, i32, i32) {
    %c0_i32 = arith.constant 0 : i32
    %c0_i32_0 = arith.constant 0 : i32
    %c0_i32_1 = arith.constant 0 : i32
    return %arg0, %c0_i32, %c0_i32_0 : i32, i32, i32
  }
}

module attributes {stable_mosaic.version = 11 : i64} {
  func.func @_matmul_bias_kernel(%arg0: i32, %arg1: memref<16x384xbf16, #tpu.memory_space<vmem>>, %arg2: memref<384x128xbf16, #tpu.memory_space<vmem>>, %arg3: memref<1x128xf32, #tpu.memory_space<vmem>>, %arg4: memref<16x128xf32, #tpu.memory_space<vmem>>) attributes {dimension_semantics = [#tpu.dimension_semantics<parallel>], iteration_bounds = array<i64: 2>, scalar_prefetch = 0 : i64, scratch_operands = 0 : i64, tpu.core_type = #tpu.core_type<tc>, window_params = [{transform_indices = @transform_0, window_bounds = array<i64: 16, 384>}, {pipeline_mode = #tpu.pipeline_mode<synchronous>, transform_indices = @transform_1, window_bounds = array<i64: 384, 128>}, {pipeline_mode = #tpu.pipeline_mode<synchronous>, transform_indices = @transform_2, window_bounds = array<i64: 1, 128>}, {transform_indices = @transform_3, window_bounds = array<i64: 16, 128>}]} {
    %c0 = arith.constant 0 : index
    %c0_0 = arith.constant 0 : index
    %0 = vector.load %arg1[%c0, %c0_0] : memref<16x384xbf16, #tpu.memory_space<vmem>>, vector<16x384xbf16>
    %c0_1 = arith.constant 0 : index
    %c0_2 = arith.constant 0 : index
    %1 = vector.load %arg2[%c0_1, %c0_2] : memref<384x128xbf16, #tpu.memory_space<vmem>>, vector<384x128xbf16>
    %cst = arith.constant dense<0.000000e+00> : vector<16x128xf32>
    %2 = tpu.matmul %0, %1, %cst {dimension_numbers = #tpu.dot_dimension_numbers<[1], [0], [0], [1], [0, 0, 1, 1], [], []>} : vector<16x384xbf16>, vector<384x128xbf16>, vector<16x128xf32> -> vector<16x128xf32>
    %c0_3 = arith.constant 0 : index
    %c0_4 = arith.constant 0 : index
    %3 = vector.load %arg3[%c0_3, %c0_4] : memref<1x128xf32, #tpu.memory_space<vmem>>, vector<1x128xf32>
    %4 = vector.broadcast %3 : vector<1x128xf32> to vector<16x128xf32>
    %5 = arith.addf %2, %4 : vector<16x128xf32>
    %c0_5 = arith.constant 0 : index
    %c0_6 = arith.constant 0 : index
    %6 = vector.load %arg4[%c0_5, %c0_6] : memref<16x128xf32, #tpu.memory_space<vmem>>, vector<16x128xf32>
    tpu.vector_store %arg4[%c0_5, %c0_6], %5 {strides = array<i32>} : memref<16x128xf32, #tpu.memory_space<vmem>>, vector<16x128xf32>,
    return
  }
  func.func @transform_0(%arg0: i32) -> (i32, i32) {
    %c0_i32 = arith.constant 0 : i32
    %c0_i32_0 = arith.constant 0 : i32
    return %arg0, %c0_i32 : i32, i32
  }
  func.func @transform_1(%arg0: i32) -> (i32, i32) {
    %c0_i32 = arith.constant 0 : i32
    %c0_i32_0 = arith.constant 0 : i32
    %c0_i32_1 = arith.constant 0 : i32
    return %c0_i32, %c0_i32_0 : i32, i32
  }
  func.func @transform_2(%arg0: i32) -> (i32, i32) {
    %c0_i32 = arith.constant 0 : i32
    %c0_i32_0 = arith.constant 0 : i32
    %c0_i32_1 = arith.constant 0 : i32
    return %c0_i32, %c0_i32_0 : i32, i32
  }
  func.func @transform_3(%arg0: i32) -> (i32, i32) {
    %c0_i32 = arith.constant 0 : i32
    %c0_i32_0 = arith.constant 0 : i32
    return %arg0, %c0_i32 : i32, i32
  }
}

module attributes {stable_mosaic.version = 11 : i64} {
  func.func @_stage_kernel(%arg0: i32, %arg1: i32, %arg2: memref<1x16x128xf32, #tpu.memory_space<vmem>>, %arg3: memref<16x1xf32, #tpu.memory_space<vmem>>, %arg4: memref<16x1xf32, #tpu.memory_space<vmem>>, %arg5: memref<16x1xf32, #tpu.memory_space<vmem>>, %arg6: memref<1x1x128xf32, #tpu.memory_space<vmem>>, %arg7: memref<1x1x128xf32, #tpu.memory_space<vmem>>, %arg8: memref<1x1x128xf32, #tpu.memory_space<vmem>>, %arg9: memref<1x1x128xf32, #tpu.memory_space<vmem>>, %arg10: memref<1x1x128xf32, #tpu.memory_space<vmem>>, %arg11: memref<1x1x128xf32, #tpu.memory_space<vmem>>, %arg12: memref<1x128x128xbf16, #tpu.memory_space<vmem>>, %arg13: memref<1x1x128xf32, #tpu.memory_space<vmem>>, %arg14: memref<1x128x128xbf16, #tpu.memory_space<vmem>>, %arg15: memref<1x1x128xf32, #tpu.memory_space<vmem>>, %arg16: memref<1x16x128xf32, #tpu.memory_space<vmem>>) attributes {dimension_semantics = [#tpu.dimension_semantics<parallel>, #tpu.dimension_semantics<arbitrary>], iteration_bounds = array<i64: 2, 1>, scalar_prefetch = 0 : i64, scratch_operands = 0 : i64, tpu.core_type = #tpu.core_type<tc>, window_params = [{transform_indices = @transform_0, window_bounds = array<i64: 1, 16, 128>}, {pipeline_mode = #tpu.pipeline_mode<synchronous>, transform_indices = @transform_1, window_bounds = array<i64: 16, 1>}, {pipeline_mode = #tpu.pipeline_mode<synchronous>, transform_indices = @transform_2, window_bounds = array<i64: 16, 1>}, {pipeline_mode = #tpu.pipeline_mode<synchronous>, transform_indices = @transform_3, window_bounds = array<i64: 16, 1>}, {transform_indices = @transform_4, window_bounds = array<i64: 1, 1, 128>}, {transform_indices = @transform_5, window_bounds = array<i64: 1, 1, 128>}, {transform_indices = @transform_6, window_bounds = array<i64: 1, 1, 128>}, {transform_indices = @transform_7, window_bounds = array<i64: 1, 1, 128>}, {transform_indices = @transform_8, window_bounds = array<i64: 1, 1, 128>}, {transform_indices = @transform_9, window_bounds = array<i64: 1, 1, 128>}, {transform_indices = @transform_10, window_bounds = array<i64: 1, 128, 128>}, {transform_indices = @transform_11, window_bounds = array<i64: 1, 1, 128>}, {transform_indices = @transform_12, window_bounds = array<i64: 1, 128, 128>}, {transform_indices = @transform_13, window_bounds = array<i64: 1, 1, 128>}, {transform_indices = @transform_14, window_bounds = array<i64: 1, 16, 128>}]} {
    %c0_i32 = arith.constant 0 : i32
    %0 = arith.cmpi eq, %arg1, %c0_i32 : i32
    %1 = arith.extui %0 : i1 to i32
    %c0_i32_0 = arith.constant 0 : i32
    %2 = arith.cmpi ne, %1, %c0_i32_0 : i32
    scf.if %2 {
      %c0_61 = arith.constant 0 : index
      %c0_62 = arith.constant 0 : index
      %c0_63 = arith.constant 0 : index
      %127 = vector.load %arg2[%c0_61, %c0_62, %c0_63] : memref<1x16x128xf32, #tpu.memory_space<vmem>>, vector<1x16x128xf32>
      %c0_64 = arith.constant 0 : index
      %c0_65 = arith.constant 0 : index
      %c0_66 = arith.constant 0 : index
      %128 = vector.load %arg16[%c0_64, %c0_65, %c0_66] : memref<1x16x128xf32, #tpu.memory_space<vmem>>, vector<1x16x128xf32>
      tpu.vector_store %arg16[%c0_64, %c0_65, %c0_66], %127 {strides = array<i32>} : memref<1x16x128xf32, #tpu.memory_space<vmem>>, vector<1x16x128xf32>,
    } else {
    }
    %c0 = arith.constant 0 : index
    %c0_1 = arith.constant 0 : index
    %c0_2 = arith.constant 0 : index
    %3 = vector.load %arg16[%c0, %c0_1, %c0_2] : memref<1x16x128xf32, #tpu.memory_space<vmem>>, vector<1x16x128xf32>
    %4 = vector.shape_cast %3 : vector<1x16x128xf32> to vector<16x128xf32>
    %5 = vector.shape_cast %4 : vector<16x128xf32> to vector<1x16x128xf32>
    %cst = arith.constant dense<0.000000e+00> : vector<1xf32>
    %6 = vector.multi_reduction <add>, %5, %cst [1, 2] : vector<1x16x128xf32> to vector<1xf32>
    %7 = vector.shape_cast %6 : vector<1xf32> to vector<1x1x1xf32>
    %8 = vector.extract %7[0, 0, 0] : f32 from vector<1x1x1xf32>
    %cst_3 = arith.constant 0.00130208337 : f32
    %9 = arith.mulf %8, %cst_3 : f32
    %10 = arith.mulf %4, %4 : vector<16x128xf32>
    %11 = vector.shape_cast %10 : vector<16x128xf32> to vector<1x16x128xf32>
    %cst_4 = arith.constant dense<0.000000e+00> : vector<1xf32>
    %12 = vector.multi_reduction <add>, %11, %cst_4 [1, 2] : vector<1x16x128xf32> to vector<1xf32>
    %13 = vector.shape_cast %12 : vector<1xf32> to vector<1x1x1xf32>
    %14 = vector.extract %13[0, 0, 0] : f32 from vector<1x1x1xf32>
    %cst_5 = arith.constant 0.00130208337 : f32
    %15 = arith.mulf %14, %cst_5 : f32
    %16 = arith.mulf %9, %9 : f32
    %17 = arith.subf %15, %16 : f32
    %cst_6 = arith.constant 0.000000e+00 : f32
    %18 = arith.maximumf %17, %cst_6 : f32
    %19 = vector.broadcast %9 : f32 to vector<16x128xf32>
    %20 = arith.subf %4, %19 : vector<16x128xf32>
    %cst_7 = arith.constant 9.99999974E-6 : f32
    %21 = arith.addf %18, %cst_7 : f32
    %22 = math.rsqrt %21 : f32
    %23 = vector.broadcast %22 : f32 to vector<16x128xf32>
    %24 = arith.mulf %20, %23 : vector<16x128xf32>
    %c0_8 = arith.constant 0 : index
    %c0_9 = arith.constant 0 : index
    %c0_10 = arith.constant 0 : index
    %25 = vector.load %arg6[%c0_8, %c0_9, %c0_10] : memref<1x1x128xf32, #tpu.memory_space<vmem>>, vector<1x1x128xf32>
    %26 = vector.shape_cast %25 : vector<1x1x128xf32> to vector<1x128xf32>
    %27 = vector.broadcast %26 : vector<1x128xf32> to vector<16x128xf32>
    %28 = arith.mulf %24, %27 : vector<16x128xf32>
    %c0_11 = arith.constant 0 : index
    %c0_12 = arith.constant 0 : index
    %c0_13 = arith.constant 0 : index
    %29 = vector.load %arg7[%c0_11, %c0_12, %c0_13] : memref<1x1x128xf32, #tpu.memory_space<vmem>>, vector<1x1x128xf32>
    %30 = vector.shape_cast %29 : vector<1x1x128xf32> to vector<1x128xf32>
    %31 = vector.broadcast %30 : vector<1x128xf32> to vector<16x128xf32>
    %32 = arith.addf %28, %31 : vector<16x128xf32>
    %cst_14 = arith.constant 0.000000e+00 : f32
    %33 = vector.broadcast %cst_14 : f32 to vector<4x128xf32>
    %34 = vector.extract_strided_slice %32 {offsets = [0, 0], sizes = [12, 128], strides = [1, 1]} : vector<16x128xf32> to vector<12x128xf32>
    %35 = tpu.concatenate %33, %34 in 0 : vector<4x128xf32>, vector<12x128xf32> -> vector<16x128xf32>
    %36 = arith.addf %32, %35 : vector<16x128xf32>
    %37 = vector.extract_strided_slice %32 {offsets = [4, 0], sizes = [12, 128], strides = [1, 1]} : vector<16x128xf32> to vector<12x128xf32>
    %38 = tpu.concatenate %37, %33 in 0 : vector<12x128xf32>, vector<4x128xf32> -> vector<16x128xf32>
    %39 = arith.addf %36, %38 : vector<16x128xf32>
    %cst_15 = arith.constant 0.000000e+00 : f32
    %40 = vector.broadcast %cst_15 : f32 to vector<1x128xf32>
    %c0_16 = arith.constant 0 : index
    %c0_17 = arith.constant 0 : index
    %41 = vector.load %arg4[%c0_16, %c0_17] : memref<16x1xf32, #tpu.memory_space<vmem>>, vector<16x1xf32>
    %42 = vector.extract_strided_slice %39 {offsets = [0, 0], sizes = [15, 128], strides = [1, 1]} : vector<16x128xf32> to vector<15x128xf32>
    %43 = tpu.concatenate %40, %42 in 0 : vector<1x128xf32>, vector<15x128xf32> -> vector<16x128xf32>
    %44 = vector.broadcast %41 : vector<16x1xf32> to vector<16x128xf32>
    %45 = arith.mulf %44, %43 : vector<16x128xf32>
    %46 = arith.addf %39, %45 : vector<16x128xf32>
    %c0_18 = arith.constant 0 : index
    %c0_19 = arith.constant 0 : index
    %47 = vector.load %arg5[%c0_18, %c0_19] : memref<16x1xf32, #tpu.memory_space<vmem>>, vector<16x1xf32>
    %48 = vector.extract_strided_slice %39 {offsets = [1, 0], sizes = [15, 128], strides = [1, 1]} : vector<16x128xf32> to vector<15x128xf32>
    %49 = tpu.concatenate %48, %40 in 0 : vector<15x128xf32>, vector<1x128xf32> -> vector<16x128xf32>
    %50 = vector.broadcast %47 : vector<16x1xf32> to vector<16x128xf32>
    %51 = arith.mulf %50, %49 : vector<16x128xf32>
    %52 = arith.addf %46, %51 : vector<16x128xf32>
    %c0_20 = arith.constant 0 : index
    %c0_21 = arith.constant 0 : index
    %53 = vector.load %arg3[%c0_20, %c0_21] : memref<16x1xf32, #tpu.memory_space<vmem>>, vector<16x1xf32>
    %54 = vector.broadcast %53 : vector<16x1xf32> to vector<16x128xf32>
    %55 = arith.mulf %52, %54 : vector<16x128xf32>
    %56 = arith.subf %55, %32 : vector<16x128xf32>
    %c0_22 = arith.constant 0 : index
    %c0_23 = arith.constant 0 : index
    %c0_24 = arith.constant 0 : index
    %57 = vector.load %arg8[%c0_22, %c0_23, %c0_24] : memref<1x1x128xf32, #tpu.memory_space<vmem>>, vector<1x1x128xf32>
    %58 = vector.shape_cast %57 : vector<1x1x128xf32> to vector<1x128xf32>
    %59 = vector.broadcast %58 : vector<1x128xf32> to vector<16x128xf32>
    %60 = arith.mulf %59, %56 : vector<16x128xf32>
    %61 = arith.addf %4, %60 : vector<16x128xf32>
    %62 = vector.shape_cast %61 : vector<16x128xf32> to vector<1x16x128xf32>
    %cst_25 = arith.constant dense<0.000000e+00> : vector<1xf32>
    %63 = vector.multi_reduction <add>, %62, %cst_25 [1, 2] : vector<1x16x128xf32> to vector<1xf32>
    %64 = vector.shape_cast %63 : vector<1xf32> to vector<1x1x1xf32>
    %65 = vector.extract %64[0, 0, 0] : f32 from vector<1x1x1xf32>
    %cst_26 = arith.constant 0.00130208337 : f32
    %66 = arith.mulf %65, %cst_26 : f32
    %67 = arith.mulf %61, %61 : vector<16x128xf32>
    %68 = vector.shape_cast %67 : vector<16x128xf32> to vector<1x16x128xf32>
    %cst_27 = arith.constant dense<0.000000e+00> : vector<1xf32>
    %69 = vector.multi_reduction <add>, %68, %cst_27 [1, 2] : vector<1x16x128xf32> to vector<1xf32>
    %70 = vector.shape_cast %69 : vector<1xf32> to vector<1x1x1xf32>
    %71 = vector.extract %70[0, 0, 0] : f32 from vector<1x1x1xf32>
    %cst_28 = arith.constant 0.00130208337 : f32
    %72 = arith.mulf %71, %cst_28 : f32
    %73 = arith.mulf %66, %66 : f32
    %74 = arith.subf %72, %73 : f32
    %cst_29 = arith.constant 0.000000e+00 : f32
    %75 = arith.maximumf %74, %cst_29 : f32
    %76 = vector.broadcast %66 : f32 to vector<16x128xf32>
    %77 = arith.subf %61, %76 : vector<16x128xf32>
    %cst_30 = arith.constant 9.99999974E-6 : f32
    %78 = arith.addf %75, %cst_30 : f32
    %79 = math.rsqrt %78 : f32
    %80 = vector.broadcast %79 : f32 to vector<16x128xf32>
    %81 = arith.mulf %77, %80 : vector<16x128xf32>
    %c0_31 = arith.constant 0 : index
    %c0_32 = arith.constant 0 : index
    %c0_33 = arith.constant 0 : index
    %82 = vector.load %arg9[%c0_31, %c0_32, %c0_33] : memref<1x1x128xf32, #tpu.memory_space<vmem>>, vector<1x1x128xf32>
    %83 = vector.shape_cast %82 : vector<1x1x128xf32> to vector<1x128xf32>
    %84 = vector.broadcast %83 : vector<1x128xf32> to vector<16x128xf32>
    %85 = arith.mulf %81, %84 : vector<16x128xf32>
    %c0_34 = arith.constant 0 : index
    %c0_35 = arith.constant 0 : index
    %c0_36 = arith.constant 0 : index
    %86 = vector.load %arg10[%c0_34, %c0_35, %c0_36] : memref<1x1x128xf32, #tpu.memory_space<vmem>>, vector<1x1x128xf32>
    %87 = vector.shape_cast %86 : vector<1x1x128xf32> to vector<1x128xf32>
    %88 = vector.broadcast %87 : vector<1x128xf32> to vector<16x128xf32>
    %89 = arith.addf %85, %88 : vector<16x128xf32>
    %90 = arith.truncf %89 : vector<16x128xf32> to vector<16x128xbf16>
    %c0_37 = arith.constant 0 : index
    %c0_38 = arith.constant 0 : index
    %c0_39 = arith.constant 0 : index
    %91 = vector.load %arg12[%c0_37, %c0_38, %c0_39] : memref<1x128x128xbf16, #tpu.memory_space<vmem>>, vector<1x128x128xbf16>
    %92 = vector.shape_cast %91 : vector<1x128x128xbf16> to vector<128x128xbf16>
    %cst_40 = arith.constant dense<0.000000e+00> : vector<16x128xf32>
    %93 = tpu.matmul %90, %92, %cst_40 {dimension_numbers = #tpu.dot_dimension_numbers<[1], [0], [0], [1], [0, 0, 1, 1], [], []>} : vector<16x128xbf16>, vector<128x128xbf16>, vector<16x128xf32> -> vector<16x128xf32>
    %c0_41 = arith.constant 0 : index
    %c0_42 = arith.constant 0 : index
    %c0_43 = arith.constant 0 : index
    %94 = vector.load %arg13[%c0_41, %c0_42, %c0_43] : memref<1x1x128xf32, #tpu.memory_space<vmem>>, vector<1x1x128xf32>
    %95 = vector.shape_cast %94 : vector<1x1x128xf32> to vector<1x128xf32>
    %96 = vector.broadcast %95 : vector<1x128xf32> to vector<16x128xf32>
    %97 = arith.addf %93, %96 : vector<16x128xf32>
    %98 = arith.mulf %97, %97 : vector<16x128xf32>
    %99 = arith.mulf %97, %98 : vector<16x128xf32>
    %cst_44 = arith.constant 4.471500e-02 : f32
    %100 = vector.broadcast %cst_44 : f32 to vector<16x128xf32>
    %101 = arith.mulf %100, %99 : vector<16x128xf32>
    %102 = arith.addf %97, %101 : vector<16x128xf32>
    %cst_45 = arith.constant 0.797884583 : f32
    %103 = vector.broadcast %cst_45 : f32 to vector<16x128xf32>
    %104 = arith.mulf %103, %102 : vector<16x128xf32>
    %105 = math.tanh %104 : vector<16x128xf32>
    %cst_46 = arith.constant 1.000000e+00 : f32
    %106 = vector.broadcast %cst_46 : f32 to vector<16x128xf32>
    %107 = arith.addf %106, %105 : vector<16x128xf32>
    %cst_47 = arith.constant 5.000000e-01 : f32
    %108 = vector.broadcast %cst_47 : f32 to vector<16x128xf32>
    %109 = arith.mulf %108, %107 : vector<16x128xf32>
    %110 = arith.mulf %97, %109 : vector<16x128xf32>
    %111 = arith.truncf %110 : vector<16x128xf32> to vector<16x128xbf16>
    %c0_48 = arith.constant 0 : index
    %c0_49 = arith.constant 0 : index
    %c0_50 = arith.constant 0 : index
    %112 = vector.load %arg14[%c0_48, %c0_49, %c0_50] : memref<1x128x128xbf16, #tpu.memory_space<vmem>>, vector<1x128x128xbf16>
    %113 = vector.shape_cast %112 : vector<1x128x128xbf16> to vector<128x128xbf16>
    %cst_51 = arith.constant dense<0.000000e+00> : vector<16x128xf32>
    %114 = tpu.matmul %111, %113, %cst_51 {dimension_numbers = #tpu.dot_dimension_numbers<[1], [0], [0], [1], [0, 0, 1, 1], [], []>} : vector<16x128xbf16>, vector<128x128xbf16>, vector<16x128xf32> -> vector<16x128xf32>
    %c0_52 = arith.constant 0 : index
    %c0_53 = arith.constant 0 : index
    %c0_54 = arith.constant 0 : index
    %115 = vector.load %arg15[%c0_52, %c0_53, %c0_54] : memref<1x1x128xf32, #tpu.memory_space<vmem>>, vector<1x1x128xf32>
    %116 = vector.shape_cast %115 : vector<1x1x128xf32> to vector<1x128xf32>
    %117 = vector.broadcast %116 : vector<1x128xf32> to vector<16x128xf32>
    %118 = arith.addf %114, %117 : vector<16x128xf32>
    %c0_55 = arith.constant 0 : index
    %c0_56 = arith.constant 0 : index
    %c0_57 = arith.constant 0 : index
    %119 = vector.load %arg11[%c0_55, %c0_56, %c0_57] : memref<1x1x128xf32, #tpu.memory_space<vmem>>, vector<1x1x128xf32>
    %120 = vector.shape_cast %119 : vector<1x1x128xf32> to vector<1x128xf32>
    %121 = vector.broadcast %120 : vector<1x128xf32> to vector<16x128xf32>
    %122 = arith.mulf %121, %118 : vector<16x128xf32>
    %123 = arith.addf %61, %122 : vector<16x128xf32>
    %c0_58 = arith.constant 0 : index
    %c0_59 = arith.constant 0 : index
    %c0_60 = arith.constant 0 : index
    %124 = vector.load %arg16[%c0_58, %c0_59, %c0_60] : memref<1x16x128xf32, #tpu.memory_space<vmem>>, vector<1x16x128xf32>
    %125 = vector.shape_cast %124 : vector<1x16x128xf32> to vector<16x128xf32>
    %126 = vector.shape_cast %123 : vector<16x128xf32> to vector<1x16x128xf32>
    tpu.vector_store %arg16[%c0_58, %c0_59, %c0_60], %126 {strides = array<i32>} : memref<1x16x128xf32, #tpu.memory_space<vmem>>, vector<1x16x128xf32>,
    return
  }
  func.func @transform_0(%arg0: i32, %arg1: i32) -> (i32, i32, i32) {
    %c0_i32 = arith.constant 0 : i32
    %c0_i32_0 = arith.constant 0 : i32
    %c0_i32_1 = arith.constant 0 : i32
    return %arg0, %c0_i32, %c0_i32_0 : i32, i32, i32
  }
  func.func @transform_1(%arg0: i32, %arg1: i32) -> (i32, i32) {
    %c0_i32 = arith.constant 0 : i32
    %c0_i32_0 = arith.constant 0 : i32
    %c0_i32_1 = arith.constant 0 : i32
    return %c0_i32, %c0_i32_0 : i32, i32
  }
  func.func @transform_2(%arg0: i32, %arg1: i32) -> (i32, i32) {
    %c0_i32 = arith.constant 0 : i32
    %c0_i32_0 = arith.constant 0 : i32
    %c0_i32_1 = arith.constant 0 : i32
    return %c0_i32, %c0_i32_0 : i32, i32
  }
  func.func @transform_3(%arg0: i32, %arg1: i32) -> (i32, i32) {
    %c0_i32 = arith.constant 0 : i32
    %c0_i32_0 = arith.constant 0 : i32
    %c0_i32_1 = arith.constant 0 : i32
    return %c0_i32, %c0_i32_0 : i32, i32
  }
  func.func @transform_4(%arg0: i32, %arg1: i32) -> (i32, i32, i32) {
    %c0_i32 = arith.constant 0 : i32
    %c0_i32_0 = arith.constant 0 : i32
    %c0_i32_1 = arith.constant 0 : i32
    return %arg1, %c0_i32, %c0_i32_0 : i32, i32, i32
  }
  func.func @transform_5(%arg0: i32, %arg1: i32) -> (i32, i32, i32) {
    %c0_i32 = arith.constant 0 : i32
    %c0_i32_0 = arith.constant 0 : i32
    %c0_i32_1 = arith.constant 0 : i32
    return %arg1, %c0_i32, %c0_i32_0 : i32, i32, i32
  }
  func.func @transform_6(%arg0: i32, %arg1: i32) -> (i32, i32, i32) {
    %c0_i32 = arith.constant 0 : i32
    %c0_i32_0 = arith.constant 0 : i32
    %c0_i32_1 = arith.constant 0 : i32
    return %arg1, %c0_i32, %c0_i32_0 : i32, i32, i32
  }
  func.func @transform_7(%arg0: i32, %arg1: i32) -> (i32, i32, i32) {
    %c0_i32 = arith.constant 0 : i32
    %c0_i32_0 = arith.constant 0 : i32
    %c0_i32_1 = arith.constant 0 : i32
    return %arg1, %c0_i32, %c0_i32_0 : i32, i32, i32
  }
  func.func @transform_8(%arg0: i32, %arg1: i32) -> (i32, i32, i32) {
    %c0_i32 = arith.constant 0 : i32
    %c0_i32_0 = arith.constant 0 : i32
    %c0_i32_1 = arith.constant 0 : i32
    return %arg1, %c0_i32, %c0_i32_0 : i32, i32, i32
  }
  func.func @transform_9(%arg0: i32, %arg1: i32) -> (i32, i32, i32) {
    %c0_i32 = arith.constant 0 : i32
    %c0_i32_0 = arith.constant 0 : i32
    %c0_i32_1 = arith.constant 0 : i32
    return %arg1, %c0_i32, %c0_i32_0 : i32, i32, i32
  }
  func.func @transform_10(%arg0: i32, %arg1: i32) -> (i32, i32, i32) {
    %c0_i32 = arith.constant 0 : i32
    %c0_i32_0 = arith.constant 0 : i32
    %c0_i32_1 = arith.constant 0 : i32
    return %arg1, %c0_i32, %c0_i32_0 : i32, i32, i32
  }
  func.func @transform_11(%arg0: i32, %arg1: i32) -> (i32, i32, i32) {
    %c0_i32 = arith.constant 0 : i32
    %c0_i32_0 = arith.constant 0 : i32
    %c0_i32_1 = arith.constant 0 : i32
    return %arg1, %c0_i32, %c0_i32_0 : i32, i32, i32
  }
  func.func @transform_12(%arg0: i32, %arg1: i32) -> (i32, i32, i32) {
    %c0_i32 = arith.constant 0 : i32
    %c0_i32_0 = arith.constant 0 : i32
    %c0_i32_1 = arith.constant 0 : i32
    return %arg1, %c0_i32, %c0_i32_0 : i32, i32, i32
  }
  func.func @transform_13(%arg0: i32, %arg1: i32) -> (i32, i32, i32) {
    %c0_i32 = arith.constant 0 : i32
    %c0_i32_0 = arith.constant 0 : i32
    %c0_i32_1 = arith.constant 0 : i32
    return %arg1, %c0_i32, %c0_i32_0 : i32, i32, i32
  }
  func.func @transform_14(%arg0: i32, %arg1: i32) -> (i32, i32, i32) {
    %c0_i32 = arith.constant 0 : i32
    %c0_i32_0 = arith.constant 0 : i32
    %c0_i32_1 = arith.constant 0 : i32
    return %arg0, %c0_i32, %c0_i32_0 : i32, i32, i32
  }
}

module attributes {stable_mosaic.version = 11 : i64} {
  func.func @_matmul_bias_kernel(%arg0: i32, %arg1: memref<8x512xbf16, #tpu.memory_space<vmem>>, %arg2: memref<512x128xbf16, #tpu.memory_space<vmem>>, %arg3: memref<1x128xf32, #tpu.memory_space<vmem>>, %arg4: memref<8x128xf32, #tpu.memory_space<vmem>>) attributes {dimension_semantics = [#tpu.dimension_semantics<parallel>], iteration_bounds = array<i64: 1>, scalar_prefetch = 0 : i64, scratch_operands = 0 : i64, tpu.core_type = #tpu.core_type<tc>, window_params = [{transform_indices = @transform_0, window_bounds = array<i64: 8, 512>}, {pipeline_mode = #tpu.pipeline_mode<synchronous>, transform_indices = @transform_1, window_bounds = array<i64: 512, 128>}, {pipeline_mode = #tpu.pipeline_mode<synchronous>, transform_indices = @transform_2, window_bounds = array<i64: 1, 128>}, {transform_indices = @transform_3, window_bounds = array<i64: 8, 128>}]} {
    %c0 = arith.constant 0 : index
    %c0_0 = arith.constant 0 : index
    %0 = vector.load %arg1[%c0, %c0_0] : memref<8x512xbf16, #tpu.memory_space<vmem>>, vector<8x512xbf16>
    %c0_1 = arith.constant 0 : index
    %c0_2 = arith.constant 0 : index
    %1 = vector.load %arg2[%c0_1, %c0_2] : memref<512x128xbf16, #tpu.memory_space<vmem>>, vector<512x128xbf16>
    %cst = arith.constant dense<0.000000e+00> : vector<8x128xf32>
    %2 = tpu.matmul %0, %1, %cst {dimension_numbers = #tpu.dot_dimension_numbers<[1], [0], [0], [1], [0, 0, 1, 1], [], []>} : vector<8x512xbf16>, vector<512x128xbf16>, vector<8x128xf32> -> vector<8x128xf32>
    %c0_3 = arith.constant 0 : index
    %c0_4 = arith.constant 0 : index
    %3 = vector.load %arg3[%c0_3, %c0_4] : memref<1x128xf32, #tpu.memory_space<vmem>>, vector<1x128xf32>
    %4 = vector.broadcast %3 : vector<1x128xf32> to vector<8x128xf32>
    %5 = arith.addf %2, %4 : vector<8x128xf32>
    %c0_5 = arith.constant 0 : index
    %c0_6 = arith.constant 0 : index
    %6 = vector.load %arg4[%c0_5, %c0_6] : memref<8x128xf32, #tpu.memory_space<vmem>>, vector<8x128xf32>
    tpu.vector_store %arg4[%c0_5, %c0_6], %5 {strides = array<i32>} : memref<8x128xf32, #tpu.memory_space<vmem>>, vector<8x128xf32>,
    return
  }
  func.func @transform_0(%arg0: i32) -> (i32, i32) {
    %c0_i32 = arith.constant 0 : i32
    %c0_i32_0 = arith.constant 0 : i32
    return %arg0, %c0_i32 : i32, i32
  }
  func.func @transform_1(%arg0: i32) -> (i32, i32) {
    %c0_i32 = arith.constant 0 : i32
    %c0_i32_0 = arith.constant 0 : i32
    %c0_i32_1 = arith.constant 0 : i32
    return %c0_i32, %c0_i32_0 : i32, i32
  }
  func.func @transform_2(%arg0: i32) -> (i32, i32) {
    %c0_i32 = arith.constant 0 : i32
    %c0_i32_0 = arith.constant 0 : i32
    %c0_i32_1 = arith.constant 0 : i32
    return %c0_i32, %c0_i32_0 : i32, i32
  }
  func.func @transform_3(%arg0: i32) -> (i32, i32) {
    %c0_i32 = arith.constant 0 : i32
    %c0_i32_0 = arith.constant 0 : i32
    return %arg0, %c0_i32 : i32, i32
  }
}

module attributes {stable_mosaic.version = 11 : i64} {
  func.func @_stage_kernel(%arg0: i32, %arg1: i32, %arg2: memref<1x4x128xf32, #tpu.memory_space<vmem>>, %arg3: memref<4x1xf32, #tpu.memory_space<vmem>>, %arg4: memref<4x1xf32, #tpu.memory_space<vmem>>, %arg5: memref<4x1xf32, #tpu.memory_space<vmem>>, %arg6: memref<1x1x128xf32, #tpu.memory_space<vmem>>, %arg7: memref<1x1x128xf32, #tpu.memory_space<vmem>>, %arg8: memref<1x1x128xf32, #tpu.memory_space<vmem>>, %arg9: memref<1x1x128xf32, #tpu.memory_space<vmem>>, %arg10: memref<1x1x128xf32, #tpu.memory_space<vmem>>, %arg11: memref<1x1x128xf32, #tpu.memory_space<vmem>>, %arg12: memref<1x128x128xbf16, #tpu.memory_space<vmem>>, %arg13: memref<1x1x128xf32, #tpu.memory_space<vmem>>, %arg14: memref<1x128x128xbf16, #tpu.memory_space<vmem>>, %arg15: memref<1x1x128xf32, #tpu.memory_space<vmem>>, %arg16: memref<1x4x128xf32, #tpu.memory_space<vmem>>) attributes {dimension_semantics = [#tpu.dimension_semantics<parallel>, #tpu.dimension_semantics<arbitrary>], iteration_bounds = array<i64: 2, 1>, scalar_prefetch = 0 : i64, scratch_operands = 0 : i64, tpu.core_type = #tpu.core_type<tc>, window_params = [{transform_indices = @transform_0, window_bounds = array<i64: 1, 4, 128>}, {pipeline_mode = #tpu.pipeline_mode<synchronous>, transform_indices = @transform_1, window_bounds = array<i64: 4, 1>}, {pipeline_mode = #tpu.pipeline_mode<synchronous>, transform_indices = @transform_2, window_bounds = array<i64: 4, 1>}, {pipeline_mode = #tpu.pipeline_mode<synchronous>, transform_indices = @transform_3, window_bounds = array<i64: 4, 1>}, {transform_indices = @transform_4, window_bounds = array<i64: 1, 1, 128>}, {transform_indices = @transform_5, window_bounds = array<i64: 1, 1, 128>}, {transform_indices = @transform_6, window_bounds = array<i64: 1, 1, 128>}, {transform_indices = @transform_7, window_bounds = array<i64: 1, 1, 128>}, {transform_indices = @transform_8, window_bounds = array<i64: 1, 1, 128>}, {transform_indices = @transform_9, window_bounds = array<i64: 1, 1, 128>}, {transform_indices = @transform_10, window_bounds = array<i64: 1, 128, 128>}, {transform_indices = @transform_11, window_bounds = array<i64: 1, 1, 128>}, {transform_indices = @transform_12, window_bounds = array<i64: 1, 128, 128>}, {transform_indices = @transform_13, window_bounds = array<i64: 1, 1, 128>}, {transform_indices = @transform_14, window_bounds = array<i64: 1, 4, 128>}]} {
    %c0_i32 = arith.constant 0 : i32
    %0 = arith.cmpi eq, %arg1, %c0_i32 : i32
    %1 = arith.extui %0 : i1 to i32
    %c0_i32_0 = arith.constant 0 : i32
    %2 = arith.cmpi ne, %1, %c0_i32_0 : i32
    scf.if %2 {
      %c0_61 = arith.constant 0 : index
      %c0_62 = arith.constant 0 : index
      %c0_63 = arith.constant 0 : index
      %127 = vector.load %arg2[%c0_61, %c0_62, %c0_63] : memref<1x4x128xf32, #tpu.memory_space<vmem>>, vector<1x4x128xf32>
      %c0_64 = arith.constant 0 : index
      %c0_65 = arith.constant 0 : index
      %c0_66 = arith.constant 0 : index
      %128 = vector.load %arg16[%c0_64, %c0_65, %c0_66] : memref<1x4x128xf32, #tpu.memory_space<vmem>>, vector<1x4x128xf32>
      tpu.vector_store %arg16[%c0_64, %c0_65, %c0_66], %127 {strides = array<i32>} : memref<1x4x128xf32, #tpu.memory_space<vmem>>, vector<1x4x128xf32>,
    } else {
    }
    %c0 = arith.constant 0 : index
    %c0_1 = arith.constant 0 : index
    %c0_2 = arith.constant 0 : index
    %3 = vector.load %arg16[%c0, %c0_1, %c0_2] : memref<1x4x128xf32, #tpu.memory_space<vmem>>, vector<1x4x128xf32>
    %4 = vector.shape_cast %3 : vector<1x4x128xf32> to vector<4x128xf32>
    %5 = vector.shape_cast %4 : vector<4x128xf32> to vector<1x4x128xf32>
    %cst = arith.constant dense<0.000000e+00> : vector<1xf32>
    %6 = vector.multi_reduction <add>, %5, %cst [1, 2] : vector<1x4x128xf32> to vector<1xf32>
    %7 = vector.shape_cast %6 : vector<1xf32> to vector<1x1x1xf32>
    %8 = vector.extract %7[0, 0, 0] : f32 from vector<1x1x1xf32>
    %cst_3 = arith.constant 3.906250e-03 : f32
    %9 = arith.mulf %8, %cst_3 : f32
    %10 = arith.mulf %4, %4 : vector<4x128xf32>
    %11 = vector.shape_cast %10 : vector<4x128xf32> to vector<1x4x128xf32>
    %cst_4 = arith.constant dense<0.000000e+00> : vector<1xf32>
    %12 = vector.multi_reduction <add>, %11, %cst_4 [1, 2] : vector<1x4x128xf32> to vector<1xf32>
    %13 = vector.shape_cast %12 : vector<1xf32> to vector<1x1x1xf32>
    %14 = vector.extract %13[0, 0, 0] : f32 from vector<1x1x1xf32>
    %cst_5 = arith.constant 3.906250e-03 : f32
    %15 = arith.mulf %14, %cst_5 : f32
    %16 = arith.mulf %9, %9 : f32
    %17 = arith.subf %15, %16 : f32
    %cst_6 = arith.constant 0.000000e+00 : f32
    %18 = arith.maximumf %17, %cst_6 : f32
    %19 = vector.broadcast %9 : f32 to vector<4x128xf32>
    %20 = arith.subf %4, %19 : vector<4x128xf32>
    %cst_7 = arith.constant 9.99999974E-6 : f32
    %21 = arith.addf %18, %cst_7 : f32
    %22 = math.rsqrt %21 : f32
    %23 = vector.broadcast %22 : f32 to vector<4x128xf32>
    %24 = arith.mulf %20, %23 : vector<4x128xf32>
    %c0_8 = arith.constant 0 : index
    %c0_9 = arith.constant 0 : index
    %c0_10 = arith.constant 0 : index
    %25 = vector.load %arg6[%c0_8, %c0_9, %c0_10] : memref<1x1x128xf32, #tpu.memory_space<vmem>>, vector<1x1x128xf32>
    %26 = vector.shape_cast %25 : vector<1x1x128xf32> to vector<1x128xf32>
    %27 = vector.broadcast %26 : vector<1x128xf32> to vector<4x128xf32>
    %28 = arith.mulf %24, %27 : vector<4x128xf32>
    %c0_11 = arith.constant 0 : index
    %c0_12 = arith.constant 0 : index
    %c0_13 = arith.constant 0 : index
    %29 = vector.load %arg7[%c0_11, %c0_12, %c0_13] : memref<1x1x128xf32, #tpu.memory_space<vmem>>, vector<1x1x128xf32>
    %30 = vector.shape_cast %29 : vector<1x1x128xf32> to vector<1x128xf32>
    %31 = vector.broadcast %30 : vector<1x128xf32> to vector<4x128xf32>
    %32 = arith.addf %28, %31 : vector<4x128xf32>
    %cst_14 = arith.constant 0.000000e+00 : f32
    %33 = vector.broadcast %cst_14 : f32 to vector<2x128xf32>
    %34 = vector.extract_strided_slice %32 {offsets = [0, 0], sizes = [2, 128], strides = [1, 1]} : vector<4x128xf32> to vector<2x128xf32>
    %35 = tpu.concatenate %33, %34 in 0 : vector<2x128xf32>, vector<2x128xf32> -> vector<4x128xf32>
    %36 = arith.addf %32, %35 : vector<4x128xf32>
    %37 = vector.extract_strided_slice %32 {offsets = [2, 0], sizes = [2, 128], strides = [1, 1]} : vector<4x128xf32> to vector<2x128xf32>
    %38 = tpu.concatenate %37, %33 in 0 : vector<2x128xf32>, vector<2x128xf32> -> vector<4x128xf32>
    %39 = arith.addf %36, %38 : vector<4x128xf32>
    %cst_15 = arith.constant 0.000000e+00 : f32
    %40 = vector.broadcast %cst_15 : f32 to vector<1x128xf32>
    %c0_16 = arith.constant 0 : index
    %c0_17 = arith.constant 0 : index
    %41 = vector.load %arg4[%c0_16, %c0_17] : memref<4x1xf32, #tpu.memory_space<vmem>>, vector<4x1xf32>
    %42 = vector.extract_strided_slice %39 {offsets = [0, 0], sizes = [3, 128], strides = [1, 1]} : vector<4x128xf32> to vector<3x128xf32>
    %43 = tpu.concatenate %40, %42 in 0 : vector<1x128xf32>, vector<3x128xf32> -> vector<4x128xf32>
    %44 = vector.broadcast %41 : vector<4x1xf32> to vector<4x128xf32>
    %45 = arith.mulf %44, %43 : vector<4x128xf32>
    %46 = arith.addf %39, %45 : vector<4x128xf32>
    %c0_18 = arith.constant 0 : index
    %c0_19 = arith.constant 0 : index
    %47 = vector.load %arg5[%c0_18, %c0_19] : memref<4x1xf32, #tpu.memory_space<vmem>>, vector<4x1xf32>
    %48 = vector.extract_strided_slice %39 {offsets = [1, 0], sizes = [3, 128], strides = [1, 1]} : vector<4x128xf32> to vector<3x128xf32>
    %49 = tpu.concatenate %48, %40 in 0 : vector<3x128xf32>, vector<1x128xf32> -> vector<4x128xf32>
    %50 = vector.broadcast %47 : vector<4x1xf32> to vector<4x128xf32>
    %51 = arith.mulf %50, %49 : vector<4x128xf32>
    %52 = arith.addf %46, %51 : vector<4x128xf32>
    %c0_20 = arith.constant 0 : index
    %c0_21 = arith.constant 0 : index
    %53 = vector.load %arg3[%c0_20, %c0_21] : memref<4x1xf32, #tpu.memory_space<vmem>>, vector<4x1xf32>
    %54 = vector.broadcast %53 : vector<4x1xf32> to vector<4x128xf32>
    %55 = arith.mulf %52, %54 : vector<4x128xf32>
    %56 = arith.subf %55, %32 : vector<4x128xf32>
    %c0_22 = arith.constant 0 : index
    %c0_23 = arith.constant 0 : index
    %c0_24 = arith.constant 0 : index
    %57 = vector.load %arg8[%c0_22, %c0_23, %c0_24] : memref<1x1x128xf32, #tpu.memory_space<vmem>>, vector<1x1x128xf32>
    %58 = vector.shape_cast %57 : vector<1x1x128xf32> to vector<1x128xf32>
    %59 = vector.broadcast %58 : vector<1x128xf32> to vector<4x128xf32>
    %60 = arith.mulf %59, %56 : vector<4x128xf32>
    %61 = arith.addf %4, %60 : vector<4x128xf32>
    %62 = vector.shape_cast %61 : vector<4x128xf32> to vector<1x4x128xf32>
    %cst_25 = arith.constant dense<0.000000e+00> : vector<1xf32>
    %63 = vector.multi_reduction <add>, %62, %cst_25 [1, 2] : vector<1x4x128xf32> to vector<1xf32>
    %64 = vector.shape_cast %63 : vector<1xf32> to vector<1x1x1xf32>
    %65 = vector.extract %64[0, 0, 0] : f32 from vector<1x1x1xf32>
    %cst_26 = arith.constant 3.906250e-03 : f32
    %66 = arith.mulf %65, %cst_26 : f32
    %67 = arith.mulf %61, %61 : vector<4x128xf32>
    %68 = vector.shape_cast %67 : vector<4x128xf32> to vector<1x4x128xf32>
    %cst_27 = arith.constant dense<0.000000e+00> : vector<1xf32>
    %69 = vector.multi_reduction <add>, %68, %cst_27 [1, 2] : vector<1x4x128xf32> to vector<1xf32>
    %70 = vector.shape_cast %69 : vector<1xf32> to vector<1x1x1xf32>
    %71 = vector.extract %70[0, 0, 0] : f32 from vector<1x1x1xf32>
    %cst_28 = arith.constant 3.906250e-03 : f32
    %72 = arith.mulf %71, %cst_28 : f32
    %73 = arith.mulf %66, %66 : f32
    %74 = arith.subf %72, %73 : f32
    %cst_29 = arith.constant 0.000000e+00 : f32
    %75 = arith.maximumf %74, %cst_29 : f32
    %76 = vector.broadcast %66 : f32 to vector<4x128xf32>
    %77 = arith.subf %61, %76 : vector<4x128xf32>
    %cst_30 = arith.constant 9.99999974E-6 : f32
    %78 = arith.addf %75, %cst_30 : f32
    %79 = math.rsqrt %78 : f32
    %80 = vector.broadcast %79 : f32 to vector<4x128xf32>
    %81 = arith.mulf %77, %80 : vector<4x128xf32>
    %c0_31 = arith.constant 0 : index
    %c0_32 = arith.constant 0 : index
    %c0_33 = arith.constant 0 : index
    %82 = vector.load %arg9[%c0_31, %c0_32, %c0_33] : memref<1x1x128xf32, #tpu.memory_space<vmem>>, vector<1x1x128xf32>
    %83 = vector.shape_cast %82 : vector<1x1x128xf32> to vector<1x128xf32>
    %84 = vector.broadcast %83 : vector<1x128xf32> to vector<4x128xf32>
    %85 = arith.mulf %81, %84 : vector<4x128xf32>
    %c0_34 = arith.constant 0 : index
    %c0_35 = arith.constant 0 : index
    %c0_36 = arith.constant 0 : index
    %86 = vector.load %arg10[%c0_34, %c0_35, %c0_36] : memref<1x1x128xf32, #tpu.memory_space<vmem>>, vector<1x1x128xf32>
    %87 = vector.shape_cast %86 : vector<1x1x128xf32> to vector<1x128xf32>
    %88 = vector.broadcast %87 : vector<1x128xf32> to vector<4x128xf32>
    %89 = arith.addf %85, %88 : vector<4x128xf32>
    %90 = arith.truncf %89 : vector<4x128xf32> to vector<4x128xbf16>
    %c0_37 = arith.constant 0 : index
    %c0_38 = arith.constant 0 : index
    %c0_39 = arith.constant 0 : index
    %91 = vector.load %arg12[%c0_37, %c0_38, %c0_39] : memref<1x128x128xbf16, #tpu.memory_space<vmem>>, vector<1x128x128xbf16>
    %92 = vector.shape_cast %91 : vector<1x128x128xbf16> to vector<128x128xbf16>
    %cst_40 = arith.constant dense<0.000000e+00> : vector<4x128xf32>
    %93 = tpu.matmul %90, %92, %cst_40 {dimension_numbers = #tpu.dot_dimension_numbers<[1], [0], [0], [1], [0, 0, 1, 1], [], []>} : vector<4x128xbf16>, vector<128x128xbf16>, vector<4x128xf32> -> vector<4x128xf32>
    %c0_41 = arith.constant 0 : index
    %c0_42 = arith.constant 0 : index
    %c0_43 = arith.constant 0 : index
    %94 = vector.load %arg13[%c0_41, %c0_42, %c0_43] : memref<1x1x128xf32, #tpu.memory_space<vmem>>, vector<1x1x128xf32>
    %95 = vector.shape_cast %94 : vector<1x1x128xf32> to vector<1x128xf32>
    %96 = vector.broadcast %95 : vector<1x128xf32> to vector<4x128xf32>
    %97 = arith.addf %93, %96 : vector<4x128xf32>
    %98 = arith.mulf %97, %97 : vector<4x128xf32>
    %99 = arith.mulf %97, %98 : vector<4x128xf32>
    %cst_44 = arith.constant 4.471500e-02 : f32
    %100 = vector.broadcast %cst_44 : f32 to vector<4x128xf32>
    %101 = arith.mulf %100, %99 : vector<4x128xf32>
    %102 = arith.addf %97, %101 : vector<4x128xf32>
    %cst_45 = arith.constant 0.797884583 : f32
    %103 = vector.broadcast %cst_45 : f32 to vector<4x128xf32>
    %104 = arith.mulf %103, %102 : vector<4x128xf32>
    %105 = math.tanh %104 : vector<4x128xf32>
    %cst_46 = arith.constant 1.000000e+00 : f32
    %106 = vector.broadcast %cst_46 : f32 to vector<4x128xf32>
    %107 = arith.addf %106, %105 : vector<4x128xf32>
    %cst_47 = arith.constant 5.000000e-01 : f32
    %108 = vector.broadcast %cst_47 : f32 to vector<4x128xf32>
    %109 = arith.mulf %108, %107 : vector<4x128xf32>
    %110 = arith.mulf %97, %109 : vector<4x128xf32>
    %111 = arith.truncf %110 : vector<4x128xf32> to vector<4x128xbf16>
    %c0_48 = arith.constant 0 : index
    %c0_49 = arith.constant 0 : index
    %c0_50 = arith.constant 0 : index
    %112 = vector.load %arg14[%c0_48, %c0_49, %c0_50] : memref<1x128x128xbf16, #tpu.memory_space<vmem>>, vector<1x128x128xbf16>
    %113 = vector.shape_cast %112 : vector<1x128x128xbf16> to vector<128x128xbf16>
    %cst_51 = arith.constant dense<0.000000e+00> : vector<4x128xf32>
    %114 = tpu.matmul %111, %113, %cst_51 {dimension_numbers = #tpu.dot_dimension_numbers<[1], [0], [0], [1], [0, 0, 1, 1], [], []>} : vector<4x128xbf16>, vector<128x128xbf16>, vector<4x128xf32> -> vector<4x128xf32>
    %c0_52 = arith.constant 0 : index
    %c0_53 = arith.constant 0 : index
    %c0_54 = arith.constant 0 : index
    %115 = vector.load %arg15[%c0_52, %c0_53, %c0_54] : memref<1x1x128xf32, #tpu.memory_space<vmem>>, vector<1x1x128xf32>
    %116 = vector.shape_cast %115 : vector<1x1x128xf32> to vector<1x128xf32>
    %117 = vector.broadcast %116 : vector<1x128xf32> to vector<4x128xf32>
    %118 = arith.addf %114, %117 : vector<4x128xf32>
    %c0_55 = arith.constant 0 : index
    %c0_56 = arith.constant 0 : index
    %c0_57 = arith.constant 0 : index
    %119 = vector.load %arg11[%c0_55, %c0_56, %c0_57] : memref<1x1x128xf32, #tpu.memory_space<vmem>>, vector<1x1x128xf32>
    %120 = vector.shape_cast %119 : vector<1x1x128xf32> to vector<1x128xf32>
    %121 = vector.broadcast %120 : vector<1x128xf32> to vector<4x128xf32>
    %122 = arith.mulf %121, %118 : vector<4x128xf32>
    %123 = arith.addf %61, %122 : vector<4x128xf32>
    %c0_58 = arith.constant 0 : index
    %c0_59 = arith.constant 0 : index
    %c0_60 = arith.constant 0 : index
    %124 = vector.load %arg16[%c0_58, %c0_59, %c0_60] : memref<1x4x128xf32, #tpu.memory_space<vmem>>, vector<1x4x128xf32>
    %125 = vector.shape_cast %124 : vector<1x4x128xf32> to vector<4x128xf32>
    %126 = vector.shape_cast %123 : vector<4x128xf32> to vector<1x4x128xf32>
    tpu.vector_store %arg16[%c0_58, %c0_59, %c0_60], %126 {strides = array<i32>} : memref<1x4x128xf32, #tpu.memory_space<vmem>>, vector<1x4x128xf32>,
    return
  }
  func.func @transform_0(%arg0: i32, %arg1: i32) -> (i32, i32, i32) {
    %c0_i32 = arith.constant 0 : i32
    %c0_i32_0 = arith.constant 0 : i32
    %c0_i32_1 = arith.constant 0 : i32
    return %arg0, %c0_i32, %c0_i32_0 : i32, i32, i32
  }
  func.func @transform_1(%arg0: i32, %arg1: i32) -> (i32, i32) {
    %c0_i32 = arith.constant 0 : i32
    %c0_i32_0 = arith.constant 0 : i32
    %c0_i32_1 = arith.constant 0 : i32
    return %c0_i32, %c0_i32_0 : i32, i32
  }
  func.func @transform_2(%arg0: i32, %arg1: i32) -> (i32, i32) {
    %c0_i32 = arith.constant 0 : i32
    %c0_i32_0 = arith.constant 0 : i32
    %c0_i32_1 = arith.constant 0 : i32
    return %c0_i32, %c0_i32_0 : i32, i32
  }
  func.func @transform_3(%arg0: i32, %arg1: i32) -> (i32, i32) {
    %c0_i32 = arith.constant 0 : i32
    %c0_i32_0 = arith.constant 0 : i32
    %c0_i32_1 = arith.constant 0 : i32
    return %c0_i32, %c0_i32_0 : i32, i32
  }
  func.func @transform_4(%arg0: i32, %arg1: i32) -> (i32, i32, i32) {
    %c0_i32 = arith.constant 0 : i32
    %c0_i32_0 = arith.constant 0 : i32
    %c0_i32_1 = arith.constant 0 : i32
    return %arg1, %c0_i32, %c0_i32_0 : i32, i32, i32
  }
  func.func @transform_5(%arg0: i32, %arg1: i32) -> (i32, i32, i32) {
    %c0_i32 = arith.constant 0 : i32
    %c0_i32_0 = arith.constant 0 : i32
    %c0_i32_1 = arith.constant 0 : i32
    return %arg1, %c0_i32, %c0_i32_0 : i32, i32, i32
  }
  func.func @transform_6(%arg0: i32, %arg1: i32) -> (i32, i32, i32) {
    %c0_i32 = arith.constant 0 : i32
    %c0_i32_0 = arith.constant 0 : i32
    %c0_i32_1 = arith.constant 0 : i32
    return %arg1, %c0_i32, %c0_i32_0 : i32, i32, i32
  }
  func.func @transform_7(%arg0: i32, %arg1: i32) -> (i32, i32, i32) {
    %c0_i32 = arith.constant 0 : i32
    %c0_i32_0 = arith.constant 0 : i32
    %c0_i32_1 = arith.constant 0 : i32
    return %arg1, %c0_i32, %c0_i32_0 : i32, i32, i32
  }
  func.func @transform_8(%arg0: i32, %arg1: i32) -> (i32, i32, i32) {
    %c0_i32 = arith.constant 0 : i32
    %c0_i32_0 = arith.constant 0 : i32
    %c0_i32_1 = arith.constant 0 : i32
    return %arg1, %c0_i32, %c0_i32_0 : i32, i32, i32
  }
  func.func @transform_9(%arg0: i32, %arg1: i32) -> (i32, i32, i32) {
    %c0_i32 = arith.constant 0 : i32
    %c0_i32_0 = arith.constant 0 : i32
    %c0_i32_1 = arith.constant 0 : i32
    return %arg1, %c0_i32, %c0_i32_0 : i32, i32, i32
  }
  func.func @transform_10(%arg0: i32, %arg1: i32) -> (i32, i32, i32) {
    %c0_i32 = arith.constant 0 : i32
    %c0_i32_0 = arith.constant 0 : i32
    %c0_i32_1 = arith.constant 0 : i32
    return %arg1, %c0_i32, %c0_i32_0 : i32, i32, i32
  }
  func.func @transform_11(%arg0: i32, %arg1: i32) -> (i32, i32, i32) {
    %c0_i32 = arith.constant 0 : i32
    %c0_i32_0 = arith.constant 0 : i32
    %c0_i32_1 = arith.constant 0 : i32
    return %arg1, %c0_i32, %c0_i32_0 : i32, i32, i32
  }
  func.func @transform_12(%arg0: i32, %arg1: i32) -> (i32, i32, i32) {
    %c0_i32 = arith.constant 0 : i32
    %c0_i32_0 = arith.constant 0 : i32
    %c0_i32_1 = arith.constant 0 : i32
    return %arg1, %c0_i32, %c0_i32_0 : i32, i32, i32
  }
  func.func @transform_13(%arg0: i32, %arg1: i32) -> (i32, i32, i32) {
    %c0_i32 = arith.constant 0 : i32
    %c0_i32_0 = arith.constant 0 : i32
    %c0_i32_1 = arith.constant 0 : i32
    return %arg1, %c0_i32, %c0_i32_0 : i32, i32, i32
  }
  func.func @transform_14(%arg0: i32, %arg1: i32) -> (i32, i32, i32) {
    %c0_i32 = arith.constant 0 : i32
    %c0_i32_0 = arith.constant 0 : i32
    %c0_i32_1 = arith.constant 0 : i32
    return %arg0, %c0_i32, %c0_i32_0 : i32, i32, i32
  }
}

module attributes {stable_mosaic.version = 11 : i64} {
  func.func @_head_kernel(%arg0: i32, %arg1: memref<2x4x128xf32, #tpu.memory_space<vmem>>, %arg2: memref<1x128xf32, #tpu.memory_space<vmem>>, %arg3: memref<1x128xf32, #tpu.memory_space<vmem>>, %arg4: memref<128x128xbf16, #tpu.memory_space<vmem>>, %arg5: memref<1x128xf32, #tpu.memory_space<vmem>>, %arg6: memref<2x128xf32, #tpu.memory_space<vmem>>) attributes {dimension_semantics = [#tpu.dimension_semantics<arbitrary>], iteration_bounds = array<i64: 1>, scalar_prefetch = 0 : i64, scratch_operands = 0 : i64, tpu.core_type = #tpu.core_type<tc>, window_params = [{pipeline_mode = #tpu.pipeline_mode<synchronous>, transform_indices = @transform_0, window_bounds = array<i64: 2, 4, 128>}, {pipeline_mode = #tpu.pipeline_mode<synchronous>, transform_indices = @transform_1, window_bounds = array<i64: 1, 128>}, {pipeline_mode = #tpu.pipeline_mode<synchronous>, transform_indices = @transform_2, window_bounds = array<i64: 1, 128>}, {pipeline_mode = #tpu.pipeline_mode<synchronous>, transform_indices = @transform_3, window_bounds = array<i64: 128, 128>}, {pipeline_mode = #tpu.pipeline_mode<synchronous>, transform_indices = @transform_4, window_bounds = array<i64: 1, 128>}, {pipeline_mode = #tpu.pipeline_mode<synchronous>, transform_indices = @transform_5, window_bounds = array<i64: 2, 128>}]} {
    %c0 = arith.constant 0 : index
    %c0_0 = arith.constant 0 : index
    %c0_1 = arith.constant 0 : index
    %0 = vector.load %arg1[%c0, %c0_0, %c0_1] : memref<2x4x128xf32, #tpu.memory_space<vmem>>, vector<1x4x128xf32>
    %1 = vector.shape_cast %0 : vector<1x4x128xf32> to vector<4x128xf32>
    %2 = vector.shape_cast %1 : vector<4x128xf32> to vector<1x4x128xf32>
    %cst = arith.constant dense<0.000000e+00> : vector<1xf32>
    %3 = vector.multi_reduction <add>, %2, %cst [1, 2] : vector<1x4x128xf32> to vector<1xf32>
    %4 = vector.shape_cast %3 : vector<1xf32> to vector<1x1x1xf32>
    %5 = vector.extract %4[0, 0, 0] : f32 from vector<1x1x1xf32>
    %cst_2 = arith.constant 3.906250e-03 : f32
    %6 = arith.mulf %5, %cst_2 : f32
    %7 = arith.mulf %1, %1 : vector<4x128xf32>
    %8 = vector.shape_cast %7 : vector<4x128xf32> to vector<1x4x128xf32>
    %cst_3 = arith.constant dense<0.000000e+00> : vector<1xf32>
    %9 = vector.multi_reduction <add>, %8, %cst_3 [1, 2] : vector<1x4x128xf32> to vector<1xf32>
    %10 = vector.shape_cast %9 : vector<1xf32> to vector<1x1x1xf32>
    %11 = vector.extract %10[0, 0, 0] : f32 from vector<1x1x1xf32>
    %cst_4 = arith.constant 3.906250e-03 : f32
    %12 = arith.mulf %11, %cst_4 : f32
    %13 = arith.mulf %6, %6 : f32
    %14 = arith.subf %12, %13 : f32
    %cst_5 = arith.constant 0.000000e+00 : f32
    %15 = arith.maximumf %14, %cst_5 : f32
    %16 = vector.broadcast %6 : f32 to vector<4x128xf32>
    %17 = arith.subf %1, %16 : vector<4x128xf32>
    %cst_6 = arith.constant 9.99999974E-6 : f32
    %18 = arith.addf %15, %cst_6 : f32
    %19 = math.rsqrt %18 : f32
    %20 = vector.broadcast %19 : f32 to vector<4x128xf32>
    %21 = arith.mulf %17, %20 : vector<4x128xf32>
    %c0_7 = arith.constant 0 : index
    %c0_8 = arith.constant 0 : index
    %22 = vector.load %arg2[%c0_7, %c0_8] : memref<1x128xf32, #tpu.memory_space<vmem>>, vector<1x128xf32>
    %23 = vector.broadcast %22 : vector<1x128xf32> to vector<4x128xf32>
    %24 = arith.mulf %21, %23 : vector<4x128xf32>
    %c0_9 = arith.constant 0 : index
    %c0_10 = arith.constant 0 : index
    %25 = vector.load %arg3[%c0_9, %c0_10] : memref<1x128xf32, #tpu.memory_space<vmem>>, vector<1x128xf32>
    %26 = vector.broadcast %25 : vector<1x128xf32> to vector<4x128xf32>
    %27 = arith.addf %24, %26 : vector<4x128xf32>
    %cst_11 = arith.constant dense<0.000000e+00> : vector<128xf32>
    %28 = vector.multi_reduction <add>, %27, %cst_11 [0] : vector<4x128xf32> to vector<128xf32>
    %29 = vector.shape_cast %28 : vector<128xf32> to vector<1x128xf32>
    %cst_12 = arith.constant 2.500000e-01 : f32
    %30 = vector.broadcast %cst_12 : f32 to vector<1x128xf32>
    %31 = arith.mulf %29, %30 : vector<1x128xf32>
    %c1 = arith.constant 1 : index
    %c0_13 = arith.constant 0 : index
    %c0_14 = arith.constant 0 : index
    %32 = vector.load %arg1[%c1, %c0_13, %c0_14] : memref<2x4x128xf32, #tpu.memory_space<vmem>>, vector<1x4x128xf32>
    %33 = vector.shape_cast %32 : vector<1x4x128xf32> to vector<4x128xf32>
    %34 = vector.shape_cast %33 : vector<4x128xf32> to vector<1x4x128xf32>
    %cst_15 = arith.constant dense<0.000000e+00> : vector<1xf32>
    %35 = vector.multi_reduction <add>, %34, %cst_15 [1, 2] : vector<1x4x128xf32> to vector<1xf32>
    %36 = vector.shape_cast %35 : vector<1xf32> to vector<1x1x1xf32>
    %37 = vector.extract %36[0, 0, 0] : f32 from vector<1x1x1xf32>
    %cst_16 = arith.constant 3.906250e-03 : f32
    %38 = arith.mulf %37, %cst_16 : f32
    %39 = arith.mulf %33, %33 : vector<4x128xf32>
    %40 = vector.shape_cast %39 : vector<4x128xf32> to vector<1x4x128xf32>
    %cst_17 = arith.constant dense<0.000000e+00> : vector<1xf32>
    %41 = vector.multi_reduction <add>, %40, %cst_17 [1, 2] : vector<1x4x128xf32> to vector<1xf32>
    %42 = vector.shape_cast %41 : vector<1xf32> to vector<1x1x1xf32>
    %43 = vector.extract %42[0, 0, 0] : f32 from vector<1x1x1xf32>
    %cst_18 = arith.constant 3.906250e-03 : f32
    %44 = arith.mulf %43, %cst_18 : f32
    %45 = arith.mulf %38, %38 : f32
    %46 = arith.subf %44, %45 : f32
    %cst_19 = arith.constant 0.000000e+00 : f32
    %47 = arith.maximumf %46, %cst_19 : f32
    %48 = vector.broadcast %38 : f32 to vector<4x128xf32>
    %49 = arith.subf %33, %48 : vector<4x128xf32>
    %cst_20 = arith.constant 9.99999974E-6 : f32
    %50 = arith.addf %47, %cst_20 : f32
    %51 = math.rsqrt %50 : f32
    %52 = vector.broadcast %51 : f32 to vector<4x128xf32>
    %53 = arith.mulf %49, %52 : vector<4x128xf32>
    %c0_21 = arith.constant 0 : index
    %c0_22 = arith.constant 0 : index
    %54 = vector.load %arg2[%c0_21, %c0_22] : memref<1x128xf32, #tpu.memory_space<vmem>>, vector<1x128xf32>
    %55 = vector.broadcast %54 : vector<1x128xf32> to vector<4x128xf32>
    %56 = arith.mulf %53, %55 : vector<4x128xf32>
    %c0_23 = arith.constant 0 : index
    %c0_24 = arith.constant 0 : index
    %57 = vector.load %arg3[%c0_23, %c0_24] : memref<1x128xf32, #tpu.memory_space<vmem>>, vector<1x128xf32>
    %58 = vector.broadcast %57 : vector<1x128xf32> to vector<4x128xf32>
    %59 = arith.addf %56, %58 : vector<4x128xf32>
    %cst_25 = arith.constant dense<0.000000e+00> : vector<128xf32>
    %60 = vector.multi_reduction <add>, %59, %cst_25 [0] : vector<4x128xf32> to vector<128xf32>
    %61 = vector.shape_cast %60 : vector<128xf32> to vector<1x128xf32>
    %cst_26 = arith.constant 2.500000e-01 : f32
    %62 = vector.broadcast %cst_26 : f32 to vector<1x128xf32>
    %63 = arith.mulf %61, %62 : vector<1x128xf32>
    %64 = tpu.concatenate %31, %63 in 0 : vector<1x128xf32>, vector<1x128xf32> -> vector<2x128xf32>
    %65 = arith.truncf %64 : vector<2x128xf32> to vector<2x128xbf16>
    %c0_27 = arith.constant 0 : index
    %c0_28 = arith.constant 0 : index
    %66 = vector.load %arg4[%c0_27, %c0_28] : memref<128x128xbf16, #tpu.memory_space<vmem>>, vector<128x128xbf16>
    %cst_29 = arith.constant dense<0.000000e+00> : vector<2x128xf32>
    %67 = tpu.matmul %65, %66, %cst_29 {dimension_numbers = #tpu.dot_dimension_numbers<[1], [0], [0], [1], [0, 0, 1, 1], [], []>} : vector<2x128xbf16>, vector<128x128xbf16>, vector<2x128xf32> -> vector<2x128xf32>
    %c0_30 = arith.constant 0 : index
    %c0_31 = arith.constant 0 : index
    %68 = vector.load %arg5[%c0_30, %c0_31] : memref<1x128xf32, #tpu.memory_space<vmem>>, vector<1x128xf32>
    %69 = vector.broadcast %68 : vector<1x128xf32> to vector<2x128xf32>
    %70 = arith.addf %67, %69 : vector<2x128xf32>
    %c0_32 = arith.constant 0 : index
    %c0_33 = arith.constant 0 : index
    %71 = vector.load %arg6[%c0_32, %c0_33] : memref<2x128xf32, #tpu.memory_space<vmem>>, vector<2x128xf32>
    tpu.vector_store %arg6[%c0_32, %c0_33], %70 {strides = array<i32>} : memref<2x128xf32, #tpu.memory_space<vmem>>, vector<2x128xf32>,
    return
  }
  func.func @transform_0(%arg0: i32) -> (i32, i32, i32) {
    %c0_i32 = arith.constant 0 : i32
    %c0_i32_0 = arith.constant 0 : i32
    %c0_i32_1 = arith.constant 0 : i32
    %c0_i32_2 = arith.constant 0 : i32
    return %c0_i32, %c0_i32_0, %c0_i32_1 : i32, i32, i32
  }
  func.func @transform_1(%arg0: i32) -> (i32, i32) {
    %c0_i32 = arith.constant 0 : i32
    %c0_i32_0 = arith.constant 0 : i32
    %c0_i32_1 = arith.constant 0 : i32
    return %c0_i32, %c0_i32_0 : i32, i32
  }
  func.func @transform_2(%arg0: i32) -> (i32, i32) {
    %c0_i32 = arith.constant 0 : i32
    %c0_i32_0 = arith.constant 0 : i32
    %c0_i32_1 = arith.constant 0 : i32
    return %c0_i32, %c0_i32_0 : i32, i32
  }
  func.func @transform_3(%arg0: i32) -> (i32, i32) {
    %c0_i32 = arith.constant 0 : i32
    %c0_i32_0 = arith.constant 0 : i32
    %c0_i32_1 = arith.constant 0 : i32
    return %c0_i32, %c0_i32_0 : i32, i32
  }
  func.func @transform_4(%arg0: i32) -> (i32, i32) {
    %c0_i32 = arith.constant 0 : i32
    %c0_i32_0 = arith.constant 0 : i32
    %c0_i32_1 = arith.constant 0 : i32
    return %c0_i32, %c0_i32_0 : i32, i32
  }
  func.func @transform_5(%arg0: i32) -> (i32, i32) {
    %c0_i32 = arith.constant 0 : i32
    %c0_i32_0 = arith.constant 0 : i32
    %c0_i32_1 = arith.constant 0 : i32
    return %c0_i32, %c0_i32_0 : i32, i32
  }
}

</mosaic_0001>

<bundles_post_ra>
// kernel: poolformer_forward.9
= control target key start
LH: loop header
LB: loop body
LE: loop exit
PB: predicated region body
PF: predicated region fallthrough
CT: control target
= control target key end

     0   :  { %s1044_s12 = smov 0   ;;  %s1221_s0 = inlined_call_operand.vmem [shape: bf16[512,256], index: 0, kind: input, shape index: {}]   ;;  %s1222_s1 = inlined_call_operand.vmem [shape: bf16[256,128], index: 1, kind: input, shape index: {}]   ;;  %s1223_s2 = inlined_call_operand.vmem [shape: f32[1,128], index: 2, kind: input, shape index: {}]   ;;  %s1224_s3 = inlined_call_operand.vmem [shape: f32[512,128], index: 3, kind: output, shape index: {}]  }
   0x1 LB: > { %s754_s13 = sadd.s32 4294967295, %s1022_s12   ;;  %p758_p0 = scmp.ge.s32.totalorder %s1022_s12, 1  ;;  %s1022_s12 = sphi %s1044_s12, %s13_s12  }
   0x2   : > { %p139_p1 = scmp.lt.s32.totalorder %s1022_s12, 3 }
   0x4   : > { %p140_p2 = pnand %p758_p0, %p139_p1 }
   0x5   : > { %s759_s16 = sshll.u32 (!%p140_p2), %s754_s13, 5 }
   0x6   : > { %143 = sbr.rel (%p140_p2) target bundleno = 304 (0x130), region = 32  ;;  %p165_p3 = scmp.lt.s32.totalorder (!%p140_p2), %s759_s16, 63 }
   0xb   : > { %v952_v0 = vld [vmem:[%s1222_s1 + $0x78] sm:$0xff]   ;;  %v954_v2 = vld [vmem:[%s1222_s1 + $0x70] sm:$0xff]   ;;  %v956_v4 = vld [vmem:[%s1222_s1 + $0x68] sm:$0xff]   ;;  %s1226_s16 = smov (!%p165_p3, %s759_s16), 63 }
   0xc   : > { %v953_v1 = vld [vmem:[%s1222_s1 + $0x38] sm:$0xff]   ;;  %816 = vmatprep.subr.bf16.mxu0 %v952_v0  ;;  %928 = vmatprep.subr.bf16.mxu1 %v952_v0  ;;  %v955_v3 = vld [vmem:[%s1222_s1 + $0x30] sm:$0xff]   ;;  %v957_v5 = vld [vmem:[%s1222_s1 + $0x28] sm:$0xff]   ;;  %s815_s4 = sshll.u32 %s1226_s16, 3 }
   0xd   : > { %817 = vmatpush3.bf16.msra.mxu0 %v953_v1  ;;  %936 = vmatpush3.bf16.msra.mxu1 %v953_v1  ;;  %v958_v6 = vld [vmem:[%s1222_s1 + $0x60] sm:$0xff]   ;;  %v960_v8 = vld [vmem:[%s1222_s1 + $0x58] sm:$0xff]   ;;  %s1087_s9 = scalar_lea.vmem %s1221_s0, %s815_s4  ;;  %v962_v10 = vld [vmem:[%s1222_s1 + $0x50] sm:$0xff]   ;;  %s1152_s30 = scalar_lea.vmem %s1224_s3, %s815_s4 }
   0xe   : > { %818 = vmatprep.subr.bf16.mxu0 %v954_v2  ;;  %929 = vmatprep.subr.bf16.mxu1 %v954_v2  ;;  %v959_v7 = vld [vmem:[%s1222_s1 + $0x20] sm:$0xff]   ;;  %v961_v9 = vld [vmem:[%s1222_s1 + $0x18] sm:$0xff]   ;;  %v963_v13 = vld [vmem:[%s1222_s1 + $0x10] sm:$0xff]  }
   0xf   : > { %v970_v11 = vld [vmem:[%s1087_s9 + $0x4] ss:$8 sps:$4 sm:$0xff]   ;;  %v968_v18 = vld [vmem:[%s1087_s9] ss:$8 sps:$4 sm:$0xff]   ;;  %v974_v20 = vld [vmem:[%s1087_s9 + $0x14] ss:$8 sps:$4 sm:$0xff]  }
  0x10   : > { %v973_v12 = vld [vmem:[%s1087_s9 + $0x84] ss:$8 sps:$4 sm:$0xff]   ;;  %537 = vmatprep.mubr.bf16.mxu0 %v970_v11  ;;  %v971_v19 = vld [vmem:[%s1087_s9 + $0x80] ss:$8 sps:$4 sm:$0xff]   ;;  %v976_v21 = vld [vmem:[%s1087_s9 + $0x94] ss:$8 sps:$4 sm:$0xff]  }
  0x11   : > { %819 = vmatpush3.bf16.msra.mxu0 %v955_v3  ;;  %937 = vmatpush3.bf16.msra.mxu1 %v955_v3  ;;  %v964_v14 = vld [vmem:[%s1222_s1 + $0x48] sm:$0xff]   ;;  %v966_v16 = vld [vmem:[%s1222_s1 + $0x40] sm:$0xff]   ;;  %v978_v22 = vld [vmem:[%s1087_s9 + $0x10] ss:$8 sps:$4 sm:$0xff]  }
  0x12   : > { %820 = vmatprep.subr.bf16.mxu0 %v956_v4  ;;  %930 = vmatprep.subr.bf16.mxu1 %v956_v4  ;;  %v965_v15 = vld [vmem:[%s1222_s1 + $0x8] sm:$0xff]   ;;  %v967_v17 = vld [vmem:[%s1222_s1] sm:$0xff]   ;;  %v979_v23 = vld [vmem:[%s1087_s9 + $0x90] ss:$8 sps:$4 sm:$0xff]  }
  0x13   : > { %601 = vmatprep.mubr.bf16.mxu1 %v973_v12  ;;  %v980_v24 = vld [vmem:[%s1087_s9 + $0x24] ss:$8 sps:$4 sm:$0xff]   ;;  %v984_v26 = vld [vmem:[%s1087_s9 + $0x20] ss:$8 sps:$4 sm:$0xff]   ;;  %v986_v28 = vld [vmem:[%s1087_s9 + $0x34] ss:$8 sps:$4 sm:$0xff]  }
  0x14   : > { %v982_v25 = vld [vmem:[%s1087_s9 + $0xa4] ss:$8 sps:$4 sm:$0xff]   ;;  %v985_v27 = vld [vmem:[%s1087_s9 + $0xa0] ss:$8 sps:$4 sm:$0xff]   ;;  %v988_v29 = vld [vmem:[%s1087_s9 + $0xb4] ss:$8 sps:$4 sm:$0xff]  }
  0x15   : > { %821 = vmatpush3.bf16.msra.mxu0 %v957_v5  ;;  %938 = vmatpush3.bf16.msra.mxu1 %v957_v5  ;;  %v990_v30 = vld [vmem:[%s1087_s9 + $0x30] ss:$8 sps:$4 sm:$0xff]   ;;  %v992_v32 = vld [vmem:[%s1087_s9 + $0x44] ss:$8 sps:$4 sm:$0xff]   ;;  %v996_v34 = vld [vmem:[%s1087_s9 + $0x40] ss:$8 sps:$4 sm:$0xff]  }
  0x16   : > { %822 = vmatprep.subr.bf16.mxu0 %v958_v6  ;;  %931 = vmatprep.subr.bf16.mxu1 %v958_v6  ;;  %v991_v31 = vld [vmem:[%s1087_s9 + $0xb0] ss:$8 sps:$4 sm:$0xff]   ;;  %v994_v33 = vld [vmem:[%s1087_s9 + $0xc4] ss:$8 sps:$4 sm:$0xff]   ;;  %v997_v35 = vld [vmem:[%s1087_s9 + $0xc0] ss:$8 sps:$4 sm:$0xff]  }
  0x17   : > { %v998_v36 = vld [vmem:[%s1087_s9 + $0x54] ss:$8 sps:$4 sm:$0xff]   ;;  %v1002_v38 = vld [vmem:[%s1087_s9 + $0x50] ss:$8 sps:$4 sm:$0xff]   ;;  %v1004_v40 = vld [vmem:[%s1087_s9 + $0x64] ss:$8 sps:$4 sm:$0xff]  }
  0x18   : > { %v1000_v37 = vld [vmem:[%s1087_s9 + $0xd4] ss:$8 sps:$4 sm:$0xff]   ;;  %v1003_v39 = vld [vmem:[%s1087_s9 + $0xd0] ss:$8 sps:$4 sm:$0xff]   ;;  %v1006_v41 = vld [vmem:[%s1087_s9 + $0xe4] ss:$8 sps:$4 sm:$0xff]  }
  0x19   : > { %823 = vmatpush3.bf16.msra.mxu0 %v959_v7  ;;  %939 = vmatpush3.bf16.msra.mxu1 %v959_v7  ;;  %v1008_v42 = vld [vmem:[%s1087_s9 + $0x60] ss:$8 sps:$4 sm:$0xff]   ;;  %v1010_v44 = vld [vmem:[%s1087_s9 + $0x74] ss:$8 sps:$4 sm:$0xff]   ;;  %v1014_v46 = vld [vmem:[%s1087_s9 + $0x70] ss:$8 sps:$4 sm:$0xff]  }
  0x1a   : > { %824 = vmatprep.subr.bf16.mxu0 %v960_v8  ;;  %932 = vmatprep.subr.bf16.mxu1 %v960_v8  ;;  %v1009_v43 = vld [vmem:[%s1087_s9 + $0xe0] ss:$8 sps:$4 sm:$0xff]   ;;  %v1012_v45 = vld [vmem:[%s1087_s9 + $0xf4] ss:$8 sps:$4 sm:$0xff]   ;;  %v1015_v47 = vld [vmem:[%s1087_s9 + $0xf0] ss:$8 sps:$4 sm:$0xff]  }
  0x1b   : > { %v1145_v50 = vld [vmem:[%s1223_s2] ss:$0 sm:$0xff] }
  0x1d   : > { %825 = vmatpush3.bf16.msra.mxu0 %v961_v9  ;;  %940 = vmatpush3.bf16.msra.mxu1 %v961_v9 }
  0x1e   : > { %826 = vmatprep.subr.bf16.mxu0 %v962_v10  ;;  %933 = vmatprep.subr.bf16.mxu1 %v962_v10 }
  0x21   : > { %827 = vmatpush3.bf16.msra.mxu0 %v963_v13  ;;  %941 = vmatpush3.bf16.msra.mxu1 %v963_v13 }
  0x22   : > { %828 = vmatprep.subr.bf16.mxu0 %v964_v14  ;;  %934 = vmatprep.subr.bf16.mxu1 %v964_v14 }
  0x25   : > { %829 = vmatpush3.bf16.msra.mxu0 %v965_v15  ;;  %942 = vmatpush3.bf16.msra.mxu1 %v965_v15 }
  0x26   : > { %830 = vmatprep.subr.bf16.mxu0 %v966_v16  ;;  %935 = vmatprep.subr.bf16.mxu1 %v966_v16 }
  0x29   : > { %831 = vmatpush3.bf16.msra.mxu0 %v967_v17  ;;  %943 = vmatpush3.bf16.msra.mxu1 %v967_v17 }
  0x2c   : > { %538 = vmatmul.mubr.bf16.vlgmr.msra.gmra.mxu0 %v968_v18  ;;  %602 = vmatmul.mubr.bf16.vlgmr.msra.gmra.mxu1 %v971_v19 }
  0x2d   : > { %545 = vmatprep.mubr.bf16.mxu0 %v974_v20  ;;  %609 = vmatprep.mubr.bf16.mxu1 %v976_v21 }
  0x34   : > { %546 = vmatmul.mubr.bf16.gmra.mxu0 %v978_v22  ;;  %610 = vmatmul.mubr.bf16.gmra.mxu1 %v979_v23 }
  0x35   : > { %553 = vmatprep.mubr.bf16.mxu0 %v980_v24  ;;  %617 = vmatprep.mubr.bf16.mxu1 %v982_v25 }
  0x3c   : > { %554 = vmatmul.mubr.bf16.gmra.mxu0 %v984_v26  ;;  %618 = vmatmul.mubr.bf16.gmra.mxu1 %v985_v27 }
  0x3d   : > { %561 = vmatprep.mubr.bf16.mxu0 %v986_v28  ;;  %625 = vmatprep.mubr.bf16.mxu1 %v988_v29 }
  0x44   : > { %562 = vmatmul.mubr.bf16.gmra.mxu0 %v990_v30  ;;  %626 = vmatmul.mubr.bf16.gmra.mxu1 %v991_v31 }
  0x45   : > { %569 = vmatprep.mubr.bf16.mxu0 %v992_v32  ;;  %633 = vmatprep.mubr.bf16.mxu1 %v994_v33 }
  0x4c   : > { %570 = vmatmul.mubr.bf16.gmra.mxu0 %v996_v34  ;;  %634 = vmatmul.mubr.bf16.gmra.mxu1 %v997_v35 }
  0x4d   : > { %577 = vmatprep.mubr.bf16.mxu0 %v998_v36  ;;  %641 = vmatprep.mubr.bf16.mxu1 %v1000_v37 }
  0x54   : > { %578 = vmatmul.mubr.bf16.gmra.mxu0 %v1002_v38  ;;  %642 = vmatmul.mubr.bf16.gmra.mxu1 %v1003_v39 }
  0x55   : > { %585 = vmatprep.mubr.bf16.mxu0 %v1004_v40  ;;  %649 = vmatprep.mubr.bf16.mxu1 %v1006_v41 }
  0x5c   : > { %586 = vmatmul.mubr.bf16.gmra.mxu0 %v1008_v42  ;;  %650 = vmatmul.mubr.bf16.gmra.mxu1 %v1009_v43 }
  0x5d   : > { %593 = vmatprep.mubr.bf16.mxu0 %v1010_v44  ;;  %657 = vmatprep.mubr.bf16.mxu1 %v1012_v45 }
  0x64   : > { %594 = vmatmul.mubr.bf16.gmra.mxu0 %v1014_v46  ;;  %658 = vmatmul.mubr.bf16.gmra.mxu1 %v1015_v47 }
  0xec   : > { %v832_v48 = vpop.f32.mrf.mxu0  ;;  %v880_v49 = vpop.f32.mrf.mxu1 }
  0xee   : > { %v833_v51 = vpop.f32.mrf.mxu0  ;;  %v881_v52 = vpop.f32.mrf.mxu1 }
  0xef   : > { %v834_v53 = vadd.f32 %v833_v51, %v832_v48  ;;  %v882_v54 = vadd.f32 %v881_v52, %v880_v49 }
  0xf0   : > { %v835_v55 = vpop.f32.mrf.mxu0  ;;  %v883_v56 = vpop.f32.mrf.mxu1 }
  0xf1   : > { %v540_v57 = vadd.f32 %v834_v53, %v1145_v50  ;;  %v604_v58 = vadd.f32 %v882_v54, %v1145_v50 }
  0xf2   : > { %v836_v59 = vpop.f32.mrf.mxu0  ;;  %v884_v60 = vpop.f32.mrf.mxu1 }
  0xf3   : > { %666 = vst [vmem:[%s1152_s30] sm:$0xff] %v540_v57  ;;  %682 = vst [vmem:[%s1152_s30 + $0x80] sm:$0xff] %v604_v58  ;;  %v837_v61 = vadd.f32 %v836_v59, %v835_v55  ;;  %v885_v62 = vadd.f32 %v884_v60, %v883_v56 }
  0xf4   : > { %v838_v63 = vpop.f32.mrf.mxu0  ;;  %v886_v0 = vpop.f32.mrf.mxu1 }
  0xf5   : > { %v543_v1 = vadd.f32 %v837_v61, %v1145_v50  ;;  %v607_v2 = vadd.f32 %v885_v62, %v1145_v50 }
  0xf6   : > { %v839_v3 = vpop.f32.mrf.mxu0  ;;  %v887_v4 = vpop.f32.mrf.mxu1 }
  0xf7   : > { %667 = vst [vmem:[%s1152_s30 + $0x8] sm:$0xff] %v543_v1  ;;  %683 = vst [vmem:[%s1152_s30 + $0x88] sm:$0xff] %v607_v2  ;;  %v840_v5 = vadd.f32 %v839_v3, %v838_v63  ;;  %v888_v6 = vadd.f32 %v887_v4, %v886_v0 }
  0xf8   : > { %v841_v7 = vpop.f32.mrf.mxu0  ;;  %v889_v8 = vpop.f32.mrf.mxu1 }
  0xf9   : > { %v548_v9 = vadd.f32 %v840_v5, %v1145_v50  ;;  %v612_v10 = vadd.f32 %v888_v6, %v1145_v50 }
  0xfa   : > { %v842_v11 = vpop.f32.mrf.mxu0  ;;  %v890_v12 = vpop.f32.mrf.mxu1 }
  0xfb   : > { %668 = vst [vmem:[%s1152_s30 + $0x10] sm:$0xff] %v548_v9  ;;  %684 = vst [vmem:[%s1152_s30 + $0x90] sm:$0xff] %v612_v10  ;;  %v843_v13 = vadd.f32 %v842_v11, %v841_v7  ;;  %v891_v14 = vadd.f32 %v890_v12, %v889_v8 }
  0xfc   : > { %v844_v15 = vpop.f32.mrf.mxu0  ;;  %v892_v16 = vpop.f32.mrf.mxu1 }
  0xfd   : > { %v551_v17 = vadd.f32 %v843_v13, %v1145_v50  ;;  %v615_v18 = vadd.f32 %v891_v14, %v1145_v50 }
  0xfe   : > { %v845_v19 = vpop.f32.mrf.mxu0  ;;  %v893_v20 = vpop.f32.mrf.mxu1 }
  0xff   : > { %669 = vst [vmem:[%s1152_s30 + $0x18] sm:$0xff] %v551_v17  ;;  %685 = vst [vmem:[%s1152_s30 + $0x98] sm:$0xff] %v615_v18  ;;  %v846_v21 = vadd.f32 %v845_v19, %v844_v15  ;;  %v894_v22 = vadd.f32 %v893_v20, %v892_v16 }
 0x100   : > { %v847_v23 = vpop.f32.mrf.mxu0  ;;  %v895_v24 = vpop.f32.mrf.mxu1 }
 0x101   : > { %v556_v25 = vadd.f32 %v846_v21, %v1145_v50  ;;  %v620_v26 = vadd.f32 %v894_v22, %v1145_v50 }
 0x102   : > { %v848_v27 = vpop.f32.mrf.mxu0  ;;  %v896_v28 = vpop.f32.mrf.mxu1 }
 0x103   : > { %670 = vst [vmem:[%s1152_s30 + $0x20] sm:$0xff] %v556_v25  ;;  %686 = vst [vmem:[%s1152_s30 + $0xa0] sm:$0xff] %v620_v26  ;;  %v849_v29 = vadd.f32 %v848_v27, %v847_v23  ;;  %v897_v30 = vadd.f32 %v896_v28, %v895_v24 }
 0x104   : > { %v850_v31 = vpop.f32.mrf.mxu0  ;;  %v898_v32 = vpop.f32.mrf.mxu1 }
 0x105   : > { %v559_v33 = vadd.f32 %v849_v29, %v1145_v50  ;;  %v623_v34 = vadd.f32 %v897_v30, %v1145_v50 }
 0x106   : > { %v851_v35 = vpop.f32.mrf.mxu0  ;;  %v899_v36 = vpop.f32.mrf.mxu1 }
 0x107   : > { %671 = vst [vmem:[%s1152_s30 + $0x28] sm:$0xff] %v559_v33  ;;  %687 = vst [vmem:[%s1152_s30 + $0xa8] sm:$0xff] %v623_v34  ;;  %v852_v37 = vadd.f32 %v851_v35, %v850_v31  ;;  %v900_v38 = vadd.f32 %v899_v36, %v898_v32 }
 0x108   : > { %v853_v39 = vpop.f32.mrf.mxu0  ;;  %v901_v40 = vpop.f32.mrf.mxu1 }
 0x109   : > { %v564_v41 = vadd.f32 %v852_v37, %v1145_v50  ;;  %v628_v42 = vadd.f32 %v900_v38, %v1145_v50 }
 0x10a   : > { %v854_v43 = vpop.f32.mrf.mxu0  ;;  %v902_v44 = vpop.f32.mrf.mxu1 }
 0x10b   : > { %672 = vst [vmem:[%s1152_s30 + $0x30] sm:$0xff] %v564_v41  ;;  %688 = vst [vmem:[%s1152_s30 + $0xb0] sm:$0xff] %v628_v42  ;;  %v855_v45 = vadd.f32 %v854_v43, %v853_v39  ;;  %v903_v46 = vadd.f32 %v902_v44, %v901_v40 }
 0x10c   : > { %v856_v47 = vpop.f32.mrf.mxu0  ;;  %v904_v48 = vpop.f32.mrf.mxu1 }
 0x10d   : > { %v567_v49 = vadd.f32 %v855_v45, %v1145_v50  ;;  %v631_v51 = vadd.f32 %v903_v46, %v1145_v50 }
 0x10e   : > { %v857_v52 = vpop.f32.mrf.mxu0  ;;  %v905_v53 = vpop.f32.mrf.mxu1 }
 0x10f   : > { %673 = vst [vmem:[%s1152_s30 + $0x38] sm:$0xff] %v567_v49  ;;  %689 = vst [vmem:[%s1152_s30 + $0xb8] sm:$0xff] %v631_v51  ;;  %v858_v54 = vadd.f32 %v857_v52, %v856_v47  ;;  %v906_v55 = vadd.f32 %v905_v53, %v904_v48 }
 0x110   : > { %v859_v56 = vpop.f32.mrf.mxu0  ;;  %v907_v57 = vpop.f32.mrf.mxu1 }
 0x111   : > { %v572_v58 = vadd.f32 %v858_v54, %v1145_v50  ;;  %v636_v59 = vadd.f32 %v906_v55, %v1145_v50 }
 0x112   : > { %v860_v60 = vpop.f32.mrf.mxu0  ;;  %v908_v61 = vpop.f32.mrf.mxu1 }
 0x113   : > { %674 = vst [vmem:[%s1152_s30 + $0x40] sm:$0xff] %v572_v58  ;;  %690 = vst [vmem:[%s1152_s30 + $0xc0] sm:$0xff] %v636_v59  ;;  %v861_v62 = vadd.f32 %v860_v60, %v859_v56  ;;  %v909_v63 = vadd.f32 %v908_v61, %v907_v57 }
 0x114   : > { %v862_v0 = vpop.f32.mrf.mxu0  ;;  %v910_v1 = vpop.f32.mrf.mxu1 }
 0x115   : > { %v575_v2 = vadd.f32 %v861_v62, %v1145_v50  ;;  %v639_v3 = vadd.f32 %v909_v63, %v1145_v50 }
 0x116   : > { %v863_v4 = vpop.f32.mrf.mxu0  ;;  %v911_v5 = vpop.f32.mrf.mxu1 }
 0x117   : > { %675 = vst [vmem:[%s1152_s30 + $0x48] sm:$0xff] %v575_v2  ;;  %691 = vst [vmem:[%s1152_s30 + $0xc8] sm:$0xff] %v639_v3  ;;  %v864_v6 = vadd.f32 %v863_v4, %v862_v0  ;;  %v912_v7 = vadd.f32 %v911_v5, %v910_v1 }
 0x118   : > { %v865_v8 = vpop.f32.mrf.mxu0  ;;  %v913_v9 = vpop.f32.mrf.mxu1 }
 0x119   : > { %v580_v10 = vadd.f32 %v864_v6, %v1145_v50  ;;  %v644_v11 = vadd.f32 %v912_v7, %v1145_v50 }
 0x11a   : > { %v866_v12 = vpop.f32.mrf.mxu0  ;;  %v914_v13 = vpop.f32.mrf.mxu1 }
 0x11b   : > { %676 = vst [vmem:[%s1152_s30 + $0x50] sm:$0xff] %v580_v10  ;;  %692 = vst [vmem:[%s1152_s30 + $0xd0] sm:$0xff] %v644_v11  ;;  %v867_v14 = vadd.f32 %v866_v12, %v865_v8  ;;  %v915_v15 = vadd.f32 %v914_v13, %v913_v9 }
 0x11c   : > { %v868_v16 = vpop.f32.mrf.mxu0  ;;  %v916_v17 = vpop.f32.mrf.mxu1 }
 0x11d   : > { %v583_v18 = vadd.f32 %v867_v14, %v1145_v50  ;;  %v647_v19 = vadd.f32 %v915_v15, %v1145_v50 }
 0x11e   : > { %v869_v20 = vpop.f32.mrf.mxu0  ;;  %v917_v21 = vpop.f32.mrf.mxu1 }
 0x11f   : > { %677 = vst [vmem:[%s1152_s30 + $0x58] sm:$0xff] %v583_v18  ;;  %693 = vst [vmem:[%s1152_s30 + $0xd8] sm:$0xff] %v647_v19  ;;  %v870_v22 = vadd.f32 %v869_v20, %v868_v16  ;;  %v918_v23 = vadd.f32 %v917_v21, %v916_v17 }
 0x120   : > { %v871_v24 = vpop.f32.mrf.mxu0  ;;  %v919_v25 = vpop.f32.mrf.mxu1 }
 0x121   : > { %v588_v26 = vadd.f32 %v870_v22, %v1145_v50  ;;  %v652_v27 = vadd.f32 %v918_v23, %v1145_v50 }
 0x122   : > { %v872_v28 = vpop.f32.mrf.mxu0  ;;  %v920_v29 = vpop.f32.mrf.mxu1 }
 0x123   : > { %678 = vst [vmem:[%s1152_s30 + $0x60] sm:$0xff] %v588_v26  ;;  %694 = vst [vmem:[%s1152_s30 + $0xe0] sm:$0xff] %v652_v27  ;;  %v873_v30 = vadd.f32 %v872_v28, %v871_v24  ;;  %v921_v31 = vadd.f32 %v920_v29, %v919_v25 }
 0x124   : > { %v874_v32 = vpop.f32.mrf.mxu0  ;;  %v922_v33 = vpop.f32.mrf.mxu1 }
 0x125   : > { %v591_v34 = vadd.f32 %v873_v30, %v1145_v50  ;;  %v655_v35 = vadd.f32 %v921_v31, %v1145_v50 }
 0x126   : > { %v875_v36 = vpop.f32.mrf.mxu0  ;;  %v923_v37 = vpop.f32.mrf.mxu1 }
 0x127   : > { %679 = vst [vmem:[%s1152_s30 + $0x68] sm:$0xff] %v591_v34  ;;  %695 = vst [vmem:[%s1152_s30 + $0xe8] sm:$0xff] %v655_v35  ;;  %v876_v38 = vadd.f32 %v875_v36, %v874_v32  ;;  %v924_v39 = vadd.f32 %v923_v37, %v922_v33 }
 0x128   : > { %v877_v40 = vpop.f32.mrf.mxu0  ;;  %v925_v41 = vpop.f32.mrf.mxu1 }
 0x129   : > { %v596_v42 = vadd.f32 %v876_v38, %v1145_v50  ;;  %v660_v43 = vadd.f32 %v924_v39, %v1145_v50 }
 0x12a   : > { %v878_v44 = vpop.f32.mrf.mxu0  ;;  %v926_v45 = vpop.f32.mrf.mxu1 }
 0x12b   : > { %680 = vst [vmem:[%s1152_s30 + $0x70] sm:$0xff] %v596_v42  ;;  %696 = vst [vmem:[%s1152_s30 + $0xf0] sm:$0xff] %v660_v43  ;;  %v879_v46 = vadd.f32 %v878_v44, %v877_v40  ;;  %v927_v47 = vadd.f32 %v926_v45, %v925_v41 }
 0x12d   : > { %v599_v48 = vadd.f32 %v879_v46, %v1145_v50  ;;  %v663_v49 = vadd.f32 %v927_v47, %v1145_v50 }
 0x12f   : > { %681 = vst [vmem:[%s1152_s30 + $0x78] sm:$0xff] %v599_v48  ;;  %697 = vst [vmem:[%s1152_s30 + $0xf8] sm:$0xff] %v663_v49 }
 0x130 PF: > { %s13_s12 = sadd.s32 1, %s1022_s12  }
 0x131   : > { %p10_p4 = scmp.ge.s32.totalorder %s13_s12, 4  }
 0x133   :  { %12 = sbr.rel (!%p10_p4) target bundleno = 1 (0x1), region = 62 }

// kernel: poolformer_forward.10
= control target key start
LH: loop header
LB: loop body
LE: loop exit
PB: predicated region body
PF: predicated region fallthrough
CT: control target
= control target key end

     0   :  { %s3917_s29 = smov 0   ;;  %s3919_s30 = smov 0   ;;  %s6278_s0 = inlined_call_operand.vmem [shape: f32[2,256,128], index: 0, kind: input, shape index: {}]   ;;  %s6279_s1 = inlined_call_operand.vmem [shape: f32[256,1], index: 1, kind: input, shape index: {}]   ;;  %s6280_s2 = inlined_call_operand.vmem [shape: f32[256,1], index: 2, kind: input, shape index: {}]   ;;  %s6281_s3 = inlined_call_operand.vmem [shape: f32[256,1], index: 3, kind: input, shape index: {}]   ;;  %s6282_s4 = inlined_call_operand.vmem [shape: f32[1,1,128], index: 4, kind: input, shape index: {}, may-alias: {4,7}]   ;;  %s6283_s5 = inlined_call_operand.vmem [shape: f32[1,1,128], index: 5, kind: input, shape index: {}, may-alias: {5,8,11,13}]   ;;  %s6284_s6 = inlined_call_operand.vmem [shape: f32[1,1,128], index: 6, kind: input, shape index: {}, may-alias: {6,9}]   ;;  %s6285_s7 = inlined_call_operand.vmem [shape: f32[1,1,128], index: 7, kind: input, shape index: {}, may-alias: {4,7}]   ;;  %s6286_s8 = inlined_call_operand.vmem [shape: f32[1,1,128], index: 8, kind: input, shape index: {}, may-alias: {5,8,11,13}]   ;;  %s6287_s9 = inlined_call_operand.vmem [shape: f32[1,1,128], index: 9, kind: input, shape index: {}, may-alias: {6,9}]   ;;  %s6288_s10 = inlined_call_operand.vmem [shape: bf16[1,128,128], index: 10, kind: input, shape index: {}]   ;;  %s6289_s11 = inlined_call_operand.vmem [shape: f32[1,1,128], index: 11, kind: input, shape index: {}, may-alias: {5,8,11,13}]   ;;  %s6290_s12 = inlined_call_operand.vmem [shape: bf16[1,128,128], index: 12, kind: input, shape index: {}]   ;;  %s6291_s13 = inlined_call_operand.vmem [shape: f32[1,1,128], index: 13, kind: input, shape index: {}, may-alias: {5,8,11,13}]   ;;  %s6292_s14 = inlined_call_operand.vmem [shape: f32[2,256,128], index: 14, kind: output, shape index: {}]  }
   0x1   :  { %s3921_s15 = smov 0  }
   0x2 LB: > { %s36_s16 = sadd.s32 1, %s3834_s30  ;;  %p3483_p0 = scmp.ge.s32.totalorder %s3838_s15, 1  ;;  %s3838_s15 = sphi %s3921_s15, %s24_s15   ;;  %s3834_s30 = sphi %s3919_s30, %s6689_s30   ;;  %s3830_s29 = sphi %s3917_s29, %s6688_s29  }
   0x3   : > { %p38_p1 = scmp.ge.s32.totalorder %s36_s16, 2  ;;  %p508_p2 = scmp.lt.s32.totalorder %s3838_s15, 3 }
   0x5   : > { %s6691_s16 = smov (%p38_p1, %s36_s16), 0  ;;  %p509_p3 = pnand %p3483_p0, %p508_p2 }
   0x7   : > { %512 = sbr.rel (%p509_p3) target bundleno = 1330 (0x532), region = 76 }
   0xc   : > { %v1062_v0 = vld [vmem:[%s6280_s2] sm:$0xff]  ;;  %p588_p4 = scmp.lt.s32.totalorder %s3830_s29, 1  ;;  %v3840_v1 = vmov 0   ;;  %v1063_v2 = vld [vmem:[%s6280_s2 + $0x8] sm:$0xff]  ;;  %v1065_v25 = vld [vmem:[%s6280_s2 + $0x18] sm:$0xff]  ;;  %s3841_s17 = smov 0.0  }
   0xd   : > { %3698 = vset.pattern.permute.xlu1 %v3840_v1  ;;  %3699 = vset.pattern.permute.xlu0 %v3840_v1  ;;  %v1447_v5 = vld [vmem:[%s6281_s3] sm:$0xff]  ;;  %v1448_v16 = vld [vmem:[%s6281_s3 + $0x8] sm:$0xff]  ;;  %v1449_v34 = vld [vmem:[%s6281_s3 + $0x10] sm:$0xff]  ;;  %vm1126_vm0 = vcmask 1040384   ;;  %vm1479_vm1 = vcmask 1046528  }
   0xe   : > { %1225 = vperm.xlu1 %3698, %v1062_v0   ;;  %s6693_s29 = smov (!%p588_p4, %s3830_s29), 1  ;;  %v1066_v43 = vld [vmem:[%s6280_s2 + $0x20] sm:$0xff]  ;;  %v1450_v52 = vld [vmem:[%s6281_s3 + $0x18] sm:$0xff] }
   0xf   : > { %s3514_s21 = sshll.u32 %s6693_s29, 8  ;;  %v1800_v57 = vld [vmem:[%s6279_s1] sm:$0xff] }
  0x10   : > { %s3949_s24 = scalar_lea.vmem %s6278_s0, %s3514_s21 }
  0x11   : > { %v3952_v3 = vld [vmem:[%s3949_s24] sm:$0xff]  ;;  %v3955_v4 = vld [vmem:[%s3949_s24 + $0x8] sm:$0xff]  ;;  %v3961_v6 = vld [vmem:[%s3949_s24 + $0x10] sm:$0xff] }
  0x12   : > { %1230 = vperm.xlu1 %3698, %v1063_v2   ;;  %v733_v7 = vadd.f32 %v3955_v4, %v3952_v3  ;;  %v774_v8 = vmul.f32 %v3952_v3, %v3952_v3  ;;  %v775_v9 = vmul.f32 %v3955_v4, %v3955_v4  ;;  %v3970_v10 = vld [vmem:[%s3949_s24 + $0x18] sm:$0xff]  ;;  %v776_v11 = vmul.f32 %v3961_v6, %v3961_v6  ;;  %v3976_v13 = vld [vmem:[%s3949_s24 + $0x20] sm:$0xff]  ;;  %v3985_v18 = vld [vmem:[%s3949_s24 + $0x28] sm:$0xff] }
  0x13   : > { %v777_v14 = vmul.f32 %v3970_v10, %v3970_v10  ;;  %v778_v19 = vmul.f32 %v3976_v13, %v3976_v13  ;;  %v3991_v22 = vld [vmem:[%s3949_s24 + $0x30] sm:$0xff]  ;;  %v779_v23 = vmul.f32 %v3985_v18, %v3985_v18  ;;  %v4000_v27 = vld [vmem:[%s3949_s24 + $0x38] sm:$0xff]  ;;  %v4006_v31 = vld [vmem:[%s3949_s24 + $0x40] sm:$0xff] }
  0x14   : > { %v734_v12 = vadd.f32 %v733_v7, %v3961_v6  ;;  %v806_v15 = vadd.f32 %v775_v9, %v774_v8  ;;  %v780_v28 = vmul.f32 %v3991_v22, %v3991_v22  ;;  %v781_v32 = vmul.f32 %v4000_v27, %v4000_v27  ;;  %v4015_v36 = vld [vmem:[%s3949_s24 + $0x48] sm:$0xff]  ;;  %v4021_v40 = vld [vmem:[%s3949_s24 + $0x50] sm:$0xff]  ;;  %v4030_v45 = vld [vmem:[%s3949_s24 + $0x58] sm:$0xff] }
  0x15   : > { %v782_v37 = vmul.f32 %v4006_v31, %v4006_v31  ;;  %v783_v41 = vmul.f32 %v4015_v36, %v4015_v36  ;;  %v784_v46 = vmul.f32 %v4021_v40, %v4021_v40  ;;  %v4036_v49 = vld [vmem:[%s3949_s24 + $0x60] sm:$0xff]  ;;  %v785_v50 = vmul.f32 %v4030_v45, %v4030_v45  ;;  %v4045_v54 = vld [vmem:[%s3949_s24 + $0x68] sm:$0xff]  ;;  %v4054_v59 = vld [vmem:[%s3949_s24 + $0x70] sm:$0xff] }
  0x16   : > { %1578 = vperm.xlu1 %3698, %v1447_v5   ;;  %v735_v17 = vadd.f32 %v734_v12, %v3970_v10  ;;  %v807_v20 = vadd.f32 %v806_v15, %v776_v11  ;;  %v786_v55 = vmul.f32 %v4036_v49, %v4036_v49  ;;  %v4057_v60 = vld [vmem:[%s3949_s24 + $0x78] sm:$0xff]  ;;  %v787_v61 = vmul.f32 %v4045_v54, %v4045_v54  ;;  %v1801_v2 = vld [vmem:[%s6279_s1 + $0x8] sm:$0xff]  ;;  %v4068_v5 = vld [vmem:[%s3949_s24 + $0x80] sm:$0xff] }
  0x17   : > { %v788_v0 = vmul.f32 %v4054_v59, %v4054_v59  ;;  %v4072_v8 = vld [vmem:[%s3949_s24 + $0x88] sm:$0xff]  ;;  %v789_v9 = vmul.f32 %v4057_v60, %v4057_v60 }
  0x18   : > { %v736_v21 = vadd.f32 %v735_v17, %v3976_v13  ;;  %v808_v24 = vadd.f32 %v807_v20, %v777_v14  ;;  %v790_v14 = vmul.f32 %v4068_v5, %v4068_v5  ;;  %v4083_v17 = vld [vmem:[%s3949_s24 + $0x90] sm:$0xff]  ;;  %v4087_v20 = vld [vmem:[%s3949_s24 + $0x98] sm:$0xff] }
  0x1a   : > { %1583 = vperm.xlu1 %3698, %v1448_v16   ;;  %v737_v26 = vadd.f32 %v736_v21, %v3985_v18  ;;  %v809_v29 = vadd.f32 %v808_v24, %v778_v19  ;;  %v1067_v16 = vld [vmem:[%s6280_s2 + $0x28] sm:$0xff]  ;;  %v791_v21 = vmul.f32 %v4072_v8, %v4072_v8 }
  0x1c   : > { %v738_v30 = vadd.f32 %v737_v26, %v3991_v22  ;;  %v810_v33 = vadd.f32 %v809_v29, %v779_v23  ;;  %v4096_v29 = vld [vmem:[%s3949_s24 + $0xa0] sm:$0xff] }
  0x1e   : > { %1240 = vperm.xlu1 %3698, %v1065_v25   ;;  %v739_v35 = vadd.f32 %v738_v30, %v4000_v27  ;;  %v811_v38 = vadd.f32 %v810_v33, %v780_v28  ;;  %v792_v25 = vmul.f32 %v4083_v17, %v4083_v17  ;;  %v793_v30 = vmul.f32 %v4087_v20, %v4087_v20  ;;  %v1451_v33 = vld [vmem:[%s6281_s3 + $0x20] sm:$0xff] }
  0x20   : > { %v740_v39 = vadd.f32 %v739_v35, %v4006_v31  ;;  %v812_v42 = vadd.f32 %v811_v38, %v781_v32  ;;  %v4105_v35 = vld [vmem:[%s3949_s24 + $0xa8] sm:$0xff] }
  0x22   : > { %1588 = vperm.xlu1 %3698, %v1449_v34   ;;  %v741_v44 = vadd.f32 %v740_v39, %v4015_v36  ;;  %v813_v47 = vadd.f32 %v812_v42, %v782_v37  ;;  %v794_v37 = vmul.f32 %v4096_v29, %v4096_v29  ;;  %v795_v42 = vmul.f32 %v4105_v35, %v4105_v35 }
  0x24   : > { %v742_v48 = vadd.f32 %v741_v44, %v4021_v40  ;;  %v814_v51 = vadd.f32 %v813_v47, %v783_v41  ;;  %v4111_v41 = vld [vmem:[%s3949_s24 + $0xb0] sm:$0xff]  ;;  %v4120_v47 = vld [vmem:[%s3949_s24 + $0xb8] sm:$0xff] }
  0x25   : > { %v1802_v44 = vld [vmem:[%s6279_s1 + $0x10] sm:$0xff] }
  0x26   : > { %1245 = vperm.xlu1 %3698, %v1066_v43   ;;  %v743_v53 = vadd.f32 %v742_v48, %v4030_v45  ;;  %v815_v56 = vadd.f32 %v814_v51, %v784_v46  ;;  %v796_v48 = vmul.f32 %v4111_v41, %v4111_v41 }
  0x28   : > { %v744_v58 = vadd.f32 %v743_v53, %v4036_v49  ;;  %v816_v62 = vadd.f32 %v815_v56, %v785_v50  ;;  %v797_v53 = vmul.f32 %v4120_v47, %v4120_v47  ;;  %v1452_v56 = vld [vmem:[%s6281_s3 + $0x28] sm:$0xff] }
  0x2a   : > { %1593 = vperm.xlu1 %3698, %v1450_v52   ;;  %v745_v63 = vadd.f32 %v744_v58, %v4045_v54  ;;  %v817_v1 = vadd.f32 %v816_v62, %v786_v55  ;;  %v4126_v52 = vld [vmem:[%s3949_s24 + $0xc0] sm:$0xff]  ;;  %v4135_v58 = vld [vmem:[%s3949_s24 + $0xc8] sm:$0xff] }
  0x2c   : > { %v746_v7 = vadd.f32 %v745_v63, %v4054_v59  ;;  %v818_v11 = vadd.f32 %v817_v1, %v787_v61  ;;  %v798_v61 = vmul.f32 %v4126_v52, %v4126_v52  ;;  %v799_v1 = vmul.f32 %v4135_v58, %v4135_v58 }
  0x2e   : > { %1834 = vperm.xlu1 %3698, %v1800_v57   ;;  %v747_v12 = vadd.f32 %v746_v7, %v4057_v60  ;;  %v819_v15 = vadd.f32 %v818_v11, %v788_v0  ;;  %v4141_v0 = vld [vmem:[%s3949_s24 + $0xd0] sm:$0xff]  ;;  %v1069_v7 = vld [vmem:[%s6280_s2 + $0x38] sm:$0xff] }
  0x2f   : > { %v4150_v11 = vld [vmem:[%s3949_s24 + $0xd8] sm:$0xff] }
  0x30   : > { %v748_v19 = vadd.f32 %v747_v12, %v4068_v5  ;;  %v820_v23 = vadd.f32 %v819_v15, %v789_v9  ;;  %v800_v12 = vmul.f32 %v4141_v0, %v4141_v0 }
  0x32   : > { %1839 = vperm.xlu1 %3698, %v1801_v2   ;;  %v749_v24 = vadd.f32 %v748_v19, %v4072_v8  ;;  %v821_v26 = vadd.f32 %v820_v23, %v790_v14  ;;  %v801_v19 = vmul.f32 %v4150_v11, %v4150_v11  ;;  %v1804_v23 = vld [vmem:[%s6279_s1 + $0x20] sm:$0xff] }
  0x34   : > { %v750_v28 = vadd.f32 %v749_v24, %v4083_v17  ;;  %v822_v32 = vadd.f32 %v821_v26, %v791_v21 }
  0x36   : > { %1250 = vperm.xlu1 %3698, %v1067_v16   ;;  %v751_v34 = vadd.f32 %v750_v28, %v4087_v20  ;;  %v823_v38 = vadd.f32 %v822_v32, %v792_v25  ;;  %v4156_v16 = vld [vmem:[%s3949_s24 + $0xe0] sm:$0xff]  ;;  %v4165_v25 = vld [vmem:[%s3949_s24 + $0xe8] sm:$0xff]  ;;  %v4171_v32 = vld [vmem:[%s3949_s24 + $0xf0] sm:$0xff] }
  0x37   : > { %v802_v26 = vmul.f32 %v4156_v16, %v4156_v16 }
  0x38   : > { %v752_v39 = vadd.f32 %v751_v34, %v4096_v29  ;;  %v824_v43 = vadd.f32 %v823_v38, %v793_v30 }
  0x3a   : > { %1598 = vperm.xlu1 %3698, %v1451_v33   ;;  %v753_v46 = vadd.f32 %v752_v39, %v4105_v35  ;;  %v825_v50 = vadd.f32 %v824_v43, %v794_v37  ;;  %v803_v33 = vmul.f32 %v4165_v25, %v4165_v25  ;;  %v1454_v37 = vld [vmem:[%s6281_s3 + $0x38] sm:$0xff] }
  0x3b   : > { %v4180_v39 = vld [vmem:[%s3949_s24 + $0xf8] sm:$0xff] }
  0x3c   : > { %v754_v51 = vadd.f32 %v753_v46, %v4111_v41  ;;  %v826_v55 = vadd.f32 %v825_v50, %v795_v42  ;;  %v804_v42 = vmul.f32 %v4171_v32, %v4171_v32  ;;  %v805_v46 = vmul.f32 %v4180_v39, %v4180_v39  ;;  %v1071_v50 = vld [vmem:[%s6280_s2 + $0x48] sm:$0xff] }
  0x3e   : > { %1844 = vperm.xlu1 %3698, %v1802_v44   ;;  %v755_v57 = vadd.f32 %v754_v51, %v4120_v47  ;;  %v827_v62 = vadd.f32 %v826_v55, %v796_v48 }
  0x40   : > { %v756_v63 = vadd.f32 %v755_v57, %v4126_v52  ;;  %v828_v2 = vadd.f32 %v827_v62, %v797_v53  ;;  %v1456_v57 = vld [vmem:[%s6281_s3 + $0x48] sm:$0xff]  ;;  %v1808_v62 = vld [vmem:[%s6279_s1 + $0x40] sm:$0xff] }
  0x42   : > { %1603 = vperm.xlu1 %3698, %v1452_v56   ;;  %v757_v9 = vadd.f32 %v756_v63, %v4135_v58  ;;  %v829_v14 = vadd.f32 %v828_v2, %v798_v61  ;;  %v1806_v56 = vld [vmem:[%s6279_s1 + $0x30] sm:$0xff]  ;;  %v1073_v61 = vld [vmem:[%s6280_s2 + $0x58] sm:$0xff] }
  0x43   : > { %v1458_v63 = vld [vmem:[%s6281_s3 + $0x58] sm:$0xff]  ;;  %v1064_v2 = vld [vmem:[%s6280_s2 + $0x10] sm:$0xff] }
  0x44   : > { %v758_v15 = vadd.f32 %v757_v9, %v4141_v0  ;;  %v830_v21 = vadd.f32 %v829_v14, %v799_v1  ;;  %v1075_v1 = vld [vmem:[%s6280_s2 + $0x68] sm:$0xff]  ;;  %v1068_v9 = vld [vmem:[%s6280_s2 + $0x30] sm:$0xff]  ;;  %v1803_v14 = vld [vmem:[%s6279_s1 + $0x18] sm:$0xff] }
  0x46   : > { %1260 = vperm.xlu1 %3698, %v1069_v7   ;;  %v759_v24 = vadd.f32 %v758_v15, %v4150_v11  ;;  %v831_v28 = vadd.f32 %v830_v21, %v800_v12  ;;  %v1810_v7 = vld [vmem:[%s6279_s1 + $0x50] sm:$0xff]  ;;  %v1460_v12 = vld [vmem:[%s6281_s3 + $0x68] sm:$0xff]  ;;  %v1077_v15 = vld [vmem:[%s6280_s2 + $0x78] sm:$0xff] }
  0x47   : > { %v1812_v21 = vld [vmem:[%s6279_s1 + $0x60] sm:$0xff] }
  0x48   : > { %v760_v30 = vadd.f32 %v759_v24, %v4156_v16  ;;  %v832_v34 = vadd.f32 %v831_v28, %v801_v19  ;;  %v1453_v19 = vld [vmem:[%s6281_s3 + $0x30] sm:$0xff]  ;;  %v1462_v24 = vld [vmem:[%s6281_s3 + $0x78] sm:$0xff]  ;;  %v1079_v28 = vld [vmem:[%s6280_s2 + $0x88] sm:$0xff] }
  0x4a   : > { %1854 = vperm.xlu1 %3698, %v1804_v23   ;;  %v761_v38 = vadd.f32 %v760_v30, %v4165_v25  ;;  %v833_v43 = vadd.f32 %v832_v34, %v802_v26  ;;  %v1070_v23 = vld [vmem:[%s6280_s2 + $0x40] sm:$0xff]  ;;  %v1805_v26 = vld [vmem:[%s6279_s1 + $0x28] sm:$0xff]  ;;  %v1072_v34 = vld [vmem:[%s6280_s2 + $0x50] sm:$0xff] }
  0x4b   : > { %v1455_v30 = vld [vmem:[%s6281_s3 + $0x40] sm:$0xff] }
  0x4c   : > { %v762_v44 = vadd.f32 %v761_v38, %v4171_v32  ;;  %v834_v48 = vadd.f32 %v833_v43, %v803_v33  ;;  %v1814_v33 = vld [vmem:[%s6279_s1 + $0x70] sm:$0xff]  ;;  %v1807_v38 = vld [vmem:[%s6279_s1 + $0x38] sm:$0xff] }
  0x4d   : > { %v1457_v43 = vld [vmem:[%s6281_s3 + $0x50] sm:$0xff] }
  0x4e   : > { %1613 = vperm.xlu1 %3698, %v1454_v37   ;;  %v763_v51 = vadd.f32 %v762_v44, %v4180_v39  ;;  %v835_v53 = vadd.f32 %v834_v48, %v804_v42  ;;  %v1464_v37 = vld [vmem:[%s6281_s3 + $0x88] sm:$0xff]  ;;  %v1081_v42 = vld [vmem:[%s6280_s2 + $0x98] sm:$0xff]  ;;  %v1816_v44 = vld [vmem:[%s6279_s1 + $0x80] sm:$0xff] }
  0x4f   : > { %v1466_v48 = vld [vmem:[%s6281_s3 + $0x98] sm:$0xff] }
  0x50   : > { %764 = vadd.xlane.f32.xlu0 %v763_v51  ;;  %v836_v55 = vadd.f32 %v835_v53, %v805_v46  ;;  %v1074_v46 = vld [vmem:[%s6280_s2 + $0x60] sm:$0xff]  ;;  %v1083_v51 = vld [vmem:[%s6280_s2 + $0xa8] sm:$0xff] }
  0x51   : > { %v1459_v53 = vld [vmem:[%s6281_s3 + $0x60] sm:$0xff] }
  0x52   : > { %1270 = vperm.xlu1 %3698, %v1071_v50   ;;  %v1809_v50 = vld [vmem:[%s6279_s1 + $0x48] sm:$0xff] }
  0x54   : > { %837 = vadd.xlane.f32.xlu0 %v836_v55  ;;  %v1818_v55 = vld [vmem:[%s6279_s1 + $0x90] sm:$0xff] }
  0x56   : > { %1864 = vperm.xlu1 %3698, %v1806_v56   ;;  %v1076_v56 = vld [vmem:[%s6280_s2 + $0x70] sm:$0xff] }
  0x5a   : > { %1623 = vperm.xlu1 %3698, %v1456_v57   ;;  %v1468_v57 = vld [vmem:[%s6281_s3 + $0xa8] sm:$0xff] }
  0x5e   : > { %1280 = vperm.xlu1 %3698, %v1073_v61   ;;  %v1811_v61 = vld [vmem:[%s6279_s1 + $0x58] sm:$0xff] }
  0x62   : > { %1874 = vperm.xlu1 %3698, %v1808_v62   ;;  %v1085_v62 = vld [vmem:[%s6280_s2 + $0xb8] sm:$0xff] }
  0x66   : > { %1633 = vperm.xlu1 %3698, %v1458_v63   ;;  %v1461_v63 = vld [vmem:[%s6281_s3 + $0x70] sm:$0xff] }
  0x6a   : > { %1290 = vperm.xlu1 %3698, %v1075_v1   ;;  %1235 = vperm.xlu0 %3699, %v1064_v2   ;;  %v1820_v1 = vld [vmem:[%s6279_s1 + $0xa0] sm:$0xff] }
  0x6b   : > { %v1078_v2 = vld [vmem:[%s6280_s2 + $0x80] sm:$0xff] }
  0x6e   : > { %1884 = vperm.xlu1 %3698, %v1810_v7   ;;  %1255 = vperm.xlu0 %3699, %v1068_v9   ;;  %v1470_v7 = vld [vmem:[%s6281_s3 + $0xb8] sm:$0xff]  ;;  %v1813_v9 = vld [vmem:[%s6279_s1 + $0x68] sm:$0xff] }
  0x72   : > { %1643 = vperm.xlu1 %3698, %v1460_v12   ;;  %1849 = vperm.xlu0 %3699, %v1803_v14   ;;  %v1087_v12 = vld [vmem:[%s6280_s2 + $0xc8] sm:$0xff]  ;;  %v1463_v14 = vld [vmem:[%s6281_s3 + $0x80] sm:$0xff] }
  0x76   : > { %1300 = vperm.xlu1 %3698, %v1077_v15   ;;  %1608 = vperm.xlu0 %3699, %v1453_v19   ;;  %v1822_v15 = vld [vmem:[%s6279_s1 + $0xb0] sm:$0xff] }
  0x77   : > { %v1080_v19 = vld [vmem:[%s6280_s2 + $0x90] sm:$0xff] }
  0x7a   : > { %1894 = vperm.xlu1 %3698, %v1812_v21   ;;  %1265 = vperm.xlu0 %3699, %v1070_v23   ;;  %v1472_v23 = vld [vmem:[%s6281_s3 + $0xc8] sm:$0xff] }
  0x7e   : > { %1653 = vperm.xlu1 %3698, %v1462_v24   ;;  %1859 = vperm.xlu0 %3699, %v1805_v26   ;;  %v1815_v24 = vld [vmem:[%s6279_s1 + $0x78] sm:$0xff] }
  0x7f   : > { %v1089_v26 = vld [vmem:[%s6280_s2 + $0xd8] sm:$0xff] }
  0x82   : > { %1310 = vperm.xlu1 %3698, %v1079_v28   ;;  %1618 = vperm.xlu0 %3699, %v1455_v30   ;;  %v1465_v30 = vld [vmem:[%s6281_s3 + $0x90] sm:$0xff] }
  0x86   : > { %1904 = vperm.xlu1 %3698, %v1814_v33   ;;  %1275 = vperm.xlu0 %3699, %v1072_v34   ;;  %v1824_v33 = vld [vmem:[%s6279_s1 + $0xc0] sm:$0xff] }
  0x87   : > { %v1082_v34 = vld [vmem:[%s6280_s2 + $0xa0] sm:$0xff] }
  0x89   : > { %v4326_v21 = vpop.permute.xlu1 %1225 }
  0x8a   : > { %1663 = vperm.xlu1 %3698, %v1464_v37   ;;  %1869 = vperm.xlu0 %3699, %v1807_v38   ;;  %v1474_v38 = vld [vmem:[%s6281_s3 + $0xd8] sm:$0xff] }
  0x8d   : > { %v4337_v28 = vpop.permute.xlu1 %1230 }
  0x8e   : > { %1320 = vperm.xlu1 %3698, %v1081_v42   ;;  %1628 = vperm.xlu0 %3699, %v1457_v43   ;;  %v1817_v42 = vld [vmem:[%s6279_s1 + $0x88] sm:$0xff] }
  0x8f   : > { %v1091_v43 = vld [vmem:[%s6280_s2 + $0xe8] sm:$0xff] }
  0x91   : > { %v4348_v37 = vpop.permute.xlu1 %1578 }
  0x92   : > { %1914 = vperm.xlu1 %3698, %v1816_v44   ;;  %1285 = vperm.xlu0 %3699, %v1074_v46   ;;  %6395 = vst [vmem:[#allocation2_spill] sm:$0xff] %v4348_v37  ;;  %v1467_v46 = vld [vmem:[%s6281_s3 + $0xa0] sm:$0xff] }
  0x95   : > { %v4359_v44 = vpop.permute.xlu1 %1583 }
  0x96   : > { %1673 = vperm.xlu1 %3698, %v1466_v48   ;;  %1879 = vperm.xlu0 %3699, %v1809_v50   ;;  %6396 = vst [vmem:[#allocation3_spill] sm:$0xff] %v4359_v44  ;;  %v1826_v48 = vld [vmem:[%s6279_s1 + $0xd0] sm:$0xff] }
  0x97   : > { %v1084_v50 = vld [vmem:[%s6280_s2 + $0xb0] sm:$0xff] }
  0x9a   : > { %1330 = vperm.xlu1 %3698, %v1083_v51   ;;  %1638 = vperm.xlu0 %3699, %v1459_v53   ;;  %v4370_v51 = vpop.permute.xlu1 %1240  ;;  %v1476_v53 = vld [vmem:[%s6281_s3 + $0xe8] sm:$0xff] }
  0x9e   : > { %1924 = vperm.xlu1 %3698, %v1818_v55   ;;  %1295 = vperm.xlu0 %3699, %v1076_v56   ;;  %v1819_v55 = vld [vmem:[%s6279_s1 + $0x98] sm:$0xff] }
  0x9f   : > { %v1093_v56 = vld [vmem:[%s6280_s2 + $0xf8] sm:$0xff] }
  0xa2   : > { %1683 = vperm.xlu1 %3698, %v1468_v57   ;;  %1889 = vperm.xlu0 %3699, %v1811_v61   ;;  %v4381_v57 = vpop.permute.xlu1 %1588  ;;  %v1469_v61 = vld [vmem:[%s6281_s3 + $0xb0] sm:$0xff] }
  0xa3   : > { %6397 = vst [vmem:[#allocation4_spill] sm:$0xff] %v4381_v57 }
  0xa6   : > { %1340 = vperm.xlu1 %3698, %v1085_v62   ;;  %1648 = vperm.xlu0 %3699, %v1461_v63   ;;  %v1828_v62 = vld [vmem:[%s6279_s1 + $0xe0] sm:$0xff] }
  0xa7   : > { %v1086_v63 = vld [vmem:[%s6280_s2 + $0xc0] sm:$0xff] }
  0xaa   : > { %1934 = vperm.xlu1 %3698, %v1820_v1   ;;  %1305 = vperm.xlu0 %3699, %v1078_v2   ;;  %v4392_v1 = vpop.permute.xlu1 %1245 }
  0xae   : > { %1693 = vperm.xlu1 %3698, %v1470_v7   ;;  %1899 = vperm.xlu0 %3699, %v1813_v9   ;;  %v1829_v7 = vld [vmem:[%s6279_s1 + $0xe8] sm:$0xff] }
  0xb2   : > { %1350 = vperm.xlu1 %3698, %v1087_v12   ;;  %1658 = vperm.xlu0 %3699, %v1463_v14   ;;  %v1821_v12 = vld [vmem:[%s6279_s1 + $0xa8] sm:$0xff] }
  0xb6   : > { %1944 = vperm.xlu1 %3698, %v1822_v15   ;;  %1315 = vperm.xlu0 %3699, %v1080_v19   ;;  %v1831_v19 = vld [vmem:[%s6279_s1 + $0xf8] sm:$0xff] }
  0xba   : > { %1703 = vperm.xlu1 %3698, %v1472_v23   ;;  %1909 = vperm.xlu0 %3699, %v1815_v24  }
  0xbe   : > { %1360 = vperm.xlu1 %3698, %v1089_v26   ;;  %1668 = vperm.xlu0 %3699, %v1465_v30   ;;  %v4403_v26 = vpop.permute.xlu1 %1593  ;;  %v1471_v30 = vld [vmem:[%s6281_s3 + $0xc0] sm:$0xff] }
  0xbf   : > { %6398 = vst [vmem:[#allocation5_spill] sm:$0xff] %v4403_v26 }
  0xc2   : > { %1954 = vperm.xlu1 %3698, %v1824_v33   ;;  %1325 = vperm.xlu0 %3699, %v1082_v34  }
  0xc6   : > { %1713 = vperm.xlu1 %3698, %v1474_v38   ;;  %1919 = vperm.xlu0 %3699, %v1817_v42  }
  0xca   : > { %1370 = vperm.xlu1 %3698, %v1091_v43   ;;  %1678 = vperm.xlu0 %3699, %v1467_v46   ;;  %v1088_v43 = vld [vmem:[%s6280_s2 + $0xd0] sm:$0xff] }
  0xce   : > { %1964 = vperm.xlu1 %3698, %v1826_v48   ;;  %1335 = vperm.xlu0 %3699, %v1084_v50   ;;  %v4411_v50 = vpop.permute.xlu1 %1834 }
  0xcf   : > { %6399 = vst [vmem:[#allocation6_spill] sm:$0xff] %v4411_v50 }
  0xd2   : > { %1723 = vperm.xlu1 %3698, %v1476_v53   ;;  %1929 = vperm.xlu0 %3699, %v1819_v55   ;;  %v1823_v55 = vld [vmem:[%s6279_s1 + $0xb8] sm:$0xff] }
  0xd6   : > { %1380 = vperm.xlu1 %3698, %v1093_v56   ;;  %1688 = vperm.xlu0 %3699, %v1469_v61   ;;  %v4416_v61 = vpop.permute.xlu1 %1839 }
  0xd7   : > { %6400 = vst [vmem:[#allocation7_spill] sm:$0xff] %v4416_v61 }
  0xd9   : > { %v765_v2 = vpop.xlane.xlu0 %764 }
  0xda   : > { %1974 = vperm.xlu1 %3698, %v1828_v62   ;;  %v766_v9 = vrot.slane %v765_v2, 4  ;;  %1345 = vperm.xlu0 %3699, %v1086_v63   ;;  %v1473_v62 = vld [vmem:[%s6281_s3 + $0xd0] sm:$0xff]  ;;  %v1090_v63 = vld [vmem:[%s6280_s2 + $0xe0] sm:$0xff] }
  0xdc   : > { %v767_v14 = vadd.f32 %v766_v9, %v765_v2  ;;  %v4424_v2 = vpop.permute.xlu1 %1250 }
  0xdd   : > { %v838_v15 = vpop.xlane.xlu0 %837 }
  0xde   : > { %1979 = vperm.xlu1 %3698, %v1829_v7   ;;  %v768_v23 = vrot.slane %v767_v14, 2  ;;  %v839_v24 = vrot.slane %v838_v15, 4  ;;  %1939 = vperm.xlu0 %3699, %v1821_v12   ;;  %v1825_v7 = vld [vmem:[%s6279_s1 + $0xc8] sm:$0xff]  ;;  %v1475_v12 = vld [vmem:[%s6281_s3 + $0xe0] sm:$0xff] }
  0xe0   : > { %v840_v33 = vadd.f32 %v839_v24, %v838_v15  ;;  %v769_v34 = vadd.f32 %v768_v23, %v767_v14  ;;  %v4429_v9 = vpop.permute.xlu1 %1598  ;;  %v1092_v14 = vld [vmem:[%s6280_s2 + $0xf0] sm:$0xff] }
  0xe1   : > { %6401 = vst [vmem:[#allocation8_spill] sm:$0xff] %v4429_v9 }
  0xe2   : > { %1989 = vperm.xlu1 %3698, %v1831_v19   ;;  %v841_v38 = vrot.slane %v840_v33, 2  ;;  %1698 = vperm.xlu0 %3699, %v1471_v30   ;;  %v770_v42 = vrot.slane %v769_v34, 1  ;;  %v1827_v19 = vld [vmem:[%s6279_s1 + $0xd8] sm:$0xff]  ;;  %v1477_v30 = vld [vmem:[%s6281_s3 + $0xf0] sm:$0xff] }
  0xe4   : > { %v771_v46 = vadd.f32 %v770_v42, %v769_v34  ;;  %v842_v48 = vadd.f32 %v841_v38, %v840_v33  ;;  %v4437_v15 = vpop.permute.xlu1 %1844  ;;  %v1478_v34 = vld [vmem:[%s6281_s3 + $0xf8] sm:$0xff]  ;;  %v1830_v42 = vld [vmem:[%s6279_s1 + $0xf0] sm:$0xff] }
  0xe5   : > { %6402 = vst [vmem:[#allocation9_spill] sm:$0xff] %v4437_v15  ;;  %v4442_v23 = vpop.permute.xlu0 %1235 }
  0xe6   : > { %1355 = vperm.xlu0 %3699, %v1088_v43   ;;  %3660 = vpush %v771_v46  ;;  %v843_v53 = vrot.slane %v842_v48, 1 }
  0xe8   : > { %v844_v56 = vadd.f32 %v843_v53, %v842_v48  ;;  %v4444_v24 = vpop.permute.xlu1 %1603 }
  0xe9   : > { %6403 = vst [vmem:[#allocation10_spill] sm:$0xff] %v4444_v24  ;;  %v4449_v33 = vpop.permute.xlu0 %1255 }
  0xea   : > { %1949 = vperm.xlu0 %3699, %v1823_v55   ;;  %3662 = vpush %v844_v56 }
  0xec   : > { %v4454_v38 = vpop.permute.xlu1 %1260 }
  0xed   : > { %v4459_v43 = vpop.permute.xlu0 %1849 }
  0xee   : > { %1708 = vperm.xlu0 %3699, %v1473_v62   ;;  %6404 = vst [vmem:[#allocation11_spill] sm:$0xff] %v4459_v43 }
  0xf0   : > { %v4461_v46 = vpop.permute.xlu1 %1854 }
  0xf1   : > { %6405 = vst [vmem:[#allocation12_spill] sm:$0xff] %v4461_v46  ;;  %v4463_v48 = vpop.permute.xlu0 %1608 }
  0xf2   : > { %1365 = vperm.xlu0 %3699, %v1090_v63   ;;  %6406 = vst [vmem:[#allocation13_spill] sm:$0xff] %v4463_v48 }
  0xf4   : > { %v4465_v53 = vpop.permute.xlu1 %1613 }
  0xf5   : > { %6407 = vst [vmem:[#allocation14_spill] sm:$0xff] %v4465_v53  ;;  %v4469_v55 = vpop.permute.xlu0 %1265 }
  0xf6   : > { %1959 = vperm.xlu0 %3699, %v1825_v7  }
  0xf8   : > { %v4471_v56 = vpop.permute.xlu1 %1270 }
  0xf9   : > { %v4475_v62 = vpop.permute.xlu0 %1859 }
  0xfa   : > { %1718 = vperm.xlu0 %3699, %v1475_v12   ;;  %6408 = vst [vmem:[#allocation15_spill] sm:$0xff] %v4475_v62 }
  0xfc   : > { %v4478_v63 = vpop.permute.xlu1 %1864 }
  0xfd   : > { %6409 = vst [vmem:[#allocation16_spill] sm:$0xff] %v4478_v63  ;;  %v4480_v12 = vpop.permute.xlu0 %1618 }
  0xfe   : > { %1375 = vperm.xlu0 %3699, %v1092_v14   ;;  %6410 = vst [vmem:[#allocation17_spill] sm:$0xff] %v4480_v12 }
 0x100   : > { %v4482_v14 = vpop.permute.xlu1 %1623 }
 0x101   : > { %6411 = vst [vmem:[#allocation18_spill] sm:$0xff] %v4482_v14 }
 0x102   : > { %1969 = vperm.xlu0 %3699, %v1827_v19   ;;  %v4484_v19 = vpop.permute.xlu0 %1275 }
 0x103   : > { %6412 = vst [vmem:[#allocation19_spill] sm:$0xff] %v4484_v19 }
 0x106   : > { %1728 = vperm.xlu0 %3699, %v1477_v30   ;;  %v4486_v30 = vpop.permute.xlu1 %1280 }
 0x107   : > { %6413 = vst [vmem:[#allocation20_spill] sm:$0xff] %v4486_v30 }
 0x10a   : > { %1733 = vperm.xlu0 %3699, %v1478_v34   ;;  %v4490_v62 = vpop.permute.xlu1 %1874 }
 0x10b   : > { %6415 = vst [vmem:[#allocation22_spill] sm:$0xff] %v4490_v62 }
 0x10e   : > { %1984 = vperm.xlu0 %3699, %v1830_v42   ;;  %v4488_v42 = vpop.permute.xlu0 %1869  ;;  %v4494_v63 = vpop.permute.xlu1 %1633 }
 0x10f   : > { %6414 = vst [vmem:[#allocation21_spill] sm:$0xff] %v4488_v42  ;;  %6417 = vst [vmem:[#allocation24_spill] sm:$0xff] %v4494_v63 }
 0x112   : > { %v4492_v46 = vpop.permute.xlu0 %1628  ;;  %v4498_v43 = vpop.permute.xlu1 %1290 }
 0x113   : > { %6416 = vst [vmem:[#allocation23_spill] sm:$0xff] %v4492_v46  ;;  %6419 = vst [vmem:[#allocation26_spill] sm:$0xff] %v4498_v43 }
 0x116   : > { %v4502_v61 = vpop.permute.xlu1 %1884 }
 0x117   : > { %s3661_s22 = spop %3660  ;;  %6421 = vst [vmem:[#allocation28_spill] sm:$0xff] %v4502_v61 }
 0x118   : > { %s4467_s23 = smul.f32 0.00024414063, %s3661_s22 }
 0x11a   : > { %s847_s25 = smul.f32 %s4467_s23, %s4467_s23  ;;  %v4506_v14 = vpop.permute.xlu1 %1643  ;;  %v4519_v12 = vstv %s4467_s23 }
 0x11b   : > { %s3663_s26 = spop %3662  ;;  %6423 = vst [vmem:[#allocation30_spill] sm:$0xff] %v4506_v14  ;;  %v851_v61 = vsub.f32 %v3952_v3, %v4519_v12  ;;  %v853_v14 = vsub.f32 %v3961_v6, %v4519_v12  ;;  %v858_v3 = vsub.f32 %v4000_v27, %v4519_v12  ;;  %v860_v6 = vsub.f32 %v4015_v36, %v4519_v12 }
 0x11c   : > { %s846_s27 = smul.f32 0.00024414063, %s3663_s26  ;;  %v864_v27 = vsub.f32 %v4045_v54, %v4519_v12  ;;  %v866_v36 = vsub.f32 %v4057_v60, %v4519_v12  ;;  %v871_v54 = vsub.f32 %v4096_v29, %v4519_v12  ;;  %v873_v60 = vsub.f32 %v4111_v41, %v4519_v12 }
 0x11d   : > { %v879_v29 = vsub.f32 %v4156_v16, %v4519_v12  ;;  %v881_v41 = vsub.f32 %v4171_v32, %v4519_v12 }
 0x11e   : > { %s848_s28 = ssub.f32 %s846_s27, %s847_s25 }
 0x120   : > { %s849_s18 = smax.f32 %s3841_s17, %s848_s28 }
 0x121   : > { %s883_s19 = sadd.f32 1e-05, %s849_s18 }
 0x123   : > { %v884_v7 = vstv %s883_s19 }
 0x124   : > { %3716 = vrsqrt.f32 %v884_v7  ;;  %v4496_v7 = vpop.permute.xlu0 %1285 }
 0x125   : > { %6418 = vst [vmem:[#allocation25_spill] sm:$0xff] %v4496_v7 }
 0x128   : > { %v4500_v15 = vpop.permute.xlu0 %1879 }
 0x129   : > { %6420 = vst [vmem:[#allocation27_spill] sm:$0xff] %v4500_v15  ;;  %v852_v15 = vsub.f32 %v3955_v4, %v4519_v12  ;;  %v859_v4 = vsub.f32 %v4006_v31, %v4519_v12  ;;  %v865_v31 = vsub.f32 %v4054_v59, %v4519_v12  ;;  %v872_v59 = vsub.f32 %v4105_v35, %v4519_v12 }
 0x12a   : > { %v880_v35 = vsub.f32 %v4165_v25, %v4519_v12 }
 0x12c   : > { %v4504_v50 = vpop.permute.xlu0 %1638 }
 0x12d   : > { %6422 = vst [vmem:[#allocation29_spill] sm:$0xff] %v4504_v50  ;;  %v857_v50 = vsub.f32 %v3991_v22, %v4519_v12 }
 0x130   : > { %v4508_v42 = vpop.permute.xlu0 %1295 }
 0x131   : > { %v3717_v34 = vpop.eup %3716  ;;  %6424 = vst [vmem:[#allocation31_spill] sm:$0xff] %v4508_v42 }
 0x132   : > { %3664 = vpush %v3717_v34  ;;  %v4510_v34 = vpop.permute.xlu1 %1300 }
 0x133   : > { %6425 = vst [vmem:[#allocation32_spill] sm:$0xff] %v4510_v34 }
 0x134   : > { %v4512_v62 = vpop.permute.xlu0 %1889 }
 0x135   : > { %6426 = vst [vmem:[#allocation33_spill] sm:$0xff] %v4512_v62  ;;  %v854_v62 = vsub.f32 %v3970_v10, %v4519_v12  ;;  %v861_v10 = vsub.f32 %v4021_v40, %v4519_v12  ;;  %v867_v40 = vsub.f32 %v4068_v5, %v4519_v12  ;;  %v874_v5 = vsub.f32 %v4120_v47, %v4519_v12 }
 0x136   : > { %v4514_v46 = vpop.permute.xlu1 %1894  ;;  %v882_v47 = vsub.f32 %v4180_v39, %v4519_v12 }
 0x137   : > { %6427 = vst [vmem:[#allocation34_spill] sm:$0xff] %v4514_v46  ;;  %v855_v46 = vsub.f32 %v3976_v13, %v4519_v12  ;;  %v862_v13 = vsub.f32 %v4030_v45, %v4519_v12  ;;  %v868_v45 = vsub.f32 %v4072_v8, %v4519_v12  ;;  %v875_v8 = vsub.f32 %v4126_v52, %v4519_v12 }
 0x138   : > { %v4516_v63 = vpop.permute.xlu0 %1648  ;;  %v876_v52 = vsub.f32 %v4135_v58, %v4519_v12 }
 0x139   : > { %6428 = vst [vmem:[#allocation35_spill] sm:$0xff] %v4516_v63  ;;  %v856_v63 = vsub.f32 %v3985_v18, %v4519_v12  ;;  %v863_v18 = vsub.f32 %v4036_v49, %v4519_v12  ;;  %v869_v49 = vsub.f32 %v4083_v17, %v4519_v12  ;;  %v877_v17 = vsub.f32 %v4141_v0, %v4519_v12 }
 0x13a   : > { %v4521_v53 = vpop.permute.xlu1 %1653 }
 0x13b   : > { %6429 = vst [vmem:[#allocation36_spill] sm:$0xff] %v4521_v53  ;;  %v870_v53 = vsub.f32 %v4087_v20, %v4519_v12  ;;  %v878_v20 = vsub.f32 %v4150_v11, %v4519_v12 }
 0x13c   : > { %v4541_v48 = vpop.permute.xlu0 %1305 }
 0x13e   : > { %v4551_v22 = vpop.permute.xlu1 %1310 }
 0x13f   : > { %6430 = vst [vmem:[#allocation37_spill] sm:$0xff] %v4551_v22 }
 0x140   : > { %v4591_v9 = vpop.permute.xlu0 %1899 }
 0x141   : > { %6431 = vst [vmem:[#allocation38_spill] sm:$0xff] %v4591_v9 }
 0x142   : > { %v4593_v44 = vpop.permute.xlu1 %1904 }
 0x143   : > { %6432 = vst [vmem:[#allocation39_spill] sm:$0xff] %v4593_v44 }
 0x163   : > { %s3665_s20 = spop %3664 }
 0x164   : > { %v887_v24 = vstv %s3665_s20 }
 0x165   : > { %v888_v0 = vmul.f32 %v887_v24, %v851_v61  ;;  %v889_v26 = vmul.f32 %v887_v24, %v852_v15  ;;  %v890_v11 = vmul.f32 %v887_v24, %v853_v14  ;;  %v891_v57 = vmul.f32 %v887_v24, %v854_v62  ;;  %v4598_v62 = vld [vmem:[%s6282_s4] ss:$0 sm:$0xff] }
 0x166   : > { %v892_v16 = vmul.f32 %v887_v24, %v855_v46  ;;  %v893_v37 = vmul.f32 %v887_v24, %v856_v63  ;;  %v894_v25 = vmul.f32 %v887_v24, %v857_v50  ;;  %v895_v22 = vmul.f32 %v887_v24, %v858_v3  ;;  %6433 = vst [vmem:[#allocation40_spill] sm:$0xff] %v4598_v62  ;;  %v4600_v46 = vpop.permute.xlu0 %1658 }
 0x167   : > { %v896_v34 = vmul.f32 %v887_v24, %v859_v4  ;;  %v897_v32 = vmul.f32 %v887_v24, %v860_v6  ;;  %v898_v42 = vmul.f32 %v887_v24, %v861_v10  ;;  %v899_v43 = vmul.f32 %v887_v24, %v862_v13  ;;  %6434 = vst [vmem:[#allocation41_spill] sm:$0xff] %v4600_v46 }
 0x168   : > { %v900_v39 = vmul.f32 %v887_v24, %v863_v18  ;;  %v901_v7 = vmul.f32 %v887_v24, %v864_v27  ;;  %v902_v30 = vmul.f32 %v887_v24, %v865_v31  ;;  %v903_v58 = vmul.f32 %v887_v24, %v866_v36  ;;  %v4604_v18 = vpop.permute.xlu1 %1663 }
 0x169   : > { %v904_v12 = vmul.f32 %v887_v24, %v867_v40  ;;  %v905_v9 = vmul.f32 %v887_v24, %v868_v45  ;;  %v906_v61 = vmul.f32 %v887_v24, %v869_v49  ;;  %v907_v15 = vmul.f32 %v887_v24, %v870_v53  ;;  %6436 = vst [vmem:[#allocation43_spill] sm:$0xff] %v4604_v18 }
 0x16a   : > { %v908_v50 = vmul.f32 %v887_v24, %v871_v54  ;;  %v909_v63 = vmul.f32 %v887_v24, %v872_v59  ;;  %v910_v14 = vmul.f32 %v887_v24, %v873_v60  ;;  %v911_v3 = vmul.f32 %v887_v24, %v874_v5 }
 0x16b   : > { %v912_v4 = vmul.f32 %v887_v24, %v875_v8  ;;  %v913_v6 = vmul.f32 %v887_v24, %v876_v52  ;;  %v914_v10 = vmul.f32 %v887_v24, %v877_v17  ;;  %v4602_v13 = vmul.f32 %v887_v24, %v878_v20 }
 0x16c   : > { %v4606_v27 = vmul.f32 %v887_v24, %v879_v29  ;;  %v4608_v53 = vmul.f32 %v887_v24, %v880_v35  ;;  %v4610_v31 = vmul.f32 %v887_v24, %v881_v41  ;;  %v4612_v36 = vmul.f32 %v887_v24, %v882_v47  ;;  %v4631_v29 = vpop.permute.xlu0 %1315  ;;  %v4641_v52 = vpop.permute.xlu1 %1320 }
 0x16d   : > { %6435 = vst [vmem:[#allocation42_spill] sm:$0xff] %v4602_v13  ;;  %v927_v40 = vmul.f32 %v4598_v62, %v888_v0  ;;  %v928_v45 = vmul.f32 %v4598_v62, %v889_v26  ;;  %v929_v49 = vmul.f32 %v4598_v62, %v890_v11  ;;  %v930_v54 = vmul.f32 %v4598_v62, %v891_v57  ;;  %v4629_v57 = vld [vmem:[%s6283_s5] ss:$0 sm:$0xff] }
 0x16e   : > { %6437 = vst [vmem:[#allocation44_spill] sm:$0xff] %v4606_v27  ;;  %6438 = vst [vmem:[#allocation45_spill] sm:$0xff] %v4608_v53  ;;  %v931_v59 = vmul.f32 %v4598_v62, %v892_v16  ;;  %v932_v60 = vmul.f32 %v4598_v62, %v893_v37  ;;  %v933_v5 = vmul.f32 %v4598_v62, %v894_v25 }
 0x16f   : > { %6439 = vst [vmem:[#allocation46_spill] sm:$0xff] %v4610_v31  ;;  %6440 = vst [vmem:[#allocation47_spill] sm:$0xff] %v4612_v36  ;;  %v934_v8 = vmul.f32 %v4598_v62, %v895_v22  ;;  %v935_v17 = vmul.f32 %v4598_v62, %v896_v34  ;;  %v936_v24 = vmul.f32 %v4598_v62, %v897_v32 }
 0x170   : > { %v937_v20 = vmul.f32 %v4598_v62, %v898_v42  ;;  %v938_v26 = vmul.f32 %v4598_v62, %v899_v43  ;;  %6441 = vst [vmem:[#allocation48_spill] sm:$0xff] %v4629_v57  ;;  %6442 = vst [vmem:[#allocation49_spill] sm:$0xff] %v4631_v29  ;;  %v939_v37 = vmul.f32 %v4598_v62, %v900_v39 }
 0x171   : > { %v940_v35 = vmul.f32 %v4598_v62, %v901_v7  ;;  %v941_v22 = vmul.f32 %v4598_v62, %v902_v30  ;;  %v942_v34 = vmul.f32 %v4598_v62, %v903_v58  ;;  %v943_v41 = vmul.f32 %v4598_v62, %v904_v12  ;;  %6443 = vst [vmem:[#allocation50_spill] sm:$0xff] %v4641_v52 }
 0x172   : > { %v944_v42 = vmul.f32 %v4598_v62, %v905_v9  ;;  %v945_v43 = vmul.f32 %v4598_v62, %v906_v61  ;;  %v946_v47 = vmul.f32 %v4598_v62, %v907_v15  ;;  %v947_v0 = vmul.f32 %v4598_v62, %v908_v50 }
 0x173   : > { %v948_v11 = vmul.f32 %v4598_v62, %v909_v63  ;;  %v949_v7 = vmul.f32 %v4598_v62, %v910_v14  ;;  %v950_v30 = vmul.f32 %v4598_v62, %v911_v3  ;;  %v951_v16 = vmul.f32 %v4598_v62, %v912_v4  ;;  %v4677_v3 = vpop.permute.xlu0 %1909 }
 0x174   : > { %v952_v25 = vmul.f32 %v4598_v62, %v913_v6  ;;  %v953_v9 = vmul.f32 %v4598_v62, %v914_v10  ;;  %v4651_v32 = vadd.f32 %v4629_v57, %v927_v40  ;;  %v4654_v39 = vadd.f32 %v4629_v57, %v928_v45  ;;  %6453 = vst [vmem:[#allocation60_spill] sm:$0xff] %v4677_v3 }
 0x175   : > { %v4657_v58 = vadd.f32 %v4629_v57, %v929_v49  ;;  %v4660_v12 = vadd.f32 %v4629_v57, %v930_v54  ;;  %v4663_v61 = vadd.f32 %v4629_v57, %v931_v59  ;;  %v4666_v15 = vadd.f32 %v4629_v57, %v932_v60  ;;  %v4703_v60 = vpop.permute.xlu1 %1914 }
 0x176   : > { %6444 = vst [vmem:[#allocation51_spill] sm:$0xff] %v4651_v32  ;;  %6445 = vst [vmem:[#allocation52_spill] sm:$0xff] %v4654_v39  ;;  %v4669_v50 = vadd.f32 %v4629_v57, %v933_v5  ;;  %v4672_v63 = vadd.f32 %v4629_v57, %v934_v8  ;;  %v4675_v14 = vadd.f32 %v4629_v57, %v935_v17 }
 0x177   : > { %6446 = vst [vmem:[#allocation53_spill] sm:$0xff] %v4657_v58  ;;  %6447 = vst [vmem:[#allocation54_spill] sm:$0xff] %v4660_v12  ;;  %v4680_v4 = vadd.f32 %v4629_v57, %v936_v24  ;;  %v4683_v6 = vadd.f32 %v4629_v57, %v937_v20  ;;  %v4686_v10 = vadd.f32 %v4629_v57, %v938_v26 }
 0x178   : > { %6448 = vst [vmem:[#allocation55_spill] sm:$0xff] %v4663_v61  ;;  %6449 = vst [vmem:[#allocation56_spill] sm:$0xff] %v4666_v15  ;;  %v4689_v40 = vadd.f32 %v4629_v57, %v939_v37  ;;  %v4692_v45 = vadd.f32 %v4629_v57, %v940_v35  ;;  %v4695_v49 = vadd.f32 %v4629_v57, %v941_v22 }
 0x179   : > { %6450 = vst [vmem:[#allocation57_spill] sm:$0xff] %v4669_v50  ;;  %6451 = vst [vmem:[#allocation58_spill] sm:$0xff] %v4672_v63  ;;  %v4698_v54 = vadd.f32 %v4629_v57, %v942_v34  ;;  %v4701_v59 = vadd.f32 %v4629_v57, %v943_v41  ;;  %v4706_v5 = vadd.f32 %v4629_v57, %v944_v42  ;;  %v4769_v27 = vpop.permute.xlu1 %1673 }
 0x17a   : > { %6452 = vst [vmem:[#allocation59_spill] sm:$0xff] %v4675_v14  ;;  %6454 = vst [vmem:[#allocation61_spill] sm:$0xff] %v4680_v4  ;;  %v4709_v8 = vadd.f32 %v4629_v57, %v945_v43  ;;  %v4712_v17 = vadd.f32 %v4629_v57, %v946_v47  ;;  %v4715_v24 = vadd.f32 %v4629_v57, %v947_v0 }
 0x17b   : > { %6455 = vst [vmem:[#allocation62_spill] sm:$0xff] %v4683_v6  ;;  %6456 = vst [vmem:[#allocation63_spill] sm:$0xff] %v4686_v10  ;;  %v4718_v20 = vadd.f32 %v4629_v57, %v948_v11  ;;  %v4721_v26 = vadd.f32 %v4629_v57, %v949_v7  ;;  %v4724_v37 = vadd.f32 %v4629_v57, %v950_v30  ;;  %v4751_v7 = vpop.permute.xlu0 %1668 }
 0x17c   : > { %6457 = vst [vmem:[#allocation64_spill] sm:$0xff] %v4689_v40  ;;  %6458 = vst [vmem:[#allocation65_spill] sm:$0xff] %v4692_v45  ;;  %v4727_v35 = vadd.f32 %v4629_v57, %v951_v16  ;;  %v4730_v22 = vadd.f32 %v4629_v57, %v952_v25  ;;  %v4733_v34 = vadd.f32 %v4629_v57, %v953_v9 }
 0x17d   : > { %6459 = vst [vmem:[#allocation66_spill] sm:$0xff] %v4695_v49  ;;  %6460 = vst [vmem:[#allocation67_spill] sm:$0xff] %v4698_v54  ;;  %v4737_v41 = vadd.f32 %v4657_v58, %v4651_v32  ;;  %v4741_v42 = vadd.f32 %v4660_v12, %v4654_v39  ;;  %v1002_v43 = vadd.f32 %v4663_v61, %v4657_v58 }
 0x17e   : > { %6461 = vst [vmem:[#allocation68_spill] sm:$0xff] %v4701_v59  ;;  %6462 = vst [vmem:[#allocation69_spill] sm:$0xff] %v4703_v60  ;;  %v1003_v47 = vadd.f32 %v4666_v15, %v4660_v12  ;;  %v1004_v0 = vadd.f32 %v4669_v50, %v4663_v61  ;;  %v1005_v11 = vadd.f32 %v4672_v63, %v4666_v15 }
 0x17f   : > { %6463 = vst [vmem:[#allocation70_spill] sm:$0xff] %v4706_v5  ;;  %6464 = vst [vmem:[#allocation71_spill] sm:$0xff] %v4709_v8  ;;  %v1006_v30 = vadd.f32 %v4675_v14, %v4669_v50  ;;  %v1007_v16 = vadd.f32 %v4680_v4, %v4672_v63  ;;  %v1008_v25 = vadd.f32 %v4683_v6, %v4675_v14 }
 0x180   : > { %6465 = vst [vmem:[#allocation72_spill] sm:$0xff] %v4712_v17  ;;  %6466 = vst [vmem:[#allocation73_spill] sm:$0xff] %v4715_v24  ;;  %v1009_v9 = vadd.f32 %v4686_v10, %v4680_v4  ;;  %v1010_v36 = vadd.f32 %v4689_v40, %v4683_v6  ;;  %v1011_v31 = vadd.f32 %v4692_v45, %v4686_v10 }
 0x181   : > { %6467 = vst [vmem:[#allocation74_spill] sm:$0xff] %v4718_v20  ;;  %6468 = vst [vmem:[#allocation75_spill] sm:$0xff] %v4721_v26  ;;  %v1012_v57 = vadd.f32 %v4695_v49, %v4689_v40  ;;  %v1013_v53 = vadd.f32 %v4698_v54, %v4692_v45  ;;  %v1014_v62 = vadd.f32 %v4701_v59, %v4695_v49 }
 0x182   : > { %6469 = vst [vmem:[#allocation76_spill] sm:$0xff] %v4724_v37  ;;  %6470 = vst [vmem:[#allocation77_spill] sm:$0xff] %v4727_v35  ;;  %v1015_v13 = vadd.f32 %v4706_v5, %v4698_v54  ;;  %v1016_v12 = vadd.f32 %v4709_v8, %v4701_v59  ;;  %v1017_v58 = vadd.f32 %v4712_v17, %v4706_v5 }
 0x183   : > { %6471 = vst [vmem:[#allocation78_spill] sm:$0xff] %v4730_v22  ;;  %6472 = vst [vmem:[#allocation79_spill] sm:$0xff] %v4733_v34  ;;  %v1018_v39 = vadd.f32 %v4715_v24, %v4709_v8  ;;  %v1019_v32 = vadd.f32 %v4718_v20, %v4712_v17  ;;  %v1020_v44 = vadd.f32 %v4721_v26, %v4715_v24 }
 0x184   : > { %6473 = vst [vmem:[#allocation80_spill] sm:$0xff] %v4751_v7  ;;  %6474 = vst [vmem:[#allocation81_spill] sm:$0xff] %v4769_v27  ;;  %v1021_v60 = vadd.f32 %v4724_v37, %v4718_v20  ;;  %v1022_v3 = vadd.f32 %v4727_v35, %v4721_v26  ;;  %v4791_v27 = vadd.f32 %v4737_v41, %v4663_v61  ;;  %v4812_v61 = vpop.permute.xlu0 %1325 }
 0x185   : > { %v4795_v7 = vadd.f32 %v4741_v42, %v4666_v15  ;;  %v4798_v18 = vadd.f32 %v1002_v43, %v4669_v50  ;;  %v4801_v46 = vadd.f32 %v1003_v47, %v4672_v63  ;;  %v4804_v52 = vadd.f32 %v1004_v0, %v4675_v14 }
 0x186   : > { %v4807_v29 = vadd.f32 %v1005_v11, %v4680_v4  ;;  %v4810_v19 = vadd.f32 %v1006_v30, %v4683_v6  ;;  %v4815_v15 = vadd.f32 %v1007_v16, %v4686_v10  ;;  %v4818_v43 = vadd.f32 %v1008_v25, %v4689_v40  ;;  %v4838_v25 = vpop.permute.xlu1 %1330 }
 0x187   : > { %v4821_v47 = vadd.f32 %v1009_v9, %v4692_v45  ;;  %v4824_v0 = vadd.f32 %v1010_v36, %v4695_v49  ;;  %v4827_v11 = vadd.f32 %v1011_v31, %v4698_v54  ;;  %v4830_v30 = vadd.f32 %v1012_v57, %v4701_v59 }
 0x188   : > { %v4833_v6 = vadd.f32 %v1013_v53, %v4706_v5  ;;  %v4836_v16 = vadd.f32 %v1014_v62, %v4709_v8  ;;  %v1127_v9 = vrot.slane %v4737_v41, 7  ;;  %v1128_v45 = vrot.slane %v4741_v42, 7 }
 0x189   : > { %6475 = vst [vmem:[#allocation82_spill] sm:$0xff] %v4830_v30  ;;  %v1130_v36 = vrot.slane %v4791_v27, 7  ;;  %v1132_v31 = vrot.slane %v4795_v7, 7  ;;  %v1134_v49 = vrot.slane %v4798_v18, 7  ;;  %v1136_v57 = vrot.slane %v4801_v46, 7 }
 0x18a   : > { %6476 = vst [vmem:[#allocation83_spill] sm:$0xff] %v4833_v6  ;;  %v1138_v53 = vrot.slane %v4804_v52, 7  ;;  %v1140_v5 = vrot.slane %v4807_v29, 7  ;;  %v4849_v62 = vadd.f32 %v1015_v13, %v4712_v17  ;;  %v4852_v8 = vadd.f32 %v1016_v12, %v4715_v24  ;;  %v4870_v17 = vpop.permute.xlu0 %1919 }
 0x18b   : > { %v4855_v10 = vadd.f32 %v1017_v58, %v4718_v20  ;;  %v4858_v4 = vadd.f32 %v1018_v39, %v4721_v26  ;;  %v4861_v14 = vadd.f32 %v1019_v32, %v4724_v37  ;;  %v4864_v63 = vadd.f32 %v1020_v44, %v4727_v35  ;;  %6484 = vst [vmem:[#allocation91_spill] sm:$0xff] %v4870_v17 }
 0x18c   : > { %6477 = vst [vmem:[#allocation84_spill] sm:$0xff] %v4849_v62  ;;  %6478 = vst [vmem:[#allocation85_spill] sm:$0xff] %v4852_v8  ;;  %v4867_v50 = vadd.f32 %v1021_v60, %v4730_v22  ;;  %v1142_v13 = vrot.slane %v4810_v19, 7  ;;  %v4873_v12 = vadd.f32 %v1022_v3, %v4733_v34  ;;  %v1129_v58 = vsel %vm1126_vm0, %v1127_v9, %v1128_v45  ;;  %v4882_v22 = vpop.permute.xlu1 %1924 }
 0x18d   : > { %6479 = vst [vmem:[#allocation86_spill] sm:$0xff] %v4855_v10  ;;  %6480 = vst [vmem:[#allocation87_spill] sm:$0xff] %v4858_v4  ;;  %v1131_v39 = vsel %vm1126_vm0, %v1128_v45, %v1130_v36  ;;  %v1133_v32 = vsel %vm1126_vm0, %v1130_v36, %v1132_v31  ;;  %v1135_v37 = vsel %vm1126_vm0, %v1132_v31, %v1134_v49  ;;  %v1144_v26 = vrot.slane %v4815_v15, 7 }
 0x18e   : > { %6481 = vst [vmem:[#allocation88_spill] sm:$0xff] %v4861_v14  ;;  %6482 = vst [vmem:[#allocation89_spill] sm:$0xff] %v4864_v63  ;;  %v1137_v44 = vsel %vm1126_vm0, %v1134_v49, %v1136_v57  ;;  %v1139_v60 = vsel %vm1126_vm0, %v1136_v57, %v1138_v53  ;;  %v1141_v35 = vsel %vm1126_vm0, %v1138_v53, %v1140_v5  ;;  %v1146_v3 = vrot.slane %v4818_v43, 7  ;;  %v4900_v17 = vpop.permute.xlu0 %1678 }
 0x18f   : > { %6483 = vst [vmem:[#allocation90_spill] sm:$0xff] %v4867_v50  ;;  %6485 = vst [vmem:[#allocation92_spill] sm:$0xff] %v4873_v12  ;;  %v1148_v34 = vrot.slane %v4821_v47, 7  ;;  %v1150_v45 = vrot.slane %v4824_v0, 7  ;;  %v1143_v36 = vsel %vm1126_vm0, %v1140_v5, %v1142_v13  ;;  %v1152_v31 = vrot.slane %v4827_v11, 7 }
 0x190   : > { %6486 = vst [vmem:[#allocation93_spill] sm:$0xff] %v4882_v22  ;;  %v1154_v49 = vrot.slane %v4830_v30, 7  ;;  %v1156_v57 = vrot.slane %v4833_v6, 7  ;;  %v1158_v53 = vrot.slane %v4836_v16, 7  ;;  %v1160_v20 = vrot.slane %v4849_v62, 7  ;;  %6487 = vst [vmem:[#allocation94_spill] sm:$0xff] %v4900_v17  ;;  %v4910_v30 = vpop.permute.xlu1 %1683 }
 0x191   : > { %v1162_v24 = vrot.slane %v4852_v8, 7  ;;  %v1164_v59 = vrot.slane %v4855_v10, 7  ;;  %v1166_v54 = vrot.slane %v4858_v4, 7  ;;  %v1168_v40 = vrot.slane %v4861_v14, 7  ;;  %6488 = vst [vmem:[#allocation95_spill] sm:$0xff] %v4910_v30 }
 0x192   : > { %v1170_v5 = vrot.slane %v4864_v63, 7  ;;  %v1145_v12 = vsel %vm1126_vm0, %v1142_v13, %v1144_v26  ;;  %v1147_v6 = vsel %vm1126_vm0, %v1144_v26, %v1146_v3  ;;  %v1149_v62 = vsel %vm1126_vm0, %v1146_v3, %v1148_v34  ;;  %v1336_v17 = vpop.permute.xlu0 %1335 }
 0x193   : > { %v1151_v8 = vsel %vm1126_vm0, %v1148_v34, %v1150_v45  ;;  %v1153_v10 = vsel %vm1126_vm0, %v1150_v45, %v1152_v31  ;;  %v1155_v4 = vsel %vm1126_vm0, %v1152_v31, %v1154_v49  ;;  %v1157_v14 = vsel %vm1126_vm0, %v1154_v49, %v1156_v57 }
 0x194   : > { %v1222_v63 = vsel %vm1126_vm0, 0.0, %v1127_v9  ;;  %v1159_v22 = vsel %vm1126_vm0, %v1156_v57, %v1158_v53  ;;  %v1161_v13 = vsel %vm1126_vm0, %v1158_v53, %v1160_v20  ;;  %v1163_v26 = vsel %vm1126_vm0, %v1160_v20, %v1162_v24 }
 0x195   : > { %v1165_v3 = vsel %vm1126_vm0, %v1162_v24, %v1164_v59  ;;  %v1167_v34 = vsel %vm1126_vm0, %v1164_v59, %v1166_v54  ;;  %v1169_v45 = vsel %vm1126_vm0, %v1166_v54, %v1168_v40  ;;  %v1171_v31 = vsel %vm1126_vm0, %v1168_v40, %v1170_v5 }
 0x196   : > { %v6489_v49 = vrot.slane %v4867_v50, 7  ;;  %v1383_v30 = vmul.f32 %v4326_v21, %v1222_v63  ;;  %v1384_v57 = vmul.f32 %v4337_v28, %v1129_v58  ;;  %v1385_v53 = vmul.f32 %v4442_v23, %v1131_v39  ;;  %v6490_v28 = vld [vmem:[#allocation19_spill] sm:$0xff]  ;;  %v6491_v23 = vld [vmem:[#allocation20_spill] sm:$0xff]  ;;  %v6492_v58 = vld [vmem:[#allocation25_spill] sm:$0xff] }
 0x197   : > { %v1386_v20 = vmul.f32 %v4370_v51, %v1133_v32  ;;  %v1387_v24 = vmul.f32 %v4392_v1, %v1135_v37  ;;  %v1388_v59 = vmul.f32 %v4424_v2, %v1137_v44  ;;  %v1389_v54 = vmul.f32 %v4449_v33, %v1139_v60  ;;  %v6493_v37 = vld [vmem:[#allocation26_spill] sm:$0xff]  ;;  %v6494_v39 = vld [vmem:[#allocation31_spill] sm:$0xff]  ;;  %v1341_v32 = vpop.permute.xlu1 %1340  ;;  %v6496_v44 = vld [vmem:[#allocation37_spill] sm:$0xff] }
 0x198   : > { %v1173_v9 = vsel %vm1126_vm0, %v1170_v5, %v6489_v49  ;;  %v1399_v40 = vmul.f32 %v4541_v48, %v1159_v22  ;;  %v1390_v50 = vmul.f32 %v4454_v38, %v1141_v35  ;;  %v1391_v5 = vmul.f32 %v4469_v55, %v1143_v36  ;;  %v6495_v48 = vld [vmem:[#allocation32_spill] sm:$0xff]  ;;  %v6497_v35 = vld [vmem:[#allocation49_spill] sm:$0xff]  ;;  %v6498_v60 = vld [vmem:[#allocation50_spill] sm:$0xff] }
 0x199   : > { %v1392_v21 = vmul.f32 %v4471_v56, %v1145_v12  ;;  %v1393_v63 = vmul.f32 %v6490_v28, %v1147_v6  ;;  %v1394_v51 = vmul.f32 %v6491_v23, %v1149_v62  ;;  %v1395_v1 = vmul.f32 %v6492_v58, %v1151_v8  ;;  %v6501_v28 = vld [vmem:[#allocation83_spill] sm:$0xff]  ;;  %v6502_v23 = vld [vmem:[#allocation84_spill] sm:$0xff] }
 0x19a   : > { %v1396_v2 = vmul.f32 %v6493_v37, %v1153_v10  ;;  %v1397_v33 = vmul.f32 %v6494_v39, %v1155_v4  ;;  %v1398_v22 = vmul.f32 %v6495_v48, %v1157_v14  ;;  %v1400_v38 = vmul.f32 %v6496_v44, %v1161_v13  ;;  %v6514_v39 = vld [vmem:[#allocation90_spill] sm:$0xff] }
 0x19b   : > { %v1401_v55 = vmul.f32 %v6497_v35, %v1163_v26  ;;  %v1402_v56 = vmul.f32 %v6498_v60, %v1165_v3  ;;  %v1403_v6 = vmul.f32 %v4812_v61, %v1167_v34  ;;  %v1404_v12 = vmul.f32 %v4838_v25, %v1169_v45  ;;  %v4968_v25 = vpop.permute.xlu0 %1929 }
 0x19c   : > { %v1405_v62 = vmul.f32 %v1336_v17, %v1171_v31  ;;  %v1406_v36 = vmul.f32 %v1341_v32, %v1173_v9  ;;  %v4945_v8 = vadd.f32 %v1383_v30, %v4737_v41  ;;  %v4948_v4 = vadd.f32 %v1384_v57, %v4741_v42  ;;  %6499 = vst [vmem:[#allocation19_spill] sm:$0xff] %v4968_v25 }
 0x19d   : > { %v4951_v14 = vadd.f32 %v1385_v53, %v4791_v27  ;;  %v4954_v10 = vadd.f32 %v1386_v20, %v4795_v7  ;;  %v4957_v13 = vadd.f32 %v1387_v24, %v4798_v18  ;;  %v4960_v61 = vadd.f32 %v1388_v59, %v4801_v46 }
 0x19e   : > { %v4963_v17 = vadd.f32 %v1389_v54, %v4804_v52  ;;  %v4966_v30 = vadd.f32 %v1399_v40, %v4836_v16  ;;  %v4971_v26 = vadd.f32 %v1390_v50, %v4807_v29  ;;  %v4974_v3 = vadd.f32 %v1391_v5, %v4810_v19  ;;  %v6500_v50 = vld [vmem:[#allocation82_spill] sm:$0xff] }
 0x19f   : > { %v4977_v34 = vadd.f32 %v1392_v21, %v4815_v15  ;;  %v4980_v45 = vadd.f32 %v1393_v63, %v4818_v43  ;;  %v4983_v31 = vadd.f32 %v1394_v51, %v4821_v47  ;;  %v4986_v49 = vadd.f32 %v1395_v1, %v4824_v0 }
 0x1a0   : > { %v4989_v9 = vadd.f32 %v1396_v2, %v4827_v11  ;;  %v4992_v57 = vadd.f32 %v1397_v33, %v6500_v50  ;;  %v1480_v53 = vrot.slane %v4737_v41, 1  ;;  %v1481_v20 = vrot.slane %v4741_v42, 1  ;;  %v6504_v41 = vld [vmem:[#allocation85_spill] sm:$0xff]  ;;  %v5024_v2 = vpop.permute.xlu0 %1688 }
 0x1a1   : > { %v1483_v24 = vrot.slane %v4791_v27, 1  ;;  %v1485_v59 = vrot.slane %v4795_v7, 1  ;;  %v1487_v54 = vrot.slane %v4798_v18, 1  ;;  %v1489_v40 = vrot.slane %v4801_v46, 1  ;;  %v6506_v7 = vld [vmem:[#allocation86_spill] sm:$0xff]  ;;  %v6508_v18 = vld [vmem:[#allocation87_spill] sm:$0xff] }
 0x1a2   : > { %v1491_v5 = vrot.slane %v4804_v52, 1  ;;  %v1493_v21 = vrot.slane %v4807_v29, 1  ;;  %v5003_v63 = vadd.f32 %v1398_v22, %v6501_v28  ;;  %v5006_v51 = vadd.f32 %v1400_v38, %v6502_v23  ;;  %v6510_v52 = vld [vmem:[#allocation88_spill] sm:$0xff]  ;;  %v6512_v29 = vld [vmem:[#allocation89_spill] sm:$0xff] }
 0x1a3   : > { %v5009_v42 = vadd.f32 %v1401_v55, %v6504_v41  ;;  %v1495_v27 = vrot.slane %v4810_v19, 1  ;;  %v5013_v58 = vadd.f32 %v1402_v56, %v6506_v7  ;;  %v5016_v46 = vadd.f32 %v1403_v6, %v6508_v18 }
 0x1a4   : > { %6503 = vst [vmem:[#allocation20_spill] sm:$0xff] %v5006_v51  ;;  %v5019_v1 = vadd.f32 %v1404_v12, %v6510_v52  ;;  %v5022_v37 = vadd.f32 %v1405_v62, %v6512_v29  ;;  %v5027_v33 = vadd.f32 %v1406_v36, %v6514_v39  ;;  %v1482_v32 = vsel %vm1479_vm1, %v1480_v53, %v1481_v20  ;;  %v5040_v12 = vpop.permute.xlu1 %1934  ;;  %v6538_v51 = vld [vmem:[#allocation43_spill] sm:$0xff] }
 0x1a5   : > { %6505 = vst [vmem:[#allocation25_spill] sm:$0xff] %v5009_v42  ;;  %6507 = vst [vmem:[#allocation26_spill] sm:$0xff] %v5013_v58  ;;  %v1484_v19 = vsel %vm1479_vm1, %v1481_v20, %v1483_v24  ;;  %v1486_v48 = vsel %vm1479_vm1, %v1483_v24, %v1485_v59  ;;  %v1488_v22 = vsel %vm1479_vm1, %v1485_v59, %v1487_v54  ;;  %v1497_v60 = vrot.slane %v4815_v15, 1  ;;  %v6529_v42 = vld [vmem:[#allocation14_spill] sm:$0xff] }
 0x1a6   : > { %6509 = vst [vmem:[#allocation31_spill] sm:$0xff] %v5016_v46  ;;  %6511 = vst [vmem:[#allocation32_spill] sm:$0xff] %v5019_v1  ;;  %v1490_v44 = vsel %vm1479_vm1, %v1487_v54, %v1489_v40  ;;  %v1492_v38 = vsel %vm1479_vm1, %v1489_v40, %v1491_v5  ;;  %v1494_v35 = vsel %vm1479_vm1, %v1491_v5, %v1493_v21  ;;  %v1499_v56 = vrot.slane %v4818_v43, 1  ;;  %v5054_v40 = vpop.permute.xlu0 %1345  ;;  %v6525_v1 = vld [vmem:[#allocation10_spill] sm:$0xff]  ;;  %v6526_v46 = vld [vmem:[#allocation36_spill] sm:$0xff] }
 0x1a7   : > { %6513 = vst [vmem:[#allocation37_spill] sm:$0xff] %v5022_v37  ;;  %6515 = vst [vmem:[#allocation49_spill] sm:$0xff] %v5027_v33  ;;  %v1496_v55 = vsel %vm1479_vm1, %v1493_v21, %v1495_v27  ;;  %v1501_v6 = vrot.slane %v4821_v47, 1  ;;  %v1503_v62 = vrot.slane %v4824_v0, 1  ;;  %v1505_v36 = vrot.slane %v4827_v11, 1  ;;  %v6518_v21 = vld [vmem:[#allocation92_spill] sm:$0xff] }
 0x1a8   : > { %6516 = vst [vmem:[#allocation50_spill] sm:$0xff] %v5040_v12  ;;  %v1507_v53 = vrot.slane %v6500_v50, 1  ;;  %v1509_v20 = vrot.slane %v6501_v28, 1  ;;  %v1511_v24 = vrot.slane %v4836_v16, 1  ;;  %v1513_v59 = vrot.slane %v6502_v23, 1  ;;  %6517 = vst [vmem:[#allocation82_spill] sm:$0xff] %v5054_v40  ;;  %v1694_v40 = vpop.permute.xlu1 %1693 }
 0x1a9   : > { %v1515_v15 = vrot.slane %v6504_v41, 1  ;;  %v1517_v43 = vrot.slane %v6506_v7, 1  ;;  %v1519_v47 = vrot.slane %v6508_v18, 1  ;;  %v1521_v54 = vrot.slane %v6510_v52, 1  ;;  %v6524_v37 = vld [vmem:[#allocation8_spill] sm:$0xff] }
 0x1aa   : > { %v1523_v0 = vrot.slane %v6512_v29, 1  ;;  %v1525_v11 = vrot.slane %v6514_v39, 1  ;;  %v1498_v50 = vsel %vm1479_vm1, %v1495_v27, %v1497_v60  ;;  %v1500_v16 = vsel %vm1479_vm1, %v1497_v60, %v1499_v56  ;;  %v5082_v58 = vpop.permute.xlu0 %1939 }
 0x1ab   : > { %v1502_v5 = vsel %vm1479_vm1, %v1499_v56, %v1501_v6  ;;  %v1504_v23 = vsel %vm1479_vm1, %v1501_v6, %v1503_v62  ;;  %v1506_v41 = vsel %vm1479_vm1, %v1503_v62, %v1505_v36  ;;  %v1508_v7 = vsel %vm1479_vm1, %v1505_v36, %v1507_v53  ;;  %6527 = vst [vmem:[#allocation83_spill] sm:$0xff] %v5082_v58 }
 0x1ac   : > { %v1510_v18 = vsel %vm1479_vm1, %v1507_v53, %v1509_v20  ;;  %v1512_v52 = vsel %vm1479_vm1, %v1509_v20, %v1511_v24  ;;  %v1514_v29 = vsel %vm1479_vm1, %v1511_v24, %v1513_v59  ;;  %v1516_v27 = vsel %vm1479_vm1, %v1513_v59, %v1515_v15  ;;  %v6520_v20 = vld [vmem:[#allocation2_spill] sm:$0xff]  ;;  %v6521_v24 = vld [vmem:[#allocation3_spill] sm:$0xff]  ;;  %v6522_v59 = vld [vmem:[#allocation4_spill] sm:$0xff] }
 0x1ad   : > { %v1518_v60 = vsel %vm1479_vm1, %v1515_v15, %v1517_v43  ;;  %v1520_v56 = vsel %vm1479_vm1, %v1517_v43, %v1519_v47  ;;  %v1522_v28 = vsel %vm1479_vm1, %v1519_v47, %v1521_v54  ;;  %v1524_v6 = vsel %vm1479_vm1, %v1521_v54, %v1523_v0  ;;  %v6523_v15 = vld [vmem:[#allocation5_spill] sm:$0xff] }
 0x1ae   : > { %v1526_v62 = vsel %vm1479_vm1, %v1523_v0, %v1525_v11  ;;  %v6519_v36 = vrot.slane %v6518_v21, 1  ;;  %v1736_v39 = vmul.f32 %v6520_v20, %v1482_v32  ;;  %v1737_v12 = vmul.f32 %v6521_v24, %v1484_v19  ;;  %v6528_v0 = vld [vmem:[#allocation13_spill] sm:$0xff]  ;;  %v6531_v20 = vld [vmem:[#allocation18_spill] sm:$0xff]  ;;  %v6532_v24 = vld [vmem:[#allocation23_spill] sm:$0xff] }
 0x1af   : > { %v1738_v25 = vmul.f32 %v6522_v59, %v1486_v48  ;;  %v1739_v33 = vmul.f32 %v6523_v15, %v1488_v22  ;;  %v1740_v43 = vmul.f32 %v6524_v37, %v1490_v44  ;;  %v1741_v47 = vmul.f32 %v6525_v1, %v1492_v38  ;;  %v6533_v59 = vld [vmem:[#allocation24_spill] sm:$0xff]  ;;  %v6534_v15 = vld [vmem:[#allocation29_spill] sm:$0xff]  ;;  %v6535_v44 = vld [vmem:[#allocation30_spill] sm:$0xff] }
 0x1b0   : > { %v1528_v53 = vsel %vm1479_vm1, %v1525_v11, %v6519_v36  ;;  %v1751_v54 = vmul.f32 %v6526_v46, %v1512_v52  ;;  %v1742_v21 = vmul.f32 %v6528_v0, %v1494_v35  ;;  %v1743_v11 = vmul.f32 %v6529_v42, %v1496_v55  ;;  %v6530_v36 = vld [vmem:[#allocation17_spill] sm:$0xff]  ;;  %v6536_v38 = vld [vmem:[#allocation35_spill] sm:$0xff]  ;;  %v6539_v0 = vld [vmem:[#allocation80_spill] sm:$0xff]  ;;  %v5096_v55 = vpop.permute.xlu1 %1350 }
 0x1b1   : > { %v1744_v32 = vmul.f32 %v6530_v36, %v1498_v50  ;;  %v1745_v19 = vmul.f32 %v6531_v20, %v1500_v16  ;;  %v1746_v48 = vmul.f32 %v6532_v24, %v1502_v5  ;;  %v1747_v22 = vmul.f32 %v6533_v59, %v1504_v23  ;;  %v6537_v52 = vld [vmem:[#allocation41_spill] sm:$0xff]  ;;  %v6541_v36 = vld [vmem:[#allocation94_spill] sm:$0xff]  ;;  %v6542_v20 = vld [vmem:[#allocation95_spill] sm:$0xff] }
 0x1b2   : > { %v1748_v37 = vmul.f32 %v6534_v15, %v1506_v41  ;;  %v1749_v1 = vmul.f32 %v6535_v44, %v1508_v7  ;;  %v1750_v46 = vmul.f32 %v6536_v38, %v1510_v18  ;;  %v1752_v58 = vmul.f32 %v6537_v52, %v1514_v29  ;;  %v6540_v50 = vld [vmem:[#allocation81_spill] sm:$0xff]  ;;  %v6555_v59 = vld [vmem:[#allocation12_spill] sm:$0xff]  ;;  %v6556_v15 = vld [vmem:[#allocation15_spill] sm:$0xff] }
 0x1b3   : > { %v1753_v35 = vmul.f32 %v6538_v51, %v1516_v27  ;;  %v1754_v42 = vmul.f32 %v6539_v0, %v1518_v60  ;;  %v1755_v16 = vmul.f32 %v6540_v50, %v1520_v56  ;;  %v1756_v5 = vmul.f32 %v6541_v36, %v1522_v28  ;;  %v5109_v28 = vpop.permute.xlu0 %1698 }
 0x1b4   : > { %v1757_v23 = vmul.f32 %v6542_v20, %v1524_v6  ;;  %v1758_v41 = vmul.f32 %v5024_v2, %v1526_v62  ;;  %v1759_v24 = vmul.f32 %v1694_v40, %v1528_v53  ;;  %v1768_v7 = vadd.f32 %v1736_v39, %v4945_v8  ;;  %v6544_v39 = vld [vmem:[#allocation25_spill] sm:$0xff] }
 0x1b5   : > { %v1769_v18 = vadd.f32 %v1737_v12, %v4948_v4  ;;  %v1770_v29 = vadd.f32 %v1738_v25, %v4951_v14  ;;  %v1771_v51 = vadd.f32 %v1739_v33, %v4954_v10  ;;  %v1772_v27 = vadd.f32 %v1740_v43, %v4957_v13  ;;  %v1945_v33 = vpop.permute.xlu1 %1944  ;;  %v6551_v43 = vld [vmem:[#allocation7_spill] sm:$0xff] }
 0x1b6   : > { %v1783_v60 = vadd.f32 %v1751_v54, %v5003_v63  ;;  %v1784_v56 = vadd.f32 %v1752_v58, %v4966_v30  ;;  %v1773_v6 = vadd.f32 %v1741_v47, %v4960_v61  ;;  %v1774_v2 = vadd.f32 %v1742_v21, %v4963_v17  ;;  %v6543_v58 = vld [vmem:[#allocation20_spill] sm:$0xff]  ;;  %v6552_v47 = vld [vmem:[#allocation34_spill] sm:$0xff] }
 0x1b7   : > { %v1775_v8 = vadd.f32 %v1743_v11, %v4971_v26  ;;  %v1780_v4 = vadd.f32 %v1748_v37, %v4986_v49  ;;  %v1776_v14 = vadd.f32 %v1744_v32, %v4974_v3  ;;  %v1777_v10 = vadd.f32 %v1745_v19, %v4977_v34  ;;  %v6545_v26 = vld [vmem:[#allocation26_spill] sm:$0xff]  ;;  %v6546_v49 = vld [vmem:[#allocation31_spill] sm:$0xff]  ;;  %v6547_v3 = vld [vmem:[#allocation32_spill] sm:$0xff]  ;;  %v5137_v44 = vpop.permute.xlu0 %1355 }
 0x1b8   : > { %v1778_v13 = vadd.f32 %v1746_v48, %v4980_v45  ;;  %v1779_v25 = vadd.f32 %v1747_v22, %v4983_v31  ;;  %v1781_v30 = vadd.f32 %v1749_v1, %v4989_v9  ;;  %v1782_v63 = vadd.f32 %v1750_v46, %v4992_v57  ;;  %v6548_v34 = vld [vmem:[#allocation37_spill] sm:$0xff]  ;;  %v6550_v31 = vld [vmem:[#allocation6_spill] sm:$0xff]  ;;  %v6554_v19 = vld [vmem:[#allocation11_spill] sm:$0xff] }
 0x1b9   : > { %v1785_v61 = vadd.f32 %v1753_v35, %v6543_v58  ;;  %v1786_v17 = vadd.f32 %v1754_v42, %v6544_v39  ;;  %v1787_v12 = vadd.f32 %v1755_v16, %v6545_v26  ;;  %v1788_v40 = vadd.f32 %v1756_v5, %v6546_v49  ;;  %v6549_v45 = vld [vmem:[#allocation49_spill] sm:$0xff]  ;;  %v6557_v1 = vld [vmem:[#allocation16_spill] sm:$0xff]  ;;  %v6559_v35 = vld [vmem:[#allocation22_spill] sm:$0xff]  ;;  %v5151_v58 = vpop.permute.xlu1 %1703 }
 0x1ba   : > { %v1789_v21 = vadd.f32 %v1757_v23, %v6547_v3  ;;  %v1790_v62 = vadd.f32 %v1758_v41, %v6548_v34  ;;  %v5128_v53 = vadd.f32 %v1759_v24, %v6549_v45  ;;  %v1992_v9 = vmul.f32 %v6550_v31, %v1768_v7  ;;  %v6553_v11 = vld [vmem:[#allocation9_spill] sm:$0xff]  ;;  %v6560_v42 = vld [vmem:[#allocation60_spill] sm:$0xff]  ;;  %v6561_v16 = vld [vmem:[#allocation27_spill] sm:$0xff] }
 0x1bb   : > { %v1993_v57 = vmul.f32 %v6551_v43, %v1769_v18  ;;  %v2004_v54 = vmul.f32 %v6552_v47, %v1780_v4  ;;  %v1994_v32 = vmul.f32 %v6553_v11, %v1770_v29  ;;  %v1995_v48 = vmul.f32 %v6554_v19, %v1771_v51  ;;  %v6558_v46 = vld [vmem:[#allocation21_spill] sm:$0xff]  ;;  %v6562_v5 = vld [vmem:[#allocation28_spill] sm:$0xff]  ;;  %v6565_v18 = vld [vmem:[#allocation38_spill] sm:$0xff] }
 0x1bc   : > { %v1996_v22 = vmul.f32 %v6555_v59, %v1772_v27  ;;  %v1997_v37 = vmul.f32 %v6556_v15, %v1773_v6  ;;  %v1998_v38 = vmul.f32 %v6557_v1, %v1774_v2  ;;  %v1999_v52 = vmul.f32 %v6558_v46, %v1775_v8  ;;  %v6563_v23 = vld [vmem:[#allocation33_spill] sm:$0xff]  ;;  %v6566_v51 = vld [vmem:[#allocation39_spill] sm:$0xff]  ;;  %v6570_v39 = vld [vmem:[#allocation50_spill] sm:$0xff] }
 0x1bd   : > { %v2000_v0 = vmul.f32 %v6559_v35, %v1776_v14  ;;  %v2007_v50 = vmul.f32 %v6560_v42, %v1783_v60  ;;  %v2001_v36 = vmul.f32 %v6561_v16, %v1777_v10  ;;  %v2002_v20 = vmul.f32 %v6562_v5, %v1778_v13  ;;  %v6564_v24 = vld [vmem:[#allocation69_spill] sm:$0xff]  ;;  %v6567_v6 = vld [vmem:[#allocation91_spill] sm:$0xff] }
 0x1be   : > { %v2003_v41 = vmul.f32 %v6563_v23, %v1779_v25  ;;  %v2008_v7 = vmul.f32 %v6564_v24, %v1784_v56  ;;  %v2005_v29 = vmul.f32 %v6565_v18, %v1781_v30  ;;  %v2006_v27 = vmul.f32 %v6566_v51, %v1782_v63  ;;  %v6568_v4 = vld [vmem:[#allocation93_spill] sm:$0xff]  ;;  %v6569_v14 = vld [vmem:[#allocation19_spill] sm:$0xff]  ;;  %v6573_v56 = vld [vmem:[#allocation52_spill] sm:$0xff] }
 0x1bf   : > { %v2009_v2 = vmul.f32 %v6567_v6, %v1785_v61  ;;  %v2010_v8 = vmul.f32 %v6568_v4, %v1786_v17  ;;  %v2011_v60 = vmul.f32 %v6569_v14, %v1787_v12  ;;  %v2012_v10 = vmul.f32 %v6570_v39, %v1788_v40  ;;  %v6571_v26 = vld [vmem:[#allocation83_spill] sm:$0xff]  ;;  %v6574_v30 = vld [vmem:[#allocation64_spill] sm:$0xff]  ;;  %v6576_v61 = vld [vmem:[#allocation53_spill] sm:$0xff]  ;;  %v5183_v6 = vpop.permute.xlu1 %1360 }
 0x1c0   : > { %v2013_v13 = vmul.f32 %v6571_v26, %v1789_v21  ;;  %v2014_v49 = vmul.f32 %v1945_v33, %v1790_v62  ;;  %v6572_v25 = vld [vmem:[#allocation51_spill] sm:$0xff]  ;;  %v2025_v34 = vsub.f32 %v1993_v57, %v6573_v56  ;;  %v2036_v45 = vsub.f32 %v2004_v54, %v6574_v30  ;;  %v6577_v17 = vld [vmem:[#allocation54_spill] sm:$0xff]  ;;  %v6579_v12 = vld [vmem:[#allocation68_spill] sm:$0xff] }
 0x1c1   : > { %v2024_v3 = vsub.f32 %v1992_v9, %v6572_v25  ;;  %v6575_v63 = vld [vmem:[#allocation67_spill] sm:$0xff]  ;;  %v2026_v43 = vsub.f32 %v1994_v32, %v6576_v61  ;;  %v2027_v47 = vsub.f32 %v1995_v48, %v6577_v17  ;;  %v2040_v59 = vsub.f32 %v2008_v7, %v6579_v12  ;;  %v5167_v33 = vld [vmem:[%s6284_s6] ss:$0 sm:$0xff]  ;;  %v6580_v40 = vld [vmem:[#allocation56_spill] sm:$0xff]  ;;  %v5173_v32 = vpop.permute.xlu0 %1949 }
 0x1c2   : > { %v2039_v31 = vsub.f32 %v2007_v50, %v6575_v63  ;;  %v6578_v11 = vld [vmem:[#allocation55_spill] sm:$0xff]  ;;  %v2029_v21 = vsub.f32 %v1997_v37, %v6580_v40  ;;  %v6581_v62 = vld [vmem:[#allocation57_spill] sm:$0xff]  ;;  %v6582_v57 = vld [vmem:[#allocation58_spill] sm:$0xff]  ;;  %v2075_v56 = vmul.f32 %v5167_v33, %v2036_v45 }
 0x1c3   : > { %v2028_v19 = vsub.f32 %v1996_v22, %v6578_v11  ;;  %v2030_v9 = vsub.f32 %v1998_v38, %v6581_v62  ;;  %v2031_v54 = vsub.f32 %v1999_v52, %v6582_v57  ;;  %v6583_v15 = vld [vmem:[#allocation59_spill] sm:$0xff]  ;;  %v6584_v48 = vld [vmem:[#allocation61_spill] sm:$0xff]  ;;  %v6585_v22 = vld [vmem:[#allocation62_spill] sm:$0xff]  ;;  %v5215_v40 = vpop.permute.xlu1 %1954 }
 0x1c4   : > { %v2032_v1 = vsub.f32 %v2000_v0, %v6583_v15  ;;  %v2033_v46 = vsub.f32 %v2001_v36, %v6584_v48  ;;  %v2034_v35 = vsub.f32 %v2002_v20, %v6585_v22  ;;  %v6586_v42 = vld [vmem:[#allocation63_spill] sm:$0xff]  ;;  %v6587_v16 = vld [vmem:[#allocation65_spill] sm:$0xff]  ;;  %v6588_v23 = vld [vmem:[#allocation66_spill] sm:$0xff]  ;;  %v2078_v61 = vmul.f32 %v5167_v33, %v2039_v31  ;;  %6597 = vst [vmem:[#allocation86_spill] sm:$0xff] %v5215_v40 }
 0x1c5   : > { %v2035_v50 = vsub.f32 %v2003_v41, %v6586_v42  ;;  %v2037_v5 = vsub.f32 %v2005_v29, %v6587_v16  ;;  %v2038_v24 = vsub.f32 %v2006_v27, %v6588_v23  ;;  %v6589_v7 = vld [vmem:[#allocation70_spill] sm:$0xff]  ;;  %v6590_v18 = vld [vmem:[#allocation71_spill] sm:$0xff]  ;;  %v6591_v51 = vld [vmem:[#allocation72_spill] sm:$0xff]  ;;  %v2063_v41 = vmul.f32 %v5167_v33, %v2024_v3 }
 0x1c6   : > { %v2041_v37 = vsub.f32 %v2009_v2, %v6589_v7  ;;  %v2042_v38 = vsub.f32 %v2010_v8, %v6590_v18  ;;  %v2043_v52 = vsub.f32 %v2011_v60, %v6591_v51  ;;  %v6592_v0 = vld [vmem:[#allocation73_spill] sm:$0xff]  ;;  %v6593_v14 = vld [vmem:[#allocation74_spill] sm:$0xff]  ;;  %v6594_v39 = vld [vmem:[#allocation75_spill] sm:$0xff]  ;;  %v2064_v29 = vmul.f32 %v5167_v33, %v2025_v34  ;;  %v5201_v34 = vpop.permute.xlu0 %1708 }
 0x1c7   : > { %v2044_v4 = vsub.f32 %v2012_v10, %v6592_v0  ;;  %v2045_v36 = vsub.f32 %v2013_v13, %v6593_v14  ;;  %v2046_v20 = vsub.f32 %v2014_v49, %v6594_v39  ;;  %v2065_v27 = vmul.f32 %v5167_v33, %v2026_v43  ;;  %v3784_v11 = vld [vmem:[%s3949_s24] sm:$0xff] }
 0x1c8   : > { %v2066_v2 = vmul.f32 %v5167_v33, %v2027_v47  ;;  %v2067_v8 = vmul.f32 %v5167_v33, %v2028_v19  ;;  %v2068_v60 = vmul.f32 %v5167_v33, %v2029_v21  ;;  %v2069_v26 = vmul.f32 %v5167_v33, %v2030_v9  ;;  %v3785_v19 = vld [vmem:[%s3949_s24 + $0x8] sm:$0xff]  ;;  %v3786_v9 = vld [vmem:[%s3949_s24 + $0x10] sm:$0xff] }
 0x1c9   : > { %v2070_v10 = vmul.f32 %v5167_v33, %v2031_v54  ;;  %v2071_v13 = vmul.f32 %v5167_v33, %v2032_v1  ;;  %v2072_v49 = vmul.f32 %v5167_v33, %v2033_v46  ;;  %v2073_v25 = vmul.f32 %v5167_v33, %v2034_v35  ;;  %v3787_v54 = vld [vmem:[%s3949_s24 + $0x18] sm:$0xff]  ;;  %v3788_v1 = vld [vmem:[%s3949_s24 + $0x20] sm:$0xff]  ;;  %v3789_v46 = vld [vmem:[%s3949_s24 + $0x28] sm:$0xff] }
 0x1ca   : > { %v2074_v3 = vmul.f32 %v5167_v33, %v2035_v50  ;;  %v2076_v30 = vmul.f32 %v5167_v33, %v2037_v5  ;;  %v2077_v63 = vmul.f32 %v5167_v33, %v2038_v24  ;;  %v2079_v43 = vmul.f32 %v5167_v33, %v2040_v59  ;;  %v3790_v35 = vld [vmem:[%s3949_s24 + $0x30] sm:$0xff]  ;;  %v3791_v50 = vld [vmem:[%s3949_s24 + $0x38] sm:$0xff]  ;;  %v3792_v5 = vld [vmem:[%s3949_s24 + $0x40] sm:$0xff]  ;;  %v5256_v14 = vpop.permute.xlu0 %1365 }
 0x1cb   : > { %v2080_v17 = vmul.f32 %v5167_v33, %v2041_v37  ;;  %v2081_v47 = vmul.f32 %v5167_v33, %v2042_v38  ;;  %v5210_v45 = vadd.f32 %v3784_v11, %v2063_v41  ;;  %v5213_v12 = vadd.f32 %v3785_v19, %v2064_v29  ;;  %v3793_v24 = vld [vmem:[%s3949_s24 + $0x48] sm:$0xff]  ;;  %v3794_v37 = vld [vmem:[%s3949_s24 + $0x50] sm:$0xff]  ;;  %v3795_v38 = vld [vmem:[%s3949_s24 + $0x58] sm:$0xff] }
 0x1cc   : > { %v2082_v31 = vmul.f32 %v5167_v33, %v2043_v52  ;;  %v2083_v59 = vmul.f32 %v5167_v33, %v2044_v4  ;;  %v2084_v21 = vmul.f32 %v5167_v33, %v2045_v36  ;;  %v2085_v62 = vmul.f32 %v5167_v33, %v2046_v20  ;;  %v3796_v52 = vld [vmem:[%s3949_s24 + $0x60] sm:$0xff]  ;;  %v3797_v36 = vld [vmem:[%s3949_s24 + $0x68] sm:$0xff]  ;;  %v3798_v20 = vld [vmem:[%s3949_s24 + $0x70] sm:$0xff] }
 0x1cd   : > { %6595 = vst [vmem:[#allocation84_spill] sm:$0xff] %v5210_v45  ;;  %6596 = vst [vmem:[#allocation85_spill] sm:$0xff] %v5213_v12  ;;  %v5222_v57 = vadd.f32 %v3786_v9, %v2065_v27  ;;  %v5225_v15 = vadd.f32 %v3787_v54, %v2066_v2  ;;  %v5228_v48 = vadd.f32 %v3788_v1, %v2067_v8  ;;  %v3799_v29 = vld [vmem:[%s3949_s24 + $0x78] sm:$0xff]  ;;  %v3800_v2 = vld [vmem:[%s3949_s24 + $0x80] sm:$0xff] }
 0x1ce   : > { %v5231_v22 = vadd.f32 %v3789_v46, %v2068_v60  ;;  %v5234_v42 = vadd.f32 %v3790_v35, %v2069_v26  ;;  %v5237_v16 = vadd.f32 %v3791_v50, %v2070_v10  ;;  %v5240_v23 = vadd.f32 %v3792_v5, %v2071_v13  ;;  %v3801_v60 = vld [vmem:[%s3949_s24 + $0x88] sm:$0xff]  ;;  %v3802_v10 = vld [vmem:[%s3949_s24 + $0x90] sm:$0xff] }
 0x1cf   : > { %6598 = vst [vmem:[#allocation87_spill] sm:$0xff] %v5222_v57  ;;  %6599 = vst [vmem:[#allocation88_spill] sm:$0xff] %v5225_v15  ;;  %v5243_v7 = vadd.f32 %v3793_v24, %v2072_v49  ;;  %v5246_v18 = vadd.f32 %v3794_v37, %v2073_v25  ;;  %v5249_v51 = vadd.f32 %v3795_v38, %v2074_v3  ;;  %v3803_v49 = vld [vmem:[%s3949_s24 + $0x98] sm:$0xff]  ;;  %v5321_v24 = vpop.permute.xlu0 %1959 }
 0x1d0   : > { %6600 = vst [vmem:[#allocation89_spill] sm:$0xff] %v5228_v48  ;;  %6601 = vst [vmem:[#allocation2_spill] sm:$0xff] %v5231_v22  ;;  %v5252_v0 = vadd.f32 %v3796_v52, %v2075_v56  ;;  %v2127_v4 = vadd.f32 %v5213_v12, %v5210_v45  ;;  %v5259_v39 = vadd.f32 %v3797_v36, %v2076_v30  ;;  %v5280_v56 = vpop.permute.xlu1 %1713  ;;  %v3804_v30 = vld [vmem:[%s3949_s24 + $0xa0] sm:$0xff] }
 0x1d1   : > { %6602 = vst [vmem:[#allocation3_spill] sm:$0xff] %v5234_v42  ;;  %6603 = vst [vmem:[#allocation4_spill] sm:$0xff] %v5237_v16  ;;  %v5262_v41 = vadd.f32 %v3798_v20, %v2077_v63  ;;  %v5265_v27 = vadd.f32 %v3799_v29, %v2078_v61  ;;  %v5268_v8 = vadd.f32 %v3800_v2, %v2079_v43  ;;  %v3805_v61 = vld [vmem:[%s3949_s24 + $0xa8] sm:$0xff]  ;;  %v6619_v52 = vld [vmem:[#allocation42_spill] sm:$0xff] }
 0x1d2   : > { %6604 = vst [vmem:[#allocation5_spill] sm:$0xff] %v5240_v23  ;;  %6605 = vst [vmem:[#allocation8_spill] sm:$0xff] %v5243_v7  ;;  %v5271_v26 = vadd.f32 %v3801_v60, %v2080_v17  ;;  %v5274_v13 = vadd.f32 %v3802_v10, %v2081_v47  ;;  %v5277_v25 = vadd.f32 %v3803_v49, %v2082_v31  ;;  %v3806_v47 = vld [vmem:[%s3949_s24 + $0xb0] sm:$0xff]  ;;  %v6622_v49 = vld [vmem:[#allocation45_spill] sm:$0xff] }
 0x1d3   : > { %6606 = vst [vmem:[#allocation10_spill] sm:$0xff] %v5249_v51  ;;  %6607 = vst [vmem:[#allocation36_spill] sm:$0xff] %v5252_v0  ;;  %v2128_v3 = vadd.f32 %v2127_v4, %v5222_v57  ;;  %v5283_v63 = vadd.f32 %v3804_v30, %v2083_v59  ;;  %v5286_v11 = vadd.f32 %v3805_v61, %v2084_v21  ;;  %v6620_v4 = vld [vmem:[#allocation40_spill] sm:$0xff] }
 0x1d4   : > { %6608 = vst [vmem:[#allocation13_spill] sm:$0xff] %v5259_v39  ;;  %6609 = vst [vmem:[#allocation14_spill] sm:$0xff] %v5262_v41  ;;  %v2168_v43 = vmul.f32 %v5210_v45, %v5210_v45  ;;  %v2169_v17 = vmul.f32 %v5213_v12, %v5213_v12  ;;  %v5293_v19 = vadd.f32 %v3806_v47, %v2085_v62  ;;  %v6621_v20 = vld [vmem:[#allocation44_spill] sm:$0xff]  ;;  %v5342_v30 = vpop.permute.xlu1 %1370  ;;  %v6624_v47 = vld [vmem:[#allocation78_spill] sm:$0xff] }
 0x1d5   : > { %6610 = vst [vmem:[#allocation17_spill] sm:$0xff] %v5265_v27  ;;  %6611 = vst [vmem:[#allocation18_spill] sm:$0xff] %v5268_v8  ;;  %v2129_v31 = vadd.f32 %v2128_v3, %v5225_v15  ;;  %v2170_v9 = vmul.f32 %v5222_v57, %v5222_v57  ;;  %v2171_v59 = vmul.f32 %v5225_v15, %v5225_v15  ;;  %v6629_v12 = vld [vmem:[#allocation46_spill] sm:$0xff] }
 0x1d6   : > { %6612 = vst [vmem:[#allocation23_spill] sm:$0xff] %v5271_v26  ;;  %6613 = vst [vmem:[#allocation24_spill] sm:$0xff] %v5274_v13  ;;  %v2172_v21 = vmul.f32 %v5228_v48, %v5228_v48  ;;  %v2173_v54 = vmul.f32 %v5231_v22, %v5231_v22  ;;  %v2174_v1 = vmul.f32 %v5234_v42, %v5234_v42 }
 0x1d7   : > { %6614 = vst [vmem:[#allocation29_spill] sm:$0xff] %v5277_v25  ;;  %6615 = vst [vmem:[#allocation30_spill] sm:$0xff] %v5280_v56  ;;  %v2175_v62 = vmul.f32 %v5237_v16, %v5237_v16  ;;  %v2130_v46 = vadd.f32 %v2129_v31, %v5228_v48  ;;  %v5311_v35 = vmul.f32 %v5240_v23, %v5240_v23 }
 0x1d8   : > { %6616 = vst [vmem:[#allocation35_spill] sm:$0xff] %v5283_v63  ;;  %6617 = vst [vmem:[#allocation41_spill] sm:$0xff] %v5286_v11  ;;  %v5315_v50 = vmul.f32 %v5243_v7, %v5243_v7  ;;  %v5319_v5 = vmul.f32 %v5246_v18, %v5246_v18  ;;  %v5325_v37 = vmul.f32 %v5249_v51, %v5249_v51  ;;  %v5379_v11 = vpop.permute.xlu0 %1718 }
 0x1d9   : > { %6618 = vst [vmem:[#allocation43_spill] sm:$0xff] %v5293_v19  ;;  %v2200_v38 = vadd.f32 %v2169_v17, %v2168_v43  ;;  %v954_v36 = vmul.f32 %v6620_v4, %v6619_v52  ;;  %v955_v29 = vmul.f32 %v6620_v4, %v6621_v20  ;;  %v2131_v2 = vadd.f32 %v2130_v46, %v5231_v22  ;;  %v6623_v17 = vld [vmem:[#allocation76_spill] sm:$0xff]  ;;  %v6625_v46 = vld [vmem:[#allocation77_spill] sm:$0xff]  ;;  %v6626_v52 = vld [vmem:[#allocation79_spill] sm:$0xff] }
 0x1da   : > { %v5334_v60 = vmul.f32 %v5252_v0, %v5252_v0  ;;  %v5338_v10 = vmul.f32 %v5259_v39, %v5259_v39  ;;  %v956_v3 = vmul.f32 %v6620_v4, %v6622_v49  ;;  %v5346_v61 = vmul.f32 %v5262_v41, %v5262_v41  ;;  %v6627_v49 = vld [vmem:[#allocation48_spill] sm:$0xff] }
 0x1db   : > { %v2201_v43 = vadd.f32 %v2200_v38, %v2170_v9  ;;  %v1023_v31 = vadd.f32 %v6624_v47, %v6623_v17  ;;  %v1024_v20 = vadd.f32 %v6626_v52, %v6625_v46  ;;  %v2132_v22 = vadd.f32 %v2131_v2, %v5234_v42  ;;  %v1965_v46 = vpop.permute.xlu1 %1964 }
 0x1dc   : > { %v5355_v48 = vmul.f32 %v5265_v27, %v5265_v27  ;;  %v5358_v15 = vadd.f32 %v6627_v49, %v954_v36  ;;  %v5361_v57 = vadd.f32 %v6627_v49, %v955_v29  ;;  %v5365_v9 = vmul.f32 %v5268_v8, %v5268_v8  ;;  %v5418_v56 = vpop.permute.xlu0 %1375 }
 0x1dd   : > { %v2202_v38 = vadd.f32 %v2201_v43, %v2171_v59  ;;  %v957_v45 = vmul.f32 %v6620_v4, %v6629_v12  ;;  %v5370_v2 = vadd.f32 %v6627_v49, %v956_v3  ;;  %v2133_v42 = vadd.f32 %v2132_v22, %v5237_v16 }
 0x1de   : > { %6628 = vst [vmem:[#allocation80_spill] sm:$0xff] %v5365_v9  ;;  %v1025_v36 = vadd.f32 %v5358_v15, %v6624_v47  ;;  %v5376_v19 = vadd.f32 %v1023_v31, %v5358_v15  ;;  %v1056_v29 = vadd.f32 %v1024_v20, %v5361_v57  ;;  %v5383_v59 = vmul.f32 %v5271_v26, %v5271_v26  ;;  %v6631_v9 = vld [vmem:[#allocation47_spill] sm:$0xff] }
 0x1df   : > { %v2203_v12 = vadd.f32 %v2202_v38, %v2172_v21  ;;  %v2015_v3 = vmul.f32 %v5173_v32, %v5128_v53  ;;  %v1026_v22 = vadd.f32 %v5361_v57, %v6626_v52  ;;  %v2134_v43 = vadd.f32 %v2133_v42, %v5240_v23  ;;  %v6632_v21 = vld [vmem:[#allocation92_spill] sm:$0xff] }
 0x1e0   : > { %6630 = vst [vmem:[#allocation81_spill] sm:$0xff] %v5383_v59  ;;  %v5391_v31 = vadd.f32 %v1025_v36, %v5370_v2  ;;  %v1176_v20 = vrot.slane %v5376_v19, 7  ;;  %v1178_v16 = vrot.slane %v1056_v29, 7  ;;  %v958_v59 = vmul.f32 %v6620_v4, %v6631_v9 }
 0x1e1   : > { %v2204_v63 = vadd.f32 %v2203_v12, %v2173_v54  ;;  %v1174_v38 = vrot.slane %v6632_v21, 7  ;;  %v1531_v40 = vrot.slane %v1056_v29, 1  ;;  %v2135_v53 = vadd.f32 %v2134_v43, %v5243_v7 }
 0x1e2   : > { %v1179_v32 = vsel %vm1126_vm0, %v1176_v20, %v1178_v16  ;;  %v6372_v42 = vrot.slane %v5391_v31, 1  ;;  %v5401_v36 = vadd.f32 %v6627_v49, %v957_v45  ;;  %v5405_v23 = vmul.f32 %v5274_v13, %v5274_v13 }
 0x1e3   : > { %v2205_v54 = vadd.f32 %v2204_v63, %v2174_v1  ;;  %v2047_v12 = vsub.f32 %v2015_v3, %v6623_v17  ;;  %v1409_v4 = vmul.f32 %v5137_v44, %v1179_v32  ;;  %v2136_v9 = vadd.f32 %v2135_v53, %v5246_v18 }
 0x1e4   : > { %6633 = vst [vmem:[#allocation94_spill] sm:$0xff] %v5405_v23  ;;  %v1534_v43 = vsel %vm1479_vm1, %v1531_v40, %v6372_v42  ;;  %v1027_v7 = vadd.f32 %v5370_v2, %v5358_v15  ;;  %v5416_v45 = vadd.f32 %v1026_v22, %v5401_v36  ;;  %v1177_v1 = vsel %vm1126_vm0, %v1174_v38, %v1176_v20  ;;  %v5431_v22 = vpop.permute.xlu1 %1723  ;;  %v6634_v42 = vld [vmem:[#allocation90_spill] sm:$0xff] }
 0x1e5   : > { %v2206_v23 = vadd.f32 %v2205_v54, %v2175_v62  ;;  %v1441_v63 = vadd.f32 %v1409_v4, %v1056_v29  ;;  %v1529_v44 = vrot.slane %v5376_v19, 1  ;;  %v2137_v17 = vadd.f32 %v2136_v9, %v5249_v51 }
 0x1e6   : > { %v5425_v3 = vmul.f32 %v5277_v25, %v5277_v25  ;;  %v1762_v53 = vmul.f32 %v5201_v34, %v1534_v43  ;;  %v5429_v32 = vadd.f32 %v6627_v49, %v958_v59  ;;  %v2086_v29 = vmul.f32 %v5167_v33, %v2047_v12 }
 0x1e7   : > { %v2207_v62 = vadd.f32 %v2206_v23, %v5311_v35  ;;  %v1180_v20 = vrot.slane %v5391_v31, 7  ;;  %v1182_v54 = vrot.slane %v5416_v45, 7  ;;  %v2138_v4 = vadd.f32 %v2137_v17, %v5252_v0 }
 0x1e8   : > { %v1794_v9 = vadd.f32 %v1762_v53, %v1441_v63  ;;  %v6635_v51 = vrot.slane %v6634_v42, 7  ;;  %v1408_v49 = vmul.f32 %v5096_v55, %v1177_v1  ;;  %v5445_v23 = vadd.f32 %v5401_v36, %v5361_v57 }
 0x1e9   : > { %v2208_v59 = vadd.f32 %v2207_v62, %v5315_v50  ;;  %v5448_v35 = vadd.f32 %v1027_v7, %v5429_v32  ;;  %v1532_v12 = vsel %vm1479_vm1, %v1529_v44, %v1531_v40  ;;  %v2139_v43 = vadd.f32 %v2138_v4, %v5259_v39  ;;  %v5458_v50 = vpop.permute.xlu0 %1969  ;;  %v6636_v40 = vld [vmem:[#allocation82_spill] sm:$0xff] }
 0x1ea   : > { %v1175_v34 = vsel %vm1126_vm0, %v6635_v51, %v1174_v38  ;;  %v5454_v42 = vadd.f32 %v5429_v32, %v5370_v2  ;;  %v1440_v55 = vadd.f32 %v1408_v49, %v5376_v19  ;;  %v1761_v51 = vmul.f32 %v5151_v58, %v1532_v12  ;;  %v1381_v19 = vpop.permute.xlu1 %1380  ;;  %v3807_v49 = vld [vmem:[%s3949_s24 + $0xb8] sm:$0xff] }
 0x1eb   : > { %v2209_v38 = vadd.f32 %v2208_v59, %v5319_v5  ;;  %v1183_v7 = vsel %vm1126_vm0, %v1180_v20, %v1182_v54  ;;  %v1181_v63 = vsel %vm1126_vm0, %v1178_v16, %v1180_v20  ;;  %v1407_v1 = vmul.f32 %v6636_v40, %v1175_v34 }
 0x1ec   : > { %v2140_v17 = vadd.f32 %v2139_v43, %v5262_v41  ;;  %v5465_v53 = vmul.f32 %v1965_v46, %v1794_v9  ;;  %v1535_v62 = vrot.slane %v5416_v45, 1  ;;  %v1793_v4 = vadd.f32 %v1761_v51, %v1440_v55 }
 0x1ed   : > { %v2210_v58 = vadd.f32 %v2209_v38, %v5325_v37  ;;  %v5470_v12 = vadd.f32 %v3807_v49, %v2086_v29  ;;  %v6638_v5 = vrot.slane %v6632_v21, 1  ;;  %v1184_v16 = vrot.slane %v5448_v35, 7 }
 0x1ee   : > { %v2141_v20 = vadd.f32 %v2140_v17, %v5265_v27  ;;  %v1411_v46 = vmul.f32 %v5256_v14, %v1183_v7  ;;  %v1186_v9 = vrot.slane %v5445_v23, 7  ;;  %v1537_v34 = vrot.slane %v5448_v35, 1  ;;  %v1729_v7 = vpop.permute.xlu0 %1728 }
 0x1ef   : > { %6637 = vst [vmem:[#allocation95_spill] sm:$0xff] %v5470_v12  ;;  %v1530_v59 = vsel %vm1479_vm1, %v6638_v5, %v1529_v44  ;;  %v2211_v43 = vadd.f32 %v2210_v58, %v5334_v60  ;;  %v1188_v37 = vrot.slane %v5454_v42, 7  ;;  %v1410_v29 = vmul.f32 %v5183_v6, %v1181_v63 }
 0x1f0   : > { %v1439_v55 = vadd.f32 %v1407_v1, %v6632_v21  ;;  %v2142_v44 = vadd.f32 %v2141_v20, %v5268_v8  ;;  %v2050_v51 = vsub.f32 %v5465_v53, %v6626_v52  ;;  %v2017_v38 = vmul.f32 %v5321_v24, %v1793_v4  ;;  %v1975_v53 = vpop.permute.xlu1 %1974 }
 0x1f1   : > { %v1538_v14 = vsel %vm1479_vm1, %v1535_v62, %v1537_v34  ;;  %v2212_v40 = vadd.f32 %v2211_v43, %v5338_v10  ;;  %v1760_v60 = vmul.f32 %v5109_v28, %v1530_v59  ;;  %v1185_v6 = vsel %vm1126_vm0, %v1182_v54, %v1184_v16  ;;  %v6640_v59 = vld [vmem:[#allocation30_spill] sm:$0xff] }
 0x1f2   : > { %v1764_v17 = vmul.f32 %v5379_v11, %v1538_v14  ;;  %v2143_v21 = vadd.f32 %v2142_v44, %v5271_v26  ;;  %v1443_v63 = vadd.f32 %v1411_v46, %v5416_v45  ;;  %v6639_v1 = vrot.slane %v5391_v31, 1 }
 0x1f3   : > { %v1539_v24 = vrot.slane %v5445_v23, 1  ;;  %v2213_v4 = vadd.f32 %v2212_v40, %v5346_v61  ;;  %v1189_v10 = vsel %vm1126_vm0, %v1186_v9, %v1188_v37  ;;  %v1442_v28 = vadd.f32 %v1410_v29, %v5391_v31  ;;  %v6641_v37 = vld [vmem:[#allocation86_spill] sm:$0xff] }
 0x1f4   : > { %v1536_v52 = vsel %vm1479_vm1, %v6639_v1, %v1535_v62  ;;  %v1792_v11 = vadd.f32 %v1760_v60, %v1439_v55  ;;  %v2144_v54 = vadd.f32 %v2143_v21, %v5274_v13  ;;  %v2049_v58 = vsub.f32 %v2017_v38, %v6624_v47  ;;  %v1734_v55 = vpop.permute.xlu0 %1733  ;;  %v6642_v47 = vld [vmem:[#allocation80_spill] sm:$0xff]  ;;  %v6643_v38 = vld [vmem:[#allocation35_spill] sm:$0xff]  ;;  %v6646_v1 = vld [vmem:[#allocation41_spill] sm:$0xff] }
 0x1f5   : > { %v1540_v45 = vsel %vm1479_vm1, %v1537_v34, %v1539_v24  ;;  %v1412_v49 = vmul.f32 %v5342_v30, %v1185_v6  ;;  %v2214_v62 = vadd.f32 %v2213_v4, %v5355_v48  ;;  %v1796_v5 = vadd.f32 %v1764_v17, %v1443_v63 }
 0x1f6   : > { %v1763_v20 = vmul.f32 %v6640_v59, %v1536_v52  ;;  %v1187_v61 = vsel %vm1126_vm0, %v1184_v16, %v1186_v9  ;;  %v2145_v46 = vadd.f32 %v2144_v54, %v5277_v25  ;;  %v1414_v43 = vmul.f32 %v1381_v19, %v1189_v10  ;;  %v6644_v16 = vld [vmem:[#allocation77_spill] sm:$0xff]  ;;  %v6647_v10 = vld [vmem:[#allocation94_spill] sm:$0xff] }
 0x1f7   : > { %v1413_v31 = vmul.f32 %v5418_v56, %v1187_v61  ;;  %v2016_v29 = vmul.f32 %v6641_v37, %v1792_v11  ;;  %v2215_v44 = vadd.f32 %v2214_v62, %v6642_v47  ;;  %v1765_v34 = vmul.f32 %v5431_v22, %v1540_v45  ;;  %v1980_v56 = vpop.permute.xlu1 %1979  ;;  %v6645_v19 = vld [vmem:[#allocation81_spill] sm:$0xff] }
 0x1f8   : > { %v1795_v30 = vadd.f32 %v1763_v20, %v1442_v28  ;;  %v1444_v48 = vadd.f32 %v1412_v49, %v5448_v35  ;;  %v2146_v14 = vadd.f32 %v2145_v46, %v6643_v38  ;;  %v2088_v40 = vmul.f32 %v5167_v33, %v2049_v58  ;;  %v3808_v46 = vld [vmem:[%s3949_s24 + $0xc0] sm:$0xff] }
 0x1f9   : > { %v2048_v9 = vsub.f32 %v2016_v29, %v6644_v16  ;;  %v1541_v60 = vrot.slane %v5454_v42, 1  ;;  %v2216_v17 = vadd.f32 %v2215_v44, %v6645_v19  ;;  %v2020_v6 = vmul.f32 %v1975_v53, %v1796_v5  ;;  %v6648_v53 = vld [vmem:[#allocation43_spill] sm:$0xff] }
 0x1fa   : > { %v2019_v21 = vmul.f32 %v5458_v50, %v1795_v30  ;;  %v1797_v63 = vadd.f32 %v1765_v34, %v1444_v48  ;;  %v2147_v22 = vadd.f32 %v2146_v14, %v6646_v1  ;;  %v1445_v52 = vadd.f32 %v1413_v31, %v5445_v23  ;;  %v1985_v23 = vpop.permute.xlu0 %1984  ;;  %v3809_v29 = vld [vmem:[%s3949_s24 + $0xc8] sm:$0xff]  ;;  %v3810_v48 = vld [vmem:[%s3949_s24 + $0xd0] sm:$0xff] }
 0x1fb   : > { %v1542_v35 = vsel %vm1479_vm1, %v1539_v24, %v1541_v60  ;;  %v2087_v4 = vmul.f32 %v5167_v33, %v2048_v9  ;;  %v2217_v28 = vadd.f32 %v2216_v17, %v6647_v10  ;;  %v1446_v11 = vadd.f32 %v1414_v43, %v5454_v42  ;;  %v1990_v31 = vpop.permute.xlu1 %1989 }
 0x1fc   : > { %v1766_v54 = vmul.f32 %v1729_v7, %v1542_v35  ;;  %v1575_v58 = vsel %vm1479_vm1, %v1541_v60, 0.0  ;;  %v2148_v45 = vadd.f32 %v2147_v22, %v6648_v53  ;;  %v2051_v50 = vsub.f32 %v2019_v21, %v5358_v15  ;;  %v3812_v22 = vld [vmem:[%s3949_s24 + $0xe0] sm:$0xff] }
 0x1fd   : > { %v1767_v49 = vmul.f32 %v1734_v55, %v1575_v58  ;;  %v2021_v62 = vmul.f32 %v1980_v56, %v1797_v63  ;;  %v2188_v24 = vmul.f32 %v6643_v38, %v6643_v38  ;;  %v2218_v5 = vadd.f32 %v2217_v28, %v5425_v3  ;;  %v3811_v56 = vld [vmem:[%s3949_s24 + $0xd8] sm:$0xff] }
 0x1fe   : > { %v2089_v59 = vmul.f32 %v5167_v33, %v2050_v51  ;;  %v1798_v20 = vadd.f32 %v1766_v54, %v1445_v52  ;;  %v2149_v42 = vadd.f32 %v2148_v45, %v5470_v12  ;;  %v2052_v7 = vsub.f32 %v2020_v6, %v5361_v57 }
 0x1ff   : > { %v1799_v61 = vadd.f32 %v1767_v49, %v1446_v11  ;;  %v5537_v15 = vadd.f32 %v3808_v46, %v2087_v4  ;;  %v2189_v43 = vmul.f32 %v6646_v1, %v6646_v1  ;;  %v2219_v37 = vadd.f32 %v2218_v5, %v2188_v24  ;;  %v3813_v11 = vld [vmem:[%s3949_s24 + $0xe8] sm:$0xff]  ;;  %v3814_v49 = vld [vmem:[%s3949_s24 + $0xf0] sm:$0xff] }
 0x200   : > { %v5542_v3 = vadd.f32 %v3809_v29, %v2088_v40  ;;  %v2022_v51 = vmul.f32 %v1985_v23, %v1798_v20  ;;  %v2090_v55 = vmul.f32 %v5167_v33, %v2051_v50  ;;  %v2053_v57 = vsub.f32 %v2021_v62, %v5370_v2 }
 0x201   : > { %6649 = vst [vmem:[#allocation20_spill] sm:$0xff] %v5537_v15  ;;  %v2023_v47 = vmul.f32 %v1990_v31, %v1799_v61  ;;  %v2150_v44 = vadd.f32 %v2149_v42, %v5537_v15  ;;  %v2190_v34 = vmul.f32 %v6648_v53, %v6648_v53  ;;  %v2220_v30 = vadd.f32 %v2219_v37, %v2189_v43 }
 0x202   : > { %6650 = vst [vmem:[#allocation25_spill] sm:$0xff] %v5542_v3  ;;  %v5550_v14 = vadd.f32 %v3810_v48, %v2089_v59  ;;  %v2091_v16 = vmul.f32 %v5167_v33, %v2052_v7  ;;  %v2054_v40 = vsub.f32 %v2022_v51, %v5401_v36  ;;  %v2191_v2 = vmul.f32 %v5470_v12, %v5470_v12  ;;  %v3815_v59 = vld [vmem:[%s3949_s24 + $0xf8] sm:$0xff]  ;;  %v3705_v48 = vld [vmem:[%s6288_s10 + $0x10] sm:$0xff]  }
 0x203   : > { %v2151_v9 = vadd.f32 %v2150_v44, %v5542_v3  ;;  %v2221_v60 = vadd.f32 %v2220_v30, %v2190_v34  ;;  %v5558_v19 = vadd.f32 %v3811_v56, %v2090_v55  ;;  %v2055_v17 = vsub.f32 %v2023_v47, %v5429_v32  ;;  %v3700_v47 = vld [vmem:[%s6288_s10 + $0x38] sm:$0xff]   ;;  %v3702_v44 = vld [vmem:[%s6288_s10 + $0x28] sm:$0xff]   ;;  %v3703_v34 = vld [vmem:[%s6288_s10 + $0x20] sm:$0xff]  }
 0x204   : > { %6651 = vst [vmem:[#allocation26_spill] sm:$0xff] %v5550_v14  ;;  %v2092_v6 = vmul.f32 %v5167_v33, %v2053_v57  ;;  %v2192_v36 = vmul.f32 %v5537_v15, %v5537_v15  ;;  %v5566_v52 = vadd.f32 %v3812_v22, %v2091_v16  ;;  %v2093_v35 = vmul.f32 %v5167_v33, %v2054_v40  ;;  %v3701_v57 = vld [vmem:[%s6288_s10 + $0x30] sm:$0xff]   ;;  %v3704_v30 = vld [vmem:[%s6288_s10 + $0x18] sm:$0xff]  }
 0x205   : > { %6652 = vst [vmem:[#allocation31_spill] sm:$0xff] %v5558_v19  ;;  %v2152_v21 = vadd.f32 %v2151_v9, %v5550_v14  ;;  %v2222_v63 = vadd.f32 %v2221_v60, %v2191_v2  ;;  %v2193_v32 = vmul.f32 %v5542_v3, %v5542_v3  ;;  %v2094_v28 = vmul.f32 %v5167_v33, %v2055_v17 }
 0x206   : > { %6653 = vst [vmem:[#allocation32_spill] sm:$0xff] %v5566_v52  ;;  %v5574_v54 = vadd.f32 %v3813_v11, %v2092_v6  ;;  %v2194_v45 = vmul.f32 %v5550_v14, %v5550_v14  ;;  %v5580_v62 = vadd.f32 %v3814_v49, %v2093_v35  ;;  %v2195_v24 = vmul.f32 %v5558_v19, %v5558_v19  ;;  %v3706_v35 = vld [vmem:[%s6288_s10 + $0x8] sm:$0xff]   ;;  %v6658_v49 = vld [vmem:[#allocation85_spill] sm:$0xff] }
 0x207   : > { %v2153_v4 = vadd.f32 %v2152_v21, %v5558_v19  ;;  %v2223_v10 = vadd.f32 %v2222_v63, %v2192_v36  ;;  %v5586_v33 = vadd.f32 %v3815_v59, %v2094_v28  ;;  %v2196_v42 = vmul.f32 %v5566_v52, %v5566_v52  ;;  %3564 = vmatprep.subr.bf16.mxu0 %v3700_v47  ;;  %v6660_v59 = vld [vmem:[#allocation88_spill] sm:$0xff] }
 0x208   : > { %6654 = vst [vmem:[#allocation37_spill] sm:$0xff] %v5574_v54  ;;  %6655 = vst [vmem:[#allocation49_spill] sm:$0xff] %v5580_v62  ;;  %v2197_v46 = vmul.f32 %v5574_v54, %v5574_v54  ;;  %v2198_v43 = vmul.f32 %v5580_v62, %v5580_v62  ;;  %3565 = vmatpush3.bf16.msra.mxu0 %v3700_v47 }
 0x209   : > { %v2154_v58 = vadd.f32 %v2153_v4, %v5566_v52  ;;  %v2224_v50 = vadd.f32 %v2223_v10, %v2193_v32  ;;  %6656 = vst [vmem:[#allocation6_spill] sm:$0xff] %v5586_v33  ;;  %v2199_v29 = vmul.f32 %v5586_v33, %v5586_v33  ;;  %3566 = vmatprep.subr.bf16.mxu0 %v3701_v57  ;;  %v3707_v4 = vld [vmem:[%s6288_s10] sm:$0xff]  }
 0x20b   : > { %v2155_v23 = vadd.f32 %v2154_v58, %v5574_v54  ;;  %v2225_v5 = vadd.f32 %v2224_v50, %v2194_v45  ;;  %v6657_v45 = vld [vmem:[#allocation84_spill] sm:$0xff] }
 0x20c   : > { %3567 = vmatpush3.bf16.msra.mxu0 %v3701_v57 }
 0x20d   : > { %v2156_v20 = vadd.f32 %v2155_v23, %v5580_v62  ;;  %v2226_v7 = vadd.f32 %v2225_v5, %v2195_v24  ;;  %3568 = vmatprep.subr.bf16.mxu0 %v3702_v44  ;;  %v6659_v24 = vld [vmem:[#allocation87_spill] sm:$0xff] }
 0x20f   : > { %v2157_v61 = vadd.f32 %v2156_v20, %v5586_v33  ;;  %v2227_v31 = vadd.f32 %v2226_v7, %v2196_v42  ;;  %v6661_v42 = vld [vmem:[#allocation89_spill] sm:$0xff] }
 0x210   : > { %3569 = vmatpush3.bf16.msra.mxu0 %v3702_v44 }
 0x211   : > { %2158 = vadd.xlane.f32.xlu0 %v2157_v61  ;;  %v2228_v37 = vadd.f32 %v2227_v31, %v2197_v46  ;;  %3570 = vmatprep.subr.bf16.mxu0 %v3703_v34  ;;  %v5640_v46 = vld [vmem:[%s6285_s7] ss:$0 sm:$0xff] }
 0x212   : > { %v6662_v31 = vld [vmem:[#allocation2_spill] sm:$0xff] }
 0x213   : > { %v2229_v51 = vadd.f32 %v2228_v37, %v2198_v43  ;;  %v6663_v37 = vld [vmem:[#allocation3_spill] sm:$0xff] }
 0x214   : > { %3571 = vmatpush3.bf16.msra.mxu0 %v3703_v34 }
 0x215   : > { %v2230_v55 = vadd.f32 %v2229_v51, %v2199_v29  ;;  %3572 = vmatprep.subr.bf16.mxu0 %v3704_v30  ;;  %v6664_v51 = vld [vmem:[#allocation4_spill] sm:$0xff] }
 0x217   : > { %2231 = vadd.xlane.f32.xlu1 %v2230_v55 }
 0x218   : > { %3573 = vmatpush3.bf16.msra.mxu0 %v3704_v30  ;;  %v5655_v30 = vld [vmem:[%s6286_s8] ss:$0 sm:$0xff] }
 0x219   : > { %3574 = vmatprep.subr.bf16.mxu0 %v3705_v48 }
 0x21c   : > { %3575 = vmatpush3.bf16.msra.mxu0 %v3705_v48 }
 0x21d   : > { %3576 = vmatprep.subr.bf16.mxu0 %v3706_v35 }
 0x220   : > { %3577 = vmatpush3.bf16.msra.mxu0 %v3706_v35 }
 0x221   : > { %3578 = vmatprep.subr.bf16.mxu0 %v3707_v4 }
 0x224   : > { %3579 = vmatpush3.bf16.msra.mxu0 %v3707_v4 }
 0x29a   : > { %v2159_v16 = vpop.xlane.xlu0 %2158 }
 0x29b   : > { %v2160_v40 = vrot.slane %v2159_v16, 4 }
 0x29d   : > { %v2161_v9 = vadd.f32 %v2160_v40, %v2159_v16  ;;  %v6665_v40 = vld [vmem:[#allocation5_spill] sm:$0xff] }
 0x29f   : > { %v2162_v60 = vrot.slane %v2161_v9, 2 }
 0x2a0   : > { %v2232_v56 = vpop.xlane.xlu1 %2231 }
 0x2a1   : > { %v2163_v2 = vadd.f32 %v2162_v60, %v2161_v9  ;;  %v2233_v17 = vrot.slane %v2232_v56, 4  ;;  %v6666_v60 = vld [vmem:[#allocation8_spill] sm:$0xff] }
 0x2a3   : > { %v2164_v6 = vrot.slane %v2163_v2, 1  ;;  %v2234_v21 = vadd.f32 %v2233_v17, %v2232_v56 }
 0x2a5   : > { %v2165_v63 = vadd.f32 %v2164_v6, %v2163_v2  ;;  %v2235_v36 = vrot.slane %v2234_v21, 2 }
 0x2a7   : > { %3666 = vpush %v2165_v63  ;;  %v2236_v22 = vadd.f32 %v2235_v36, %v2234_v21 }
 0x2a9   : > { %v2237_v32 = vrot.slane %v2236_v22, 1 }
 0x2ab   : > { %v2238_v10 = vadd.f32 %v2237_v32, %v2236_v22 }
 0x2ad   : > { %3668 = vpush %v2238_v10 }
 0x2d8   : > { %s3667_s25 = spop %3666 }
 0x2d9   : > { %s2167_s26 = smul.f32 0.00024414063, %s3667_s25 }
 0x2db   : > { %s2241_s27 = smul.f32 %s2167_s26, %s2167_s26  ;;  %v5623_v58 = vstv %s2167_s26 }
 0x2dc   : > { %v2245_v50 = vsub.f32 %v6657_v45, %v5623_v58  ;;  %v2246_v23 = vsub.f32 %v6658_v49, %v5623_v58  ;;  %v2247_v5 = vsub.f32 %v6659_v24, %v5623_v58  ;;  %v2248_v20 = vsub.f32 %v6660_v59, %v5623_v58 }
 0x2dd   : > { %v2249_v7 = vsub.f32 %v6661_v42, %v5623_v58  ;;  %v2250_v43 = vsub.f32 %v6662_v31, %v5623_v58  ;;  %v2251_v29 = vsub.f32 %v6663_v37, %v5623_v58  ;;  %v2252_v55 = vsub.f32 %v6664_v51, %v5623_v58 }
 0x2de   : > { %s3669_s28 = spop %3668  ;;  %v2253_v9 = vsub.f32 %v6665_v40, %v5623_v58  ;;  %v2254_v2 = vsub.f32 %v6666_v60, %v5623_v58 }
 0x2df   : > { %s2240_s24 = smul.f32 0.00024414063, %s3669_s28 }
 0x2e1   : > { %s2242_s18 = ssub.f32 %s2240_s24, %s2241_s27  ;;  %s6142_s24 = scalar_lea.vmem %s6292_s14, %s3514_s21 }
 0x2e3   : > { %s2243_s19 = smax.f32 %s3841_s17, %s2242_s18 }
 0x2e4   : > { %s2277_s20 = sadd.f32 1e-05, %s2243_s19 }
 0x2e6   : > { %v2278_v28 = vstv %s2277_s20 }
 0x2e7   : > { %3718 = vrsqrt.f32 %v2278_v28 }
 0x2f4   : > { %v3719_v11 = vpop.eup %3718 }
 0x2f5   : > { %3670 = vpush %v3719_v11 }
 0x326   : > { %s3671_s22 = spop %3670 }
 0x327   : > { %v5635_v61 = vstv %s3671_s22 }
 0x328   : > { %v2282_v47 = vmul.f32 %v5635_v61, %v2245_v50  ;;  %v2283_v57 = vmul.f32 %v5635_v61, %v2246_v23  ;;  %v2284_v44 = vmul.f32 %v5635_v61, %v2247_v5  ;;  %v2285_v34 = vmul.f32 %v5635_v61, %v2248_v20 }
 0x329   : > { %v2286_v48 = vmul.f32 %v5635_v61, %v2249_v7  ;;  %v2287_v16 = vmul.f32 %v5635_v61, %v2250_v43  ;;  %v2288_v22 = vmul.f32 %v5635_v61, %v2251_v29  ;;  %v2289_v35 = vmul.f32 %v5635_v61, %v2252_v55 }
 0x32a   : > { %v2321_v56 = vmul.f32 %v5640_v46, %v2282_v47  ;;  %v2322_v17 = vmul.f32 %v5640_v46, %v2283_v57  ;;  %v2323_v6 = vmul.f32 %v5640_v46, %v2284_v44  ;;  %v2324_v21 = vmul.f32 %v5640_v46, %v2285_v34  ;;  %v6667_v34 = vld [vmem:[#allocation10_spill] sm:$0xff] }
 0x32b   : > { %v2325_v63 = vmul.f32 %v5640_v46, %v2286_v48  ;;  %v2326_v36 = vmul.f32 %v5640_v46, %v2287_v16  ;;  %v2290_v20 = vmul.f32 %v5635_v61, %v2253_v9  ;;  %v2291_v7 = vmul.f32 %v5635_v61, %v2254_v2 }
 0x32c   : > { %v2360_v4 = vadd.f32 %v5655_v30, %v2321_v56  ;;  %v2361_v32 = vadd.f32 %v5655_v30, %v2322_v17  ;;  %v2362_v10 = vadd.f32 %v5655_v30, %v2323_v6  ;;  %v2363_v28 = vadd.f32 %v5655_v30, %v2324_v21 }
 0x32d   : > { %v2364_v11 = vadd.f32 %v5655_v30, %v2325_v63  ;;  %v2365_v50 = vadd.f32 %v5655_v30, %v2326_v36  ;;  %v2327_v43 = vmul.f32 %v5640_v46, %v2288_v22  ;;  %v2328_v29 = vmul.f32 %v5640_v46, %v2289_v35 }
 0x32e   : > { %v2392_v23 = vpack.c.bf16 %v2361_v32, %v2360_v4  ;;  %v2393_v5 = vpack.c.bf16 %v2363_v28, %v2362_v10  ;;  %v2329_v47 = vmul.f32 %v5640_v46, %v2290_v20  ;;  %v2330_v57 = vmul.f32 %v5640_v46, %v2291_v7 }
 0x32f   : > { %v2394_v55 = vpack.c.bf16 %v2365_v50, %v2364_v11  ;;  %v2255_v44 = vsub.f32 %v5246_v18, %v5623_v58  ;;  %v2256_v48 = vsub.f32 %v6667_v34, %v5623_v58  ;;  %v2257_v16 = vsub.f32 %v5252_v0, %v5623_v58 }
 0x330   : > { %3580 = vmatprep.mubr.bf16.mxu0 %v2392_v23  ;;  %v2258_v9 = vsub.f32 %v5259_v39, %v5623_v58  ;;  %v2366_v2 = vadd.f32 %v5655_v30, %v2327_v43  ;;  %v2367_v56 = vadd.f32 %v5655_v30, %v2328_v29  ;;  %v2368_v21 = vadd.f32 %v5655_v30, %v2329_v47 }
 0x331   : > { %3581 = vmatmul.mubr.bf16.vlgmr.msra.gmra.mxu0 %v2393_v5  ;;  %v2292_v17 = vmul.f32 %v5635_v61, %v2255_v44  ;;  %v2293_v6 = vmul.f32 %v5635_v61, %v2256_v48  ;;  %v2369_v63 = vadd.f32 %v5655_v30, %v2330_v57  ;;  %v2294_v36 = vmul.f32 %v5635_v61, %v2257_v16 }
 0x332   : > { %3584 = vmatprep.mubr.bf16.mxu0 %v2394_v55  ;;  %v2295_v22 = vmul.f32 %v5635_v61, %v2258_v9  ;;  %v2395_v35 = vpack.c.bf16 %v2367_v56, %v2366_v2  ;;  %v2259_v50 = vsub.f32 %v5262_v41, %v5623_v58  ;;  %v2260_v23 = vsub.f32 %v5265_v27, %v5623_v58 }
 0x333   : > { %v2331_v4 = vmul.f32 %v5640_v46, %v2292_v17  ;;  %v2332_v32 = vmul.f32 %v5640_v46, %v2293_v6  ;;  %v2396_v10 = vpack.c.bf16 %v2369_v63, %v2368_v21  ;;  %v2333_v28 = vmul.f32 %v5640_v46, %v2294_v36 }
 0x334   : > { %v2334_v11 = vmul.f32 %v5640_v46, %v2295_v22  ;;  %v2261_v5 = vsub.f32 %v5268_v8, %v5623_v58  ;;  %v2262_v20 = vsub.f32 %v5271_v26, %v5623_v58  ;;  %v2296_v29 = vmul.f32 %v5635_v61, %v2259_v50 }
 0x335   : > { %v2370_v7 = vadd.f32 %v5655_v30, %v2331_v4  ;;  %v2371_v43 = vadd.f32 %v5655_v30, %v2332_v32  ;;  %v2297_v55 = vmul.f32 %v5635_v61, %v2260_v23  ;;  %v2372_v47 = vadd.f32 %v5655_v30, %v2333_v28 }
 0x336   : > { %v2373_v57 = vadd.f32 %v5655_v30, %v2334_v11  ;;  %v2298_v44 = vmul.f32 %v5635_v61, %v2261_v5  ;;  %v2299_v48 = vmul.f32 %v5635_v61, %v2262_v20  ;;  %v2335_v9 = vmul.f32 %v5640_v46, %v2296_v29 }
 0x337   : > { %v2397_v16 = vpack.c.bf16 %v2371_v43, %v2370_v7  ;;  %v2336_v2 = vmul.f32 %v5640_v46, %v2297_v55  ;;  %v2263_v21 = vsub.f32 %v5274_v13, %v5623_v58  ;;  %v2264_v63 = vsub.f32 %v5277_v25, %v5623_v58 }
 0x338   : > { %v2398_v56 = vpack.c.bf16 %v2373_v57, %v2372_v47  ;;  %v2337_v17 = vmul.f32 %v5640_v46, %v2298_v44  ;;  %v2338_v6 = vmul.f32 %v5640_v46, %v2299_v48  ;;  %v2265_v36 = vsub.f32 %v6643_v38, %v5623_v58 }
 0x339   : > { %3585 = vmatmul.mubr.bf16.gmra.mxu0 %v2395_v35  ;;  %v2266_v22 = vsub.f32 %v6646_v1, %v5623_v58  ;;  %v2374_v35 = vadd.f32 %v5655_v30, %v2335_v9  ;;  %v2375_v4 = vadd.f32 %v5655_v30, %v2336_v2  ;;  %v2300_v32 = vmul.f32 %v5635_v61, %v2263_v21 }
 0x33a   : > { %3588 = vmatprep.mubr.bf16.mxu0 %v2396_v10  ;;  %v2301_v10 = vmul.f32 %v5635_v61, %v2264_v63  ;;  %v2376_v28 = vadd.f32 %v5655_v30, %v2337_v17  ;;  %v2377_v11 = vadd.f32 %v5655_v30, %v2338_v6  ;;  %v2302_v50 = vmul.f32 %v5635_v61, %v2265_v36 }
 0x33b   : > { %v2303_v23 = vmul.f32 %v5635_v61, %v2266_v22  ;;  %v2399_v5 = vpack.c.bf16 %v2375_v4, %v2374_v35  ;;  %v2339_v20 = vmul.f32 %v5640_v46, %v2300_v32  ;;  %v2267_v47 = vsub.f32 %v6648_v53, %v5623_v58 }
 0x33c   : > { %v2340_v7 = vmul.f32 %v5640_v46, %v2301_v10  ;;  %v2400_v43 = vpack.c.bf16 %v2377_v11, %v2376_v28  ;;  %v2341_v29 = vmul.f32 %v5640_v46, %v2302_v50  ;;  %v2268_v57 = vsub.f32 %v5470_v12, %v5623_v58 }
 0x33d   : > { %v2342_v55 = vmul.f32 %v5640_v46, %v2303_v23  ;;  %v2269_v44 = vsub.f32 %v5537_v15, %v5623_v58  ;;  %v2270_v48 = vsub.f32 %v5542_v3, %v5623_v58  ;;  %v2304_v2 = vmul.f32 %v5635_v61, %v2267_v47 }
 0x33e   : > { %v2379_v9 = vadd.f32 %v5655_v30, %v2340_v7  ;;  %v2380_v17 = vadd.f32 %v5655_v30, %v2341_v29  ;;  %v2271_v28 = vsub.f32 %v5550_v14, %v5623_v58  ;;  %v2272_v11 = vsub.f32 %v5558_v19, %v5623_v58 }
 0x33f   : > { %v2381_v6 = vadd.f32 %v5655_v30, %v2342_v55  ;;  %v2306_v21 = vmul.f32 %v5635_v61, %v2269_v44  ;;  %v2307_v63 = vmul.f32 %v5635_v61, %v2270_v48  ;;  %v2343_v22 = vmul.f32 %v5640_v46, %v2304_v2 }
 0x340   : > { %v2273_v50 = vsub.f32 %v5566_v52, %v5623_v58  ;;  %v2274_v23 = vsub.f32 %v5574_v54, %v5623_v58  ;;  %v2308_v7 = vmul.f32 %v5635_v61, %v2271_v28 }
 0x341   : > { %3589 = vmatmul.mubr.bf16.gmra.mxu0 %v2397_v16  ;;  %v2378_v16 = vadd.f32 %v5655_v30, %v2339_v20  ;;  %v2402_v4 = vpack.c.bf16 %v2381_v6, %v2380_v17  ;;  %v2345_v32 = vmul.f32 %v5640_v46, %v2306_v21  ;;  %v2346_v10 = vmul.f32 %v5640_v46, %v2307_v63 }
 0x342   : > { %3592 = vmatprep.mubr.bf16.mxu0 %v2398_v56  ;;  %v2305_v56 = vmul.f32 %v5635_v61, %v2268_v57  ;;  %v2310_v47 = vmul.f32 %v5635_v61, %v2273_v50  ;;  %v2311_v57 = vmul.f32 %v5635_v61, %v2274_v23  ;;  %v2347_v48 = vmul.f32 %v5640_v46, %v2308_v7  ;;  %v3713_v7 = vld [vmem:[%s6290_s12 + $0x10] sm:$0xff]  }
 0x343   : > { %v2401_v36 = vpack.c.bf16 %v2379_v9, %v2378_v16  ;;  %v2384_v29 = vadd.f32 %v5655_v30, %v2345_v32  ;;  %v2385_v55 = vadd.f32 %v5655_v30, %v2346_v10  ;;  %v2275_v17 = vsub.f32 %v5580_v62, %v5623_v58 }
 0x344   : > { %v2344_v35 = vmul.f32 %v5640_v46, %v2305_v56  ;;  %v2349_v2 = vmul.f32 %v5640_v46, %v2310_v47  ;;  %v2350_v56 = vmul.f32 %v5640_v46, %v2311_v57  ;;  %v2276_v6 = vsub.f32 %v5586_v33, %v5623_v58 }
 0x345   : > { %v2404_v9 = vpack.c.bf16 %v2385_v55, %v2384_v29  ;;  %v2386_v21 = vadd.f32 %v5655_v30, %v2347_v48  ;;  %v3715_v29 = vld [vmem:[%s6290_s12] sm:$0xff]  }
 0x346   : > { %v2383_v20 = vadd.f32 %v5655_v30, %v2344_v35  ;;  %v2388_v35 = vadd.f32 %v5655_v30, %v2349_v2  ;;  %v5824_v55 = vld [vmem:[%s6289_s11] ss:$0 sm:$0xff] }
 0x349   : > { %3593 = vmatmul.mubr.bf16.gmra.mxu0 %v2399_v5  ;;  %v2382_v5 = vadd.f32 %v5655_v30, %v2343_v22  ;;  %v2313_v22 = vmul.f32 %v5635_v61, %v2276_v6 }
 0x34a   : > { %3596 = vmatprep.mubr.bf16.mxu0 %v2400_v43  ;;  %v2309_v43 = vmul.f32 %v5635_v61, %v2272_v11 }
 0x34b   : > { %v2403_v44 = vpack.c.bf16 %v2383_v20, %v2382_v5  ;;  %v2352_v28 = vmul.f32 %v5640_v46, %v2313_v22  ;;  %v3709_v5 = vld [vmem:[%s6290_s12 + $0x30] sm:$0xff]   ;;  %v3712_v20 = vld [vmem:[%s6290_s12 + $0x18] sm:$0xff]  }
 0x34c   : > { %v2348_v16 = vmul.f32 %v5640_v46, %v2309_v43  ;;  %v3714_v43 = vld [vmem:[%s6290_s12 + $0x8] sm:$0xff]  }
 0x34d   : > { %v2391_v50 = vadd.f32 %v5655_v30, %v2352_v28 }
 0x34e   : > { %v2387_v63 = vadd.f32 %v5655_v30, %v2348_v16 }
 0x350   : > { %v2405_v32 = vpack.c.bf16 %v2387_v63, %v2386_v21 }
 0x351   : > { %3597 = vmatmul.mubr.bf16.gmra.mxu0 %v2401_v36  ;;  %v2312_v36 = vmul.f32 %v5635_v61, %v2275_v17  ;;  %v3708_v61 = vld [vmem:[%s6290_s12 + $0x38] sm:$0xff]  }
 0x352   : > { %3600 = vmatprep.mubr.bf16.mxu0 %v2402_v4  ;;  %v2389_v4 = vadd.f32 %v5655_v30, %v2350_v56  ;;  %3612 = vmatprep.subr.bf16.mxu1 %v3708_v61 }
 0x353   : > { %v2351_v10 = vmul.f32 %v5640_v46, %v2312_v36  ;;  %3613 = vmatpush3.bf16.msra.mxu1 %v3708_v61  ;;  %v3710_v46 = vld [vmem:[%s6290_s12 + $0x28] sm:$0xff]  }
 0x354   : > { %v2406_v11 = vpack.c.bf16 %v2389_v4, %v2388_v35  ;;  %3614 = vmatprep.subr.bf16.mxu1 %v3709_v5 }
 0x355   : > { %v2390_v58 = vadd.f32 %v5655_v30, %v2351_v10  ;;  %v3711_v30 = vld [vmem:[%s6290_s12 + $0x20] sm:$0xff]  }
 0x357   : > { %v2407_v23 = vpack.c.bf16 %v2391_v50, %v2390_v58  ;;  %3615 = vmatpush3.bf16.msra.mxu1 %v3709_v5 }
 0x358   : > { %3616 = vmatprep.subr.bf16.mxu1 %v3710_v46 }
 0x359   : > { %3601 = vmatmul.mubr.bf16.gmra.mxu0 %v2403_v44 }
 0x35a   : > { %3604 = vmatprep.mubr.bf16.mxu0 %v2404_v9 }
 0x35b   : > { %3617 = vmatpush3.bf16.msra.mxu1 %v3710_v46 }
 0x35c   : > { %3618 = vmatprep.subr.bf16.mxu1 %v3711_v30 }
 0x35f   : > { %3619 = vmatpush3.bf16.msra.mxu1 %v3711_v30 }
 0x360   : > { %3620 = vmatprep.subr.bf16.mxu1 %v3712_v20 }
 0x361   : > { %3605 = vmatmul.mubr.bf16.gmra.mxu0 %v2405_v32 }
 0x362   : > { %3608 = vmatprep.mubr.bf16.mxu0 %v2406_v11 }
 0x363   : > { %3621 = vmatpush3.bf16.msra.mxu1 %v3712_v20 }
 0x364   : > { %3622 = vmatprep.subr.bf16.mxu1 %v3713_v7 }
 0x367   : > { %3623 = vmatpush3.bf16.msra.mxu1 %v3713_v7 }
 0x368   : > { %3624 = vmatprep.subr.bf16.mxu1 %v3714_v43 }
 0x369   : > { %3609 = vmatmul.mubr.bf16.gmra.mxu0 %v2407_v23 }
 0x36b   : > { %3625 = vmatpush3.bf16.msra.mxu1 %v3714_v43 }
 0x36c   : > { %3626 = vmatprep.subr.bf16.mxu1 %v3715_v29 }
 0x36f   : > { %3627 = vmatpush3.bf16.msra.mxu1 %v3715_v29 }
 0x3f1   : > { %v3582_v47 = vpop.f32.mrf.mxu0 }
 0x3f2   : > { %v5827_v57 = vadd.f32 %v3582_v47, %v5824_v55 }
 0x3f3   : > { %v2513_v44 = vpop.f32.mrf.mxu0 }
 0x3f4   : > { %v2642_v48 = vmul.f32 %v5827_v57, %v5827_v57  ;;  %v5832_v16 = vadd.f32 %v5824_v55, %v2513_v44 }
 0x3f5   : > { %v3583_v9 = vpop.f32.mrf.mxu0 }
 0x3f6   : > { %v2640_v2 = vmul.f32 %v5832_v16, %v5832_v16  ;;  %v5837_v56 = vadd.f32 %v3583_v9, %v5824_v55  ;;  %v2674_v17 = vmul.f32 %v2642_v48, %v5827_v57 }
 0x3f7   : > { %v2516_v6 = vpop.f32.mrf.mxu0 }
 0x3f8   : > { %v2672_v21 = vmul.f32 %v2640_v2, %v5832_v16  ;;  %v2643_v63 = vmul.f32 %v5837_v56, %v5837_v56  ;;  %v5844_v36 = vadd.f32 %v5824_v55, %v2516_v6  ;;  %v2706_v10 = vmul.f32 0.044715, %v2674_v17 }
 0x3f9   : > { %v3586_v22 = vpop.f32.mrf.mxu0 }
 0x3fa   : > { %v2704_v35 = vmul.f32 0.044715, %v2672_v21  ;;  %v2675_v4 = vmul.f32 %v2643_v63, %v5837_v56  ;;  %v2641_v32 = vmul.f32 %v5844_v36, %v5844_v36  ;;  %v5850_v28 = vadd.f32 %v3586_v22, %v5824_v55 }
 0x3fb   : > { %v2529_v11 = vpop.f32.mrf.mxu0  ;;  %v2738_v7 = vadd.f32 %v2706_v10, %v5827_v57 }
 0x3fc   : > { %v2736_v58 = vadd.f32 %v2704_v35, %v5832_v16  ;;  %v2673_v50 = vmul.f32 %v2641_v32, %v5844_v36  ;;  %v2707_v23 = vmul.f32 0.044715, %v2675_v4  ;;  %v2646_v61 = vmul.f32 %v5850_v28, %v5850_v28 }
 0x3fd   : > { %v5857_v5 = vadd.f32 %v5824_v55, %v2529_v11  ;;  %v3587_v46 = vpop.f32.mrf.mxu0  ;;  %v2770_v32 = vmul.f32 0.7978846, %v2738_v7 }
 0x3fe   : > { %v2705_v30 = vmul.f32 0.044715, %v2673_v50  ;;  %v5860_v20 = vadd.f32 %v3587_v46, %v5824_v55  ;;  %v2678_v43 = vmul.f32 %v2646_v61, %v5850_v28  ;;  %v2768_v44 = vmul.f32 0.7978846, %v2736_v58 }
 0x3ff   : > { %v2644_v29 = vmul.f32 %v5857_v5, %v5857_v5  ;;  %v2532_v47 = vpop.f32.mrf.mxu0  ;;  %v2739_v17 = vadd.f32 %v2707_v23, %v5837_v56 }
 0x400   : > { %v2737_v48 = vadd.f32 %v2705_v30, %v5844_v36  ;;  %v2647_v9 = vmul.f32 %v5860_v20, %v5860_v20  ;;  %v5870_v2 = vadd.f32 %v5824_v55, %v2532_v47  ;;  %v2710_v6 = vmul.f32 0.044715, %v2678_v43 }
 0x401   : > { %v2676_v21 = vmul.f32 %v2644_v29, %v5857_v5  ;;  %v3590_v63 = vpop.f32.mrf.mxu0  ;;  %3720 = vtanh.f32 %v2768_v44  ;;  %v2771_v43 = vmul.f32 0.7978846, %v2739_v17 }
 0x402   : > { %v2679_v22 = vmul.f32 %v2647_v9, %v5860_v20  ;;  %v2645_v35 = vmul.f32 %v5870_v2, %v5870_v2  ;;  %v5878_v4 = vadd.f32 %v3590_v63, %v5824_v55  ;;  %v2742_v10 = vadd.f32 %v2710_v6, %v5850_v28 }
 0x403   : > { %v2708_v11 = vmul.f32 0.044715, %v2676_v21  ;;  %v2545_v58 = vpop.f32.mrf.mxu0  ;;  %v2769_v50 = vmul.f32 0.7978846, %v2737_v48 }
 0x404   : > { %v2711_v23 = vmul.f32 0.044715, %v2679_v22  ;;  %v2677_v61 = vmul.f32 %v2645_v35, %v5870_v2  ;;  %v2650_v46 = vmul.f32 %v5878_v4, %v5878_v4  ;;  %v5885_v30 = vadd.f32 %v5824_v55, %v2545_v58 }
 0x405   : > { %v2774_v29 = vmul.f32 0.7978846, %v2742_v10  ;;  %v2740_v47 = vadd.f32 %v2708_v11, %v5857_v5  ;;  %v3591_v44 = vpop.f32.mrf.mxu0  ;;  %3722 = vtanh.f32 %v2769_v50 }
 0x406   : > { %v2743_v7 = vadd.f32 %v2711_v23, %v5860_v20  ;;  %v2709_v9 = vmul.f32 0.044715, %v2677_v61  ;;  %v2682_v48 = vmul.f32 %v2650_v46, %v5878_v4  ;;  %v2648_v6 = vmul.f32 %v5885_v30, %v5885_v30 }
 0x407   : > { %3724 = vtanh.f32 %v2770_v32  ;;  %v2772_v21 = vmul.f32 0.7978846, %v2740_v47  ;;  %v5893_v63 = vadd.f32 %v3591_v44, %v5824_v55  ;;  %v2548_v22 = vpop.f32.mrf.mxu0 }
 0x408   : > { %v2775_v17 = vmul.f32 0.7978846, %v2743_v7  ;;  %v2741_v35 = vadd.f32 %v2709_v9, %v5870_v2  ;;  %v2714_v10 = vmul.f32 0.044715, %v2682_v48  ;;  %v2680_v11 = vmul.f32 %v2648_v6, %v5885_v30 }
 0x409   : > { %3726 = vtanh.f32 %v2771_v43  ;;  %v2651_v58 = vmul.f32 %v5893_v63, %v5893_v63  ;;  %v5900_v50 = vadd.f32 %v5824_v55, %v2548_v22  ;;  %v3594_v23 = vpop.f32.mrf.mxu0 }
 0x40a   : > { %3728 = vtanh.f32 %v2774_v29  ;;  %v2773_v32 = vmul.f32 0.7978846, %v2741_v35  ;;  %v2746_v61 = vadd.f32 %v2714_v10, %v5878_v4  ;;  %v2712_v46 = vmul.f32 0.044715, %v2680_v11 }
 0x40b   : > { %3730 = vtanh.f32 %v2772_v21  ;;  %v2683_v47 = vmul.f32 %v2651_v58, %v5893_v63  ;;  %v2649_v44 = vmul.f32 %v5900_v50, %v5900_v50  ;;  %v5907_v43 = vadd.f32 %v3594_v23, %v5824_v55  ;;  %v2561_v7 = vpop.f32.mrf.mxu0 }
 0x40c   : > { %3732 = vtanh.f32 %v2775_v17  ;;  %v2778_v9 = vmul.f32 0.7978846, %v2746_v61  ;;  %v2744_v48 = vadd.f32 %v2712_v46, %v5885_v30  ;;  %v5911_v29 = vadd.f32 %v5824_v55, %v2561_v7 }
 0x40d   : > { %3734 = vtanh.f32 %v2773_v32  ;;  %v2715_v6 = vmul.f32 0.044715, %v2683_v47  ;;  %v2681_v21 = vmul.f32 %v2649_v44, %v5900_v50  ;;  %v2654_v22 = vmul.f32 %v5907_v43, %v5907_v43  ;;  %v3595_v35 = vpop.f32.mrf.mxu0 }
 0x40e   : > { %v3721_v10 = vpop.eup %3720  ;;  %3736 = vtanh.f32 %v2778_v9  ;;  %v2776_v11 = vmul.f32 0.7978846, %v2744_v48  ;;  %v2652_v17 = vmul.f32 %v5911_v29, %v5911_v29  ;;  %v5919_v58 = vadd.f32 %v3595_v35, %v5824_v55 }
 0x40f   : > { %v2747_v23 = vadd.f32 %v2715_v6, %v5893_v63  ;;  %v2713_v61 = vmul.f32 0.044715, %v2681_v21  ;;  %v2686_v32 = vmul.f32 %v2654_v22, %v5907_v43  ;;  %v2564_v46 = vpop.f32.mrf.mxu0  ;;  %v2832_v47 = vadd.f32 1.0, %v3721_v10 }
 0x410   : > { %3738 = vtanh.f32 %v2776_v11  ;;  %v2684_v44 = vmul.f32 %v2652_v17, %v5911_v29  ;;  %v2655_v7 = vmul.f32 %v5919_v58, %v5919_v58  ;;  %v5927_v9 = vadd.f32 %v5824_v55, %v2564_v46 }
 0x411   : > { %v2779_v48 = vmul.f32 0.7978846, %v2747_v23  ;;  %v2745_v35 = vadd.f32 %v2713_v61, %v5900_v50  ;;  %v2718_v54 = vmul.f32 0.044715, %v2686_v32  ;;  %v3598_v33 = vpop.f32.mrf.mxu0  ;;  %v2864_v6 = vmul.f32 0.5, %v2832_v47 }
 0x412   : > { %v3723_v21 = vpop.eup %3722  ;;  %v2716_v52 = vmul.f32 0.044715, %v2684_v44  ;;  %v2687_v22 = vmul.f32 %v2655_v7, %v5919_v58  ;;  %v2653_v10 = vmul.f32 %v5927_v9, %v5927_v9  ;;  %v5934_v11 = vadd.f32 %v3598_v33, %v5824_v55 }
 0x413   : > { %3740 = vtanh.f32 %v2779_v48  ;;  %v2777_v17 = vmul.f32 0.7978846, %v2745_v35  ;;  %v2750_v46 = vadd.f32 %v2718_v54, %v5907_v43  ;;  %v2577_v23 = vpop.f32.mrf.mxu0  ;;  %v2833_v62 = vadd.f32 1.0, %v3723_v21 }
 0x414   : > { %v3725_v61 = vpop.eup %3724  ;;  %v2748_v32 = vadd.f32 %v2716_v52, %v5911_v29  ;;  %v2719_v47 = vmul.f32 0.044715, %v2687_v22  ;;  %v2685_v44 = vmul.f32 %v2653_v10, %v5927_v9  ;;  %v2658_v7 = vmul.f32 %v5934_v11, %v5934_v11 }
 0x415   : > { %3742 = vtanh.f32 %v2777_v17  ;;  %v2782_v3 = vmul.f32 0.7978846, %v2750_v46  ;;  %v5942_v33 = vadd.f32 %v5824_v55, %v2577_v23  ;;  %v3599_v48 = vpop.f32.mrf.mxu0  ;;  %v2865_v35 = vmul.f32 0.5, %v2833_v62 }
 0x416   : > { %v3727_v19 = vpop.eup %3726  ;;  %v2780_v54 = vmul.f32 0.7978846, %v2748_v32  ;;  %v2751_v21 = vadd.f32 %v2719_v47, %v5919_v58  ;;  %v2717_v15 = vmul.f32 0.044715, %v2685_v44  ;;  %v2690_v52 = vmul.f32 %v2658_v7, %v5934_v11 }
 0x417   : > { %v5946_v22 = vpop.eup %3728  ;;  %3744 = vtanh.f32 %v2782_v3  ;;  %v2656_v10 = vmul.f32 %v5942_v33, %v5942_v33  ;;  %v5951_v17 = vadd.f32 %v3599_v48, %v5824_v55  ;;  %v2580_v46 = vpop.f32.mrf.mxu0  ;;  %v2834_v23 = vadd.f32 1.0, %v3725_v61 }
 0x418   : > { %v5953_v14 = vpop.eup %3730  ;;  %v2783_v62 = vmul.f32 0.7978846, %v2751_v21  ;;  %v2749_v32 = vadd.f32 %v2717_v15, %v5927_v9  ;;  %v2722_v47 = vmul.f32 0.044715, %v2690_v52  ;;  %v2896_v44 = vmul.f32 %v2864_v6, %v5832_v16 }
 0x419   : > { %v5957_v7 = vpop.eup %3732  ;;  %v2688_v3 = vmul.f32 %v2656_v10, %v5942_v33  ;;  %v2659_v1 = vmul.f32 %v5951_v17, %v5951_v17  ;;  %v5963_v48 = vadd.f32 %v5824_v55, %v2580_v46  ;;  %v3602_v12 = vpop.f32.mrf.mxu0  ;;  %v2897_v61 = vmul.f32 %v2865_v35, %v5844_v36 }
 0x41a   : > { %v3735_v38 = vpop.eup %3734  ;;  %3746 = vtanh.f32 %v2780_v54  ;;  %v2781_v21 = vmul.f32 0.7978846, %v2749_v32  ;;  %v2754_v15 = vadd.f32 %v2722_v47, %v5934_v11  ;;  %v5968_v16 = vadd.f32 %v3602_v12, %v5824_v55 }
 0x41b   : > { %v5970_v6 = vpop.eup %3736  ;;  %v2720_v52 = vmul.f32 0.044715, %v2688_v3  ;;  %v2691_v10 = vmul.f32 %v2659_v1, %v5951_v17  ;;  %v2657_v46 = vmul.f32 %v5963_v48, %v5963_v48  ;;  %v2928_v53 = vpack.c.bf16 %v2897_v61, %v2896_v44  ;;  %v2593_v26 = vpop.f32.mrf.mxu0 }
 0x41c   : > { %3748 = vtanh.f32 %v2783_v62  ;;  %v2662_v36 = vmul.f32 %v5968_v16, %v5968_v16  ;;  %v5978_v35 = vadd.f32 %v5824_v55, %v2593_v26  ;;  %v2835_v1 = vadd.f32 1.0, %v3727_v19 }
 0x41d   : > { %v5980_v54 = vpop.eup %3738  ;;  %v2752_v12 = vadd.f32 %v2720_v52, %v5942_v33  ;;  %v2723_v32 = vmul.f32 0.044715, %v2691_v10  ;;  %v2689_v47 = vmul.f32 %v2657_v46, %v5963_v48  ;;  %3628 = vmatprep.mubr.bf16.mxu1 %v2928_v53  ;;  %v3603_v3 = vpop.f32.mrf.mxu0  ;;  %3750 = vtanh.f32 %v2781_v21 }
 0x41e   : > { %v2694_v44 = vmul.f32 %v2662_v36, %v5968_v16  ;;  %v2660_v62 = vmul.f32 %v5978_v35, %v5978_v35  ;;  %v2866_v61 = vmul.f32 0.5, %v2834_v23  ;;  %v2786_v25 = vmul.f32 0.7978846, %v2754_v15 }
 0x41f   : > { %v2755_v26 = vadd.f32 %v2723_v32, %v5951_v17  ;;  %v2721_v8 = vmul.f32 0.044715, %v2689_v47  ;;  %v2867_v13 = vmul.f32 0.5, %v2835_v1  ;;  %v2596_v39 = vpop.f32.mrf.mxu0  ;;  %v2784_v10 = vmul.f32 0.7978846, %v2752_v12 }
 0x420   : > { %v5988_v52 = vpop.eup %3740  ;;  %v2726_v46 = vmul.f32 0.044715, %v2694_v44  ;;  %v2692_v53 = vmul.f32 %v2660_v62, %v5978_v35  ;;  %v5992_v19 = vadd.f32 %v3603_v3, %v5824_v55  ;;  %v2898_v23 = vmul.f32 %v2866_v61, %v5827_v57 }
 0x421   : > { %v2787_v21 = vmul.f32 0.7978846, %v2755_v26  ;;  %v2753_v36 = vadd.f32 %v2721_v8, %v5963_v48  ;;  %v2899_v15 = vmul.f32 %v2867_v13, %v5837_v56  ;;  %v3606_v32 = vpop.f32.mrf.mxu0  ;;  %v6003_v44 = vadd.f32 %v5824_v55, %v2596_v39 }
 0x422   : > { %v5997_v47 = vpop.eup %3742  ;;  %v2758_v1 = vadd.f32 %v2726_v46, %v5968_v16  ;;  %v2724_v27 = vmul.f32 0.044715, %v2692_v53  ;;  %v2663_v12 = vmul.f32 %v5992_v19, %v5992_v19  ;;  %3752 = vtanh.f32 %v2786_v25 }
 0x423   : > { %v2929_v3 = vpack.c.bf16 %v2899_v15, %v2898_v23  ;;  %v6006_v8 = vadd.f32 %v3606_v32, %v5824_v55  ;;  %v2609_v57 = vpop.f32.mrf.mxu0  ;;  %v2785_v13 = vmul.f32 0.7978846, %v2753_v36  ;;  %v2661_v26 = vmul.f32 %v6003_v44, %v6003_v44 }
 0x424   : > { %v6008_v62 = vpop.eup %3744  ;;  %v2756_v56 = vadd.f32 %v2724_v27, %v5978_v35  ;;  %v2695_v61 = vmul.f32 %v2663_v12, %v5992_v19  ;;  %3754 = vtanh.f32 %v2784_v10  ;;  %v2836_v25 = vadd.f32 1.0, %v5953_v14 }
 0x425   : > { %3629 = vmatmul.mubr.bf16.vlgmr.msra.gmra.mxu1 %v2929_v3  ;;  %v2666_v39 = vmul.f32 %v6006_v8, %v6006_v8  ;;  %v2837_v46 = vadd.f32 1.0, %v3735_v38  ;;  %v3607_v53 = vpop.f32.mrf.mxu0  ;;  %3756 = vtanh.f32 %v2787_v21  ;;  %v2790_v23 = vmul.f32 0.7978846, %v2758_v1 }
 0x426   : > { %v2727_v15 = vmul.f32 0.044715, %v2695_v61  ;;  %v2693_v36 = vmul.f32 %v2661_v26, %v6003_v44  ;;  %v2868_v12 = vmul.f32 0.5, %v2836_v25  ;;  %v6022_v10 = vadd.f32 %v5824_v55, %v2609_v57 }
 0x427   : > { %v6018_v27 = vpop.eup %3746  ;;  %v2698_v32 = vmul.f32 %v2666_v39, %v6006_v8  ;;  %v2869_v0 = vmul.f32 0.5, %v2837_v46  ;;  %v2612_v3 = vpop.f32.mrf.mxu0  ;;  %3758 = vtanh.f32 %v2785_v13  ;;  %v2788_v41 = vmul.f32 0.7978846, %v2756_v56 }
 0x428   : > { %v2725_v14 = vmul.f32 0.044715, %v2693_v36  ;;  %v2838_v38 = vadd.f32 1.0, %v5946_v22  ;;  %v2900_v61 = vmul.f32 %v2868_v12, %v5857_v5  ;;  %v2664_v39 = vmul.f32 %v6022_v10, %v6022_v10 }
 0x429   : > { %v6025_v21 = vpop.eup %3748  ;;  %v2730_v1 = vmul.f32 0.044715, %v2698_v32  ;;  %v2901_v26 = vmul.f32 %v2869_v0, %v5870_v2  ;;  %v3610_v25 = vpop.f32.mrf.mxu0  ;;  %3760 = vtanh.f32 %v2790_v23  ;;  %v2839_v13 = vadd.f32 1.0, %v5957_v7 }
 0x42a   : > { %v2757_v57 = vadd.f32 %v2725_v14, %v6003_v44  ;;  %v2870_v56 = vmul.f32 0.5, %v2838_v38  ;;  %v6033_v46 = vpop.eup %3750  ;;  %v2759_v22 = vadd.f32 %v2727_v15, %v5992_v19  ;;  %v2696_v32 = vmul.f32 %v2664_v39, %v6022_v10 }
 0x42b   : > { %v2930_v36 = vpack.c.bf16 %v2901_v26, %v2900_v61  ;;  %v6038_v5 = vadd.f32 %v3607_v53, %v5824_v55  ;;  %3762 = vtanh.f32 %v2788_v41  ;;  %v2762_v0 = vadd.f32 %v2730_v1, %v6006_v8  ;;  %v2625_v15 = vpop.f32.mrf.mxu0 }
 0x42c   : > { %v2871_v2 = vmul.f32 0.5, %v2839_v13  ;;  %v2789_v23 = vmul.f32 0.7978846, %v2757_v57  ;;  %v2728_v12 = vmul.f32 0.044715, %v2696_v32  ;;  %v6044_v14 = vadd.f32 %v5824_v55, %v2612_v3 }
 0x42d   : > { %3632 = vmatprep.mubr.bf16.mxu1 %v2930_v36  ;;  %v2667_v7 = vmul.f32 %v6038_v5, %v6038_v5  ;;  %v2902_v38 = vmul.f32 %v2870_v56, %v5850_v28  ;;  %v6049_v53 = vadd.f32 %v3610_v25, %v5824_v55  ;;  %v2840_v41 = vadd.f32 1.0, %v5980_v54 }
 0x42e   : > { %v2903_v61 = vmul.f32 %v2871_v2, %v5860_v20  ;;  %v2791_v1 = vmul.f32 0.7978846, %v2759_v22  ;;  %v2760_v26 = vadd.f32 %v2728_v12, %v6022_v10  ;;  %v2665_v57 = vmul.f32 %v6044_v14, %v6044_v14  ;;  %v3611_v22 = vpop.f32.mrf.mxu0 }
 0x42f   : > { %v2699_v39 = vmul.f32 %v2667_v7, %v6038_v5  ;;  %v6056_v3 = vpop.eup %3752  ;;  %v2794_v13 = vmul.f32 0.7978846, %v2762_v0  ;;  %v2841_v28 = vadd.f32 1.0, %v5997_v47  ;;  %v2872_v20 = vmul.f32 0.5, %v2840_v41 }
 0x430   : > { %v2931_v36 = vpack.c.bf16 %v2903_v61, %v2902_v38  ;;  %3764 = vtanh.f32 %v2789_v23  ;;  %v2697_v56 = vmul.f32 %v2665_v57, %v6044_v14  ;;  %v6061_v54 = vadd.f32 %v5824_v55, %v2625_v15 }
 0x431   : > { %v2731_v25 = vmul.f32 0.044715, %v2699_v39  ;;  %v3755_v32 = vpop.eup %3754  ;;  %v2792_v2 = vmul.f32 0.7978846, %v2760_v26  ;;  %v2670_v12 = vmul.f32 %v6049_v53, %v6049_v53  ;;  %v2873_v7 = vmul.f32 0.5, %v2841_v28  ;;  %v2628_v28 = vpop.f32.mrf.mxu0 }
 0x432   : > { %3633 = vmatmul.mubr.bf16.gmra.mxu1 %v2931_v36  ;;  %v2842_v0 = vadd.f32 1.0, %v5970_v6  ;;  %v6066_v38 = vpop.eup %3756  ;;  %3766 = vtanh.f32 %v2791_v1  ;;  %v2729_v23 = vmul.f32 0.044715, %v2697_v56  ;;  %v2668_v15 = vmul.f32 %v6061_v54, %v6061_v54 }
 0x433   : > { %v2763_v47 = vadd.f32 %v2731_v25, %v6038_v5  ;;  %v2904_v61 = vmul.f32 %v2872_v20, %v5885_v30  ;;  %v2905_v41 = vmul.f32 %v2873_v7, %v5900_v50  ;;  %v2843_v26 = vadd.f32 1.0, %v5988_v52 }
 0x434   : > { %v2874_v39 = vmul.f32 0.5, %v2842_v0  ;;  %v3759_v57 = vpop.eup %3758  ;;  %3768 = vtanh.f32 %v2794_v13  ;;  %v2761_v6 = vadd.f32 %v2729_v23, %v6044_v14  ;;  %v2700_v36 = vmul.f32 %v2668_v15, %v6061_v54 }
 0x435   : > { %v6077_v1 = vadd.f32 %v3611_v22, %v5824_v55  ;;  %3770 = vtanh.f32 %v2792_v2  ;;  %v2702_v25 = vmul.f32 %v2670_v12, %v6049_v53  ;;  %v2932_v56 = vpack.c.bf16 %v2905_v41, %v2904_v61 }
 0x436   : > { %v2875_v30 = vmul.f32 0.5, %v2843_v26  ;;  %v6080_v20 = vpop.eup %3760  ;;  %v2795_v50 = vmul.f32 0.7978846, %v2763_v47  ;;  %v2793_v52 = vmul.f32 0.7978846, %v2761_v6  ;;  %v2906_v0 = vmul.f32 %v2874_v39, %v5878_v4 }
 0x437   : > { %v2732_v7 = vmul.f32 0.044715, %v2700_v36  ;;  %v2671_v13 = vmul.f32 %v6077_v1, %v6077_v1  ;;  %3636 = vmatprep.mubr.bf16.mxu1 %v2932_v56  ;;  %v6087_v23 = vadd.f32 %v5824_v55, %v2628_v28  ;;  %v2844_v2 = vadd.f32 1.0, %v6018_v27 }
 0x438   : > { %v2907_v22 = vmul.f32 %v2875_v30, %v5893_v63  ;;  %v3763_v12 = vpop.eup %3762  ;;  %3772 = vtanh.f32 %v2793_v52  ;;  %v2845_v61 = vadd.f32 1.0, %v6033_v46  ;;  %v2734_v41 = vmul.f32 0.044715, %v2702_v25 }
 0x439   : > { %v2764_v15 = vadd.f32 %v2732_v7, %v6061_v54  ;;  %v2703_v47 = vmul.f32 %v2671_v13, %v6077_v1  ;;  %v2669_v4 = vmul.f32 %v6087_v23, %v6087_v23  ;;  %v2876_v39 = vmul.f32 0.5, %v2844_v2 }
 0x43a   : > { %v2933_v26 = vpack.c.bf16 %v2907_v22, %v2906_v0  ;;  %v2877_v55 = vmul.f32 0.5, %v2845_v61  ;;  %v2846_v36 = vadd.f32 1.0, %v6008_v62  ;;  %3774 = vtanh.f32 %v2795_v50 }
 0x43b   : > { %v2796_v63 = vmul.f32 0.7978846, %v2764_v15  ;;  %v2735_v6 = vmul.f32 0.044715, %v2703_v47  ;;  %v2701_v27 = vmul.f32 %v2669_v4, %v6087_v23  ;;  %v2847_v28 = vadd.f32 1.0, %v6025_v21 }
 0x43c   : > { %3637 = vmatmul.mubr.bf16.gmra.mxu1 %v2933_v26  ;;  %v2848_v56 = vadd.f32 1.0, %v3755_v32  ;;  %v2908_v25 = vmul.f32 %v2876_v39, %v5911_v29  ;;  %v2909_v30 = vmul.f32 %v2877_v55, %v5927_v9  ;;  %v2878_v52 = vmul.f32 0.5, %v2846_v36 }
 0x43d   : > { %v2767_v46 = vadd.f32 %v2735_v6, %v6077_v1  ;;  %v3765_v7 = vpop.eup %3764  ;;  %v2733_v13 = vmul.f32 0.044715, %v2701_v27  ;;  %v2879_v0 = vmul.f32 0.5, %v2847_v28  ;;  %v2849_v22 = vadd.f32 1.0, %v3759_v57 }
 0x43e   : > { %v2880_v2 = vmul.f32 0.5, %v2848_v56  ;;  %v2766_v62 = vadd.f32 %v2734_v41, %v6049_v53  ;;  %3776 = vtanh.f32 %v2796_v63  ;;  %v2934_v50 = vpack.c.bf16 %v2909_v30, %v2908_v25 }
 0x43f   : > { %v2910_v15 = vmul.f32 %v2878_v52, %v5907_v43  ;;  %v3767_v21 = vpop.eup %3766  ;;  %v2765_v32 = vadd.f32 %v2733_v13, %v6087_v23  ;;  %v2911_v47 = vmul.f32 %v2879_v0, %v5919_v58  ;;  %v2881_v29 = vmul.f32 0.5, %v2849_v22 }
 0x440   : > { %v2850_v9 = vadd.f32 1.0, %v6056_v3  ;;  %v2799_v61 = vmul.f32 0.7978846, %v2767_v46  ;;  %3640 = vmatprep.mubr.bf16.mxu1 %v2934_v50  ;;  %v2912_v26 = vmul.f32 %v2880_v2, %v5942_v33  ;;  %v2851_v57 = vadd.f32 1.0, %v6066_v38 }
 0x441   : > { %v2852_v4 = vadd.f32 1.0, %v3763_v12  ;;  %v3769_v41 = vpop.eup %3768  ;;  %v2797_v39 = vmul.f32 0.7978846, %v2765_v32  ;;  %v2935_v63 = vpack.c.bf16 %v2911_v47, %v2910_v15  ;;  %v2913_v43 = vmul.f32 %v2881_v29, %v5963_v48 }
 0x442   : > { %v2853_v6 = vadd.f32 1.0, %v3765_v7  ;;  %v3771_v55 = vpop.eup %3770  ;;  %v2798_v36 = vmul.f32 0.7978846, %v2766_v62  ;;  %v2883_v27 = vmul.f32 0.5, %v2851_v57  ;;  %v2882_v28 = vmul.f32 0.5, %v2850_v9 }
 0x443   : > { %v2884_v58 = vmul.f32 0.5, %v2852_v4  ;;  %3778 = vtanh.f32 %v2797_v39  ;;  %v2936_v3 = vpack.c.bf16 %v2913_v43, %v2912_v26  ;;  %v2855_v12 = vadd.f32 1.0, %v3767_v21 }
 0x444   : > { %3641 = vmatmul.mubr.bf16.gmra.mxu1 %v2935_v63  ;;  %v2885_v56 = vmul.f32 0.5, %v2853_v6  ;;  %3780 = vtanh.f32 %v2799_v61  ;;  %v2915_v33 = vmul.f32 %v2883_v27, %v5951_v17  ;;  %v2856_v25 = vadd.f32 1.0, %v3771_v55 }
 0x445   : > { %v3773_v46 = vpop.eup %3772  ;;  %3644 = vmatprep.mubr.bf16.mxu1 %v2936_v3  ;;  %v2916_v48 = vmul.f32 %v2884_v58, %v5978_v35  ;;  %3782 = vtanh.f32 %v2798_v36  ;;  %v2914_v52 = vmul.f32 %v2882_v28, %v5934_v11  ;;  %v2854_v7 = vadd.f32 1.0, %v6080_v20 }
 0x446   : > { %v2917_v38 = vmul.f32 %v2885_v56, %v6003_v44  ;;  %v2857_v30 = vadd.f32 1.0, %v3773_v46  ;;  %v2887_v62 = vmul.f32 0.5, %v2855_v12  ;;  %v2888_v50 = vmul.f32 0.5, %v2856_v25 }
 0x447   : > { %v3775_v13 = vpop.eup %3774  ;;  %v2937_v2 = vpack.c.bf16 %v2915_v33, %v2914_v52  ;;  %v2886_v17 = vmul.f32 0.5, %v2854_v7  ;;  %v2858_v47 = vadd.f32 1.0, %v3769_v41 }
 0x448   : > { %v2938_v0 = vpack.c.bf16 %v2917_v38, %v2916_v48  ;;  %v2889_v22 = vmul.f32 0.5, %v2857_v30  ;;  %v2919_v35 = vmul.f32 %v2887_v62, %v5992_v19  ;;  %v2859_v21 = vadd.f32 1.0, %v3775_v13 }
 0x449   : > { %v2920_v32 = vmul.f32 %v2888_v50, %v6022_v10  ;;  %v2918_v20 = vmul.f32 %v2886_v17, %v5968_v16  ;;  %v2890_v63 = vmul.f32 0.5, %v2858_v47 }
 0x44a   : > { %v2921_v44 = vmul.f32 %v2889_v22, %v6044_v14  ;;  %v2891_v26 = vmul.f32 0.5, %v2859_v21 }
 0x44b   : > { %v3777_v15 = vpop.eup %3776  ;;  %v2939_v61 = vpack.c.bf16 %v2919_v35, %v2918_v20  ;;  %v2922_v41 = vmul.f32 %v2890_v63, %v6006_v8 }
 0x44c   : > { %3645 = vmatmul.mubr.bf16.gmra.mxu1 %v2937_v2  ;;  %v2860_v11 = vadd.f32 1.0, %v3777_v15  ;;  %v2940_v9 = vpack.c.bf16 %v2921_v44, %v2920_v32  ;;  %v2923_v19 = vmul.f32 %v2891_v26, %v6038_v5 }
 0x44d   : > { %3648 = vmatprep.mubr.bf16.mxu1 %v2938_v0 }
 0x44e   : > { %v2892_v39 = vmul.f32 0.5, %v2860_v11  ;;  %v2941_v27 = vpack.c.bf16 %v2923_v19, %v2922_v41 }
 0x450   : > { %v3779_v29 = vpop.eup %3778  ;;  %v2924_v16 = vmul.f32 %v2892_v39, %v6061_v54  ;;  %v6127_v54 = vld [vmem:[%s6291_s13] ss:$0 sm:$0xff] }
 0x451   : > { %v2861_v57 = vadd.f32 1.0, %v3779_v29  ;;  %v3781_v4 = vpop.eup %3780 }
 0x452   : > { %v3783_v14 = vpop.eup %3782  ;;  %v2863_v6 = vadd.f32 1.0, %v3781_v4 }
 0x453   : > { %v2893_v43 = vmul.f32 0.5, %v2861_v57  ;;  %v2862_v55 = vadd.f32 1.0, %v3783_v14 }
 0x454   : > { %3649 = vmatmul.mubr.bf16.gmra.mxu1 %v2939_v61  ;;  %v2895_v58 = vmul.f32 0.5, %v2863_v6 }
 0x455   : > { %3652 = vmatprep.mubr.bf16.mxu1 %v2940_v9  ;;  %v2925_v10 = vmul.f32 %v2893_v43, %v6087_v23  ;;  %v2894_v3 = vmul.f32 0.5, %v2862_v55  ;;  %v6132_v23 = vld [vmem:[%s6287_s9] ss:$0 sm:$0xff] }
 0x456   : > { %v2927_v28 = vmul.f32 %v2895_v58, %v6077_v1 }
 0x457   : > { %v2942_v36 = vpack.c.bf16 %v2925_v10, %v2924_v16  ;;  %v2926_v56 = vmul.f32 %v2894_v3, %v6049_v53 }
 0x459   : > { %v2943_v5 = vpack.c.bf16 %v2927_v28, %v2926_v56  ;;  %v6669_v56 = vld [vmem:[#allocation36_spill] sm:$0xff] }
 0x45c   : > { %3653 = vmatmul.mubr.bf16.gmra.mxu1 %v2941_v27  ;;  %v6668_v27 = vld [vmem:[#allocation14_spill] sm:$0xff] }
 0x45d   : > { %3656 = vmatprep.mubr.bf16.mxu1 %v2942_v36 }
 0x464   : > { %3657 = vmatmul.mubr.bf16.gmra.mxu1 %v2943_v5 }
 0x4e5   : > { %v3630_v8 = vpop.f32.mrf.mxu1 }
 0x4e6   : > { %v3058_v46 = vadd.f32 %v3630_v8, %v6127_v54 }
 0x4e7   : > { %v3049_v33 = vpop.f32.mrf.mxu1 }
 0x4e8   : > { %v3185_v1 = vmul.f32 %v6132_v23, %v3058_v46  ;;  %v3050_v53 = vadd.f32 %v6127_v54, %v3049_v33  ;;  %v6670_v33 = vld [vmem:[#allocation17_spill] sm:$0xff] }
 0x4e9   : > { %v3631_v38 = vpop.f32.mrf.mxu1 }
 0x4ea   : > { %v3217_v12 = vadd.f32 %v3185_v1, %v6659_v24  ;;  %v3183_v48 = vmul.f32 %v6132_v23, %v3050_v53  ;;  %v3061_v25 = vadd.f32 %v3631_v38, %v6127_v54 }
 0x4eb   : > { %v3052_v30 = vpop.f32.mrf.mxu1 }
 0x4ec   : > { %3249 = vst [vmem:[%s6142_s24 + $0x10] sm:$0xff] %v3217_v12  ;;  %v3215_v52 = vadd.f32 %v3183_v48, %v6657_v45  ;;  %v3186_v7 = vmul.f32 %v6132_v23, %v3061_v25  ;;  %v3053_v13 = vadd.f32 %v6127_v54, %v3052_v30  ;;  %v6671_v48 = vld [vmem:[#allocation13_spill] sm:$0xff] }
 0x4ee   : > { %3247 = vst [vmem:[%s6142_s24] sm:$0xff] %v3215_v52  ;;  %v3218_v0 = vadd.f32 %v3186_v7, %v6660_v59  ;;  %v3184_v22 = vmul.f32 %v6132_v23, %v3053_v13  ;;  %v6672_v13 = vld [vmem:[#allocation24_spill] sm:$0xff] }
 0x4f0   : > { %3250 = vst [vmem:[%s6142_s24 + $0x18] sm:$0xff] %v3218_v0  ;;  %v3216_v24 = vadd.f32 %v3184_v22, %v6658_v49 }
 0x4f2   : > { %3248 = vst [vmem:[%s6142_s24 + $0x8] sm:$0xff] %v3216_v24  ;;  %v3634_v2 = vpop.f32.mrf.mxu1 }
 0x4f3   : > { %v3074_v62 = vadd.f32 %v3634_v2, %v6127_v54 }
 0x4f4   : > { %v3065_v50 = vpop.f32.mrf.mxu1 }
 0x4f5   : > { %v3189_v45 = vmul.f32 %v6132_v23, %v3074_v62  ;;  %v3066_v15 = vadd.f32 %v6127_v54, %v3065_v50  ;;  %v6673_v62 = vld [vmem:[#allocation18_spill] sm:$0xff] }
 0x4f6   : > { %v3635_v17 = vpop.f32.mrf.mxu1 }
 0x4f7   : > { %v3221_v44 = vadd.f32 %v3189_v45, %v6663_v37  ;;  %v3187_v59 = vmul.f32 %v6132_v23, %v3066_v15  ;;  %v3077_v35 = vadd.f32 %v3635_v17, %v6127_v54 }
 0x4f8   : > { %v3068_v49 = vpop.f32.mrf.mxu1 }
 0x4f9   : > { %3253 = vst [vmem:[%s6142_s24 + $0x30] sm:$0xff] %v3221_v44  ;;  %v3219_v21 = vadd.f32 %v3187_v59, %v6661_v42  ;;  %v3190_v32 = vmul.f32 %v6132_v23, %v3077_v35  ;;  %v3069_v11 = vadd.f32 %v6127_v54, %v3068_v49  ;;  %v6674_v44 = vld [vmem:[#allocation29_spill] sm:$0xff] }
 0x4fb   : > { %3251 = vst [vmem:[%s6142_s24 + $0x20] sm:$0xff] %v3219_v21  ;;  %v3222_v20 = vadd.f32 %v3190_v32, %v6664_v51  ;;  %v3188_v47 = vmul.f32 %v6132_v23, %v3069_v11  ;;  %v6675_v32 = vld [vmem:[#allocation23_spill] sm:$0xff] }
 0x4fc   : > { %v3638_v37 = vpop.f32.mrf.mxu1 }
 0x4fd   : > { %3254 = vst [vmem:[%s6142_s24 + $0x38] sm:$0xff] %v3222_v20  ;;  %v3220_v29 = vadd.f32 %v3188_v47, %v6662_v31  ;;  %v3090_v9 = vadd.f32 %v3638_v37, %v6127_v54 }
 0x4fe   : > { %v3081_v61 = vpop.f32.mrf.mxu1 }
 0x4ff   : > { %3252 = vst [vmem:[%s6142_s24 + $0x28] sm:$0xff] %v3220_v29  ;;  %v3193_v42 = vmul.f32 %v6132_v23, %v3090_v9  ;;  %v3082_v26 = vadd.f32 %v6127_v54, %v3081_v61  ;;  %v6676_v29 = vld [vmem:[#allocation43_spill] sm:$0xff] }
 0x500   : > { %v3639_v57 = vpop.f32.mrf.mxu1 }
 0x501   : > { %v3225_v4 = vadd.f32 %v3193_v42, %v5246_v18  ;;  %v3191_v51 = vmul.f32 %v6132_v23, %v3082_v26  ;;  %v3093_v39 = vadd.f32 %v3639_v57, %v6127_v54  ;;  %v6677_v57 = vld [vmem:[#allocation35_spill] sm:$0xff] }
 0x502   : > { %v3084_v63 = vpop.f32.mrf.mxu1 }
 0x503   : > { %3257 = vst [vmem:[%s6142_s24 + $0x50] sm:$0xff] %v3225_v4  ;;  %v3223_v31 = vadd.f32 %v3191_v51, %v6665_v40  ;;  %v3194_v43 = vmul.f32 %v6132_v23, %v3093_v39  ;;  %v3085_v14 = vadd.f32 %v6127_v54, %v3084_v63 }
 0x504   : > { %v3642_v19 = vpop.f32.mrf.mxu1 }
 0x505   : > { %3255 = vst [vmem:[%s6142_s24 + $0x40] sm:$0xff] %v3223_v31  ;;  %v3226_v10 = vadd.f32 %v3194_v43, %v6667_v34  ;;  %v3192_v18 = vmul.f32 %v6132_v23, %v3085_v14  ;;  %v3106_v6 = vadd.f32 %v3642_v19, %v6127_v54  ;;  %v6678_v31 = vld [vmem:[#allocation95_spill] sm:$0xff] }
 0x506   : > { %v3097_v16 = vpop.f32.mrf.mxu1 }
 0x507   : > { %3258 = vst [vmem:[%s6142_s24 + $0x58] sm:$0xff] %v3226_v10  ;;  %v3224_v41 = vadd.f32 %v3192_v18, %v6666_v60  ;;  %v3197_v40 = vmul.f32 %v6132_v23, %v3106_v6  ;;  %v3098_v55 = vadd.f32 %v6127_v54, %v3097_v16  ;;  %v6679_v18 = vld [vmem:[#allocation41_spill] sm:$0xff] }
 0x508   : > { %v3643_v36 = vpop.f32.mrf.mxu1 }
 0x509   : > { %3256 = vst [vmem:[%s6142_s24 + $0x48] sm:$0xff] %v3224_v41  ;;  %v3229_v58 = vadd.f32 %v3197_v40, %v6668_v27  ;;  %v3195_v34 = vmul.f32 %v6132_v23, %v3098_v55  ;;  %v3109_v3 = vadd.f32 %v3643_v36, %v6127_v54  ;;  %v6680_v55 = vld [vmem:[#allocation26_spill] sm:$0xff] }
 0x50a   : > { %v3100_v28 = vpop.f32.mrf.mxu1 }
 0x50b   : > { %3261 = vst [vmem:[%s6142_s24 + $0x70] sm:$0xff] %v3229_v58  ;;  %v3227_v5 = vadd.f32 %v3195_v34, %v6669_v56  ;;  %v3198_v60 = vmul.f32 %v6132_v23, %v3109_v3  ;;  %v3101_v8 = vadd.f32 %v6127_v54, %v3100_v28  ;;  %v6681_v3 = vld [vmem:[#allocation20_spill] sm:$0xff] }
 0x50c   : > { %v3646_v46 = vpop.f32.mrf.mxu1 }
 0x50d   : > { %3259 = vst [vmem:[%s6142_s24 + $0x60] sm:$0xff] %v3227_v5  ;;  %v3230_v1 = vadd.f32 %v3198_v60, %v6670_v33  ;;  %v3196_v53 = vmul.f32 %v6132_v23, %v3101_v8  ;;  %v3122_v38 = vadd.f32 %v3646_v46, %v6127_v54  ;;  %v6682_v8 = vld [vmem:[#allocation31_spill] sm:$0xff] }
 0x50e   : > { %v3113_v12 = vpop.f32.mrf.mxu1 }
 0x50f   : > { %3262 = vst [vmem:[%s6142_s24 + $0x78] sm:$0xff] %v3230_v1  ;;  %v3228_v25 = vadd.f32 %v3196_v53, %v6671_v48  ;;  %v3201_v30 = vmul.f32 %v6132_v23, %v3122_v38  ;;  %v3114_v52 = vadd.f32 %v6127_v54, %v3113_v12  ;;  %v6683_v38 = vld [vmem:[#allocation25_spill] sm:$0xff] }
 0x510   : > { %v3647_v7 = vpop.f32.mrf.mxu1 }
 0x511   : > { %3260 = vst [vmem:[%s6142_s24 + $0x68] sm:$0xff] %v3228_v25  ;;  %v3233_v0 = vadd.f32 %v3201_v30, %v6672_v13  ;;  %v3199_v22 = vmul.f32 %v6132_v23, %v3114_v52  ;;  %v3125_v24 = vadd.f32 %v3647_v7, %v6127_v54  ;;  %v6684_v52 = vld [vmem:[#allocation49_spill] sm:$0xff] }
 0x512   : > { %v3116_v2 = vpop.f32.mrf.mxu1 }
 0x513   : > { %3265 = vst [vmem:[%s6142_s24 + $0x90] sm:$0xff] %v3233_v0  ;;  %v3231_v50 = vadd.f32 %v3199_v22, %v6673_v62  ;;  %v3202_v45 = vmul.f32 %v6132_v23, %v3125_v24  ;;  %v3117_v15 = vadd.f32 %v6127_v54, %v3116_v2  ;;  %v6685_v24 = vld [vmem:[#allocation32_spill] sm:$0xff] }
 0x514   : > { %v3650_v17 = vpop.f32.mrf.mxu1 }
 0x515   : > { %3263 = vst [vmem:[%s6142_s24 + $0x80] sm:$0xff] %v3231_v50  ;;  %v3234_v59 = vadd.f32 %v3202_v45, %v6674_v44  ;;  %v3200_v35 = vmul.f32 %v6132_v23, %v3117_v15  ;;  %v3138_v49 = vadd.f32 %v3650_v17, %v6127_v54  ;;  %v6686_v45 = vld [vmem:[#allocation6_spill] sm:$0xff]  ;;  %v6687_v44 = vld [vmem:[#allocation37_spill] sm:$0xff] }
 0x516   : > { %v3129_v21 = vpop.f32.mrf.mxu1 }
 0x517   : > { %3266 = vst [vmem:[%s6142_s24 + $0x98] sm:$0xff] %v3234_v59  ;;  %v3232_v11 = vadd.f32 %v3200_v35, %v6675_v32  ;;  %v3205_v20 = vmul.f32 %v6132_v23, %v3138_v49  ;;  %v3130_v47 = vadd.f32 %v6127_v54, %v3129_v21 }
 0x518   : > { %v3651_v37 = vpop.f32.mrf.mxu1 }
 0x519   : > { %3264 = vst [vmem:[%s6142_s24 + $0x88] sm:$0xff] %v3232_v11  ;;  %v3237_v9 = vadd.f32 %v3205_v20, %v6676_v29  ;;  %v3203_v61 = vmul.f32 %v6132_v23, %v3130_v47  ;;  %v3141_v42 = vadd.f32 %v3651_v37, %v6127_v54 }
 0x51a   : > { %v3132_v26 = vpop.f32.mrf.mxu1 }
 0x51b   : > { %3269 = vst [vmem:[%s6142_s24 + $0xb0] sm:$0xff] %v3237_v9  ;;  %v3235_v4 = vadd.f32 %v3203_v61, %v6677_v57  ;;  %v3206_v51 = vmul.f32 %v6132_v23, %v3141_v42  ;;  %v3133_v39 = vadd.f32 %v6127_v54, %v3132_v26 }
 0x51c   : > { %v3654_v63 = vpop.f32.mrf.mxu1 }
 0x51d   : > { %3267 = vst [vmem:[%s6142_s24 + $0xa0] sm:$0xff] %v3235_v4  ;;  %v3238_v43 = vadd.f32 %v3206_v51, %v6678_v31  ;;  %v3204_v14 = vmul.f32 %v6132_v23, %v3133_v39  ;;  %v3154_v19 = vadd.f32 %v3654_v63, %v6127_v54 }
 0x51e   : > { %v3145_v10 = vpop.f32.mrf.mxu1 }
 0x51f   : > { %3270 = vst [vmem:[%s6142_s24 + $0xb8] sm:$0xff] %v3238_v43  ;;  %v3236_v6 = vadd.f32 %v3204_v14, %v6679_v18  ;;  %v3209_v16 = vmul.f32 %v6132_v23, %v3154_v19  ;;  %v3146_v41 = vadd.f32 %v6127_v54, %v3145_v10 }
 0x520   : > { %v3655_v40 = vpop.f32.mrf.mxu1 }
 0x521   : > { %3268 = vst [vmem:[%s6142_s24 + $0xa8] sm:$0xff] %v3236_v6  ;;  %v3241_v36 = vadd.f32 %v3209_v16, %v6680_v55  ;;  %v3207_v27 = vmul.f32 %v6132_v23, %v3146_v41  ;;  %v3157_v58 = vadd.f32 %v3655_v40, %v6127_v54 }
 0x522   : > { %v3148_v34 = vpop.f32.mrf.mxu1 }
 0x523   : > { %3273 = vst [vmem:[%s6142_s24 + $0xd0] sm:$0xff] %v3241_v36  ;;  %v3239_v28 = vadd.f32 %v3207_v27, %v6681_v3  ;;  %v3210_v56 = vmul.f32 %v6132_v23, %v3157_v58  ;;  %v3149_v5 = vadd.f32 %v6127_v54, %v3148_v34 }
 0x524   : > { %v3658_v60 = vpop.f32.mrf.mxu1 }
 0x525   : > { %3271 = vst [vmem:[%s6142_s24 + $0xc0] sm:$0xff] %v3239_v28  ;;  %v3242_v46 = vadd.f32 %v3210_v56, %v6682_v8  ;;  %v3208_v33 = vmul.f32 %v6132_v23, %v3149_v5  ;;  %v3170_v1 = vadd.f32 %v3658_v60, %v6127_v54 }
 0x526   : > { %v3161_v53 = vpop.f32.mrf.mxu1 }
 0x527   : > { %3274 = vst [vmem:[%s6142_s24 + $0xd8] sm:$0xff] %v3242_v46  ;;  %v3240_v12 = vadd.f32 %v3208_v33, %v6683_v38  ;;  %v3213_v48 = vmul.f32 %v6132_v23, %v3170_v1  ;;  %v3162_v25 = vadd.f32 %v6127_v54, %v3161_v53 }
 0x528   : > { %v3659_v30 = vpop.f32.mrf.mxu1 }
 0x529   : > { %3272 = vst [vmem:[%s6142_s24 + $0xc8] sm:$0xff] %v3240_v12  ;;  %v3245_v7 = vadd.f32 %v3213_v48, %v6684_v52  ;;  %v3211_v13 = vmul.f32 %v6132_v23, %v3162_v25  ;;  %v3173_v0 = vadd.f32 %v3659_v30, %v6127_v54 }
 0x52a   : > { %v3164_v22 = vpop.f32.mrf.mxu1 }
 0x52b   : > { %3277 = vst [vmem:[%s6142_s24 + $0xf0] sm:$0xff] %v3245_v7  ;;  %v3243_v2 = vadd.f32 %v3211_v13, %v6685_v24  ;;  %v3214_v62 = vmul.f32 %v6132_v23, %v3173_v0  ;;  %v3165_v50 = vadd.f32 %v6127_v54, %v3164_v22 }
 0x52d   : > { %3275 = vst [vmem:[%s6142_s24 + $0xe0] sm:$0xff] %v3243_v2  ;;  %v3246_v15 = vadd.f32 %v3214_v62, %v6686_v45  ;;  %v3212_v17 = vmul.f32 %v6132_v23, %v3165_v50 }
 0x52f   : > { %3278 = vst [vmem:[%s6142_s24 + $0xf8] sm:$0xff] %v3246_v15  ;;  %v3244_v59 = vadd.f32 %v3212_v17, %v6687_v44 }
 0x531   : > { %3276 = vst [vmem:[%s6142_s24 + $0xe8] sm:$0xff] %v3244_v59 }
 0x532 PF: > { %s24_s15 = sadd.s32 1, %s3838_s15   ;;  %s6688_s29 = smov %s3834_s30 }
 0x533   : > { %p21_p5 = scmp.ge.s32.totalorder %s24_s15, 4   ;;  %s6689_s30 = smov %s6691_s16 }
 0x535   :  { %23 = sbr.rel (!%p21_p5) target bundleno = 2 (0x2), region = 140 }

// kernel: poolformer_forward.11
= control target key start
LH: loop header
LB: loop body
LE: loop exit
PB: predicated region body
PF: predicated region fallthrough
CT: control target
= control target key end

     0   :  { %s648_s12 = smov 0   ;;  %s743_s0 = inlined_call_operand.vmem [shape: bf16[128,256], index: 0, kind: input, shape index: {}]   ;;  %s744_s1 = inlined_call_operand.vmem [shape: bf16[256,128], index: 1, kind: input, shape index: {}]   ;;  %s745_s2 = inlined_call_operand.vmem [shape: f32[1,128], index: 2, kind: input, shape index: {}]   ;;  %s746_s3 = inlined_call_operand.vmem [shape: f32[128,128], index: 3, kind: output, shape index: {}]  }
   0x1 LB: > { %s490_s13 = sadd.s32 4294967295, %s626_s12   ;;  %p494_p0 = scmp.ge.s32.totalorder %s626_s12, 1  ;;  %s626_s12 = sphi %s648_s12, %s13_s12  }
   0x2   : > { %p139_p1 = scmp.lt.s32.totalorder %s626_s12, 3 }
   0x4   : > { %p140_p2 = pnand %p494_p0, %p139_p1 }
   0x5   : > { %s495_s16 = sshll.u32 (!%p140_p2), %s490_s13, 3 }
   0x6   : > { %143 = sbr.rel (%p140_p2) target bundleno = 256 (0x100), region = 32  ;;  %p165_p3 = scmp.lt.s32.totalorder (!%p140_p2), %s495_s16, 15 }
   0xb   : > { %v592_v0 = vld [vmem:[%s744_s1 + $0x78] sm:$0xff]   ;;  %v594_v2 = vld [vmem:[%s744_s1 + $0x70] sm:$0xff]   ;;  %v596_v4 = vld [vmem:[%s744_s1 + $0x68] sm:$0xff]   ;;  %s748_s16 = smov (!%p165_p3, %s495_s16), 15 }
   0xc   : > { %v593_v1 = vld [vmem:[%s744_s1 + $0x38] sm:$0xff]   ;;  %528 = vmatprep.subr.bf16.mxu0 %v592_v0  ;;  %568 = vmatprep.subr.bf16.mxu1 %v592_v0  ;;  %v595_v3 = vld [vmem:[%s744_s1 + $0x30] sm:$0xff]   ;;  %v597_v5 = vld [vmem:[%s744_s1 + $0x28] sm:$0xff]   ;;  %s527_s4 = sshll.u32 %s748_s16, 3 }
   0xd   : > { %529 = vmatpush3.bf16.msra.mxu0 %v593_v1  ;;  %576 = vmatpush3.bf16.msra.mxu1 %v593_v1  ;;  %v598_v6 = vld [vmem:[%s744_s1 + $0x60] sm:$0xff]   ;;  %v600_v8 = vld [vmem:[%s744_s1 + $0x58] sm:$0xff]   ;;  %s691_s9 = scalar_lea.vmem %s743_s0, %s527_s4  ;;  %v602_v10 = vld [vmem:[%s744_s1 + $0x50] sm:$0xff]   ;;  %s730_s30 = scalar_lea.vmem %s746_s3, %s527_s4 }
   0xe   : > { %530 = vmatprep.subr.bf16.mxu0 %v594_v2  ;;  %569 = vmatprep.subr.bf16.mxu1 %v594_v2  ;;  %v599_v7 = vld [vmem:[%s744_s1 + $0x20] sm:$0xff]   ;;  %v601_v9 = vld [vmem:[%s744_s1 + $0x18] sm:$0xff]   ;;  %v603_v13 = vld [vmem:[%s744_s1 + $0x10] sm:$0xff]  }
   0xf   : > { %v610_v11 = vld [vmem:[%s691_s9 + $0x4] ss:$8 sps:$4 sm:$0xff]   ;;  %v608_v18 = vld [vmem:[%s691_s9] ss:$8 sps:$4 sm:$0xff]   ;;  %v614_v20 = vld [vmem:[%s691_s9 + $0x14] ss:$8 sps:$4 sm:$0xff]  }
  0x10   : > { %v613_v12 = vld [vmem:[%s691_s9 + $0x24] ss:$8 sps:$4 sm:$0xff]   ;;  %393 = vmatprep.mubr.bf16.mxu0 %v610_v11  ;;  %v611_v19 = vld [vmem:[%s691_s9 + $0x20] ss:$8 sps:$4 sm:$0xff]   ;;  %v616_v21 = vld [vmem:[%s691_s9 + $0x34] ss:$8 sps:$4 sm:$0xff]  }
  0x11   : > { %531 = vmatpush3.bf16.msra.mxu0 %v595_v3  ;;  %577 = vmatpush3.bf16.msra.mxu1 %v595_v3  ;;  %v604_v14 = vld [vmem:[%s744_s1 + $0x48] sm:$0xff]   ;;  %v606_v16 = vld [vmem:[%s744_s1 + $0x40] sm:$0xff]   ;;  %v618_v22 = vld [vmem:[%s691_s9 + $0x10] ss:$8 sps:$4 sm:$0xff]  }
  0x12   : > { %532 = vmatprep.subr.bf16.mxu0 %v596_v4  ;;  %570 = vmatprep.subr.bf16.mxu1 %v596_v4  ;;  %v605_v15 = vld [vmem:[%s744_s1 + $0x8] sm:$0xff]   ;;  %v607_v17 = vld [vmem:[%s744_s1] sm:$0xff]   ;;  %v619_v23 = vld [vmem:[%s691_s9 + $0x30] ss:$8 sps:$4 sm:$0xff]  }
  0x13   : > { %409 = vmatprep.mubr.bf16.mxu1 %v613_v12  ;;  %v500_v26 = vld [vmem:[%s745_s2] ss:$0 sm:$0xff] }
  0x15   : > { %533 = vmatpush3.bf16.msra.mxu0 %v597_v5  ;;  %578 = vmatpush3.bf16.msra.mxu1 %v597_v5 }
  0x16   : > { %534 = vmatprep.subr.bf16.mxu0 %v598_v6  ;;  %571 = vmatprep.subr.bf16.mxu1 %v598_v6 }
  0x19   : > { %535 = vmatpush3.bf16.msra.mxu0 %v599_v7  ;;  %579 = vmatpush3.bf16.msra.mxu1 %v599_v7 }
  0x1a   : > { %536 = vmatprep.subr.bf16.mxu0 %v600_v8  ;;  %572 = vmatprep.subr.bf16.mxu1 %v600_v8 }
  0x1d   : > { %537 = vmatpush3.bf16.msra.mxu0 %v601_v9  ;;  %580 = vmatpush3.bf16.msra.mxu1 %v601_v9 }
  0x1e   : > { %538 = vmatprep.subr.bf16.mxu0 %v602_v10  ;;  %573 = vmatprep.subr.bf16.mxu1 %v602_v10 }
  0x21   : > { %539 = vmatpush3.bf16.msra.mxu0 %v603_v13  ;;  %581 = vmatpush3.bf16.msra.mxu1 %v603_v13 }
  0x22   : > { %540 = vmatprep.subr.bf16.mxu0 %v604_v14  ;;  %574 = vmatprep.subr.bf16.mxu1 %v604_v14 }
  0x25   : > { %541 = vmatpush3.bf16.msra.mxu0 %v605_v15  ;;  %582 = vmatpush3.bf16.msra.mxu1 %v605_v15 }
  0x26   : > { %542 = vmatprep.subr.bf16.mxu0 %v606_v16  ;;  %575 = vmatprep.subr.bf16.mxu1 %v606_v16 }
  0x29   : > { %543 = vmatpush3.bf16.msra.mxu0 %v607_v17  ;;  %583 = vmatpush3.bf16.msra.mxu1 %v607_v17 }
  0x2c   : > { %394 = vmatmul.mubr.bf16.vlgmr.msra.gmra.mxu0 %v608_v18  ;;  %410 = vmatmul.mubr.bf16.vlgmr.msra.gmra.mxu1 %v611_v19 }
  0x2d   : > { %401 = vmatprep.mubr.bf16.mxu0 %v614_v20  ;;  %417 = vmatprep.mubr.bf16.mxu1 %v616_v21 }
  0x34   : > { %402 = vmatmul.mubr.bf16.gmra.mxu0 %v618_v22  ;;  %418 = vmatmul.mubr.bf16.gmra.mxu1 %v619_v23 }
  0xec   : > { %v544_v24 = vpop.f32.mrf.mxu0  ;;  %v556_v25 = vpop.f32.mrf.mxu1 }
  0xee   : > { %v545_v27 = vpop.f32.mrf.mxu0  ;;  %v557_v28 = vpop.f32.mrf.mxu1 }
  0xef   : > { %v546_v29 = vadd.f32 %v545_v27, %v544_v24  ;;  %v558_v30 = vadd.f32 %v557_v28, %v556_v25 }
  0xf0   : > { %v547_v31 = vpop.f32.mrf.mxu0  ;;  %v559_v32 = vpop.f32.mrf.mxu1 }
  0xf1   : > { %v396_v33 = vadd.f32 %v546_v29, %v500_v26  ;;  %v412_v34 = vadd.f32 %v558_v30, %v500_v26 }
  0xf2   : > { %v548_v35 = vpop.f32.mrf.mxu0  ;;  %v560_v36 = vpop.f32.mrf.mxu1 }
  0xf3   : > { %426 = vst [vmem:[%s730_s30] sm:$0xff] %v396_v33  ;;  %430 = vst [vmem:[%s730_s30 + $0x20] sm:$0xff] %v412_v34  ;;  %v549_v37 = vadd.f32 %v548_v35, %v547_v31  ;;  %v561_v38 = vadd.f32 %v560_v36, %v559_v32 }
  0xf4   : > { %v550_v39 = vpop.f32.mrf.mxu0  ;;  %v562_v40 = vpop.f32.mrf.mxu1 }
  0xf5   : > { %v399_v41 = vadd.f32 %v549_v37, %v500_v26  ;;  %v415_v42 = vadd.f32 %v561_v38, %v500_v26 }
  0xf6   : > { %v551_v43 = vpop.f32.mrf.mxu0  ;;  %v563_v44 = vpop.f32.mrf.mxu1 }
  0xf7   : > { %427 = vst [vmem:[%s730_s30 + $0x8] sm:$0xff] %v399_v41  ;;  %431 = vst [vmem:[%s730_s30 + $0x28] sm:$0xff] %v415_v42  ;;  %v552_v45 = vadd.f32 %v551_v43, %v550_v39  ;;  %v564_v46 = vadd.f32 %v563_v44, %v562_v40 }
  0xf8   : > { %v553_v47 = vpop.f32.mrf.mxu0  ;;  %v565_v48 = vpop.f32.mrf.mxu1 }
  0xf9   : > { %v404_v49 = vadd.f32 %v552_v45, %v500_v26  ;;  %v420_v50 = vadd.f32 %v564_v46, %v500_v26 }
  0xfa   : > { %v554_v51 = vpop.f32.mrf.mxu0  ;;  %v566_v52 = vpop.f32.mrf.mxu1 }
  0xfb   : > { %428 = vst [vmem:[%s730_s30 + $0x10] sm:$0xff] %v404_v49  ;;  %432 = vst [vmem:[%s730_s30 + $0x30] sm:$0xff] %v420_v50  ;;  %v555_v53 = vadd.f32 %v554_v51, %v553_v47  ;;  %v567_v54 = vadd.f32 %v566_v52, %v565_v48 }
  0xfd   : > { %v407_v55 = vadd.f32 %v555_v53, %v500_v26  ;;  %v423_v56 = vadd.f32 %v567_v54, %v500_v26 }
  0xff   : > { %429 = vst [vmem:[%s730_s30 + $0x18] sm:$0xff] %v407_v55  ;;  %433 = vst [vmem:[%s730_s30 + $0x38] sm:$0xff] %v423_v56 }
 0x100 PF: > { %s13_s12 = sadd.s32 1, %s626_s12  }
 0x101   : > { %p10_p4 = scmp.ge.s32.totalorder %s13_s12, 4  }
 0x103   :  { %12 = sbr.rel (!%p10_p4) target bundleno = 1 (0x1), region = 62 }

// kernel: poolformer_forward.12
= control target key start
LH: loop header
LB: loop body
LE: loop exit
PB: predicated region body
PF: predicated region fallthrough
CT: control target
= control target key end

     0   :  { %s2013_s29 = smov 0   ;;  %s2015_s30 = smov 0   ;;  %s2499_s0 = inlined_call_operand.vmem [shape: f32[2,64,128], index: 0, kind: input, shape index: {}]   ;;  %s2500_s1 = inlined_call_operand.vmem [shape: f32[64,1], index: 1, kind: input, shape index: {}]   ;;  %s2501_s2 = inlined_call_operand.vmem [shape: f32[64,1], index: 2, kind: input, shape index: {}]   ;;  %s2502_s3 = inlined_call_operand.vmem [shape: f32[64,1], index: 3, kind: input, shape index: {}]   ;;  %s2503_s4 = inlined_call_operand.vmem [shape: f32[1,1,128], index: 4, kind: input, shape index: {}, may-alias: {4,7}]   ;;  %s2504_s5 = inlined_call_operand.vmem [shape: f32[1,1,128], index: 5, kind: input, shape index: {}, may-alias: {5,8,11,13}]   ;;  %s2505_s6 = inlined_call_operand.vmem [shape: f32[1,1,128], index: 6, kind: input, shape index: {}, may-alias: {6,9}]   ;;  %s2506_s7 = inlined_call_operand.vmem [shape: f32[1,1,128], index: 7, kind: input, shape index: {}, may-alias: {4,7}]   ;;  %s2507_s8 = inlined_call_operand.vmem [shape: f32[1,1,128], index: 8, kind: input, shape index: {}, may-alias: {5,8,11,13}]   ;;  %s2508_s9 = inlined_call_operand.vmem [shape: f32[1,1,128], index: 9, kind: input, shape index: {}, may-alias: {6,9}]   ;;  %s2509_s10 = inlined_call_operand.vmem [shape: bf16[1,128,128], index: 10, kind: input, shape index: {}]   ;;  %s2510_s11 = inlined_call_operand.vmem [shape: f32[1,1,128], index: 11, kind: input, shape index: {}, may-alias: {5,8,11,13}]   ;;  %s2511_s12 = inlined_call_operand.vmem [shape: bf16[1,128,128], index: 12, kind: input, shape index: {}]   ;;  %s2512_s13 = inlined_call_operand.vmem [shape: f32[1,1,128], index: 13, kind: input, shape index: {}, may-alias: {5,8,11,13}]   ;;  %s2513_s14 = inlined_call_operand.vmem [shape: f32[2,64,128], index: 14, kind: output, shape index: {}]  }
   0x1   :  { %s2017_s15 = smov 0  }
   0x2 LB: > { %s36_s16 = sadd.s32 1, %s1930_s30  ;;  %p1731_p0 = scmp.ge.s32.totalorder %s1934_s15, 1  ;;  %s1934_s15 = sphi %s2017_s15, %s24_s15   ;;  %s1930_s30 = sphi %s2015_s30, %s2536_s30   ;;  %s1926_s29 = sphi %s2013_s29, %s2535_s29  }
   0x3   : > { %p38_p1 = scmp.ge.s32.totalorder %s36_s16, 2  ;;  %p508_p2 = scmp.lt.s32.totalorder %s1934_s15, 3 }
   0x5   : > { %s2538_s16 = smov (%p38_p1, %s36_s16), 0  ;;  %p509_p3 = pnand %p1731_p0, %p508_p2 }
   0x7   : > { %512 = sbr.rel (%p509_p3) target bundleno = 1090 (0x442), region = 76 }
   0xc   : > { %p588_p4 = scmp.lt.s32.totalorder %s1926_s29, 1  ;;  %v774_v0 = vld [vmem:[%s2501_s2] sm:$0xff]  ;;  %v1936_v1 = vmov 0   ;;  %v775_v2 = vld [vmem:[%s2501_s2 + $0x8] sm:$0xff]  ;;  %v777_v25 = vld [vmem:[%s2501_s2 + $0x18] sm:$0xff]  ;;  %s1937_s19 = smov 0.0  }
   0xd   : > { %1874 = vset.pattern.permute.xlu1 %v1936_v1  ;;  %1875 = vset.pattern.permute.xlu0 %v1936_v1  ;;  %v871_v10 = vld [vmem:[%s2502_s3] sm:$0xff]  ;;  %v872_v16 = vld [vmem:[%s2502_s3 + $0x8] sm:$0xff]  ;;  %v873_v35 = vld [vmem:[%s2502_s3 + $0x10] sm:$0xff]  ;;  %vm879_vm0 = vcmask 1046528   ;;  %vm790_vm1 = vcmask 1040384  }
   0xe   : > { %s2540_s29 = smov (!%p588_p4, %s1926_s29), 1  ;;  %817 = vperm.xlu1 %1874, %v774_v0   ;;  %v778_v37 = vld [vmem:[%s2501_s2 + $0x20] sm:$0xff]  ;;  %v874_v38 = vld [vmem:[%s2502_s3 + $0x18] sm:$0xff]  ;;  %v961_v40 = vld [vmem:[%s2500_s1 + $0x8] sm:$0xff] }
   0xf   : > { %s1762_s21 = sshll.u32 %s2540_s29, 6  ;;  %v960_v39 = vld [vmem:[%s2500_s1] sm:$0xff]  ;;  %v779_v41 = vld [vmem:[%s2501_s2 + $0x28] sm:$0xff]  ;;  %v776_v43 = vld [vmem:[%s2501_s2 + $0x10] sm:$0xff] }
  0x10   : > { %s592_s24 = scalar_lea.vmem %s2499_s0, %s1762_s21  ;;  %v875_v42 = vld [vmem:[%s2502_s3 + $0x20] sm:$0xff]  ;;  %v962_v44 = vld [vmem:[%s2500_s1 + $0x10] sm:$0xff]  ;;  %v876_v46 = vld [vmem:[%s2502_s3 + $0x28] sm:$0xff] }
  0x11   : > { %v2045_v3 = vld [vmem:[%s592_s24] sm:$0xff]  ;;  %v2047_v4 = vld [vmem:[%s592_s24 + $0x8] sm:$0xff]  ;;  %v2049_v5 = vld [vmem:[%s592_s24 + $0x10] sm:$0xff] }
  0x12   : > { %2521 = vst [vmem:[#allocation2_spill] sm:$0xff] %v2049_v5  ;;  %822 = vperm.xlu1 %1874, %v775_v2   ;;  %v661_v6 = vadd.f32 %v2047_v4, %v2045_v3  ;;  %v678_v7 = vmul.f32 %v2045_v3, %v2045_v3  ;;  %v679_v8 = vmul.f32 %v2047_v4, %v2047_v4  ;;  %v2062_v11 = vld [vmem:[%s592_s24 + $0x18] sm:$0xff]  ;;  %v2064_v12 = vld [vmem:[%s592_s24 + $0x20] sm:$0xff]  ;;  %v2072_v17 = vld [vmem:[%s592_s24 + $0x28] sm:$0xff] }
  0x13   : > { %v680_v9 = vmul.f32 %v2049_v5, %v2049_v5  ;;  %2522 = vst [vmem:[#allocation3_spill] sm:$0xff] %v2062_v11  ;;  %2523 = vst [vmem:[#allocation4_spill] sm:$0xff] %v2064_v12  ;;  %v681_v14 = vmul.f32 %v2062_v11, %v2062_v11  ;;  %v682_v19 = vmul.f32 %v2064_v12, %v2064_v12  ;;  %v2077_v21 = vld [vmem:[%s592_s24 + $0x30] sm:$0xff]  ;;  %v2085_v26 = vld [vmem:[%s592_s24 + $0x38] sm:$0xff] }
  0x14   : > { %v662_v13 = vadd.f32 %v661_v6, %v2049_v5  ;;  %v686_v15 = vadd.f32 %v679_v8, %v678_v7  ;;  %2524 = vst [vmem:[#allocation5_spill] sm:$0xff] %v2072_v17  ;;  %2525 = vst [vmem:[#allocation6_spill] sm:$0xff] %v2077_v21  ;;  %v683_v23 = vmul.f32 %v2072_v17, %v2072_v17  ;;  %v780_v45 = vld [vmem:[%s2501_s2 + $0x30] sm:$0xff]  ;;  %v963_v47 = vld [vmem:[%s2500_s1 + $0x18] sm:$0xff] }
  0x15   : > { %2526 = vst [vmem:[#allocation7_spill] sm:$0xff] %v2085_v26  ;;  %v684_v28 = vmul.f32 %v2077_v21, %v2077_v21  ;;  %v685_v31 = vmul.f32 %v2085_v26, %v2085_v26  ;;  %v781_v48 = vld [vmem:[%s2501_s2 + $0x38] sm:$0xff]  ;;  %v877_v49 = vld [vmem:[%s2502_s3 + $0x30] sm:$0xff]  ;;  %v964_v50 = vld [vmem:[%s2500_s1 + $0x20] sm:$0xff] }
  0x16   : > { %906 = vperm.xlu1 %1874, %v871_v10   ;;  %v663_v18 = vadd.f32 %v662_v13, %v2062_v11  ;;  %v687_v20 = vadd.f32 %v686_v15, %v680_v9  ;;  %v878_v51 = vld [vmem:[%s2502_s3 + $0x38] sm:$0xff]  ;;  %v965_v52 = vld [vmem:[%s2500_s1 + $0x28] sm:$0xff]  ;;  %v966_v53 = vld [vmem:[%s2500_s1 + $0x30] sm:$0xff] }
  0x17   : > { %v967_v54 = vld [vmem:[%s2500_s1 + $0x38] sm:$0xff] }
  0x18   : > { %v664_v22 = vadd.f32 %v663_v18, %v2064_v12  ;;  %v688_v24 = vadd.f32 %v687_v20, %v681_v14 }
  0x1a   : > { %911 = vperm.xlu1 %1874, %v872_v16   ;;  %v665_v27 = vadd.f32 %v664_v22, %v2072_v17  ;;  %v689_v29 = vadd.f32 %v688_v24, %v682_v19 }
  0x1c   : > { %v666_v30 = vadd.f32 %v665_v27, %v2077_v21  ;;  %v690_v32 = vadd.f32 %v689_v29, %v683_v23 }
  0x1e   : > { %832 = vperm.xlu1 %1874, %v777_v25   ;;  %v667_v33 = vadd.f32 %v666_v30, %v2085_v26  ;;  %v691_v34 = vadd.f32 %v690_v32, %v684_v28 }
  0x20   : > { %668 = vadd.xlane.f32.xlu0 %v667_v33  ;;  %v692_v36 = vadd.f32 %v691_v34, %v685_v31 }
  0x22   : > { %916 = vperm.xlu1 %1874, %v873_v35  }
  0x24   : > { %693 = vadd.xlane.f32.xlu0 %v692_v36 }
  0x26   : > { %837 = vperm.xlu1 %1874, %v778_v37  }
  0x2a   : > { %921 = vperm.xlu1 %1874, %v874_v38  }
  0x2e   : > { %970 = vperm.xlu1 %1874, %v960_v39   ;;  %v1736_v39 = vld [vmem:[%s2503_s4] ss:$0 sm:$0xff] }
  0x32   : > { %975 = vperm.xlu1 %1874, %v961_v40  }
  0x36   : > { %842 = vperm.xlu1 %1874, %v779_v41  }
  0x3a   : > { %926 = vperm.xlu1 %1874, %v875_v42   ;;  %827 = vperm.xlu0 %1875, %v776_v43  }
  0x3e   : > { %980 = vperm.xlu1 %1874, %v962_v44   ;;  %847 = vperm.xlu0 %1875, %v780_v45  }
  0x42   : > { %931 = vperm.xlu1 %1874, %v876_v46   ;;  %985 = vperm.xlu0 %1875, %v963_v47  }
  0x46   : > { %852 = vperm.xlu1 %1874, %v781_v48   ;;  %936 = vperm.xlu0 %1875, %v877_v49   ;;  %v1737_v48 = vld [vmem:[%s2504_s5] ss:$0 sm:$0xff] }
  0x4a   : > { %990 = vperm.xlu1 %1874, %v964_v50   ;;  %941 = vperm.xlu0 %1875, %v878_v51  }
  0x4e   : > { %995 = vperm.xlu1 %1874, %v965_v52   ;;  %1000 = vperm.xlu0 %1875, %v966_v53  }
  0x52   : > { %1005 = vperm.xlu1 %1874, %v967_v54  }
  0x89   : > { %v2151_v8 = vpop.permute.xlu1 %817 }
  0x8d   : > { %v2154_v9 = vpop.permute.xlu1 %822 }
  0x91   : > { %v2156_v13 = vpop.permute.xlu1 %906 }
  0x95   : > { %v2158_v14 = vpop.permute.xlu1 %911 }
  0x99   : > { %v2160_v16 = vpop.permute.xlu1 %832 }
  0x9d   : > { %v2162_v18 = vpop.permute.xlu1 %916 }
  0xa1   : > { %v2164_v19 = vpop.permute.xlu1 %837 }
  0xa5   : > { %v2166_v20 = vpop.permute.xlu1 %921 }
  0xa9   : > { %v669_v55 = vpop.xlane.xlu0 %668  ;;  %v2168_v22 = vpop.permute.xlu1 %970 }
  0xaa   : > { %v670_v56 = vrot.slane %v669_v55, 4 }
  0xac   : > { %v671_v57 = vadd.f32 %v670_v56, %v669_v55 }
  0xad   : > { %v694_v58 = vpop.xlane.xlu0 %693  ;;  %v2170_v23 = vpop.permute.xlu1 %975 }
  0xae   : > { %v672_v59 = vrot.slane %v671_v57, 2  ;;  %v695_v60 = vrot.slane %v694_v58, 4 }
  0xb0   : > { %v696_v61 = vadd.f32 %v695_v60, %v694_v58  ;;  %v673_v62 = vadd.f32 %v672_v59, %v671_v57 }
  0xb1   : > { %v2172_v24 = vpop.permute.xlu1 %842 }
  0xb2   : > { %v697_v63 = vrot.slane %v696_v61, 2  ;;  %v674_v0 = vrot.slane %v673_v62, 1 }
  0xb4   : > { %v675_v1 = vadd.f32 %v674_v0, %v673_v62  ;;  %v698_v2 = vadd.f32 %v697_v63, %v696_v61 }
  0xb5   : > { %v2174_v25 = vpop.permute.xlu1 %926  ;;  %v2176_v28 = vpop.permute.xlu0 %827 }
  0xb6   : > { %1836 = vpush %v675_v1  ;;  %v699_v6 = vrot.slane %v698_v2, 1 }
  0xb8   : > { %v700_v7 = vadd.f32 %v699_v6, %v698_v2 }
  0xb9   : > { %v2183_v34 = vpop.permute.xlu1 %980  ;;  %v2194_v49 = vpop.permute.xlu0 %847 }
  0xba   : > { %1838 = vpush %v700_v7 }
  0xbd   : > { %v932_v62 = vpop.permute.xlu1 %931 }
  0xe7   : > { %s1837_s25 = spop %1836 }
  0xe8   : > { %s677_s26 = smul.f32 0.00048828125, %s1837_s25 }
  0xea   : > { %s703_s27 = smul.f32 %s677_s26, %s677_s26  ;;  %v706_v27 = vstv %s677_s26 }
  0xeb   : > { %s1839_s28 = spop %1838  ;;  %v707_v29 = vsub.f32 %v2045_v3, %v706_v27  ;;  %v708_v30 = vsub.f32 %v2047_v4, %v706_v27  ;;  %v709_v31 = vsub.f32 %v2049_v5, %v706_v27  ;;  %v710_v32 = vsub.f32 %v2062_v11, %v706_v27 }
  0xec   : > { %s702_s17 = smul.f32 0.00048828125, %s1839_s28  ;;  %v711_v33 = vsub.f32 %v2064_v12, %v706_v27  ;;  %v712_v35 = vsub.f32 %v2072_v17, %v706_v27  ;;  %v713_v36 = vsub.f32 %v2077_v21, %v706_v27  ;;  %v714_v37 = vsub.f32 %v2085_v26, %v706_v27 }
  0xee   : > { %s704_s18 = ssub.f32 %s702_s17, %s703_s27 }
  0xf0   : > { %s705_s20 = smax.f32 %s1937_s19, %s704_s18 }
  0xf1   : > { %s715_s22 = sadd.f32 1e-05, %s705_s20 }
  0xf3   : > { %v716_v10 = vstv %s715_s22 }
  0xf4   : > { %1892 = vrsqrt.f32 %v716_v10 }
 0x101   : > { %v1893_v15 = vpop.eup %1892 }
 0x102   : > { %1840 = vpush %v1893_v15 }
 0x133   : > { %s1841_s23 = spop %1840 }
 0x134   : > { %v719_v38 = vstv %s1841_s23 }
 0x135   : > { %v720_v40 = vmul.f32 %v719_v38, %v707_v29  ;;  %v721_v41 = vmul.f32 %v719_v38, %v708_v30  ;;  %v722_v42 = vmul.f32 %v719_v38, %v709_v31  ;;  %v723_v43 = vmul.f32 %v719_v38, %v710_v32  ;;  %v2228_v31 = vpop.permute.xlu0 %985 }
 0x136   : > { %v724_v44 = vmul.f32 %v719_v38, %v711_v33  ;;  %v725_v45 = vmul.f32 %v719_v38, %v712_v35  ;;  %v726_v46 = vmul.f32 %v719_v38, %v713_v36  ;;  %v727_v47 = vmul.f32 %v719_v38, %v714_v37 }
 0x137   : > { %v735_v50 = vmul.f32 %v1736_v39, %v720_v40  ;;  %v736_v51 = vmul.f32 %v1736_v39, %v721_v41  ;;  %v737_v52 = vmul.f32 %v1736_v39, %v722_v42  ;;  %v738_v53 = vmul.f32 %v1736_v39, %v723_v43  ;;  %v853_v41 = vpop.permute.xlu1 %852 }
 0x138   : > { %v739_v54 = vmul.f32 %v1736_v39, %v724_v44  ;;  %v740_v55 = vmul.f32 %v1736_v39, %v725_v45  ;;  %v741_v56 = vmul.f32 %v1736_v39, %v726_v46  ;;  %v742_v57 = vmul.f32 %v1736_v39, %v727_v47 }
 0x139   : > { %v2196_v58 = vadd.f32 %v1737_v48, %v735_v50  ;;  %v2198_v59 = vadd.f32 %v1737_v48, %v736_v51  ;;  %v2200_v60 = vadd.f32 %v1737_v48, %v737_v52  ;;  %v2202_v61 = vadd.f32 %v1737_v48, %v738_v53 }
 0x13a   : > { %v2204_v63 = vadd.f32 %v1737_v48, %v739_v54  ;;  %v2206_v0 = vadd.f32 %v1737_v48, %v740_v55  ;;  %v2208_v1 = vadd.f32 %v1737_v48, %v741_v56  ;;  %v2210_v2 = vadd.f32 %v1737_v48, %v742_v57 }
 0x13b   : > { %v2214_v6 = vadd.f32 %v2198_v59, %v2196_v58  ;;  %v760_v7 = vadd.f32 %v2200_v60, %v2198_v59  ;;  %v761_v10 = vadd.f32 %v2202_v61, %v2200_v60  ;;  %v991_v11 = vpop.permute.xlu1 %990 }
 0x13c   : > { %2527 = vst [vmem:[#allocation8_spill] sm:$0xff] %v2210_v2  ;;  %v762_v15 = vadd.f32 %v2204_v63, %v2202_v61  ;;  %v763_v27 = vadd.f32 %v2206_v0, %v2204_v63  ;;  %v764_v29 = vadd.f32 %v2208_v1, %v2206_v0  ;;  %v765_v30 = vadd.f32 %v2210_v2, %v2208_v1 }
 0x13d   : > { %v767_v32 = vadd.f32 %v2214_v6, %v2200_v60  ;;  %v2233_v33 = vadd.f32 %v760_v7, %v2202_v61  ;;  %v2236_v35 = vadd.f32 %v761_v10, %v2204_v63  ;;  %v791_v51 = vrot.slane %v2214_v6, 7  ;;  %v937_v7 = vpop.permute.xlu0 %936 }
 0x13e   : > { %v2239_v36 = vadd.f32 %v762_v15, %v2206_v0  ;;  %v771_v37 = vadd.f32 %v763_v27, %v2208_v1  ;;  %v772_v38 = vadd.f32 %v764_v29, %v2210_v2  ;;  %v893_v45 = vrot.slane %v765_v30, 1 }
 0x13f   : > { %v792_v39 = vrot.slane %v767_v32, 7  ;;  %v794_v40 = vrot.slane %v2233_v33, 7  ;;  %v804_v47 = vrot.slane %v765_v30, 7  ;;  %v796_v48 = vrot.slane %v2236_v35, 7 }
 0x140   : > { %v887_v42 = vrot.slane %v2239_v36, 1  ;;  %v889_v43 = vrot.slane %v771_v37, 1  ;;  %v891_v44 = vrot.slane %v772_v38, 1  ;;  %v802_v46 = vrot.slane %v772_v38, 7 }
 0x141   : > { %v798_v50 = vrot.slane %v2239_v36, 7  ;;  %v880_v52 = vrot.slane %v2214_v6, 1  ;;  %v881_v53 = vrot.slane %v767_v32, 1  ;;  %v883_v55 = vrot.slane %v2233_v33, 1 }
 0x142   : > { %v890_v54 = vsel %vm879_vm0, %v887_v42, %v889_v43  ;;  %v892_v56 = vsel %vm879_vm0, %v889_v43, %v891_v44  ;;  %v894_v57 = vsel %vm879_vm0, %v891_v44, %v893_v45  ;;  %v805_v10 = vsel %vm790_vm1, %v802_v46, %v804_v47 }
 0x143   : > { %v948_v15 = vmul.f32 %v2174_v25, %v890_v54  ;;  %v903_v27 = vsel %vm879_vm0, %v893_v45, 0.0  ;;  %v799_v29 = vsel %vm790_vm1, %v796_v48, %v798_v50  ;;  %v800_v26 = vrot.slane %v771_v37, 7 }
 0x144   : > { %v859_v21 = vmul.f32 %v2164_v19, %v799_v29  ;;  %v793_v17 = vsel %vm790_vm1, %v791_v51, %v792_v39  ;;  %v795_v12 = vsel %vm790_vm1, %v792_v39, %v794_v40  ;;  %v797_v43 = vsel %vm790_vm1, %v794_v40, %v796_v48 }
 0x145   : > { %v862_v44 = vmul.f32 %v853_v41, %v805_v10  ;;  %v801_v5 = vsel %vm790_vm1, %v798_v50, %v800_v26  ;;  %v803_v47 = vsel %vm790_vm1, %v800_v26, %v802_v46  ;;  %v814_v25 = vsel %vm790_vm1, 0.0, %v791_v51  ;;  %v942_v50 = vpop.permute.xlu0 %941 }
 0x146   : > { %v860_v45 = vmul.f32 %v2172_v24, %v801_v5  ;;  %v861_v54 = vmul.f32 %v2194_v49, %v803_v47  ;;  %v855_v19 = vmul.f32 %v2151_v8, %v814_v25  ;;  %v856_v29 = vmul.f32 %v2154_v9, %v793_v17 }
 0x147   : > { %v949_v2 = vmul.f32 %v932_v62, %v892_v56  ;;  %v857_v39 = vmul.f32 %v2176_v28, %v795_v12  ;;  %v858_v40 = vmul.f32 %v2160_v16, %v797_v43  ;;  %v867_v41 = vadd.f32 %v859_v21, %v2239_v36  ;;  %v996_v21 = vpop.permute.xlu1 %995 }
 0x148   : > { %v950_v48 = vmul.f32 %v937_v7, %v894_v57  ;;  %v868_v26 = vadd.f32 %v860_v45, %v771_v37  ;;  %v869_v46 = vadd.f32 %v861_v54, %v772_v38  ;;  %v863_v51 = vadd.f32 %v855_v19, %v2214_v6 }
 0x149   : > { %v870_v5 = vadd.f32 %v862_v44, %v765_v30  ;;  %v951_v24 = vmul.f32 %v942_v50, %v903_v27  ;;  %v864_v49 = vadd.f32 %v856_v29, %v767_v32  ;;  %v882_v8 = vsel %vm879_vm0, %v880_v52, %v881_v53 }
 0x14a   : > { %v865_v17 = vadd.f32 %v857_v39, %v2233_v33  ;;  %v884_v9 = vsel %vm879_vm0, %v881_v53, %v883_v55  ;;  %v885_v12 = vrot.slane %v2236_v35, 1  ;;  %v944_v16 = vmul.f32 %v2156_v13, %v882_v8  ;;  %v2529_v39 = vld [vmem:[#allocation2_spill] sm:$0xff] }
 0x14b   : > { %v866_v28 = vadd.f32 %v858_v40, %v2236_v35  ;;  %v945_v62 = vmul.f32 %v2158_v14, %v884_v9  ;;  %v956_v36 = vadd.f32 %v948_v15, %v867_v41  ;;  %v957_v6 = vadd.f32 %v949_v2, %v868_v26  ;;  %v1738_v14 = vld [vmem:[%s2505_s6] ss:$0 sm:$0xff]  ;;  %v1001_v2 = vpop.permute.xlu0 %1000  ;;  %v1006_v15 = vpop.permute.xlu1 %1005  ;;  %v2530_v40 = vld [vmem:[#allocation3_spill] sm:$0xff] }
 0x14c   : > { %v958_v30 = vadd.f32 %v950_v48, %v869_v46  ;;  %v886_v32 = vsel %vm879_vm0, %v883_v55, %v885_v12  ;;  %v888_v37 = vsel %vm879_vm0, %v885_v12, %v887_v42  ;;  %v952_v38 = vadd.f32 %v944_v16, %v863_v51  ;;  %v2531_v48 = vld [vmem:[#allocation4_spill] sm:$0xff]  ;;  %v2533_v12 = vld [vmem:[#allocation6_spill] sm:$0xff] }
 0x14d   : > { %v946_v33 = vmul.f32 %v2162_v18, %v886_v32  ;;  %v947_v52 = vmul.f32 %v2166_v20, %v888_v37  ;;  %v953_v53 = vadd.f32 %v945_v62, %v864_v49  ;;  %v959_v56 = vadd.f32 %v951_v24, %v870_v5  ;;  %v2532_v24 = vld [vmem:[#allocation5_spill] sm:$0xff] }
 0x14e   : > { %v1008_v13 = vmul.f32 %v2168_v22, %v952_v38  ;;  %v1012_v57 = vmul.f32 %v991_v11, %v956_v36  ;;  %v1013_v35 = vmul.f32 %v996_v21, %v957_v6  ;;  %v1014_v10 = vmul.f32 %v1001_v2, %v958_v30  ;;  %v2534_v36 = vld [vmem:[#allocation7_spill] sm:$0xff] }
 0x14f   : > { %v954_v7 = vadd.f32 %v946_v33, %v865_v17  ;;  %v955_v55 = vadd.f32 %v947_v52, %v866_v28  ;;  %v1009_v42 = vmul.f32 %v2170_v23, %v953_v53  ;;  %v1015_v43 = vmul.f32 %v1006_v15, %v959_v56  ;;  %v1878_v2 = vld [vmem:[%s2509_s10 + $0x28] sm:$0xff]  }
 0x150   : > { %v1016_v18 = vsub.f32 %v1008_v13, %v2196_v58  ;;  %v1020_v22 = vsub.f32 %v1012_v57, %v2204_v63  ;;  %v1021_v44 = vsub.f32 %v1013_v35, %v2206_v0  ;;  %v1022_v58 = vsub.f32 %v1014_v10, %v2208_v1  ;;  %v2528_v63 = vld [vmem:[#allocation8_spill] sm:$0xff]  ;;  %v1876_v35 = vld [vmem:[%s2509_s10 + $0x38] sm:$0xff]  }
 0x151   : > { %v1010_v20 = vmul.f32 %v2183_v34, %v954_v7  ;;  %v1011_v27 = vmul.f32 %v2228_v31, %v955_v55  ;;  %v1017_v11 = vsub.f32 %v1009_v42, %v2198_v59  ;;  %v1023_v29 = vsub.f32 %v1015_v43, %v2528_v63  ;;  %1788 = vmatprep.subr.bf16.mxu0 %v1876_v35  ;;  %v1879_v7 = vld [vmem:[%s2509_s10 + $0x20] sm:$0xff]   ;;  %v1880_v55 = vld [vmem:[%s2509_s10 + $0x18] sm:$0xff]   ;;  %v1881_v42 = vld [vmem:[%s2509_s10 + $0x10] sm:$0xff]  }
 0x152   : > { %v1031_v47 = vmul.f32 %v1738_v14, %v1016_v18  ;;  %v1035_v19 = vmul.f32 %v1738_v14, %v1020_v22  ;;  %v1036_v0 = vmul.f32 %v1738_v14, %v1021_v44  ;;  %1789 = vmatpush3.bf16.msra.mxu0 %v1876_v35 }
 0x153   : > { %v1018_v25 = vsub.f32 %v1010_v20, %v2200_v60  ;;  %v1019_v23 = vsub.f32 %v1011_v27, %v2202_v61  ;;  %v1032_v45 = vmul.f32 %v1738_v14, %v1017_v11  ;;  %v1038_v5 = vmul.f32 %v1738_v14, %v1023_v29 }
 0x154   : > { %v2298_v54 = vadd.f32 %v1031_v47, %v2045_v3  ;;  %v2317_v50 = vadd.f32 %v1035_v19, %v2531_v48  ;;  %v2323_v49 = vadd.f32 %v1036_v0, %v2532_v24  ;;  %v1740_v24 = vld [vmem:[%s2507_s8] ss:$0 sm:$0xff] }
 0x155   : > { %v1033_v34 = vmul.f32 %v1738_v14, %v1018_v25  ;;  %v1034_v31 = vmul.f32 %v1738_v14, %v1019_v23  ;;  %v2301_v59 = vadd.f32 %v1032_v45, %v2047_v4  ;;  %v1037_v4 = vmul.f32 %v1738_v14, %v1022_v58  ;;  %v1877_v14 = vld [vmem:[%s2509_s10 + $0x30] sm:$0xff]   ;;  %v1882_v23 = vld [vmem:[%s2509_s10 + $0x8] sm:$0xff]   ;;  %v1883_v45 = vld [vmem:[%s2509_s10] sm:$0xff]  }
 0x156   : > { %v1064_v60 = vmul.f32 %v2298_v54, %v2298_v54  ;;  %v1068_v28 = vmul.f32 %v2317_v50, %v2317_v50  ;;  %v2335_v6 = vadd.f32 %v1038_v5, %v2534_v36  ;;  %v1069_v32 = vmul.f32 %v2323_v49, %v2323_v49  ;;  %1790 = vmatprep.subr.bf16.mxu0 %v1877_v14 }
 0x157   : > { %v2307_v61 = vadd.f32 %v1033_v34, %v2529_v39  ;;  %v2310_v1 = vadd.f32 %v1034_v31, %v2530_v40  ;;  %v1047_v3 = vadd.f32 %v2301_v59, %v2298_v54  ;;  %v1065_v41 = vmul.f32 %v2301_v59, %v2301_v59  ;;  %1791 = vmatpush3.bf16.msra.mxu0 %v1877_v14 }
 0x158   : > { %v2329_v16 = vadd.f32 %v1037_v4, %v2533_v12  ;;  %v1071_v56 = vmul.f32 %v2335_v6, %v2335_v6  ;;  %1792 = vmatprep.subr.bf16.mxu0 %v1878_v2 }
 0x159   : > { %v1048_v26 = vadd.f32 %v1047_v3, %v2307_v61  ;;  %v1066_v46 = vmul.f32 %v2307_v61, %v2307_v61  ;;  %v1072_v51 = vadd.f32 %v1065_v41, %v1064_v60  ;;  %v1067_v17 = vmul.f32 %v2310_v1, %v2310_v1  ;;  %v1739_v41 = vld [vmem:[%s2506_s7] ss:$0 sm:$0xff] }
 0x15a   : > { %v1070_v33 = vmul.f32 %v2329_v16, %v2329_v16 }
 0x15b   : > { %v1049_v8 = vadd.f32 %v1048_v26, %v2310_v1  ;;  %v1073_v9 = vadd.f32 %v1072_v51, %v1066_v46  ;;  %1793 = vmatpush3.bf16.msra.mxu0 %v1878_v2 }
 0x15c   : > { %1794 = vmatprep.subr.bf16.mxu0 %v1879_v7 }
 0x15d   : > { %v1050_v21 = vadd.f32 %v1049_v8, %v2317_v50  ;;  %v1074_v62 = vadd.f32 %v1073_v9, %v1067_v17 }
 0x15f   : > { %v1051_v30 = vadd.f32 %v1050_v21, %v2323_v49  ;;  %v1075_v37 = vadd.f32 %v1074_v62, %v1068_v28  ;;  %1795 = vmatpush3.bf16.msra.mxu0 %v1879_v7 }
 0x160   : > { %1796 = vmatprep.subr.bf16.mxu0 %v1880_v55 }
 0x161   : > { %v1052_v38 = vadd.f32 %v1051_v30, %v2329_v16  ;;  %v1076_v52 = vadd.f32 %v1075_v37, %v1069_v32 }
 0x163   : > { %v1053_v53 = vadd.f32 %v1052_v38, %v2335_v6  ;;  %v1077_v13 = vadd.f32 %v1076_v52, %v1070_v33  ;;  %1797 = vmatpush3.bf16.msra.mxu0 %v1880_v55 }
 0x164   : > { %1798 = vmatprep.subr.bf16.mxu0 %v1881_v42 }
 0x165   : > { %1054 = vadd.xlane.f32.xlu0 %v1053_v53  ;;  %v1078_v57 = vadd.f32 %v1077_v13, %v1071_v56 }
 0x167   : > { %1079 = vadd.xlane.f32.xlu1 %v1078_v57  ;;  %1799 = vmatpush3.bf16.msra.mxu0 %v1881_v42 }
 0x168   : > { %1800 = vmatprep.subr.bf16.mxu0 %v1882_v23 }
 0x16b   : > { %1801 = vmatpush3.bf16.msra.mxu0 %v1882_v23 }
 0x16c   : > { %1802 = vmatprep.subr.bf16.mxu0 %v1883_v45 }
 0x16f   : > { %1803 = vmatpush3.bf16.msra.mxu0 %v1883_v45 }
 0x1ee   : > { %v1055_v10 = vpop.xlane.xlu0 %1054 }
 0x1ef   : > { %v1056_v18 = vrot.slane %v1055_v10, 4 }
 0x1f0   : > { %v1080_v15 = vpop.xlane.xlu1 %1079 }
 0x1f1   : > { %v1057_v20 = vadd.f32 %v1056_v18, %v1055_v10  ;;  %v1081_v27 = vrot.slane %v1080_v15, 4 }
 0x1f3   : > { %v1058_v11 = vrot.slane %v1057_v20, 2  ;;  %v1082_v22 = vadd.f32 %v1081_v27, %v1080_v15  ;;  %v1884_v15 = vld [vmem:[%s2511_s12 + $0x38] sm:$0xff]   ;;  %v1886_v27 = vld [vmem:[%s2511_s12 + $0x28] sm:$0xff]  }
 0x1f4   : > { %1812 = vmatprep.subr.bf16.mxu1 %v1884_v15 }
 0x1f5   : > { %v1059_v43 = vadd.f32 %v1058_v11, %v1057_v20  ;;  %v1083_v44 = vrot.slane %v1082_v22, 2  ;;  %1813 = vmatpush3.bf16.msra.mxu1 %v1884_v15  ;;  %v1885_v20 = vld [vmem:[%s2511_s12 + $0x30] sm:$0xff]   ;;  %v1887_v11 = vld [vmem:[%s2511_s12 + $0x20] sm:$0xff]  }
 0x1f6   : > { %1814 = vmatprep.subr.bf16.mxu1 %v1885_v20 }
 0x1f7   : > { %v1084_v47 = vadd.f32 %v1083_v44, %v1082_v22  ;;  %v1060_v25 = vrot.slane %v1059_v43, 1  ;;  %v1888_v22 = vld [vmem:[%s2511_s12 + $0x18] sm:$0xff]   ;;  %v1890_v44 = vld [vmem:[%s2511_s12 + $0x8] sm:$0xff]  }
 0x1f9   : > { %v1061_v58 = vadd.f32 %v1060_v25, %v1059_v43  ;;  %v1085_v34 = vrot.slane %v1084_v47, 1  ;;  %1815 = vmatpush3.bf16.msra.mxu1 %v1885_v20  ;;  %v1889_v43 = vld [vmem:[%s2511_s12 + $0x10] sm:$0xff]   ;;  %v1741_v25 = vld [vmem:[%s2510_s11] ss:$0 sm:$0xff] }
 0x1fa   : > { %1816 = vmatprep.subr.bf16.mxu1 %v1886_v27 }
 0x1fb   : > { %1842 = vpush %v1061_v58  ;;  %v1086_v31 = vadd.f32 %v1085_v34, %v1084_v47  ;;  %v1891_v47 = vld [vmem:[%s2511_s12] sm:$0xff]  }
 0x1fd   : > { %1844 = vpush %v1086_v31  ;;  %1817 = vmatpush3.bf16.msra.mxu1 %v1886_v27 }
 0x1fe   : > { %1818 = vmatprep.subr.bf16.mxu1 %v1887_v11 }
 0x201   : > { %1819 = vmatpush3.bf16.msra.mxu1 %v1887_v11 }
 0x202   : > { %1820 = vmatprep.subr.bf16.mxu1 %v1888_v22 }
 0x205   : > { %1821 = vmatpush3.bf16.msra.mxu1 %v1888_v22 }
 0x206   : > { %1822 = vmatprep.subr.bf16.mxu1 %v1889_v43 }
 0x209   : > { %1823 = vmatpush3.bf16.msra.mxu1 %v1889_v43 }
 0x20a   : > { %1824 = vmatprep.subr.bf16.mxu1 %v1890_v44 }
 0x20d   : > { %1825 = vmatpush3.bf16.msra.mxu1 %v1890_v44 }
 0x20e   : > { %1826 = vmatprep.subr.bf16.mxu1 %v1891_v47 }
 0x211   : > { %1827 = vmatpush3.bf16.msra.mxu1 %v1891_v47 }
 0x22c   : > { %s1843_s26 = spop %1842 }
 0x22d   : > { %s1063_s27 = smul.f32 0.00048828125, %s1843_s26 }
 0x22e   : > { %s1845_s28 = spop %1844 }
 0x22f   : > { %s1089_s17 = smul.f32 %s1063_s27, %s1063_s27  ;;  %v1092_v29 = vstv %s1063_s27 }
 0x230   : > { %s1088_s18 = smul.f32 0.00048828125, %s1845_s28  ;;  %v1093_v0 = vsub.f32 %v2298_v54, %v1092_v29  ;;  %v1094_v60 = vsub.f32 %v2301_v59, %v1092_v29  ;;  %v1095_v39 = vsub.f32 %v2307_v61, %v1092_v29  ;;  %v1096_v40 = vsub.f32 %v2310_v1, %v1092_v29 }
 0x231   : > { %v1097_v4 = vsub.f32 %v2317_v50, %v1092_v29  ;;  %v1098_v48 = vsub.f32 %v2323_v49, %v1092_v29  ;;  %v1099_v9 = vsub.f32 %v2329_v16, %v1092_v29  ;;  %v1100_v12 = vsub.f32 %v2335_v6, %v1092_v29 }
 0x232   : > { %s1090_s20 = ssub.f32 %s1088_s18, %s1089_s17  ;;  %s2472_s18 = scalar_lea.vmem %s2513_s14, %s1762_s21 }
 0x234   : > { %s1091_s22 = smax.f32 %s1937_s19, %s1090_s20 }
 0x235   : > { %s1101_s23 = sadd.f32 1e-05, %s1091_s22 }
 0x237   : > { %v1102_v19 = vstv %s1101_s23 }
 0x238   : > { %1894 = vrsqrt.f32 %v1102_v19 }
 0x245   : > { %v1895_v63 = vpop.eup %1894 }
 0x246   : > { %1846 = vpush %v1895_v63 }
 0x277   : > { %s1847_s24 = spop %1846 }
 0x278   : > { %v1105_v3 = vstv %s1847_s24 }
 0x279   : > { %v1106_v26 = vmul.f32 %v1105_v3, %v1093_v0  ;;  %v1107_v46 = vmul.f32 %v1105_v3, %v1094_v60  ;;  %v1108_v51 = vmul.f32 %v1105_v3, %v1095_v39  ;;  %v1109_v5 = vmul.f32 %v1105_v3, %v1096_v40 }
 0x27a   : > { %v1110_v8 = vmul.f32 %v1105_v3, %v1097_v4  ;;  %v1111_v17 = vmul.f32 %v1105_v3, %v1098_v48  ;;  %v1112_v37 = vmul.f32 %v1105_v3, %v1099_v9  ;;  %v1113_v38 = vmul.f32 %v1105_v3, %v1100_v12 }
 0x27b   : > { %v1121_v21 = vmul.f32 %v1739_v41, %v1106_v26  ;;  %v1122_v28 = vmul.f32 %v1739_v41, %v1107_v46  ;;  %v1123_v62 = vmul.f32 %v1739_v41, %v1108_v51  ;;  %v1124_v36 = vmul.f32 %v1739_v41, %v1109_v5 }
 0x27c   : > { %v1125_v30 = vmul.f32 %v1739_v41, %v1110_v8  ;;  %v1126_v32 = vmul.f32 %v1739_v41, %v1111_v17  ;;  %v1127_v2 = vmul.f32 %v1739_v41, %v1112_v37  ;;  %v1128_v7 = vmul.f32 %v1739_v41, %v1113_v38 }
 0x27d   : > { %v1136_v33 = vadd.f32 %v1740_v24, %v1121_v21  ;;  %v1137_v52 = vadd.f32 %v1740_v24, %v1122_v28  ;;  %v1138_v53 = vadd.f32 %v1740_v24, %v1123_v62  ;;  %v1139_v56 = vadd.f32 %v1740_v24, %v1124_v36 }
 0x27e   : > { %v1140_v13 = vadd.f32 %v1740_v24, %v1125_v30  ;;  %v1141_v57 = vadd.f32 %v1740_v24, %v1126_v32  ;;  %v1142_v42 = vadd.f32 %v1740_v24, %v1127_v2  ;;  %v1143_v10 = vadd.f32 %v1740_v24, %v1128_v7 }
 0x27f   : > { %v1144_v35 = vpack.c.bf16 %v1137_v52, %v1136_v33  ;;  %v1145_v14 = vpack.c.bf16 %v1139_v56, %v1138_v53 }
 0x280   : > { %v1146_v55 = vpack.c.bf16 %v1141_v57, %v1140_v13  ;;  %v1147_v18 = vpack.c.bf16 %v1143_v10, %v1142_v42 }
 0x281   : > { %1804 = vmatprep.mubr.bf16.mxu0 %v1144_v35 }
 0x282   : > { %1805 = vmatmul.mubr.bf16.vlgmr.msra.gmra.mxu0 %v1145_v14 }
 0x283   : > { %1808 = vmatprep.mubr.bf16.mxu0 %v1146_v55 }
 0x28a   : > { %1809 = vmatmul.mubr.bf16.gmra.mxu0 %v1147_v18 }
 0x342   : > { %v1806_v23 = vpop.f32.mrf.mxu0 }
 0x343   : > { %v2412_v45 = vadd.f32 %v1806_v23, %v1741_v25 }
 0x344   : > { %v1253_v58 = vpop.f32.mrf.mxu0 }
 0x345   : > { %v1286_v34 = vmul.f32 %v2412_v45, %v2412_v45  ;;  %v2416_v31 = vadd.f32 %v1741_v25, %v1253_v58 }
 0x346   : > { %v1807_v19 = vpop.f32.mrf.mxu0 }
 0x347   : > { %v1294_v63 = vmul.f32 %v1286_v34, %v2412_v45  ;;  %v1284_v29 = vmul.f32 %v2416_v31, %v2416_v31  ;;  %v2421_v0 = vadd.f32 %v1807_v19, %v1741_v25 }
 0x348   : > { %v1256_v60 = vpop.f32.mrf.mxu0 }
 0x349   : > { %v1302_v39 = vmul.f32 0.044715, %v1294_v63  ;;  %v1292_v40 = vmul.f32 %v1284_v29, %v2416_v31  ;;  %v1287_v3 = vmul.f32 %v2421_v0, %v2421_v0  ;;  %v2426_v41 = vadd.f32 %v1741_v25, %v1256_v60 }
 0x34a   : > { %v1810_v4 = vpop.f32.mrf.mxu0 }
 0x34b   : > { %v1310_v48 = vadd.f32 %v1302_v39, %v2412_v45  ;;  %v1300_v26 = vmul.f32 0.044715, %v1292_v40  ;;  %v1295_v46 = vmul.f32 %v1287_v3, %v2421_v0  ;;  %v1285_v51 = vmul.f32 %v2426_v41, %v2426_v41 }
 0x34c   : > { %v2432_v5 = vadd.f32 %v1810_v4, %v1741_v25  ;;  %v1269_v24 = vpop.f32.mrf.mxu0 }
 0x34d   : > { %v1318_v8 = vmul.f32 0.7978846, %v1310_v48  ;;  %v1308_v17 = vadd.f32 %v1300_v26, %v2416_v31  ;;  %v1303_v9 = vmul.f32 0.044715, %v1295_v46  ;;  %v1293_v12 = vmul.f32 %v1285_v51, %v2426_v41 }
 0x34e   : > { %v1290_v21 = vmul.f32 %v2432_v5, %v2432_v5  ;;  %v2438_v28 = vadd.f32 %v1741_v25, %v1269_v24  ;;  %v1811_v62 = vpop.f32.mrf.mxu0 }
 0x34f   : > { %v1311_v36 = vadd.f32 %v1303_v9, %v2421_v0  ;;  %v1301_v30 = vmul.f32 0.044715, %v1293_v12  ;;  %v2441_v32 = vadd.f32 %v1811_v62, %v1741_v25  ;;  %1896 = vtanh.f32 %v1318_v8 }
 0x350   : > { %v1298_v37 = vmul.f32 %v1290_v21, %v2432_v5  ;;  %v1288_v38 = vmul.f32 %v2438_v28, %v2438_v28  ;;  %v1272_v33 = vpop.f32.mrf.mxu0  ;;  %v1316_v52 = vmul.f32 0.7978846, %v1308_v17 }
 0x351   : > { %v1319_v53 = vmul.f32 0.7978846, %v1311_v36  ;;  %v1309_v56 = vadd.f32 %v1301_v30, %v2426_v41  ;;  %v1291_v13 = vmul.f32 %v2441_v32, %v2441_v32  ;;  %v1273_v57 = vadd.f32 %v1741_v25, %v1272_v33 }
 0x352   : > { %v1306_v35 = vmul.f32 0.044715, %v1298_v37  ;;  %v1296_v14 = vmul.f32 %v1288_v38, %v2438_v28  ;;  %1898 = vtanh.f32 %v1316_v52 }
 0x353   : > { %1900 = vtanh.f32 %v1319_v53  ;;  %v1299_v2 = vmul.f32 %v1291_v13, %v2441_v32  ;;  %v1289_v7 = vmul.f32 %v1273_v57, %v1273_v57  ;;  %v1317_v55 = vmul.f32 0.7978846, %v1309_v56 }
 0x354   : > { %v1314_v42 = vadd.f32 %v1306_v35, %v2432_v5  ;;  %v1304_v10 = vmul.f32 0.044715, %v1296_v14  ;;  %v1750_v14 = vld [vmem:[%s2512_s13] ss:$0 sm:$0xff] }
 0x355   : > { %v1307_v18 = vmul.f32 0.044715, %v1299_v2  ;;  %v1297_v15 = vmul.f32 %v1289_v7, %v1273_v57  ;;  %1902 = vtanh.f32 %v1317_v55  ;;  %v1759_v7 = vld [vmem:[%s2508_s9] ss:$0 sm:$0xff] }
 0x356   : > { %v1322_v20 = vmul.f32 0.7978846, %v1314_v42  ;;  %v1312_v27 = vadd.f32 %v1304_v10, %v2438_v28 }
 0x357   : > { %v1315_v11 = vadd.f32 %v1307_v18, %v2441_v32  ;;  %v1305_v22 = vmul.f32 0.044715, %v1297_v15 }
 0x358   : > { %1904 = vtanh.f32 %v1322_v20  ;;  %v1320_v43 = vmul.f32 0.7978846, %v1312_v27 }
 0x359   : > { %v1323_v44 = vmul.f32 0.7978846, %v1315_v11  ;;  %v1313_v47 = vadd.f32 %v1305_v22, %v1273_v57 }
 0x35a   : > { %1906 = vtanh.f32 %v1320_v43 }
 0x35b   : > { %1908 = vtanh.f32 %v1323_v44  ;;  %v1321_v25 = vmul.f32 0.7978846, %v1313_v47 }
 0x35c   : > { %v1897_v23 = vpop.eup %1896 }
 0x35d   : > { %1910 = vtanh.f32 %v1321_v25  ;;  %v1334_v63 = vadd.f32 1.0, %v1897_v23 }
 0x35f   : > { %v1899_v58 = vpop.eup %1898  ;;  %v1342_v4 = vmul.f32 0.5, %v1334_v63 }
 0x360   : > { %v1901_v34 = vpop.eup %1900  ;;  %v1332_v19 = vadd.f32 1.0, %v1899_v58 }
 0x361   : > { %v1335_v29 = vadd.f32 1.0, %v1901_v34  ;;  %v1350_v9 = vmul.f32 %v1342_v4, %v2412_v45 }
 0x362   : > { %v1903_v60 = vpop.eup %1902  ;;  %v1340_v40 = vmul.f32 0.5, %v1332_v19 }
 0x363   : > { %v1333_v39 = vadd.f32 1.0, %v1903_v60  ;;  %v1343_v3 = vmul.f32 0.5, %v1335_v29 }
 0x364   : > { %v1348_v24 = vmul.f32 %v1340_v40, %v2416_v31 }
 0x365   : > { %v1905_v48 = vpop.eup %1904  ;;  %v1341_v26 = vmul.f32 0.5, %v1333_v39  ;;  %v1351_v46 = vmul.f32 %v1343_v3, %v2421_v0 }
 0x366   : > { %v1338_v21 = vadd.f32 1.0, %v1905_v48 }
 0x367   : > { %v1907_v51 = vpop.eup %1906  ;;  %v1349_v8 = vmul.f32 %v1341_v26, %v2426_v41  ;;  %v1357_v37 = vpack.c.bf16 %v1351_v46, %v1350_v9 }
 0x368   : > { %v1909_v17 = vpop.eup %1908  ;;  %v1336_v12 = vadd.f32 1.0, %v1907_v51  ;;  %v1346_v0 = vmul.f32 0.5, %v1338_v21 }
 0x369   : > { %v1356_v62 = vpack.c.bf16 %v1349_v8, %v1348_v24  ;;  %v1339_v36 = vadd.f32 1.0, %v1909_v17 }
 0x36a   : > { %v1911_v30 = vpop.eup %1910  ;;  %v1344_v33 = vmul.f32 0.5, %v1336_v12  ;;  %v1354_v45 = vmul.f32 %v1346_v0, %v2432_v5 }
 0x36b   : > { %1828 = vmatprep.mubr.bf16.mxu1 %v1356_v62  ;;  %v1337_v38 = vadd.f32 1.0, %v1911_v30  ;;  %v1347_v52 = vmul.f32 0.5, %v1339_v36 }
 0x36c   : > { %1829 = vmatmul.mubr.bf16.vlgmr.msra.gmra.mxu1 %v1357_v37  ;;  %v1352_v41 = vmul.f32 %v1344_v33, %v2438_v28 }
 0x36d   : > { %v1345_v53 = vmul.f32 0.5, %v1337_v38  ;;  %v1355_v31 = vmul.f32 %v1347_v52, %v2441_v32 }
 0x36f   : > { %v1353_v56 = vmul.f32 %v1345_v53, %v1273_v57  ;;  %v1359_v35 = vpack.c.bf16 %v1355_v31, %v1354_v45 }
 0x371   : > { %v1358_v13 = vpack.c.bf16 %v1353_v56, %v1352_v41 }
 0x373   : > { %1832 = vmatprep.mubr.bf16.mxu1 %v1358_v13 }
 0x374   : > { %1833 = vmatmul.mubr.bf16.gmra.mxu1 %v1359_v35 }
 0x42c   : > { %v1830_v2 = vpop.f32.mrf.mxu1 }
 0x42d   : > { %v1474_v55 = vadd.f32 %v1830_v2, %v1750_v14 }
 0x42e   : > { %v1465_v32 = vpop.f32.mrf.mxu1 }
 0x42f   : > { %v1505_v42 = vmul.f32 %v1759_v7, %v1474_v55  ;;  %v1466_v28 = vadd.f32 %v1750_v14, %v1465_v32 }
 0x430   : > { %v1831_v5 = vpop.f32.mrf.mxu1 }
 0x431   : > { %v1513_v57 = vadd.f32 %v1505_v42, %v2307_v61  ;;  %v1503_v10 = vmul.f32 %v1759_v7, %v1466_v28  ;;  %v1477_v18 = vadd.f32 %v1831_v5, %v1750_v14 }
 0x432   : > { %v1468_v15 = vpop.f32.mrf.mxu1 }
 0x433   : > { %1521 = vst [vmem:[%s2472_s18 + $0x10] sm:$0xff] %v1513_v57  ;;  %v1511_v20 = vadd.f32 %v1503_v10, %v2298_v54  ;;  %v1506_v27 = vmul.f32 %v1759_v7, %v1477_v18  ;;  %v1469_v11 = vadd.f32 %v1750_v14, %v1468_v15 }
 0x434   : > { %v1834_v22 = vpop.f32.mrf.mxu1 }
 0x435   : > { %1519 = vst [vmem:[%s2472_s18] sm:$0xff] %v1511_v20  ;;  %v1514_v43 = vadd.f32 %v1506_v27, %v2310_v1  ;;  %v1504_v44 = vmul.f32 %v1759_v7, %v1469_v11  ;;  %v1490_v47 = vadd.f32 %v1834_v22, %v1750_v14 }
 0x436   : > { %v1481_v25 = vpop.f32.mrf.mxu1 }
 0x437   : > { %1522 = vst [vmem:[%s2472_s18 + $0x18] sm:$0xff] %v1514_v43  ;;  %v1512_v61 = vadd.f32 %v1504_v44, %v2301_v59  ;;  %v1509_v23 = vmul.f32 %v1759_v7, %v1490_v47  ;;  %v1482_v58 = vadd.f32 %v1750_v14, %v1481_v25 }
 0x438   : > { %v1835_v34 = vpop.f32.mrf.mxu1 }
 0x439   : > { %1520 = vst [vmem:[%s2472_s18 + $0x8] sm:$0xff] %v1512_v61  ;;  %v1517_v54 = vadd.f32 %v1509_v23, %v2329_v16  ;;  %v1507_v19 = vmul.f32 %v1759_v7, %v1482_v58  ;;  %v1493_v63 = vadd.f32 %v1835_v34, %v1750_v14 }
 0x43a   : > { %v1484_v29 = vpop.f32.mrf.mxu1 }
 0x43b   : > { %1525 = vst [vmem:[%s2472_s18 + $0x30] sm:$0xff] %v1517_v54  ;;  %v1515_v1 = vadd.f32 %v1507_v19, %v2317_v50  ;;  %v1510_v60 = vmul.f32 %v1759_v7, %v1493_v63  ;;  %v1485_v39 = vadd.f32 %v1750_v14, %v1484_v29 }
 0x43d   : > { %1523 = vst [vmem:[%s2472_s18 + $0x20] sm:$0xff] %v1515_v1  ;;  %v1518_v40 = vadd.f32 %v1510_v60, %v2335_v6  ;;  %v1508_v59 = vmul.f32 %v1759_v7, %v1485_v39 }
 0x43f   : > { %1526 = vst [vmem:[%s2472_s18 + $0x38] sm:$0xff] %v1518_v40  ;;  %v1516_v3 = vadd.f32 %v1508_v59, %v2323_v49 }
 0x441   : > { %1524 = vst [vmem:[%s2472_s18 + $0x28] sm:$0xff] %v1516_v3 }
 0x442 PF: > { %s24_s15 = sadd.s32 1, %s1934_s15   ;;  %s2535_s29 = smov %s1930_s30 }
 0x443   : > { %p21_p5 = scmp.ge.s32.totalorder %s24_s15, 4   ;;  %s2536_s30 = smov %s2538_s16 }
 0x445   :  { %23 = sbr.rel (!%p21_p5) target bundleno = 2 (0x2), region = 140 }

// kernel: poolformer_forward.13
= control target key start
LH: loop header
LB: loop body
LE: loop exit
PB: predicated region body
PF: predicated region fallthrough
CT: control target
= control target key end

     0   :  { %s696_s12 = smov 0   ;;  %s792_s0 = inlined_call_operand.vmem [shape: bf16[32,384], index: 0, kind: input, shape index: {}]   ;;  %s793_s1 = inlined_call_operand.vmem [shape: bf16[384,128], index: 1, kind: input, shape index: {}]   ;;  %s794_s2 = inlined_call_operand.vmem [shape: f32[1,128], index: 2, kind: input, shape index: {}]   ;;  %s795_s3 = inlined_call_operand.vmem [shape: f32[32,128], index: 3, kind: output, shape index: {}]  }
   0x1 LB: > { %s537_s13 = sadd.s32 4294967295, %s672_s12   ;;  %p541_p0 = scmp.ge.s32.totalorder %s672_s12, 1  ;;  %s672_s12 = sphi %s696_s12, %s13_s12  }
   0x2   : > { %p139_p1 = scmp.lt.s32.totalorder %s672_s12, 3 }
   0x4   : > { %p140_p2 = pnand %p541_p0, %p139_p1 }
   0x5   : > { %s542_s30 = sshll.u32 (!%p140_p2), %s537_s13, 1 }
   0x6   : > { %143 = sbr.rel (%p140_p2) target bundleno = 250 (0xfa), region = 32  ;;  %p165_p3 = scmp.lt.s32.totalorder (!%p140_p2), %s542_s30, 3 }
   0xb   : > { %v638_v0 = vld [vmem:[%s793_s1 + $0x78] sm:$0xff]   ;;  %v674_v1 = vmov 0.0   ;;  %v641_v4 = vld [vmem:[%s793_s1 + $0x70] sm:$0xff]   ;;  %vm675_vm0 = vmmov 0   ;;  %v644_v7 = vld [vmem:[%s793_s1 + $0x68] sm:$0xff]   ;;  %s797_s30 = smov (!%p165_p3, %s542_s30), 3 }
   0xc   : > { %607 = vmatprep.subr.bf16.mxu1 %v674_v1  ;;  %v639_v2 = vld [vmem:[%s793_s1 + $0x38] sm:$0xff]   ;;  %576 = vmatprep.subr.bf16.mxu0 %v638_v0  ;;  %v642_v5 = vld [vmem:[%s793_s1 + $0x30] sm:$0xff]   ;;  %v645_v8 = vld [vmem:[%s793_s1 + $0x28] sm:$0xff]   ;;  %s627_s23 = smul.u32 12, %s797_s30  ;;  %s545_s18 = sshll.u32 %s797_s30, 3 }
   0xd   : > { %v640_v3 = vld [vmem:[%s793_s1 + $0xb8] sm:$0xff]   ;;  %577 = vmatpush3.bf16.msra.mxu0 %v639_v2  ;;  %623 = vmatprep.mubr.msk.bf16.mxu1 %vm675_vm0, %v674_v1  ;;  %v643_v6 = vld [vmem:[%s793_s1 + $0xb0] sm:$0xff]   ;;  %v646_v9 = vld [vmem:[%s793_s1 + $0xa8] sm:$0xff]   ;;  %s175_s21 = scalar_lea.vmem %s795_s3, %s545_s18 }
   0xe   : > { %608 = vmatpush3.bf16.msra.mxu1 %v640_v3  ;;  %578 = vmatprep.subr.bf16.mxu0 %v641_v4  ;;  %v647_v10 = vld [vmem:[%s793_s1 + $0x60] sm:$0xff]   ;;  %v650_v13 = vld [vmem:[%s793_s1 + $0x58] sm:$0xff]   ;;  %v653_v16 = vld [vmem:[%s793_s1 + $0x50] sm:$0xff]   ;;  %s169_s6 = scalar_lea.vmem %s792_s0, %s627_s23 }
   0xf   : > { %609 = vmatprep.subr.bf16.mxu1 %v674_v1  ;;  %v648_v11 = vld [vmem:[%s793_s1 + $0x20] sm:$0xff]   ;;  %v651_v14 = vld [vmem:[%s793_s1 + $0x18] sm:$0xff]   ;;  %v654_v17 = vld [vmem:[%s793_s1 + $0x10] sm:$0xff]  }
  0x10   : > { %v649_v12 = vld [vmem:[%s793_s1 + $0xa0] sm:$0xff]   ;;  %v652_v15 = vld [vmem:[%s793_s1 + $0x98] sm:$0xff]   ;;  %v655_v18 = vld [vmem:[%s793_s1 + $0x90] sm:$0xff]  }
  0x11   : > { %579 = vmatpush3.bf16.msra.mxu0 %v642_v5  ;;  %v656_v19 = vld [vmem:[%s793_s1 + $0x48] sm:$0xff]   ;;  %v659_v22 = vld [vmem:[%s793_s1 + $0x40] sm:$0xff]  }
  0x12   : > { %610 = vmatpush3.bf16.msra.mxu1 %v643_v6  ;;  %580 = vmatprep.subr.bf16.mxu0 %v644_v7  ;;  %v657_v20 = vld [vmem:[%s793_s1 + $0x8] sm:$0xff]   ;;  %v664_v23 = vld [vmem:[%s169_s6 + $0x4] ss:$12 sps:$4 sm:$0xff]   ;;  %v546_v30 = vld [vmem:[%s794_s2] ss:$0 sm:$0xff] }
  0x13   : > { %611 = vmatprep.subr.bf16.mxu1 %v674_v1  ;;  %v658_v21 = vld [vmem:[%s793_s1 + $0x88] sm:$0xff]   ;;  %v660_v24 = vld [vmem:[%s793_s1] sm:$0xff]   ;;  %429 = vmatprep.mubr.bf16.mxu0 %v664_v23 }
  0x14   : > { %v661_v25 = vld [vmem:[%s793_s1 + $0x80] sm:$0xff]   ;;  %v665_v27 = vld [vmem:[%s169_s6 + $0x8] ss:$12 sps:$4 sm:$0xff]  }
  0x15   : > { %581 = vmatpush3.bf16.msra.mxu0 %v645_v8  ;;  %v662_v26 = vld [vmem:[%s169_s6] ss:$12 sps:$4 sm:$0xff]  }
  0x16   : > { %612 = vmatpush3.bf16.msra.mxu1 %v646_v9  ;;  %582 = vmatprep.subr.bf16.mxu0 %v647_v10 }
  0x17   : > { %613 = vmatprep.subr.bf16.mxu1 %v674_v1 }
  0x19   : > { %583 = vmatpush3.bf16.msra.mxu0 %v648_v11 }
  0x1a   : > { %614 = vmatpush3.bf16.msra.mxu1 %v649_v12  ;;  %584 = vmatprep.subr.bf16.mxu0 %v650_v13 }
  0x1b   : > { %615 = vmatprep.subr.bf16.mxu1 %v674_v1 }
  0x1d   : > { %585 = vmatpush3.bf16.msra.mxu0 %v651_v14 }
  0x1e   : > { %616 = vmatpush3.bf16.msra.mxu1 %v652_v15  ;;  %586 = vmatprep.subr.bf16.mxu0 %v653_v16 }
  0x1f   : > { %617 = vmatprep.subr.bf16.mxu1 %v674_v1 }
  0x21   : > { %587 = vmatpush3.bf16.msra.mxu0 %v654_v17 }
  0x22   : > { %618 = vmatpush3.bf16.msra.mxu1 %v655_v18  ;;  %588 = vmatprep.subr.bf16.mxu0 %v656_v19 }
  0x23   : > { %619 = vmatprep.subr.bf16.mxu1 %v674_v1 }
  0x25   : > { %589 = vmatpush3.bf16.msra.mxu0 %v657_v20 }
  0x26   : > { %620 = vmatpush3.bf16.msra.mxu1 %v658_v21  ;;  %590 = vmatprep.subr.bf16.mxu0 %v659_v22 }
  0x27   : > { %621 = vmatprep.subr.bf16.mxu1 %v674_v1 }
  0x29   : > { %591 = vmatpush3.bf16.msra.mxu0 %v660_v24 }
  0x2a   : > { %622 = vmatpush3.bf16.msra.mxu1 %v661_v25 }
  0x2c   : > { %430 = vmatmul.mubr.bf16.vlgmr.msra.gmra.mxu0 %v662_v26 }
  0x2d   : > { %624 = vmatmul.mubr.bf16.vlgmr.msra.gmra.mxu1 %v665_v27 }
  0xec   : > { %v592_v28 = vpop.f32.mrf.mxu0 }
  0xed   : > { %v472_v29 = vpop.f32.mrf.mxu1 }
  0xee   : > { %v593_v31 = vpop.f32.mrf.mxu0 }
  0xef   : > { %v594_v32 = vadd.f32 %v593_v31, %v592_v28  ;;  %v625_v33 = vpop.f32.mrf.mxu1 }
  0xf0   : > { %v595_v34 = vpop.f32.mrf.mxu0 }
  0xf1   : > { %v432_v35 = vadd.f32 %v594_v32, %v546_v30  ;;  %v475_v36 = vpop.f32.mrf.mxu1 }
  0xf2   : > { %v596_v37 = vpop.f32.mrf.mxu0 }
  0xf3   : > { %v473_v38 = vadd.f32 %v472_v29, %v432_v35  ;;  %v597_v39 = vadd.f32 %v596_v37, %v595_v34  ;;  %v626_v40 = vpop.f32.mrf.mxu1 }
  0xf5   : > { %479 = vst [vmem:[%s175_s21] sm:$0xff] %v473_v38  ;;  %v435_v41 = vadd.f32 %v597_v39, %v546_v30 }
  0xf7   : > { %v476_v42 = vadd.f32 %v475_v36, %v435_v41 }
  0xf9   : > { %480 = vst [vmem:[%s175_s21 + $0x8] sm:$0xff] %v476_v42 }
  0xfa PF: > { %s13_s12 = sadd.s32 1, %s672_s12  }
  0xfb   : > { %p10_p4 = scmp.ge.s32.totalorder %s13_s12, 4  }
  0xfd   :  { %12 = sbr.rel (!%p10_p4) target bundleno = 1 (0x1), region = 62 }

// kernel: poolformer_forward.14
= control target key start
LH: loop header
LB: loop body
LE: loop exit
PB: predicated region body
PF: predicated region fallthrough
CT: control target
= control target key end

     0   :  { %s1564_s29 = smov 0   ;;  %s1566_s30 = smov 0   ;;  %s1742_s0 = inlined_call_operand.vmem [shape: f32[2,16,128], index: 0, kind: input, shape index: {}]   ;;  %s1743_s1 = inlined_call_operand.vmem [shape: f32[16,1], index: 1, kind: input, shape index: {}]   ;;  %s1744_s2 = inlined_call_operand.vmem [shape: f32[16,1], index: 2, kind: input, shape index: {}]   ;;  %s1745_s3 = inlined_call_operand.vmem [shape: f32[16,1], index: 3, kind: input, shape index: {}]   ;;  %s1746_s4 = inlined_call_operand.vmem [shape: f32[1,1,128], index: 4, kind: input, shape index: {}, may-alias: {4,7}]   ;;  %s1747_s5 = inlined_call_operand.vmem [shape: f32[1,1,128], index: 5, kind: input, shape index: {}, may-alias: {5,8,11,13}]   ;;  %s1748_s6 = inlined_call_operand.vmem [shape: f32[1,1,128], index: 6, kind: input, shape index: {}, may-alias: {6,9}]   ;;  %s1749_s7 = inlined_call_operand.vmem [shape: f32[1,1,128], index: 7, kind: input, shape index: {}, may-alias: {4,7}]   ;;  %s1750_s8 = inlined_call_operand.vmem [shape: f32[1,1,128], index: 8, kind: input, shape index: {}, may-alias: {5,8,11,13}]   ;;  %s1751_s9 = inlined_call_operand.vmem [shape: f32[1,1,128], index: 9, kind: input, shape index: {}, may-alias: {6,9}]   ;;  %s1752_s10 = inlined_call_operand.vmem [shape: bf16[1,128,128], index: 10, kind: input, shape index: {}]   ;;  %s1753_s11 = inlined_call_operand.vmem [shape: f32[1,1,128], index: 11, kind: input, shape index: {}, may-alias: {5,8,11,13}]   ;;  %s1754_s12 = inlined_call_operand.vmem [shape: bf16[1,128,128], index: 12, kind: input, shape index: {}]   ;;  %s1755_s13 = inlined_call_operand.vmem [shape: f32[1,1,128], index: 13, kind: input, shape index: {}, may-alias: {5,8,11,13}]   ;;  %s1756_s14 = inlined_call_operand.vmem [shape: f32[2,16,128], index: 14, kind: output, shape index: {}]  }
   0x1   :  { %s1568_s15 = smov 0  }
   0x2 LB: > { %s36_s16 = sadd.s32 1, %s1479_s30  ;;  %p1304_p0 = scmp.ge.s32.totalorder %s1483_s15, 1  ;;  %s1483_s15 = sphi %s1568_s15, %s24_s15   ;;  %s1479_s30 = sphi %s1566_s30, %s1758_s30   ;;  %s1475_s29 = sphi %s1564_s29, %s1757_s29  }
   0x3   : > { %p38_p1 = scmp.ge.s32.totalorder %s36_s16, 2  ;;  %p508_p2 = scmp.lt.s32.totalorder %s1483_s15, 3 }
   0x5   : > { %s1760_s16 = smov (%p38_p1, %s36_s16), 0  ;;  %p509_p3 = pnand %p1304_p0, %p508_p2 }
   0x6   : > { %p588_p4 = scmp.lt.s32.totalorder (!%p509_p3), %s1475_s29, 1  ;;  %s1486_s28 = smov (!%p509_p3), 0.0  }
   0x7   : > { %512 = sbr.rel (%p509_p3) target bundleno = 1046 (0x416), region = 76 }
   0xc   : > { %s1762_s29 = smov (!%p588_p4, %s1475_s29), 1  ;;  %v1485_v6 = vmov 0   ;;  %v713_v7 = vld [vmem:[%s1744_s2] sm:$0xff]  ;;  %v714_v8 = vld [vmem:[%s1744_s2 + $0x8] sm:$0xff]  ;;  %vm700_vm0 = vcmask 1043456   ;;  %vm717_vm1 = vcmask 1040384  }
   0xd   : > { %s1335_s17 = sshll.u32 %s1762_s29, 4  ;;  %1435 = vset.pattern.permute.xlu1 %v1485_v6  ;;  %1436 = vset.pattern.permute.xlu0 %v1485_v6  ;;  %v739_v9 = vld [vmem:[%s1745_s3 + $0x8] sm:$0xff]  ;;  %v761_v10 = vld [vmem:[%s1743_s1] sm:$0xff]  ;;  %vm740_vm2 = vcmask 1046528   ;;  %vm1488_vm3 = vmmov 0  }
   0xe   : > { %s592_s20 = scalar_lea.vmem %s1742_s0, %s1335_s17  ;;  %726 = vperm.xlu1 %1435, %v713_v7   ;;  %v738_v11 = vld [vmem:[%s1745_s3] sm:$0xff]  ;;  %v762_v12 = vld [vmem:[%s1743_s1 + $0x8] sm:$0xff] }
   0xf   : > { %v1590_v0 = vld [vmem:[%s592_s20] sm:$0xff]  ;;  %v1592_v1 = vld [vmem:[%s592_s20 + $0x8] sm:$0xff] }
  0x10   : > { %v643_v2 = vadd.f32 %v1592_v1, %v1590_v0  ;;  %v654_v3 = vmul.f32 %v1590_v0, %v1590_v0  ;;  %v655_v4 = vmul.f32 %v1592_v1, %v1592_v1  ;;  %v1309_v34 = vld [vmem:[%s1746_s4] ss:$0 sm:$0xff] }
  0x11   : > { %v1310_v37 = vld [vmem:[%s1747_s5] ss:$0 sm:$0xff] }
  0x12   : > { %644 = vadd.xlane.f32.xlu0 %v643_v2  ;;  %v656_v5 = vadd.f32 %v655_v4, %v654_v3  ;;  %731 = vperm.xlu1 %1435, %v714_v8  }
  0x16   : > { %657 = vadd.xlane.f32.xlu0 %v656_v5  ;;  %754 = vperm.xlu1 %1435, %v739_v9  }
  0x1a   : > { %765 = vperm.xlu1 %1435, %v761_v10  }
  0x1e   : > { %770 = vperm.xlu1 %1435, %v762_v12   ;;  %v1311_v12 = vld [vmem:[%s1748_s6] ss:$0 sm:$0xff] }
  0x2c   : > { %749 = vperm.xlu0 %1436, %v738_v11  }
  0x89   : > { %v727_v30 = vpop.permute.xlu1 %726 }
  0x8d   : > { %v732_v40 = vpop.permute.xlu1 %731 }
  0x91   : > { %v755_v47 = vpop.permute.xlu1 %754 }
  0x95   : > { %v766_v57 = vpop.permute.xlu1 %765 }
  0x99   : > { %v771_v9 = vpop.permute.xlu1 %770 }
  0x9b   : > { %v645_v13 = vpop.xlane.xlu0 %644 }
  0x9c   : > { %v646_v14 = vrot.slane %v645_v13, 4 }
  0x9e   : > { %v647_v15 = vadd.f32 %v646_v14, %v645_v13 }
  0x9f   : > { %v658_v16 = vpop.xlane.xlu0 %657 }
  0xa0   : > { %v648_v17 = vrot.slane %v647_v15, 2  ;;  %v659_v18 = vrot.slane %v658_v16, 4 }
  0xa2   : > { %v660_v19 = vadd.f32 %v659_v18, %v658_v16  ;;  %v649_v20 = vadd.f32 %v648_v17, %v647_v15 }
  0xa4   : > { %v661_v21 = vrot.slane %v660_v19, 2  ;;  %v650_v22 = vrot.slane %v649_v20, 1 }
  0xa6   : > { %v651_v23 = vadd.f32 %v650_v22, %v649_v20  ;;  %v662_v24 = vadd.f32 %v661_v21, %v660_v19 }
  0xa7   : > { %v750_v62 = vpop.permute.xlu0 %749 }
  0xa8   : > { %1395 = vpush %v651_v23  ;;  %v663_v25 = vrot.slane %v662_v24, 1  ;;  %v1487_v23 = vmov 0.0  }
  0xa9   : > { %1355 = vmatprep.subr.bf16.mxu0 %v1487_v23  ;;  %1375 = vmatprep.subr.bf16.mxu1 %v1487_v23 }
  0xaa   : > { %v664_v26 = vadd.f32 %v663_v25, %v662_v24  ;;  %v1439_v24 = vld [vmem:[%s1752_s10 + $0x28] sm:$0xff]   ;;  %v1440_v25 = vld [vmem:[%s1752_s10 + $0x20] sm:$0xff]   ;;  %1371 = vmatprep.mubr.msk.bf16.mxu0 %vm1488_vm3, %v1487_v23  ;;  %1391 = vmatprep.mubr.msk.bf16.mxu1 %vm1488_vm3, %v1487_v23 }
  0xac   : > { %1397 = vpush %v664_v26  ;;  %v1441_v26 = vld [vmem:[%s1752_s10 + $0x18] sm:$0xff]  }
  0xd9   : > { %s1396_s22 = spop %1395 }
  0xda   : > { %s653_s23 = smul.f32 0.0013020834, %s1396_s22 }
  0xdc   : > { %s667_s24 = smul.f32 %s653_s23, %s653_s23  ;;  %v670_v29 = vstv %s653_s23 }
  0xdd   : > { %s1398_s25 = spop %1397  ;;  %v671_v31 = vsub.f32 %v1590_v0, %v670_v29  ;;  %v672_v32 = vsub.f32 %v1592_v1, %v670_v29 }
  0xde   : > { %s666_s26 = smul.f32 0.0013020834, %s1398_s25 }
  0xe0   : > { %s668_s27 = ssub.f32 %s666_s26, %s667_s24 }
  0xe2   : > { %s669_s18 = smax.f32 %s1486_s28, %s668_s27 }
  0xe3   : > { %s673_s19 = sadd.f32 1e-05, %s669_s18 }
  0xe5   : > { %v674_v27 = vstv %s673_s19 }
  0xe6   : > { %1453 = vrsqrt.f32 %v674_v27  ;;  %v1442_v27 = vld [vmem:[%s1752_s10 + $0x10] sm:$0xff]  }
  0xf3   : > { %v1454_v28 = vpop.eup %1453 }
  0xf4   : > { %1399 = vpush %v1454_v28 }
 0x125   : > { %s1400_s20 = spop %1399 }
 0x126   : > { %v677_v33 = vstv %s1400_s20 }
 0x127   : > { %v678_v35 = vmul.f32 %v677_v33, %v671_v31  ;;  %v679_v36 = vmul.f32 %v677_v33, %v672_v32 }
 0x129   : > { %v687_v38 = vmul.f32 %v1309_v34, %v678_v35  ;;  %v688_v39 = vmul.f32 %v1309_v34, %v679_v36 }
 0x12b   : > { %v696_v41 = vadd.f32 %v1310_v37, %v687_v38  ;;  %v697_v42 = vadd.f32 %v1310_v37, %v688_v39  ;;  %v1443_v39 = vld [vmem:[%s1752_s10 + $0x8] sm:$0xff]  }
 0x12d   : > { %v701_v43 = vrot.slane %v696_v41, 4  ;;  %v702_v44 = vrot.slane %v697_v42, 4 }
 0x12f   : > { %v703_v45 = vsel %vm700_vm0, %v701_v43, %v702_v44  ;;  %v706_v46 = vsel %vm700_vm0, 0.0, %v701_v43  ;;  %v710_v50 = vsel %vm700_vm0, %v702_v44, 0.0  ;;  %v1444_v43 = vld [vmem:[%s1752_s10] sm:$0xff]  }
 0x130   : > { %v707_v48 = vadd.f32 %v706_v46, %v696_v41  ;;  %v708_v49 = vadd.f32 %v703_v45, %v697_v42 }
 0x132   : > { %v711_v51 = vadd.f32 %v707_v48, %v703_v45  ;;  %v712_v52 = vadd.f32 %v710_v50, %v708_v49  ;;  %v1312_v50 = vld [vmem:[%s1749_s7] ss:$0 sm:$0xff] }
 0x134   : > { %v718_v53 = vrot.slane %v711_v51, 7  ;;  %v719_v54 = vrot.slane %v712_v52, 7  ;;  %v742_v55 = vrot.slane %v712_v52, 1  ;;  %v741_v56 = vrot.slane %v711_v51, 1 }
 0x136   : > { %v720_v58 = vsel %vm717_vm1, %v718_v53, %v719_v54  ;;  %v746_v59 = vsel %vm740_vm2, %v742_v55, 0.0  ;;  %v723_v60 = vsel %vm717_vm1, 0.0, %v718_v53  ;;  %v743_v61 = vsel %vm740_vm2, %v741_v56, %v742_v55  ;;  %v1313_v53 = vld [vmem:[%s1750_s8] ss:$0 sm:$0xff] }
 0x137   : > { %v735_v63 = vmul.f32 %v732_v40, %v720_v58  ;;  %v734_v2 = vmul.f32 %v727_v30, %v723_v60  ;;  %v758_v4 = vmul.f32 %v755_v47, %v746_v59  ;;  %v757_v6 = vmul.f32 %v750_v62, %v743_v61  ;;  %v1445_v59 = vld [vmem:[%s1754_s12 + $0x38] sm:$0xff]   ;;  %v1446_v60 = vld [vmem:[%s1754_s12 + $0x30] sm:$0xff]   ;;  %v1447_v61 = vld [vmem:[%s1754_s12 + $0x28] sm:$0xff]  }
 0x138   : > { %1376 = vmatpush3.bf16.msra.mxu1 %v1445_v59  ;;  %v1448_v62 = vld [vmem:[%s1754_s12 + $0x20] sm:$0xff]  }
 0x139   : > { %v737_v3 = vadd.f32 %v735_v63, %v712_v52  ;;  %v736_v5 = vadd.f32 %v734_v2, %v711_v51  ;;  %1377 = vmatprep.subr.bf16.mxu1 %v1487_v23  ;;  %v1449_v63 = vld [vmem:[%s1754_s12 + $0x18] sm:$0xff]   ;;  %v1450_v2 = vld [vmem:[%s1754_s12 + $0x10] sm:$0xff]  }
 0x13b   : > { %v760_v7 = vadd.f32 %v758_v4, %v737_v3  ;;  %v759_v8 = vadd.f32 %v757_v6, %v736_v5  ;;  %v1451_v3 = vld [vmem:[%s1754_s12 + $0x8] sm:$0xff]   ;;  %v1452_v4 = vld [vmem:[%s1754_s12] sm:$0xff]  }
 0x13c   : > { %1378 = vmatpush3.bf16.msra.mxu1 %v1446_v60  ;;  %v1314_v5 = vld [vmem:[%s1753_s11] ss:$0 sm:$0xff] }
 0x13d   : > { %v774_v10 = vmul.f32 %v771_v9, %v760_v7  ;;  %v773_v11 = vmul.f32 %v766_v57, %v759_v8  ;;  %1379 = vmatprep.subr.bf16.mxu1 %v1487_v23 }
 0x13f   : > { %v776_v13 = vsub.f32 %v774_v10, %v697_v42  ;;  %v775_v14 = vsub.f32 %v773_v11, %v696_v41 }
 0x140   : > { %1380 = vmatpush3.bf16.msra.mxu1 %v1447_v61 }
 0x141   : > { %v785_v15 = vmul.f32 %v1311_v12, %v776_v13  ;;  %v784_v16 = vmul.f32 %v1311_v12, %v775_v14  ;;  %1381 = vmatprep.subr.bf16.mxu1 %v1487_v23 }
 0x143   : > { %v1631_v17 = vadd.f32 %v785_v15, %v1592_v1  ;;  %v1634_v18 = vadd.f32 %v784_v16, %v1590_v0  ;;  %v1437_v1 = vld [vmem:[%s1752_s10 + $0x38] sm:$0xff]   ;;  %v1438_v0 = vld [vmem:[%s1752_s10 + $0x30] sm:$0xff]  }
 0x144   : > { %1356 = vmatpush3.bf16.msra.mxu0 %v1437_v1  ;;  %1382 = vmatpush3.bf16.msra.mxu1 %v1448_v62 }
 0x145   : > { %v788_v19 = vadd.f32 %v1631_v17, %v1634_v18  ;;  %v799_v20 = vmul.f32 %v1634_v18, %v1634_v18  ;;  %v800_v21 = vmul.f32 %v1631_v17, %v1631_v17  ;;  %1357 = vmatprep.subr.bf16.mxu0 %v1487_v23  ;;  %1383 = vmatprep.subr.bf16.mxu1 %v1487_v23 }
 0x147   : > { %789 = vadd.xlane.f32.xlu1 %v788_v19  ;;  %v801_v22 = vadd.f32 %v800_v21, %v799_v20 }
 0x148   : > { %1358 = vmatpush3.bf16.msra.mxu0 %v1438_v0  ;;  %1384 = vmatpush3.bf16.msra.mxu1 %v1449_v63 }
 0x149   : > { %802 = vadd.xlane.f32.xlu0 %v801_v22  ;;  %1359 = vmatprep.subr.bf16.mxu0 %v1487_v23 }
 0x14a   : > { %1385 = vmatprep.subr.bf16.mxu1 %v1487_v23 }
 0x14c   : > { %1360 = vmatpush3.bf16.msra.mxu0 %v1439_v24  ;;  %1386 = vmatpush3.bf16.msra.mxu1 %v1450_v2 }
 0x14d   : > { %1361 = vmatprep.subr.bf16.mxu0 %v1487_v23  ;;  %1387 = vmatprep.subr.bf16.mxu1 %v1487_v23 }
 0x150   : > { %1362 = vmatpush3.bf16.msra.mxu0 %v1440_v25  ;;  %1388 = vmatpush3.bf16.msra.mxu1 %v1451_v3 }
 0x151   : > { %1363 = vmatprep.subr.bf16.mxu0 %v1487_v23  ;;  %1389 = vmatprep.subr.bf16.mxu1 %v1487_v23 }
 0x154   : > { %1364 = vmatpush3.bf16.msra.mxu0 %v1441_v26  ;;  %1390 = vmatpush3.bf16.msra.mxu1 %v1452_v4 }
 0x155   : > { %1365 = vmatprep.subr.bf16.mxu0 %v1487_v23 }
 0x158   : > { %1366 = vmatpush3.bf16.msra.mxu0 %v1442_v27 }
 0x159   : > { %1367 = vmatprep.subr.bf16.mxu0 %v1487_v23 }
 0x15c   : > { %1368 = vmatpush3.bf16.msra.mxu0 %v1443_v39 }
 0x15d   : > { %1369 = vmatprep.subr.bf16.mxu0 %v1487_v23 }
 0x160   : > { %1370 = vmatpush3.bf16.msra.mxu0 %v1444_v43 }
 0x1d0   : > { %v790_v28 = vpop.xlane.xlu1 %789 }
 0x1d1   : > { %v791_v29 = vrot.slane %v790_v28, 4 }
 0x1d2   : > { %v803_v30 = vpop.xlane.xlu0 %802 }
 0x1d3   : > { %v792_v31 = vadd.f32 %v791_v29, %v790_v28  ;;  %v804_v32 = vrot.slane %v803_v30, 4 }
 0x1d5   : > { %v793_v33 = vrot.slane %v792_v31, 2  ;;  %v805_v34 = vadd.f32 %v804_v32, %v803_v30 }
 0x1d7   : > { %v794_v35 = vadd.f32 %v793_v33, %v792_v31  ;;  %v806_v36 = vrot.slane %v805_v34, 2  ;;  %v1323_v31 = vld [vmem:[%s1755_s13] ss:$0 sm:$0xff] }
 0x1d8   : > { %v1332_v33 = vld [vmem:[%s1751_s9] ss:$0 sm:$0xff] }
 0x1d9   : > { %v807_v37 = vadd.f32 %v806_v36, %v805_v34  ;;  %v795_v38 = vrot.slane %v794_v35, 1 }
 0x1db   : > { %v796_v40 = vadd.f32 %v795_v38, %v794_v35  ;;  %v808_v41 = vrot.slane %v807_v37, 1 }
 0x1dd   : > { %1401 = vpush %v796_v40  ;;  %v809_v42 = vadd.f32 %v808_v41, %v807_v37 }
 0x1df   : > { %1403 = vpush %v809_v42 }
 0x20e   : > { %s1402_s24 = spop %1401 }
 0x20f   : > { %s798_s25 = smul.f32 0.0013020834, %s1402_s24 }
 0x210   : > { %s1404_s23 = spop %1403 }
 0x211   : > { %s812_s26 = smul.f32 %s798_s25, %s798_s25  ;;  %v815_v46 = vstv %s798_s25 }
 0x212   : > { %s811_s27 = smul.f32 0.0013020834, %s1404_s23  ;;  %v816_v47 = vsub.f32 %v1634_v18, %v815_v46  ;;  %v817_v48 = vsub.f32 %v1631_v17, %v815_v46 }
 0x214   : > { %s813_s18 = ssub.f32 %s811_s27, %s812_s26  ;;  %s631_s27 = scalar_lea.vmem %s1756_s14, %s1335_s17 }
 0x216   : > { %s814_s19 = smax.f32 %s1486_s28, %s813_s18 }
 0x217   : > { %s818_s20 = sadd.f32 1e-05, %s814_s19 }
 0x219   : > { %v819_v44 = vstv %s818_s20 }
 0x21a   : > { %1455 = vrsqrt.f32 %v819_v44 }
 0x227   : > { %v1456_v45 = vpop.eup %1455 }
 0x228   : > { %1405 = vpush %v1456_v45 }
 0x259   : > { %s1406_s21 = spop %1405 }
 0x25a   : > { %v822_v49 = vstv %s1406_s21 }
 0x25b   : > { %v823_v51 = vmul.f32 %v822_v49, %v816_v47  ;;  %v824_v52 = vmul.f32 %v822_v49, %v817_v48 }
 0x25d   : > { %v832_v54 = vmul.f32 %v1312_v50, %v823_v51  ;;  %v833_v55 = vmul.f32 %v1312_v50, %v824_v52 }
 0x25f   : > { %v841_v56 = vadd.f32 %v1313_v53, %v832_v54  ;;  %v842_v57 = vadd.f32 %v1313_v53, %v833_v55 }
 0x261   : > { %v843_v58 = vpack.c.bf16 %v842_v57, %v841_v56 }
 0x263   : > { %1372 = vmatmul.mubr.bf16.vlgmr.msra.gmra.mxu0 %v843_v58 }
 0x323   : > { %v949_v6 = vpop.f32.mrf.mxu0 }
 0x324   : > { %v950_v7 = vadd.f32 %v1314_v5, %v949_v6 }
 0x325   : > { %v1373_v8 = vpop.f32.mrf.mxu0 }
 0x326   : > { %v956_v9 = vmul.f32 %v950_v7, %v950_v7 }
 0x327   : > { %v952_v10 = vpop.f32.mrf.mxu0 }
 0x328   : > { %v958_v11 = vmul.f32 %v956_v9, %v950_v7  ;;  %v953_v12 = vadd.f32 %v1314_v5, %v952_v10 }
 0x329   : > { %v1374_v13 = vpop.f32.mrf.mxu0 }
 0x32a   : > { %v960_v14 = vmul.f32 0.044715, %v958_v11  ;;  %v957_v15 = vmul.f32 %v953_v12, %v953_v12 }
 0x32c   : > { %v962_v16 = vadd.f32 %v960_v14, %v950_v7  ;;  %v959_v19 = vmul.f32 %v957_v15, %v953_v12 }
 0x32e   : > { %v964_v20 = vmul.f32 0.7978846, %v962_v16  ;;  %v961_v21 = vmul.f32 0.044715, %v959_v19 }
 0x330   : > { %1457 = vtanh.f32 %v964_v20  ;;  %v963_v22 = vadd.f32 %v961_v21, %v953_v12 }
 0x332   : > { %v965_v1 = vmul.f32 0.7978846, %v963_v22 }
 0x334   : > { %1459 = vtanh.f32 %v965_v1 }
 0x33d   : > { %v1458_v23 = vpop.eup %1457 }
 0x33e   : > { %v968_v0 = vadd.f32 1.0, %v1458_v23 }
 0x340   : > { %v970_v26 = vmul.f32 0.5, %v968_v0 }
 0x341   : > { %v1460_v24 = vpop.eup %1459 }
 0x342   : > { %v969_v25 = vadd.f32 1.0, %v1460_v24  ;;  %v972_v28 = vmul.f32 %v970_v26, %v950_v7 }
 0x344   : > { %v971_v27 = vmul.f32 0.5, %v969_v25 }
 0x346   : > { %v973_v29 = vmul.f32 %v971_v27, %v953_v12 }
 0x348   : > { %v974_v30 = vpack.c.bf16 %v973_v29, %v972_v28 }
 0x34a   : > { %1392 = vmatmul.mubr.bf16.vlgmr.msra.gmra.mxu1 %v974_v30 }
 0x40a   : > { %v1080_v32 = vpop.f32.mrf.mxu1 }
 0x40b   : > { %v1081_v34 = vadd.f32 %v1323_v31, %v1080_v32 }
 0x40c   : > { %v1393_v35 = vpop.f32.mrf.mxu1 }
 0x40d   : > { %v1094_v36 = vmul.f32 %v1332_v33, %v1081_v34 }
 0x40e   : > { %v1083_v37 = vpop.f32.mrf.mxu1 }
 0x40f   : > { %v1096_v38 = vadd.f32 %v1094_v36, %v1634_v18  ;;  %v1084_v39 = vadd.f32 %v1323_v31, %v1083_v37 }
 0x410   : > { %v1394_v40 = vpop.f32.mrf.mxu1 }
 0x411   : > { %1098 = vst [vmem:[%s631_s27] sm:$0xff] %v1096_v38  ;;  %v1095_v41 = vmul.f32 %v1332_v33, %v1084_v39 }
 0x413   : > { %v1097_v42 = vadd.f32 %v1095_v41, %v1631_v17 }
 0x415   : > { %1099 = vst [vmem:[%s631_s27 + $0x8] sm:$0xff] %v1097_v42 }
 0x416 PF: > { %s24_s15 = sadd.s32 1, %s1483_s15   ;;  %s1757_s29 = smov %s1479_s30 }
 0x417   : > { %p21_p5 = scmp.ge.s32.totalorder %s24_s15, 4   ;;  %s1758_s30 = smov %s1760_s16 }
 0x419   :  { %23 = sbr.rel (!%p21_p5) target bundleno = 2 (0x2), region = 140 }

// kernel: poolformer_forward.15
= control target key start
LH: loop header
LB: loop body
LE: loop exit
PB: predicated region body
PF: predicated region fallthrough
CT: control target
= control target key end

     0   :  { %s624_s1 = inlined_call_operand.vmem [shape: bf16[512,128], index: 1, kind: input, shape index: {}]   ;;  %s625_s0 = inlined_call_operand.vmem [shape: bf16[8,512], index: 0, kind: input, shape index: {}]   ;;  %s626_s2 = inlined_call_operand.vmem [shape: f32[1,128], index: 2, kind: input, shape index: {}]   ;;  %s627_s3 = inlined_call_operand.vmem [shape: f32[8,128], index: 3, kind: output, shape index: {}]  }
   0x1   :  { %v460_v0 = vld [vmem:[%s624_s1 + $0x78] sm:$0xff]   ;;  %v464_v4 = vld [vmem:[%s624_s1 + $0x70] sm:$0xff]   ;;  %v468_v8 = vld [vmem:[%s624_s1 + $0x68] sm:$0xff]  }
   0x2   :  { %v461_v1 = vld [vmem:[%s624_s1 + $0xf8] sm:$0xff]   ;;  %416 = vmatprep.subr.bf16.mxu0 %v460_v0  ;;  %v465_v5 = vld [vmem:[%s624_s1 + $0xf0] sm:$0xff]   ;;  %v469_v9 = vld [vmem:[%s624_s1 + $0xe8] sm:$0xff]  }
   0x3   :  { %v462_v2 = vld [vmem:[%s624_s1 + $0x38] sm:$0xff]   ;;  %438 = vmatprep.subr.bf16.mxu1 %v461_v1  ;;  %v466_v6 = vld [vmem:[%s624_s1 + $0x30] sm:$0xff]   ;;  %v470_v10 = vld [vmem:[%s624_s1 + $0x28] sm:$0xff]  }
   0x4   :  { %v463_v3 = vld [vmem:[%s624_s1 + $0xb8] sm:$0xff]   ;;  %417 = vmatpush3.bf16.msra.mxu0 %v462_v2  ;;  %v467_v7 = vld [vmem:[%s624_s1 + $0xb0] sm:$0xff]   ;;  %v471_v11 = vld [vmem:[%s624_s1 + $0xa8] sm:$0xff]  }
   0x5   :  { %439 = vmatpush3.bf16.msra.mxu1 %v463_v3  ;;  %418 = vmatprep.subr.bf16.mxu0 %v464_v4  ;;  %v472_v12 = vld [vmem:[%s624_s1 + $0x60] sm:$0xff]   ;;  %v476_v16 = vld [vmem:[%s624_s1 + $0x58] sm:$0xff]   ;;  %v480_v20 = vld [vmem:[%s624_s1 + $0x50] sm:$0xff]  }
   0x6   :  { %440 = vmatprep.subr.bf16.mxu1 %v465_v5  ;;  %v473_v13 = vld [vmem:[%s624_s1 + $0xe0] sm:$0xff]   ;;  %v477_v17 = vld [vmem:[%s624_s1 + $0xd8] sm:$0xff]   ;;  %v481_v21 = vld [vmem:[%s624_s1 + $0xd0] sm:$0xff]  }
   0x7   :  { %v474_v14 = vld [vmem:[%s624_s1 + $0x20] sm:$0xff]   ;;  %v478_v18 = vld [vmem:[%s624_s1 + $0x18] sm:$0xff]   ;;  %v482_v22 = vld [vmem:[%s624_s1 + $0x10] sm:$0xff]  }
   0x8   :  { %419 = vmatpush3.bf16.msra.mxu0 %v466_v6  ;;  %v475_v15 = vld [vmem:[%s624_s1 + $0xa0] sm:$0xff]   ;;  %v479_v19 = vld [vmem:[%s624_s1 + $0x98] sm:$0xff]   ;;  %v483_v23 = vld [vmem:[%s624_s1 + $0x90] sm:$0xff]  }
   0x9   :  { %441 = vmatpush3.bf16.msra.mxu1 %v467_v7  ;;  %420 = vmatprep.subr.bf16.mxu0 %v468_v8  ;;  %v484_v24 = vld [vmem:[%s624_s1 + $0x48] sm:$0xff]   ;;  %v488_v28 = vld [vmem:[%s624_s1 + $0x40] sm:$0xff]  }
   0xa   :  { %442 = vmatprep.subr.bf16.mxu1 %v469_v9  ;;  %v485_v25 = vld [vmem:[%s624_s1 + $0xc8] sm:$0xff]   ;;  %v489_v29 = vld [vmem:[%s624_s1 + $0xc0] sm:$0xff]  }
   0xb   :  { %v486_v26 = vld [vmem:[%s624_s1 + $0x8] sm:$0xff]   ;;  %v490_v30 = vld [vmem:[%s624_s1] sm:$0xff]  }
   0xc   :  { %421 = vmatpush3.bf16.msra.mxu0 %v470_v10  ;;  %v487_v27 = vld [vmem:[%s624_s1 + $0x88] sm:$0xff]   ;;  %v491_v31 = vld [vmem:[%s624_s1 + $0x80] sm:$0xff]  }
   0xd   :  { %443 = vmatpush3.bf16.msra.mxu1 %v471_v11  ;;  %422 = vmatprep.subr.bf16.mxu0 %v472_v12  ;;  %v15_v32 = vld [vmem:[%s625_s0] sm:$0xff]  ;;  %v16_v33 = vld [vmem:[%s625_s0 + $0x8] sm:$0xff] }
   0xe   :  { %444 = vmatprep.subr.bf16.mxu1 %v473_v13  ;;  %v380_v34 = vcombine.low %v15_v32, %v15_v32  ;;  %v381_v35 = vcombine.high %v15_v32, %v15_v32  ;;  %v382_v36 = vcombine.low %v16_v33, %v16_v33  ;;  %v383_v37 = vcombine.high %v16_v33, %v16_v33  ;;  %v379_v40 = vld [vmem:[%s626_s2] ss:$0 sm:$0xff] }
  0x10   :  { %423 = vmatpush3.bf16.msra.mxu0 %v474_v14  ;;  %326 = vmatprep.mubr.bf16.mxu0 %v381_v35 }
  0x11   :  { %445 = vmatpush3.bf16.msra.mxu1 %v475_v15  ;;  %424 = vmatprep.subr.bf16.mxu0 %v476_v16 }
  0x12   :  { %446 = vmatprep.subr.bf16.mxu1 %v477_v17  ;;  %366 = vmatprep.mubr.bf16.mxu1 %v383_v37 }
  0x14   :  { %425 = vmatpush3.bf16.msra.mxu0 %v478_v18 }
  0x15   :  { %447 = vmatpush3.bf16.msra.mxu1 %v479_v19  ;;  %426 = vmatprep.subr.bf16.mxu0 %v480_v20 }
  0x16   :  { %448 = vmatprep.subr.bf16.mxu1 %v481_v21 }
  0x18   :  { %427 = vmatpush3.bf16.msra.mxu0 %v482_v22 }
  0x19   :  { %449 = vmatpush3.bf16.msra.mxu1 %v483_v23  ;;  %428 = vmatprep.subr.bf16.mxu0 %v484_v24 }
  0x1a   :  { %450 = vmatprep.subr.bf16.mxu1 %v485_v25 }
  0x1c   :  { %429 = vmatpush3.bf16.msra.mxu0 %v486_v26 }
  0x1d   :  { %451 = vmatpush3.bf16.msra.mxu1 %v487_v27  ;;  %430 = vmatprep.subr.bf16.mxu0 %v488_v28 }
  0x1e   :  { %452 = vmatprep.subr.bf16.mxu1 %v489_v29 }
  0x20   :  { %431 = vmatpush3.bf16.msra.mxu0 %v490_v30 }
  0x21   :  { %453 = vmatpush3.bf16.msra.mxu1 %v491_v31 }
  0x23   :  { %327 = vmatmul.mubr.bf16.vlgmr.msra.gmra.mxu0 %v380_v34 }
  0x24   :  { %367 = vmatmul.mubr.bf16.vlgmr.msra.gmra.mxu1 %v382_v36 }
  0xe3   :  { %v432_v38 = vpop.f32.mrf.mxu0 }
  0xe4   :  { %v454_v39 = vpop.f32.mrf.mxu1 }
  0xe5   :  { %v433_v41 = vpop.f32.mrf.mxu0 }
  0xe6   :  { %v455_v42 = vpop.f32.mrf.mxu1  ;;  %v434_v43 = vadd.f32 %v433_v41, %v432_v38 }
  0xe7   :  { %v435_v44 = vpop.f32.mrf.mxu0  ;;  %v456_v47 = vadd.f32 %v455_v42, %v454_v39 }
  0xe8   :  { %v457_v45 = vpop.f32.mrf.mxu1  ;;  %v329_v46 = vadd.f32 %v434_v43, %v379_v40 }
  0xe9   :  { %v436_v48 = vpop.f32.mrf.mxu0 }
  0xea   :  { %v458_v49 = vpop.f32.mrf.mxu1  ;;  %v369_v50 = vadd.f32 %v456_v47, %v329_v46 }
  0xec   :  { %374 = vst [vmem:[%s627_s3] sm:$0xff] %v369_v50 }

// kernel: poolformer_forward.17
= control target key start
LH: loop header
LB: loop body
LE: loop exit
PB: predicated region body
PF: predicated region fallthrough
CT: control target
= control target key end

     0   :  { %vm23_vm0 = vcmask 1043456   ;;  %s449_s0 = inlined_call_operand.vmem [shape: f32[2,4,128], index: 0, kind: input, shape index: {}]   ;;  %s450_s1 = inlined_call_operand.vmem [shape: f32[1,128], index: 1, kind: input, shape index: {}]   ;;  %s451_s2 = inlined_call_operand.vmem [shape: f32[1,128], index: 2, kind: input, shape index: {}, may-alias: {2,4}]   ;;  %s452_s3 = inlined_call_operand.vmem [shape: bf16[128,128], index: 3, kind: input, shape index: {}]   ;;  %s453_s4 = inlined_call_operand.vmem [shape: f32[1,128], index: 4, kind: input, shape index: {}, may-alias: {2,4}]   ;;  %s454_s5 = inlined_call_operand.hbm [shape: f32[2,128], index: 5, kind: output, shape index: {}]  }
   0x1   :  { %v385_v0 = vld [vmem:[%s449_s0] sm:$0xf]  ;;  %v390_v1 = vld [vmem:[%s449_s0 + $0x4] sm:$0xf] }
   0x2   :  { %v24_v2 = vsel %vm23_vm0, %v385_v0, 0.0  ;;  %v35_v3 = vmul.f32 %v385_v0, %v385_v0  ;;  %v84_v4 = vsel %vm23_vm0, %v390_v1, 0.0  ;;  %v95_v5 = vmul.f32 %v390_v1, %v390_v1 }
   0x3   :  { %25 = vadd.xlane.f32.xlu0 %v24_v2  ;;  %85 = vadd.xlane.f32.xlu1 %v84_v4 }
   0x4   :  { %v36_v6 = vsel %vm23_vm0, %v35_v3, 0.0  ;;  %v96_v7 = vsel %vm23_vm0, %v95_v5, 0.0 }
   0x7   :  { %37 = vadd.xlane.f32.xlu0 %v36_v6  ;;  %97 = vadd.xlane.f32.xlu1 %v96_v7 }
   0x8   :  { %10 = vsyncpa [#allocation3], 0  ;;  %v314_v22 = vld [vmem:[%s452_s3 + $0x38] sm:$0xff]   ;;  %v348_v23 = vmov 0.0   ;;  %v315_v24 = vld [vmem:[%s452_s3 + $0x30] sm:$0xff]   ;;  %s349_s6 = smov 0.0  }
   0x9   :  { %278 = vmatprep.subr.bf16.mxu0 %v348_v23  ;;  %v316_v38 = vld [vmem:[%s452_s3 + $0x28] sm:$0xff]   ;;  %v317_v42 = vld [vmem:[%s452_s3 + $0x20] sm:$0xff]   ;;  %v318_v43 = vld [vmem:[%s452_s3 + $0x18] sm:$0xff]   ;;  %vm350_vm1 = vmmov 0   ;;  %vm128_vm2 = vcmask 1040384  }
   0xa   :  { %279 = vmatpush3.bf16.msra.mxu0 %v314_v22  ;;  %v319_v44 = vld [vmem:[%s452_s3 + $0x10] sm:$0xff]   ;;  %v320_v45 = vld [vmem:[%s452_s3 + $0x8] sm:$0xff]   ;;  %294 = vmatprep.mubr.msk.bf16.mxu0 %vm350_vm1, %v348_v23  ;;  %v321_v46 = vld [vmem:[%s452_s3] sm:$0xff]  }
   0xb   :  { %280 = vmatprep.subr.bf16.mxu0 %v348_v23  ;;  %v257_v53 = vld [vmem:[%s450_s1] ss:$0 sm:$0xff] }
   0xc   :  { %v258_v55 = vld [vmem:[%s451_s2] ss:$0 sm:$0xff] }
   0xe   :  { %281 = vmatpush3.bf16.msra.mxu0 %v315_v24 }
   0xf   :  { %282 = vmatprep.subr.bf16.mxu0 %v348_v23 }
  0x12   :  { %283 = vmatpush3.bf16.msra.mxu0 %v316_v38 }
  0x13   :  { %284 = vmatprep.subr.bf16.mxu0 %v348_v23 }
  0x16   :  { %285 = vmatpush3.bf16.msra.mxu0 %v317_v42 }
  0x17   :  { %286 = vmatprep.subr.bf16.mxu0 %v348_v23 }
  0x1a   :  { %287 = vmatpush3.bf16.msra.mxu0 %v318_v43 }
  0x1b   :  { %288 = vmatprep.subr.bf16.mxu0 %v348_v23 }
  0x1e   :  { %289 = vmatpush3.bf16.msra.mxu0 %v319_v44 }
  0x1f   :  { %290 = vmatprep.subr.bf16.mxu0 %v348_v23 }
  0x22   :  { %291 = vmatpush3.bf16.msra.mxu0 %v320_v45 }
  0x23   :  { %292 = vmatprep.subr.bf16.mxu0 %v348_v23 }
  0x26   :  { %293 = vmatpush3.bf16.msra.mxu0 %v321_v46 }
  0x8c   :  { %v26_v8 = vpop.xlane.xlu0 %25  ;;  %v86_v25 = vpop.xlane.xlu1 %85 }
  0x8d   :  { %v27_v9 = vrot.slane %v26_v8, 4  ;;  %v87_v27 = vrot.slane %v86_v25, 4 }
  0x8f   :  { %v28_v10 = vadd.f32 %v27_v9, %v26_v8  ;;  %v88_v29 = vadd.f32 %v87_v27, %v86_v25 }
  0x90   :  { %v38_v11 = vpop.xlane.xlu0 %37  ;;  %v98_v26 = vpop.xlane.xlu1 %97 }
  0x91   :  { %v29_v12 = vrot.slane %v28_v10, 2  ;;  %v39_v13 = vrot.slane %v38_v11, 4  ;;  %v99_v28 = vrot.slane %v98_v26, 4  ;;  %v89_v32 = vrot.slane %v88_v29, 2 }
  0x93   :  { %v40_v14 = vadd.f32 %v39_v13, %v38_v11  ;;  %v30_v15 = vadd.f32 %v29_v12, %v28_v10  ;;  %v100_v30 = vadd.f32 %v99_v28, %v98_v26  ;;  %v90_v34 = vadd.f32 %v89_v32, %v88_v29 }
  0x95   :  { %v41_v16 = vrot.slane %v40_v14, 2  ;;  %v31_v17 = vrot.slane %v30_v15, 1  ;;  %v101_v33 = vrot.slane %v100_v30, 2  ;;  %v91_v36 = vrot.slane %v90_v34, 1 }
  0x97   :  { %v42_v18 = vadd.f32 %v41_v16, %v40_v14  ;;  %v32_v19 = vadd.f32 %v31_v17, %v30_v15  ;;  %v102_v35 = vadd.f32 %v101_v33, %v100_v30  ;;  %v92_v40 = vadd.f32 %v91_v36, %v90_v34  ;;  %v260_v17 = vld [vmem:[%s453_s4] ss:$0 sm:$0xff] }
  0x99   :  { %298 = vpush %v32_v19  ;;  %v43_v20 = vrot.slane %v42_v18, 1  ;;  %v103_v37 = vrot.slane %v102_v35, 1 }
  0x9b   :  { %v44_v21 = vadd.f32 %v43_v20, %v42_v18  ;;  %v104_v41 = vadd.f32 %v103_v37, %v102_v35 }
  0x9d   :  { %300 = vpush %v44_v21 }
  0xca   :  { %s299_s25 = spop %298 }
  0xcb   :  { %s408_s26 = smul.f32 0.00390625, %s299_s25 }
  0xcd   :  { %s47_s27 = smul.f32 %s408_s26, %s408_s26  ;;  %v50_v47 = vstv %s408_s26 }
  0xce   :  { %s301_s28 = spop %300  ;;  %v51_v48 = vsub.f32 %v385_v0, %v50_v47 }
  0xcf   :  { %s46_s29 = smul.f32 0.00390625, %s301_s28 }
  0xd1   :  { %s48_s30 = ssub.f32 %s46_s29, %s47_s27 }
  0xd3   :  { %s49_s7 = smax.f32 %s349_s6, %s48_s30 }
  0xd4   :  { %s52_s8 = sadd.f32 1e-05, %s49_s7 }
  0xd6   :  { %v53_v31 = vstv %s52_s8  ;;  %s351_s8 = smov [#allocation2]  }
  0xd7   :  { %322 = vrsqrt.f32 %v53_v31  ;;  %s249_s9 = sshll.u32 %s351_s8, 4  ;;  %s250_s9 = int_to_ptr.vmem [resolvable:$true] %s249_s9 }
  0xd8   :  { %s326_s10 = scalar_lea.vmem %s250_s9, 32  ;;  %p331_p1 = scmp.lt.s32.totalorder %s250_s9, %s250_s9 }
  0xd9   :  { %p327_p0 = scmp.ne.s32.totalorder %s250_s9, %s326_s10  ;;  %p332_p2 = scmp.lt.s32.totalorder %s326_s10, %s326_s10 }
  0xdb   :  { %p333_p3 = por %p332_p2, %p331_p1 }
  0xdd   :  { %p334_p4 = pnand %p333_p3, %p327_p0 }
  0xe4   :  { %v323_v39 = vpop.eup %322 }
  0xe5   :  { %302 = vpush %v323_v39 }
  0xe6   :  { %304 = vpush %v92_v40 }
  0xe7   :  { %306 = vpush %v104_v41 }
 0x116   :  { %s303_s21 = spop %302 }
 0x117   :  { %v56_v49 = vstv %s303_s21  ;;  %s305_s0 = spop %304 }
 0x118   :  { %v57_v50 = vmul.f32 %v56_v49, %v51_v48  ;;  %s94_s22 = smul.f32 0.00390625, %s305_s0  ;;  %s307_s23 = spop %306 }
 0x119   :  { %s106_s24 = smul.f32 0.00390625, %s307_s23 }
 0x11a   :  { %s107_s25 = smul.f32 %s94_s22, %s94_s22  ;;  %v65_v54 = vmul.f32 %v257_v53, %v57_v50  ;;  %v110_v59 = vstv %s94_s22 }
 0x11b   :  { %v111_v60 = vsub.f32 %v390_v1, %v110_v59 }
 0x11c   :  { %s108_s27 = ssub.f32 %s106_s24, %s107_s25  ;;  %v73_v56 = vadd.f32 %v258_v55, %v65_v54 }
 0x11e   :  { %s109_s28 = smax.f32 %s349_s6, %s108_s27  ;;  %v74_v57 = vsel %vm23_vm0, %v73_v56, 0.0 }
 0x11f   :  { %s112_s29 = sadd.f32 1e-05, %s109_s28  ;;  %v75_v58 = vrot.slane %v74_v57, 4 }
 0x121   :  { %v113_v51 = vstv %s112_s29  ;;  %v76_v61 = vadd.f32 %v75_v58, %v74_v57 }
 0x122   :  { %324 = vrsqrt.f32 %v113_v51 }
 0x123   :  { %v77_v2 = vrot.slane %v76_v61, 2 }
 0x125   :  { %v78_v5 = vadd.f32 %v77_v2, %v76_v61 }
 0x127   :  { %v79_v9 = vrot.slane %v78_v5, 1 }
 0x129   :  { %v80_v11 = vadd.f32 %v79_v9, %v78_v5 }
 0x12b   :  { %v81_v1 = vmul.f32 0.25, %v80_v11 }
 0x12f   :  { %v325_v52 = vpop.eup %324 }
 0x130   :  { %308 = vpush %v325_v52 }
 0x161   :  { %s309_s6 = spop %308 }
 0x162   :  { %v116_v62 = vstv %s309_s6 }
 0x163   :  { %v117_v63 = vmul.f32 %v116_v62, %v111_v60 }
 0x165   :  { %v118_v0 = vmul.f32 %v257_v53, %v117_v63 }
 0x167   :  { %v119_v3 = vadd.f32 %v258_v55, %v118_v0 }
 0x169   :  { %v120_v4 = vsel %vm23_vm0, %v119_v3, 0.0 }
 0x16a   :  { %v121_v6 = vrot.slane %v120_v4, 4 }
 0x16c   :  { %v122_v7 = vadd.f32 %v121_v6, %v120_v4 }
 0x16e   :  { %v123_v8 = vrot.slane %v122_v7, 2 }
 0x170   :  { %v124_v10 = vadd.f32 %v123_v8, %v122_v7 }
 0x172   :  { %v125_v12 = vrot.slane %v124_v10, 1 }
 0x174   :  { %v126_v13 = vadd.f32 %v125_v12, %v124_v10 }
 0x176   :  { %v127_v14 = vmul.f32 0.25, %v126_v13 }
 0x178   :  { %v129_v15 = vsel %vm128_vm2, %v81_v1, %v127_v14 }
 0x179   :  { %v130_v16 = vpack.c.bf16 %v129_v15, %v129_v15 }
 0x17b   :  { %295 = vmatmul.mubr.bf16.vlgmr.msra.gmra.mxu0 %v130_v16 }
 0x23b   :  { %v236_v18 = vpop.f32.mrf.mxu0 }
 0x23c   :  { %v237_v19 = vadd.f32 %v260_v17, %v236_v18 }
 0x23d   :  { %v296_v20 = vpop.f32.mrf.mxu0 }
 0x23e   :  { %242 = vst [vmem:[#allocation2] sm:$0x3] %v237_v19 }
 0x23f   :  { %v239_v21 = vpop.f32.mrf.mxu0 }
 0x240   :  { %337 = shalt.err (!%p334_p4)
}
 0x241   :  { %252 = dma.vmem_to_hbm [thread:$0]  %s250_s9, 32, %s454_s5, [#allocation3]   ;;  %v297_v22 = vpop.f32.mrf.mxu0 }
 0x242   :  { %346 = dma.done.wait [#allocation3], 32  }
 0x243   :  { %347 = vsyncadd [#allocation3], 4294967264 }
 0x244   :  { %256 = vsyncpa [#allocation3], 1 }

// kernel: poolformer_forward.16
= control target key start
LH: loop header
LB: loop body
LE: loop exit
PB: predicated region body
PF: predicated region fallthrough
CT: control target
= control target key end

     0   :  { %s1487_s29 = smov 0   ;;  %s1489_s30 = smov 0   ;;  %s1644_s0 = inlined_call_operand.vmem [shape: f32[2,4,128], index: 0, kind: input, shape index: {}]   ;;  %s1645_s1 = inlined_call_operand.vmem [shape: f32[4,1], index: 1, kind: input, shape index: {}]   ;;  %s1646_s2 = inlined_call_operand.vmem [shape: f32[4,1], index: 2, kind: input, shape index: {}]   ;;  %s1647_s3 = inlined_call_operand.vmem [shape: f32[4,1], index: 3, kind: input, shape index: {}]   ;;  %s1648_s4 = inlined_call_operand.vmem [shape: f32[1,1,128], index: 4, kind: input, shape index: {}, may-alias: {4,7}]   ;;  %s1649_s5 = inlined_call_operand.vmem [shape: f32[1,1,128], index: 5, kind: input, shape index: {}, may-alias: {5,8,11,13}]   ;;  %s1650_s6 = inlined_call_operand.vmem [shape: f32[1,1,128], index: 6, kind: input, shape index: {}, may-alias: {6,9}]   ;;  %s1651_s7 = inlined_call_operand.vmem [shape: f32[1,1,128], index: 7, kind: input, shape index: {}, may-alias: {4,7}]   ;;  %s1652_s8 = inlined_call_operand.vmem [shape: f32[1,1,128], index: 8, kind: input, shape index: {}, may-alias: {5,8,11,13}]   ;;  %s1653_s9 = inlined_call_operand.vmem [shape: f32[1,1,128], index: 9, kind: input, shape index: {}, may-alias: {6,9}]   ;;  %s1654_s10 = inlined_call_operand.vmem [shape: bf16[1,128,128], index: 10, kind: input, shape index: {}]   ;;  %s1655_s11 = inlined_call_operand.vmem [shape: f32[1,1,128], index: 11, kind: input, shape index: {}, may-alias: {5,8,11,13}]   ;;  %s1656_s12 = inlined_call_operand.vmem [shape: bf16[1,128,128], index: 12, kind: input, shape index: {}]   ;;  %s1657_s13 = inlined_call_operand.vmem [shape: f32[1,1,128], index: 13, kind: input, shape index: {}, may-alias: {5,8,11,13}]   ;;  %s1658_s14 = inlined_call_operand.vmem [shape: f32[2,4,128], index: 14, kind: output, shape index: {}]  }
   0x1   :  { %s1491_s15 = smov 0  }
   0x2 LB: > { %s36_s16 = sadd.s32 1, %s1402_s30  ;;  %p1233_p0 = scmp.ge.s32.totalorder %s1406_s15, 1  ;;  %s1406_s15 = sphi %s1491_s15, %s24_s15   ;;  %s1402_s30 = sphi %s1489_s30, %s1660_s30   ;;  %s1398_s29 = sphi %s1487_s29, %s1659_s29  }
   0x3   : > { %p38_p1 = scmp.ge.s32.totalorder %s36_s16, 2  ;;  %p507_p2 = scmp.lt.s32.totalorder %s1406_s15, 3 }
   0x5   : > { %s1662_s16 = smov (%p38_p1, %s36_s16), 0  ;;  %p508_p3 = pnand %p1233_p0, %p507_p2 }
   0x6   : > { %p585_p4 = scmp.lt.s32.totalorder (!%p508_p3), %s1398_s29, 1  ;;  %s1409_s24 = smov (!%p508_p3), 0.0  }
   0x7   : > { %511 = sbr.rel (%p508_p3) target bundleno = 1045 (0x415), region = 76 }
   0xc   : > { %s1664_s29 = smov (!%p585_p4, %s1398_s29), 1  ;;  %vm635_vm0 = vcmask 1043456   ;;  %v696_v5 = vld [vmem:[%s1646_s2] sm:$0xf]  ;;  %v1408_v6 = vmov 0   ;;  %vm689_vm1 = vcmask 1041408  }
   0xd   : > { %s1234_s17 = sshll.u32 %s1664_s29, 2  ;;  %1360 = vset.pattern.permute.xlu1 %v1408_v6  ;;  %1361 = vset.pattern.permute.xlu0 %v1408_v6  ;;  %v721_v7 = vld [vmem:[%s1645_s1] sm:$0xf]  ;;  %vm700_vm2 = vcmask 1040384   ;;  %vm712_vm3 = vcmask 1042432   ;;  %v1362_v58 = vld [vmem:[%s1654_s10 + $0x38] sm:$0xff]  }
   0xe   : > { %s588_s20 = scalar_lea.vmem %s1644_s0, %s1234_s17  ;;  %s1511_s23 = scalar_lea.vmem %s1658_s14, %s1234_s17  ;;  %704 = vperm.xlu1 %1360, %v696_v5   ;;  %v709_v8 = vld [vmem:[%s1647_s3] sm:$0xf]  ;;  %v1410_v59 = vmov 0.0   ;;  %v1363_v60 = vld [vmem:[%s1654_s10 + $0x30] sm:$0xff]   ;;  %v1364_v61 = vld [vmem:[%s1654_s10 + $0x28] sm:$0xff]   ;;  %vm1411_vm4 = vmmov 0  }
   0xf   : > { %v632_v0 = vld [vmem:[%s588_s20] sm:$0xf]  ;;  %1280 = vmatprep.subr.bf16.mxu0 %v1410_v59  ;;  %1300 = vmatprep.subr.bf16.mxu1 %v1410_v59  ;;  %v1366_v63 = vld [vmem:[%s1654_s10 + $0x18] sm:$0xff]  }
  0x10   : > { %633 = vst [vmem:[%s1511_s23] sm:$0xf] %v632_v0  ;;  %v1236_v28 = vld [vmem:[%s1648_s4] ss:$0 sm:$0xff]  ;;  %1281 = vmatpush3.bf16.msra.mxu0 %v1362_v58  ;;  %v1367_v0 = vld [vmem:[%s1654_s10 + $0x10] sm:$0xff]   ;;  %1296 = vmatprep.mubr.msk.bf16.mxu0 %vm1411_vm4, %v1410_v59 }
  0x11   : > { %v1237_v30 = vld [vmem:[%s1649_s5] ss:$0 sm:$0xff]  ;;  %1282 = vmatprep.subr.bf16.mxu0 %v1410_v59  ;;  %1316 = vmatprep.mubr.msk.bf16.mxu1 %vm1411_vm4, %v1410_v59 }
  0x12   : > { %716 = vperm.xlu1 %1360, %v709_v8   ;;  %v1238_v51 = vld [vmem:[%s1650_s6] ss:$0 sm:$0xff] }
  0x13   : > { %v1365_v62 = vld [vmem:[%s1654_s10 + $0x20] sm:$0xff]  }
  0x14   : > { %1283 = vmatpush3.bf16.msra.mxu0 %v1363_v60 }
  0x15   : > { %1284 = vmatprep.subr.bf16.mxu0 %v1410_v59 }
  0x17   : > { %v1515_v1 = vld [vmem:[%s1511_s23] sm:$0xf] }
  0x18   : > { %v636_v2 = vsel %vm635_vm0, %v1515_v1, 0.0  ;;  %v647_v3 = vmul.f32 %v1515_v1, %v1515_v1  ;;  %1285 = vmatpush3.bf16.msra.mxu0 %v1364_v61 }
  0x19   : > { %637 = vadd.xlane.f32.xlu0 %v636_v2  ;;  %1286 = vmatprep.subr.bf16.mxu0 %v1410_v59 }
  0x1a   : > { %v648_v4 = vsel %vm635_vm0, %v647_v3, 0.0 }
  0x1c   : > { %1287 = vmatpush3.bf16.msra.mxu0 %v1365_v62 }
  0x1d   : > { %649 = vadd.xlane.f32.xlu0 %v648_v4  ;;  %1288 = vmatprep.subr.bf16.mxu0 %v1410_v59 }
  0x20   : > { %1289 = vmatpush3.bf16.msra.mxu0 %v1366_v63 }
  0x21   : > { %1290 = vmatprep.subr.bf16.mxu0 %v1410_v59 }
  0x24   : > { %1291 = vmatpush3.bf16.msra.mxu0 %v1367_v0 }
  0x25   : > { %1292 = vmatprep.subr.bf16.mxu0 %v1410_v59 }
  0x33   : > { %724 = vperm.xlu0 %1361, %v721_v7  }
  0x89   : > { %v705_v38 = vpop.permute.xlu1 %704 }
  0x8d   : > { %v717_v45 = vpop.permute.xlu1 %716 }
  0xa2   : > { %v638_v9 = vpop.xlane.xlu0 %637 }
  0xa3   : > { %v639_v10 = vrot.slane %v638_v9, 4 }
  0xa5   : > { %v640_v11 = vadd.f32 %v639_v10, %v638_v9 }
  0xa6   : > { %v650_v12 = vpop.xlane.xlu0 %649 }
  0xa7   : > { %v641_v13 = vrot.slane %v640_v11, 2  ;;  %v651_v14 = vrot.slane %v650_v12, 4 }
  0xa9   : > { %v652_v15 = vadd.f32 %v651_v14, %v650_v12  ;;  %v642_v16 = vadd.f32 %v641_v13, %v640_v11  ;;  %v1368_v13 = vld [vmem:[%s1654_s10 + $0x8] sm:$0xff]  }
  0xaa   : > { %1293 = vmatpush3.bf16.msra.mxu0 %v1368_v13 }
  0xab   : > { %v653_v17 = vrot.slane %v652_v15, 2  ;;  %v643_v18 = vrot.slane %v642_v16, 1  ;;  %1294 = vmatprep.subr.bf16.mxu0 %v1410_v59 }
  0xad   : > { %v644_v19 = vadd.f32 %v643_v18, %v642_v16  ;;  %v654_v20 = vadd.f32 %v653_v17, %v652_v15  ;;  %v1369_v15 = vld [vmem:[%s1654_s10] sm:$0xff]  }
  0xae   : > { %v725_v48 = vpop.permute.xlu0 %724  ;;  %1295 = vmatpush3.bf16.msra.mxu0 %v1369_v15 }
  0xaf   : > { %1320 = vpush %v644_v19  ;;  %v655_v21 = vrot.slane %v654_v20, 1 }
  0xb1   : > { %v656_v22 = vadd.f32 %v655_v21, %v654_v20 }
  0xb3   : > { %1322 = vpush %v656_v22  ;;  %v1239_v22 = vld [vmem:[%s1651_s7] ss:$0 sm:$0xff] }
  0xe0   : > { %s1321_s17 = spop %1320 }
  0xe1   : > { %s646_s18 = smul.f32 0.00390625, %s1321_s17 }
  0xe3   : > { %s659_s19 = smul.f32 %s646_s18, %s646_s18  ;;  %v662_v25 = vstv %s646_s18 }
  0xe4   : > { %s1323_s20 = spop %1322  ;;  %v663_v26 = vsub.f32 %v1515_v1, %v662_v25 }
  0xe5   : > { %s658_s21 = smul.f32 0.00390625, %s1323_s20 }
  0xe7   : > { %s660_s22 = ssub.f32 %s658_s21, %s659_s19 }
  0xe9   : > { %s661_s25 = smax.f32 %s1409_s24, %s660_s22 }
  0xea   : > { %s664_s26 = sadd.f32 1e-05, %s661_s25 }
  0xec   : > { %v665_v23 = vstv %s664_s26 }
  0xed   : > { %1378 = vrsqrt.f32 %v665_v23 }
  0xfa   : > { %v1379_v24 = vpop.eup %1378 }
  0xfb   : > { %1324 = vpush %v1379_v24  ;;  %v1240_v24 = vld [vmem:[%s1652_s8] ss:$0 sm:$0xff] }
 0x12c   : > { %s1325_s27 = spop %1324 }
 0x12d   : > { %v668_v27 = vstv %s1325_s27 }
 0x12e   : > { %v669_v29 = vmul.f32 %v668_v27, %v663_v26 }
 0x130   : > { %v677_v31 = vmul.f32 %v1236_v28, %v669_v29  ;;  %v1370_v28 = vld [vmem:[%s1656_s12 + $0x38] sm:$0xff]   ;;  %v1371_v29 = vld [vmem:[%s1656_s12 + $0x30] sm:$0xff]  }
 0x131   : > { %1301 = vmatpush3.bf16.msra.mxu1 %v1370_v28 }
 0x132   : > { %v685_v32 = vadd.f32 %v1237_v30, %v677_v31  ;;  %1302 = vmatprep.subr.bf16.mxu1 %v1410_v59  ;;  %v1372_v30 = vld [vmem:[%s1656_s12 + $0x28] sm:$0xff]   ;;  %v1373_v31 = vld [vmem:[%s1656_s12 + $0x20] sm:$0xff]  }
 0x134   : > { %v687_v33 = vrot.slane %v685_v32, 6  ;;  %v692_v34 = vrot.slane %v685_v32, 2 }
 0x135   : > { %1303 = vmatpush3.bf16.msra.mxu1 %v1371_v29 }
 0x136   : > { %v690_v35 = vsel %vm689_vm1, 0.0, %v687_v33  ;;  %v694_v37 = vsel %vm689_vm1, %v692_v34, 0.0  ;;  %1304 = vmatprep.subr.bf16.mxu1 %v1410_v59  ;;  %v1375_v33 = vld [vmem:[%s1656_s12 + $0x10] sm:$0xff]   ;;  %v1376_v34 = vld [vmem:[%s1656_s12 + $0x8] sm:$0xff]  }
 0x137   : > { %v691_v36 = vadd.f32 %v690_v35, %v685_v32  ;;  %v1377_v35 = vld [vmem:[%s1656_s12] sm:$0xff]  }
 0x139   : > { %v695_v39 = vadd.f32 %v694_v37, %v691_v36  ;;  %1305 = vmatpush3.bf16.msra.mxu1 %v1372_v30  ;;  %v1241_v36 = vld [vmem:[%s1655_s11] ss:$0 sm:$0xff] }
 0x13a   : > { %1306 = vmatprep.subr.bf16.mxu1 %v1410_v59 }
 0x13b   : > { %v698_v40 = vrot.slane %v695_v39, 7  ;;  %v710_v41 = vrot.slane %v695_v39, 1 }
 0x13d   : > { %v701_v42 = vsel %vm700_vm2, 0.0, %v698_v40  ;;  %v713_v43 = vsel %vm712_vm3, %v710_v41, 0.0  ;;  %1307 = vmatpush3.bf16.msra.mxu1 %v1373_v31 }
 0x13e   : > { %v707_v44 = vmul.f32 %v705_v38, %v701_v42  ;;  %v719_v47 = vmul.f32 %v717_v45, %v713_v43  ;;  %1308 = vmatprep.subr.bf16.mxu1 %v1410_v59 }
 0x140   : > { %v708_v46 = vadd.f32 %v707_v44, %v695_v39 }
 0x142   : > { %v720_v49 = vadd.f32 %v719_v47, %v708_v46 }
 0x144   : > { %v727_v50 = vmul.f32 %v725_v48, %v720_v49 }
 0x146   : > { %v728_v52 = vsub.f32 %v727_v50, %v685_v32  ;;  %v1374_v32 = vld [vmem:[%s1656_s12 + $0x18] sm:$0xff]  }
 0x147   : > { %1309 = vmatpush3.bf16.msra.mxu1 %v1374_v32 }
 0x148   : > { %v736_v53 = vmul.f32 %v1238_v51, %v728_v52  ;;  %1310 = vmatprep.subr.bf16.mxu1 %v1410_v59  ;;  %v1250_v52 = vld [vmem:[%s1657_s13] ss:$0 sm:$0xff] }
 0x14a   : > { %v1543_v54 = vadd.f32 %v736_v53, %v1515_v1 }
 0x14b   : > { %1311 = vmatpush3.bf16.msra.mxu1 %v1375_v33 }
 0x14c   : > { %v738_v55 = vsel %vm635_vm0, %v1543_v54, 0.0  ;;  %v749_v56 = vmul.f32 %v1543_v54, %v1543_v54  ;;  %1312 = vmatprep.subr.bf16.mxu1 %v1410_v59 }
 0x14d   : > { %739 = vadd.xlane.f32.xlu1 %v738_v55  ;;  %v1259_v55 = vld [vmem:[%s1653_s9] ss:$0 sm:$0xff] }
 0x14e   : > { %v750_v57 = vsel %vm635_vm0, %v749_v56, 0.0 }
 0x14f   : > { %1313 = vmatpush3.bf16.msra.mxu1 %v1376_v34 }
 0x150   : > { %1314 = vmatprep.subr.bf16.mxu1 %v1410_v59 }
 0x151   : > { %751 = vadd.xlane.f32.xlu1 %v750_v57 }
 0x153   : > { %1315 = vmatpush3.bf16.msra.mxu1 %v1377_v35 }
 0x1d6   : > { %v740_v1 = vpop.xlane.xlu1 %739 }
 0x1d7   : > { %v741_v2 = vrot.slane %v740_v1, 4 }
 0x1d9   : > { %v742_v3 = vadd.f32 %v741_v2, %v740_v1 }
 0x1da   : > { %v752_v4 = vpop.xlane.xlu1 %751 }
 0x1db   : > { %v743_v5 = vrot.slane %v742_v3, 2  ;;  %v753_v6 = vrot.slane %v752_v4, 4 }
 0x1dd   : > { %v754_v7 = vadd.f32 %v753_v6, %v752_v4  ;;  %v744_v8 = vadd.f32 %v743_v5, %v742_v3 }
 0x1df   : > { %v755_v9 = vrot.slane %v754_v7, 2  ;;  %v745_v10 = vrot.slane %v744_v8, 1 }
 0x1e1   : > { %v756_v11 = vadd.f32 %v755_v9, %v754_v7  ;;  %v746_v12 = vadd.f32 %v745_v10, %v744_v8 }
 0x1e3   : > { %1326 = vpush %v746_v12  ;;  %v757_v14 = vrot.slane %v756_v11, 1 }
 0x1e5   : > { %v758_v16 = vadd.f32 %v757_v14, %v756_v11 }
 0x1e7   : > { %1328 = vpush %v758_v16 }
 0x214   : > { %s1327_s28 = spop %1326 }
 0x215   : > { %s748_s29 = smul.f32 0.00390625, %s1327_s28 }
 0x217   : > { %s761_s17 = smul.f32 %s748_s29, %s748_s29  ;;  %v764_v19 = vstv %s748_s29 }
 0x218   : > { %s1329_s19 = spop %1328  ;;  %v765_v20 = vsub.f32 %v1543_v54, %v764_v19 }
 0x219   : > { %s760_s18 = smul.f32 0.00390625, %s1329_s19 }
 0x21b   : > { %s762_s20 = ssub.f32 %s760_s18, %s761_s17 }
 0x21d   : > { %s763_s21 = smax.f32 %s1409_s24, %s762_s20 }
 0x21e   : > { %s766_s22 = sadd.f32 1e-05, %s763_s21 }
 0x220   : > { %v767_v17 = vstv %s766_s22 }
 0x221   : > { %1380 = vrsqrt.f32 %v767_v17 }
 0x22e   : > { %v1381_v18 = vpop.eup %1380 }
 0x22f   : > { %1330 = vpush %v1381_v18 }
 0x260   : > { %s1331_s25 = spop %1330 }
 0x261   : > { %v770_v21 = vstv %s1331_s25 }
 0x262   : > { %v771_v23 = vmul.f32 %v770_v21, %v765_v20 }
 0x264   : > { %v779_v25 = vmul.f32 %v1239_v22, %v771_v23 }
 0x266   : > { %v787_v26 = vadd.f32 %v1240_v24, %v779_v25 }
 0x268   : > { %v788_v27 = vpack.c.bf16 %v787_v26, %v787_v26 }
 0x26a   : > { %1297 = vmatmul.mubr.bf16.vlgmr.msra.gmra.mxu0 %v788_v27 }
 0x32a   : > { %v894_v37 = vpop.f32.mrf.mxu0 }
 0x32b   : > { %v895_v38 = vadd.f32 %v1241_v36, %v894_v37 }
 0x32c   : > { %v1298_v39 = vpop.f32.mrf.mxu0 }
 0x32d   : > { %v900_v40 = vmul.f32 %v895_v38, %v895_v38 }
 0x32e   : > { %v897_v41 = vpop.f32.mrf.mxu0 }
 0x32f   : > { %v901_v42 = vmul.f32 %v900_v40, %v895_v38 }
 0x330   : > { %v1299_v43 = vpop.f32.mrf.mxu0 }
 0x331   : > { %v902_v44 = vmul.f32 0.044715, %v901_v42 }
 0x333   : > { %v903_v45 = vadd.f32 %v902_v44, %v895_v38 }
 0x335   : > { %v904_v46 = vmul.f32 0.7978846, %v903_v45 }
 0x337   : > { %1382 = vtanh.f32 %v904_v46 }
 0x344   : > { %v1383_v47 = vpop.eup %1382 }
 0x345   : > { %v906_v48 = vadd.f32 1.0, %v1383_v47 }
 0x347   : > { %v907_v49 = vmul.f32 0.5, %v906_v48 }
 0x349   : > { %v908_v50 = vmul.f32 %v907_v49, %v895_v38 }
 0x34b   : > { %v909_v51 = vpack.c.bf16 %v908_v50, %v908_v50 }
 0x34d   : > { %1317 = vmatmul.mubr.bf16.vlgmr.msra.gmra.mxu1 %v909_v51 }
 0x40d   : > { %v1015_v53 = vpop.f32.mrf.mxu1 }
 0x40e   : > { %v1016_v56 = vadd.f32 %v1250_v52, %v1015_v53 }
 0x40f   : > { %v1318_v57 = vpop.f32.mrf.mxu1 }
 0x410   : > { %v1028_v58 = vmul.f32 %v1259_v55, %v1016_v56 }
 0x411   : > { %v1018_v59 = vpop.f32.mrf.mxu1 }
 0x412   : > { %v1029_v60 = vadd.f32 %v1028_v58, %v1543_v54 }
 0x413   : > { %v1319_v61 = vpop.f32.mrf.mxu1 }
 0x414   : > { %1030 = vst [vmem:[%s1511_s23] sm:$0xf] %v1029_v60 }
 0x415 PF: > { %s24_s15 = sadd.s32 1, %s1406_s15   ;;  %s1659_s29 = smov %s1402_s30 }
 0x416   : > { %p21_p5 = scmp.ge.s32.totalorder %s24_s15, 4   ;;  %s1660_s30 = smov %s1662_s16 }
 0x418   :  { %23 = sbr.rel (!%p21_p5) target bundleno = 2 (0x2), region = 140 }

</bundles_post_ra>
